<compile_context>
chip_gen: v6e
topology: v6e:2x2x1
jax: 0.10.0
libtpu: 0.0.40
codegen_flags: <defaults>
</compile_context>

<pallas_src>
import functools
import math

import jax
import jax.numpy as jnp
from jax.experimental import pallas as pl
from jax.experimental.pallas import tpu as pltpu


def _layernorm(h, w, b, eps=1e-5):
    mu = jnp.mean(h, axis=-1, keepdims=True)
    var = jnp.mean((h - mu) ** 2, axis=-1, keepdims=True)
    return (h - mu) * jax.lax.rsqrt(var + eps) * w + b


def block_kernel(x_ref,
                 ln1w_ref, ln1b_ref,
                 wqkv_ref, bqkv_ref,
                 wpr_ref, bpr_ref,
                 ln2w_ref, ln2b_ref,
                 wfc_ref, bfc_ref,
                 wmp_ref, bmp_ref,
                 out_ref,
                 att_ref,
                 *, n_head, seq_len, q_block, matmul_dtype):
    x = x_ref[...].astype(jnp.float32)             # (Mblk, C), elementwise f32
    m_rows, C = x.shape
    T = seq_len
    n_seq = m_rows // T
    hd = C // n_head

    # ---------------- ln_1 + QKV projection (batch folded into M) -----------
    h = _layernorm(x, ln1w_ref[0], ln1b_ref[0])
    # 1/sqrt(hd) is already folded into the Q columns of w_qkv / b_qkv.
    qkv = jnp.dot(h.astype(matmul_dtype), wqkv_ref[...],
                  preferred_element_type=jnp.float32) + bqkv_ref[0]  # (Mblk,3C)
    qkv = qkv.astype(matmul_dtype)      # cast once: head split moves 16-bit data

    # (Mblk, 3C) -> (n_seq*H, T, hd) per tensor via slices + stack only
    # (no rank>2 transposes — keeps Mosaic lowering on well-trodden paths).
    def split_heads(col0):
        return jnp.stack(
            [qkv[b * T:(b + 1) * T, col0 + h_ * hd: col0 + (h_ + 1) * hd]
             for b in range(n_seq) for h_ in range(n_head)], axis=0)

    q_all = split_heads(0 * C)          # (n_seq*H, T, hd) bf16
    k_all = split_heads(1 * C)
    v_all = split_heads(2 * C)

    # -------- causal attention: q-row tiles with causal KV truncation -------
    # For a q tile starting at q0 only KV rows [0, q0+tq) can be attended, so
    # fully-masked tiles are never computed.  The single jnp.where covers the
    # whole (tq, kv_len) tile for simplicity; only the trailing tq columns
    # actually need it (cheap VPU select vs. EUP exp).
    n_qt = T // q_block
    for b in range(n_seq):
        h0 = b * n_head
        k_b = k_all[h0:h0 + n_head]
        v_b = v_all[h0:h0 + n_head]
        for qt in range(n_qt):
            q0 = qt * q_block
            kv_len = q0 + q_block                               # causal bound
            q_t = q_all[h0:h0 + n_head, q0:q0 + q_block, :]     # (H, tq, hd)
            k_t = k_b[:, :kv_len, :]
            v_t = v_b[:, :kv_len, :]
            s = jnp.einsum("htd,hsd->hts", q_t, k_t,
                           preferred_element_type=jnp.float32)  # (H, tq, kv)
            row = q0 + jax.lax.broadcasted_iota(jnp.int32, (q_block, kv_len), 0)
            col = jax.lax.broadcasted_iota(jnp.int32, (q_block, kv_len), 1)
            s = jnp.where((row >= col)[None], s, -1e30)
            m = jnp.max(s, axis=-1, keepdims=True)
            p = jnp.exp(s - m)                                   # f32 (EUP)
            l = jnp.sum(p, axis=-1, keepdims=True)               # f32
            o = jnp.einsum("hts,hsd->htd", p.astype(matmul_dtype), v_t,
                           preferred_element_type=jnp.float32)   # (H, tq, hd)
            # Post-AV normalisation: O(H*tq*hd) instead of O(H*tq*kv).
            o = o * pl.reciprocal(l, approx=True)
            # heads -> lanes; write row block into the lane-dense VMEM scratch.
            att_ref[pl.ds(b * T + q0, q_block), :] = jnp.concatenate(
                [o[h_] for h_ in range(n_head)], axis=-1).astype(matmul_dtype)

    y = jnp.dot(att_ref[...], wpr_ref[...],
                preferred_element_type=jnp.float32) + bpr_ref[0]
    x1 = x + y                                      # first residual

    # ---------------- ln_2 + MLP (GELU approximate='tanh') ------------------
    h2 = _layernorm(x1, ln2w_ref[0], ln2b_ref[0])
    f = jnp.dot(h2.astype(matmul_dtype), wfc_ref[...],
                preferred_element_type=jnp.float32) + bfc_ref[0]
    g = 0.5 * f * (1.0 + jnp.tanh(0.7978845608028654 *
                                  (f + 0.044715 * f * f * f)))
    m_out = jnp.dot(g.astype(matmul_dtype), wmp_ref[...],
                    preferred_element_type=jnp.float32) + bmp_ref[0]

    out_ref[...] = (x1 + m_out).astype(out_ref.dtype)


def _resident_spec(p):
    """Full-array BlockSpec for grid-invariant (resident) weights/biases."""
    nd = p.ndim
    idx = lambda i, _nd=nd: (0,) * _nd
    try:
        # Constant index map -> single-buffer to halve the weights' VMEM use.
        return pl.BlockSpec(p.shape, idx, pipeline_mode=pl.Buffered(1))
    except (TypeError, AttributeError):   # older jax without pipeline_mode
        return pl.BlockSpec(p.shape, idx)


def _vmem_limit_bytes():
    try:
        cap = int(pltpu.get_tpu_info().vmem_capacity_bytes)
    except Exception:
        cap = 64 * 1024 * 1024
    # ~3/4 of physical VMEM (48 MiB on v7x, 96 MiB on v5e/v6e), capped.
    return min(3 * cap // 4, 100 * 1024 * 1024)


def gpt2_block(x, params, n_head, *, block_rows=None, q_block=None,
               matmul_dtype=jnp.bfloat16):
    B, T, C = x.shape
    assert C % n_head == 0 and C % 128 == 0 and T % 8 == 0
    hd = C // n_head

    # Fold batch into the matmul M dimension (target ~256 rows per grid step).
    if block_rows is None:
        block_rows = max(1, min(B, 256 // T if T < 256 else 1))
        while B % block_rows:
            block_rows -= 1
    assert B % block_rows == 0
    m_block = block_rows * T

    if q_block is None:
        q_block = min(T, 128)
    assert T % q_block == 0 and q_block % 8 == 0

    # Fold the 1/sqrt(hd) attention scale into the Q columns (host-side, free).
    qscale = 1.0 / math.sqrt(hd)
    w_qkv = params["w_qkv"].astype(jnp.float32).at[:, :C].multiply(qscale)
    b_qkv = params["b_qkv"].astype(jnp.float32).at[:, :C].multiply(qscale)

    # Matmul weights in bf16 (f32 accumulation in-kernel); LN params/biases f32.
    param_list = [
        params["ln1_w"], params["ln1_b"],
        w_qkv.astype(matmul_dtype), b_qkv,
        params["w_proj"].astype(matmul_dtype), params["b_proj"],
        params["ln2_w"], params["ln2_b"],
        params["w_fc"].astype(matmul_dtype), params["b_fc"],
        params["w_mproj"].astype(matmul_dtype), params["b_mproj"],
    ]

    kernel = functools.partial(block_kernel, n_head=n_head, seq_len=T,
                               q_block=q_block, matmul_dtype=matmul_dtype)
    x2 = x.reshape(B * T, C)            # free, done in XLA outside the kernel
    out = pl.pallas_call(
        kernel,
        out_shape=jax.ShapeDtypeStruct((B * T, C), x.dtype),
        grid=(B // block_rows,),
        in_specs=[pl.BlockSpec((m_block, C), lambda i: (i, 0))]
                 + [_resident_spec(p) for p in param_list],
        out_specs=pl.BlockSpec((m_block, C), lambda i: (i, 0)),
        scratch_shapes=[pltpu.VMEM((m_block, C), matmul_dtype)],
        compiler_params=pltpu.CompilerParams(
            dimension_semantics=("parallel",),
            vmem_limit_bytes=_vmem_limit_bytes(),
        ),
    )(x2, *param_list)
    return out.reshape(B, T, C)


# ---------------- pure-JAX reference (for correctness check) ----------------
def reference_block(x, p, n_head):
    def ln(h, w, b):
        mu = jnp.mean(h, -1, keepdims=True)
        var = jnp.mean((h - mu) ** 2, -1, keepdims=True)
        return (h - mu) / jnp.sqrt(var + 1e-5) * w + b

    B, T, C = x.shape
    hd = C // n_head
    h = ln(x, p["ln1_w"][0], p["ln1_b"][0])
    qkv = h @ p["w_qkv"] + p["b_qkv"][0]
    q, k, v = jnp.split(qkv, 3, axis=-1)
    q = q.reshape(B, T, n_head, hd).transpose(0, 2, 1, 3)
    k = k.reshape(B, T, n_head, hd).transpose(0, 2, 1, 3)
    v = v.reshape(B, T, n_head, hd).transpose(0, 2, 1, 3)
    s = jnp.einsum("bhtd,bhsd->bhts", q, k) / math.sqrt(hd)
    mask = jnp.tril(jnp.ones((T, T), bool))
    s = jnp.where(mask, s, -1e30)
    a = jax.nn.softmax(s, axis=-1)
    y = jnp.einsum("bhts,bhsd->bhtd", a, v).transpose(0, 2, 1, 3).reshape(B, T, C)
    y = y @ p["w_proj"] + p["b_proj"][0]
    x1 = x + y
    h2 = ln(x1, p["ln2_w"][0], p["ln2_b"][0])
    f = h2 @ p["w_fc"] + p["b_fc"][0]
    g = 0.5 * f * (1.0 + jnp.tanh(0.7978845608028654 * (f + 0.044715 * f ** 3)))
    m = g @ p["w_mproj"] + p["b_mproj"][0]
    return x1 + m


if __name__ == "__main__":
    # Small, lane/sublane-friendly shapes.  block_rows=4 folds 4 sequences per
    # grid step (matmul M = 128) and q_block=8 exercises the causal q-tiling.
    B, T, C, n_head = 8, 32, 128, 4

    key = jax.random.PRNGKey(0)
    keys = jax.random.split(key, 14)
    std = 0.02
    params = {
        "ln1_w": 1.0 + 0.1 * jax.random.normal(keys[0], (1, C), jnp.float32),
        "ln1_b": 0.1 * jax.random.normal(keys[1], (1, C), jnp.float32),
        "w_qkv": std * jax.random.normal(keys[2], (C, 3 * C), jnp.float32),
        "b_qkv": std * jax.random.normal(keys[3], (1, 3 * C), jnp.float32),
        "w_proj": std * jax.random.normal(keys[4], (C, C), jnp.float32),
        "b_proj": std * jax.random.normal(keys[5], (1, C), jnp.float32),
        "ln2_w": 1.0 + 0.1 * jax.random.normal(keys[6], (1, C), jnp.float32),
        "ln2_b": 0.1 * jax.random.normal(keys[7], (1, C), jnp.float32),
        "w_fc": std * jax.random.normal(keys[8], (C, 4 * C), jnp.float32),
        "b_fc": std * jax.random.normal(keys[9], (1, 4 * C), jnp.float32),
        "w_mproj": std * jax.random.normal(keys[10], (4 * C, C), jnp.float32),
        "b_mproj": std * jax.random.normal(keys[11], (1, C), jnp.float32),
    }
    x = jax.random.normal(keys[12], (B, T, C), jnp.float32)

    out = gpt2_block(x, params, n_head, block_rows=4, q_block=8)
    out = jax.block_until_ready(out)

    ref = reference_block(x, params, n_head)
    assert out.shape == (B, T, C)
    # bf16 matmul operands + approx-reciprocal softmax -> loose tolerance
    # against the pure-f32 reference.
    assert jnp.allclose(out, ref, atol=2e-2, rtol=2e-2), "mismatch vs reference"

    print("KERNEL_OK")
</pallas_src>

<mosaic_0001>
module attributes {stable_mosaic.version = 11 : i64} {
  func.func @block_kernel(%arg0: i32, %arg1: memref<128x128xf32, #tpu.memory_space<vmem>>, %arg2: memref<1x128xf32, #tpu.memory_space<vmem>>, %arg3: memref<1x128xf32, #tpu.memory_space<vmem>>, %arg4: memref<128x384xbf16, #tpu.memory_space<vmem>>, %arg5: memref<1x384xf32, #tpu.memory_space<vmem>>, %arg6: memref<128x128xbf16, #tpu.memory_space<vmem>>, %arg7: memref<1x128xf32, #tpu.memory_space<vmem>>, %arg8: memref<1x128xf32, #tpu.memory_space<vmem>>, %arg9: memref<1x128xf32, #tpu.memory_space<vmem>>, %arg10: memref<128x512xbf16, #tpu.memory_space<vmem>>, %arg11: memref<1x512xf32, #tpu.memory_space<vmem>>, %arg12: memref<512x128xbf16, #tpu.memory_space<vmem>>, %arg13: memref<1x128xf32, #tpu.memory_space<vmem>>, %arg14: memref<128x128xf32, #tpu.memory_space<vmem>>, %arg15: memref<128x128xbf16, #tpu.memory_space<vmem>>) attributes {dimension_semantics = [#tpu.dimension_semantics<parallel>], iteration_bounds = array<i64: 2>, scalar_prefetch = 0 : i64, scratch_operands = 1 : i64, tpu.core_type = #tpu.core_type<tc>, window_params = [{transform_indices = @transform_0, window_bounds = array<i64: 128, 128>}, {pipeline_mode = #tpu.pipeline_mode<synchronous>, transform_indices = @transform_1, window_bounds = array<i64: 1, 128>}, {pipeline_mode = #tpu.pipeline_mode<synchronous>, transform_indices = @transform_2, window_bounds = array<i64: 1, 128>}, {pipeline_mode = #tpu.pipeline_mode<synchronous>, transform_indices = @transform_3, window_bounds = array<i64: 128, 384>}, {pipeline_mode = #tpu.pipeline_mode<synchronous>, transform_indices = @transform_4, window_bounds = array<i64: 1, 384>}, {pipeline_mode = #tpu.pipeline_mode<synchronous>, transform_indices = @transform_5, window_bounds = array<i64: 128, 128>}, {pipeline_mode = #tpu.pipeline_mode<synchronous>, transform_indices = @transform_6, window_bounds = array<i64: 1, 128>}, {pipeline_mode = #tpu.pipeline_mode<synchronous>, transform_indices = @transform_7, window_bounds = array<i64: 1, 128>}, {pipeline_mode = #tpu.pipeline_mode<synchronous>, transform_indices = @transform_8, window_bounds = array<i64: 1, 128>}, {pipeline_mode = #tpu.pipeline_mode<synchronous>, transform_indices = @transform_9, window_bounds = array<i64: 128, 512>}, {pipeline_mode = #tpu.pipeline_mode<synchronous>, transform_indices = @transform_10, window_bounds = array<i64: 1, 512>}, {pipeline_mode = #tpu.pipeline_mode<synchronous>, transform_indices = @transform_11, window_bounds = array<i64: 512, 128>}, {pipeline_mode = #tpu.pipeline_mode<synchronous>, transform_indices = @transform_12, window_bounds = array<i64: 1, 128>}, {transform_indices = @transform_13, window_bounds = array<i64: 128, 128>}]} {
    %c0 = arith.constant 0 : index
    %c0_0 = arith.constant 0 : index
    %0 = vector.load %arg1[%c0, %c0_0] : memref<128x128xf32, #tpu.memory_space<vmem>>, vector<128x128xf32>
    %c0_1 = arith.constant 0 : index
    %c0_2 = arith.constant 0 : index
    %1 = vector.load %arg2[%c0_1, %c0_2] : memref<1x128xf32, #tpu.memory_space<vmem>>, vector<1x128xf32>
    %2 = vector.shape_cast %1 : vector<1x128xf32> to vector<128xf32>
    %c0_3 = arith.constant 0 : index
    %c0_4 = arith.constant 0 : index
    %3 = vector.load %arg3[%c0_3, %c0_4] : memref<1x128xf32, #tpu.memory_space<vmem>>, vector<1x128xf32>
    %4 = vector.shape_cast %3 : vector<1x128xf32> to vector<128xf32>
    %cst = arith.constant dense<0.000000e+00> : vector<128xf32>
    %5 = vector.multi_reduction <add>, %0, %cst [1] : vector<128x128xf32> to vector<128xf32>
    %6 = vector.shape_cast %5 : vector<128xf32> to vector<128x1xf32>
    %cst_5 = arith.constant 1.280000e+02 : f32
    %7 = vector.broadcast %cst_5 : f32 to vector<128x1xf32>
    %8 = arith.divf %6, %7 : vector<128x1xf32>
    %9 = vector.broadcast %8 : vector<128x1xf32> to vector<128x128xf32>
    %10 = arith.subf %0, %9 : vector<128x128xf32>
    %11 = arith.mulf %10, %10 : vector<128x128xf32>
    %cst_6 = arith.constant dense<0.000000e+00> : vector<128xf32>
    %12 = vector.multi_reduction <add>, %11, %cst_6 [1] : vector<128x128xf32> to vector<128xf32>
    %13 = vector.shape_cast %12 : vector<128xf32> to vector<128x1xf32>
    %cst_7 = arith.constant 1.280000e+02 : f32
    %14 = vector.broadcast %cst_7 : f32 to vector<128x1xf32>
    %15 = arith.divf %13, %14 : vector<128x1xf32>
    %16 = vector.broadcast %8 : vector<128x1xf32> to vector<128x128xf32>
    %17 = arith.subf %0, %16 : vector<128x128xf32>
    %cst_8 = arith.constant 9.99999974E-6 : f32
    %18 = vector.broadcast %cst_8 : f32 to vector<128x1xf32>
    %19 = arith.addf %15, %18 : vector<128x1xf32>
    %20 = math.rsqrt %19 : vector<128x1xf32>
    %21 = vector.broadcast %20 : vector<128x1xf32> to vector<128x128xf32>
    %22 = arith.mulf %17, %21 : vector<128x128xf32>
    %23 = vector.shape_cast %2 : vector<128xf32> to vector<1x128xf32>
    %24 = vector.broadcast %23 : vector<1x128xf32> to vector<128x128xf32>
    %25 = arith.mulf %22, %24 : vector<128x128xf32>
    %26 = vector.shape_cast %4 : vector<128xf32> to vector<1x128xf32>
    %27 = vector.broadcast %26 : vector<1x128xf32> to vector<128x128xf32>
    %28 = arith.addf %25, %27 : vector<128x128xf32>
    %29 = arith.truncf %28 : vector<128x128xf32> to vector<128x128xbf16>
    %c0_9 = arith.constant 0 : index
    %c0_10 = arith.constant 0 : index
    %30 = vector.load %arg4[%c0_9, %c0_10] : memref<128x384xbf16, #tpu.memory_space<vmem>>, vector<128x384xbf16>
    %cst_11 = arith.constant dense<0.000000e+00> : vector<128x384xf32>
    %31 = tpu.matmul %29, %30, %cst_11 {dimension_numbers = #tpu.dot_dimension_numbers<[1], [0], [0], [1], [0, 0, 1, 1], [], []>} : vector<128x128xbf16>, vector<128x384xbf16>, vector<128x384xf32> -> vector<128x384xf32>
    %c0_12 = arith.constant 0 : index
    %c0_13 = arith.constant 0 : index
    %32 = vector.load %arg5[%c0_12, %c0_13] : memref<1x384xf32, #tpu.memory_space<vmem>>, vector<1x384xf32>
    %33 = vector.shape_cast %32 : vector<1x384xf32> to vector<384xf32>
    %34 = vector.shape_cast %33 : vector<384xf32> to vector<1x384xf32>
    %35 = vector.broadcast %34 : vector<1x384xf32> to vector<128x384xf32>
    %36 = arith.addf %31, %35 : vector<128x384xf32>
    %37 = arith.truncf %36 : vector<128x384xf32> to vector<128x384xbf16>
    %38 = vector.extract_strided_slice %37 {offsets = [0, 0], sizes = [32, 32], strides = [1, 1]} : vector<128x384xbf16> to vector<32x32xbf16>
    %39 = vector.extract_strided_slice %37 {offsets = [0, 32], sizes = [32, 32], strides = [1, 1]} : vector<128x384xbf16> to vector<32x32xbf16>
    %40 = vector.extract_strided_slice %37 {offsets = [0, 64], sizes = [32, 32], strides = [1, 1]} : vector<128x384xbf16> to vector<32x32xbf16>
    %41 = vector.extract_strided_slice %37 {offsets = [0, 96], sizes = [32, 32], strides = [1, 1]} : vector<128x384xbf16> to vector<32x32xbf16>
    %42 = vector.extract_strided_slice %37 {offsets = [32, 0], sizes = [32, 32], strides = [1, 1]} : vector<128x384xbf16> to vector<32x32xbf16>
    %43 = vector.extract_strided_slice %37 {offsets = [32, 32], sizes = [32, 32], strides = [1, 1]} : vector<128x384xbf16> to vector<32x32xbf16>
    %44 = vector.extract_strided_slice %37 {offsets = [32, 64], sizes = [32, 32], strides = [1, 1]} : vector<128x384xbf16> to vector<32x32xbf16>
    %45 = vector.extract_strided_slice %37 {offsets = [32, 96], sizes = [32, 32], strides = [1, 1]} : vector<128x384xbf16> to vector<32x32xbf16>
    %46 = vector.extract_strided_slice %37 {offsets = [64, 0], sizes = [32, 32], strides = [1, 1]} : vector<128x384xbf16> to vector<32x32xbf16>
    %47 = vector.extract_strided_slice %37 {offsets = [64, 32], sizes = [32, 32], strides = [1, 1]} : vector<128x384xbf16> to vector<32x32xbf16>
    %48 = vector.extract_strided_slice %37 {offsets = [64, 64], sizes = [32, 32], strides = [1, 1]} : vector<128x384xbf16> to vector<32x32xbf16>
    %49 = vector.extract_strided_slice %37 {offsets = [64, 96], sizes = [32, 32], strides = [1, 1]} : vector<128x384xbf16> to vector<32x32xbf16>
    %50 = vector.extract_strided_slice %37 {offsets = [96, 0], sizes = [32, 32], strides = [1, 1]} : vector<128x384xbf16> to vector<32x32xbf16>
    %51 = vector.extract_strided_slice %37 {offsets = [96, 32], sizes = [32, 32], strides = [1, 1]} : vector<128x384xbf16> to vector<32x32xbf16>
    %52 = vector.extract_strided_slice %37 {offsets = [96, 64], sizes = [32, 32], strides = [1, 1]} : vector<128x384xbf16> to vector<32x32xbf16>
    %53 = vector.extract_strided_slice %37 {offsets = [96, 96], sizes = [32, 32], strides = [1, 1]} : vector<128x384xbf16> to vector<32x32xbf16>
    %54 = vector.shape_cast %38 : vector<32x32xbf16> to vector<1x32x32xbf16>
    %55 = vector.shape_cast %39 : vector<32x32xbf16> to vector<1x32x32xbf16>
    %56 = vector.shape_cast %40 : vector<32x32xbf16> to vector<1x32x32xbf16>
    %57 = vector.shape_cast %41 : vector<32x32xbf16> to vector<1x32x32xbf16>
    %58 = vector.shape_cast %42 : vector<32x32xbf16> to vector<1x32x32xbf16>
    %59 = vector.shape_cast %43 : vector<32x32xbf16> to vector<1x32x32xbf16>
    %60 = vector.shape_cast %44 : vector<32x32xbf16> to vector<1x32x32xbf16>
    %61 = vector.shape_cast %45 : vector<32x32xbf16> to vector<1x32x32xbf16>
    %62 = vector.shape_cast %46 : vector<32x32xbf16> to vector<1x32x32xbf16>
    %63 = vector.shape_cast %47 : vector<32x32xbf16> to vector<1x32x32xbf16>
    %64 = vector.shape_cast %48 : vector<32x32xbf16> to vector<1x32x32xbf16>
    %65 = vector.shape_cast %49 : vector<32x32xbf16> to vector<1x32x32xbf16>
    %66 = vector.shape_cast %50 : vector<32x32xbf16> to vector<1x32x32xbf16>
    %67 = vector.shape_cast %51 : vector<32x32xbf16> to vector<1x32x32xbf16>
    %68 = vector.shape_cast %52 : vector<32x32xbf16> to vector<1x32x32xbf16>
    %69 = vector.shape_cast %53 : vector<32x32xbf16> to vector<1x32x32xbf16>
    %70 = tpu.concatenate %54, %55, %56, %57, %58, %59, %60, %61, %62, %63, %64, %65, %66, %67, %68, %69 in 0 : vector<1x32x32xbf16>, vector<1x32x32xbf16>, vector<1x32x32xbf16>, vector<1x32x32xbf16>, vector<1x32x32xbf16>, vector<1x32x32xbf16>, vector<1x32x32xbf16>, vector<1x32x32xbf16>, vector<1x32x32xbf16>, vector<1x32x32xbf16>, vector<1x32x32xbf16>, vector<1x32x32xbf16>, vector<1x32x32xbf16>, vector<1x32x32xbf16>, vector<1x32x32xbf16>, vector<1x32x32xbf16> -> vector<16x32x32xbf16>
    %71 = vector.extract_strided_slice %37 {offsets = [0, 128], sizes = [32, 32], strides = [1, 1]} : vector<128x384xbf16> to vector<32x32xbf16>
    %72 = vector.extract_strided_slice %37 {offsets = [0, 160], sizes = [32, 32], strides = [1, 1]} : vector<128x384xbf16> to vector<32x32xbf16>
    %73 = vector.extract_strided_slice %37 {offsets = [0, 192], sizes = [32, 32], strides = [1, 1]} : vector<128x384xbf16> to vector<32x32xbf16>
    %74 = vector.extract_strided_slice %37 {offsets = [0, 224], sizes = [32, 32], strides = [1, 1]} : vector<128x384xbf16> to vector<32x32xbf16>
    %75 = vector.extract_strided_slice %37 {offsets = [32, 128], sizes = [32, 32], strides = [1, 1]} : vector<128x384xbf16> to vector<32x32xbf16>
    %76 = vector.extract_strided_slice %37 {offsets = [32, 160], sizes = [32, 32], strides = [1, 1]} : vector<128x384xbf16> to vector<32x32xbf16>
    %77 = vector.extract_strided_slice %37 {offsets = [32, 192], sizes = [32, 32], strides = [1, 1]} : vector<128x384xbf16> to vector<32x32xbf16>
    %78 = vector.extract_strided_slice %37 {offsets = [32, 224], sizes = [32, 32], strides = [1, 1]} : vector<128x384xbf16> to vector<32x32xbf16>
    %79 = vector.extract_strided_slice %37 {offsets = [64, 128], sizes = [32, 32], strides = [1, 1]} : vector<128x384xbf16> to vector<32x32xbf16>
    %80 = vector.extract_strided_slice %37 {offsets = [64, 160], sizes = [32, 32], strides = [1, 1]} : vector<128x384xbf16> to vector<32x32xbf16>
    %81 = vector.extract_strided_slice %37 {offsets = [64, 192], sizes = [32, 32], strides = [1, 1]} : vector<128x384xbf16> to vector<32x32xbf16>
    %82 = vector.extract_strided_slice %37 {offsets = [64, 224], sizes = [32, 32], strides = [1, 1]} : vector<128x384xbf16> to vector<32x32xbf16>
    %83 = vector.extract_strided_slice %37 {offsets = [96, 128], sizes = [32, 32], strides = [1, 1]} : vector<128x384xbf16> to vector<32x32xbf16>
    %84 = vector.extract_strided_slice %37 {offsets = [96, 160], sizes = [32, 32], strides = [1, 1]} : vector<128x384xbf16> to vector<32x32xbf16>
    %85 = vector.extract_strided_slice %37 {offsets = [96, 192], sizes = [32, 32], strides = [1, 1]} : vector<128x384xbf16> to vector<32x32xbf16>
    %86 = vector.extract_strided_slice %37 {offsets = [96, 224], sizes = [32, 32], strides = [1, 1]} : vector<128x384xbf16> to vector<32x32xbf16>
    %87 = vector.shape_cast %71 : vector<32x32xbf16> to vector<1x32x32xbf16>
    %88 = vector.shape_cast %72 : vector<32x32xbf16> to vector<1x32x32xbf16>
    %89 = vector.shape_cast %73 : vector<32x32xbf16> to vector<1x32x32xbf16>
    %90 = vector.shape_cast %74 : vector<32x32xbf16> to vector<1x32x32xbf16>
    %91 = vector.shape_cast %75 : vector<32x32xbf16> to vector<1x32x32xbf16>
    %92 = vector.shape_cast %76 : vector<32x32xbf16> to vector<1x32x32xbf16>
    %93 = vector.shape_cast %77 : vector<32x32xbf16> to vector<1x32x32xbf16>
    %94 = vector.shape_cast %78 : vector<32x32xbf16> to vector<1x32x32xbf16>
    %95 = vector.shape_cast %79 : vector<32x32xbf16> to vector<1x32x32xbf16>
    %96 = vector.shape_cast %80 : vector<32x32xbf16> to vector<1x32x32xbf16>
    %97 = vector.shape_cast %81 : vector<32x32xbf16> to vector<1x32x32xbf16>
    %98 = vector.shape_cast %82 : vector<32x32xbf16> to vector<1x32x32xbf16>
    %99 = vector.shape_cast %83 : vector<32x32xbf16> to vector<1x32x32xbf16>
    %100 = vector.shape_cast %84 : vector<32x32xbf16> to vector<1x32x32xbf16>
    %101 = vector.shape_cast %85 : vector<32x32xbf16> to vector<1x32x32xbf16>
    %102 = vector.shape_cast %86 : vector<32x32xbf16> to vector<1x32x32xbf16>
    %103 = tpu.concatenate %87, %88, %89, %90, %91, %92, %93, %94, %95, %96, %97, %98, %99, %100, %101, %102 in 0 : vector<1x32x32xbf16>, vector<1x32x32xbf16>, vector<1x32x32xbf16>, vector<1x32x32xbf16>, vector<1x32x32xbf16>, vector<1x32x32xbf16>, vector<1x32x32xbf16>, vector<1x32x32xbf16>, vector<1x32x32xbf16>, vector<1x32x32xbf16>, vector<1x32x32xbf16>, vector<1x32x32xbf16>, vector<1x32x32xbf16>, vector<1x32x32xbf16>, vector<1x32x32xbf16>, vector<1x32x32xbf16> -> vector<16x32x32xbf16>
    %104 = vector.extract_strided_slice %37 {offsets = [0, 256], sizes = [32, 32], strides = [1, 1]} : vector<128x384xbf16> to vector<32x32xbf16>
    %105 = vector.extract_strided_slice %37 {offsets = [0, 288], sizes = [32, 32], strides = [1, 1]} : vector<128x384xbf16> to vector<32x32xbf16>
    %106 = vector.extract_strided_slice %37 {offsets = [0, 320], sizes = [32, 32], strides = [1, 1]} : vector<128x384xbf16> to vector<32x32xbf16>
    %107 = vector.extract_strided_slice %37 {offsets = [0, 352], sizes = [32, 32], strides = [1, 1]} : vector<128x384xbf16> to vector<32x32xbf16>
    %108 = vector.extract_strided_slice %37 {offsets = [32, 256], sizes = [32, 32], strides = [1, 1]} : vector<128x384xbf16> to vector<32x32xbf16>
    %109 = vector.extract_strided_slice %37 {offsets = [32, 288], sizes = [32, 32], strides = [1, 1]} : vector<128x384xbf16> to vector<32x32xbf16>
    %110 = vector.extract_strided_slice %37 {offsets = [32, 320], sizes = [32, 32], strides = [1, 1]} : vector<128x384xbf16> to vector<32x32xbf16>
    %111 = vector.extract_strided_slice %37 {offsets = [32, 352], sizes = [32, 32], strides = [1, 1]} : vector<128x384xbf16> to vector<32x32xbf16>
    %112 = vector.extract_strided_slice %37 {offsets = [64, 256], sizes = [32, 32], strides = [1, 1]} : vector<128x384xbf16> to vector<32x32xbf16>
    %113 = vector.extract_strided_slice %37 {offsets = [64, 288], sizes = [32, 32], strides = [1, 1]} : vector<128x384xbf16> to vector<32x32xbf16>
    %114 = vector.extract_strided_slice %37 {offsets = [64, 320], sizes = [32, 32], strides = [1, 1]} : vector<128x384xbf16> to vector<32x32xbf16>
    %115 = vector.extract_strided_slice %37 {offsets = [64, 352], sizes = [32, 32], strides = [1, 1]} : vector<128x384xbf16> to vector<32x32xbf16>
    %116 = vector.extract_strided_slice %37 {offsets = [96, 256], sizes = [32, 32], strides = [1, 1]} : vector<128x384xbf16> to vector<32x32xbf16>
    %117 = vector.extract_strided_slice %37 {offsets = [96, 288], sizes = [32, 32], strides = [1, 1]} : vector<128x384xbf16> to vector<32x32xbf16>
    %118 = vector.extract_strided_slice %37 {offsets = [96, 320], sizes = [32, 32], strides = [1, 1]} : vector<128x384xbf16> to vector<32x32xbf16>
    %119 = vector.extract_strided_slice %37 {offsets = [96, 352], sizes = [32, 32], strides = [1, 1]} : vector<128x384xbf16> to vector<32x32xbf16>
    %120 = vector.shape_cast %104 : vector<32x32xbf16> to vector<1x32x32xbf16>
    %121 = vector.shape_cast %105 : vector<32x32xbf16> to vector<1x32x32xbf16>
    %122 = vector.shape_cast %106 : vector<32x32xbf16> to vector<1x32x32xbf16>
    %123 = vector.shape_cast %107 : vector<32x32xbf16> to vector<1x32x32xbf16>
    %124 = vector.shape_cast %108 : vector<32x32xbf16> to vector<1x32x32xbf16>
    %125 = vector.shape_cast %109 : vector<32x32xbf16> to vector<1x32x32xbf16>
    %126 = vector.shape_cast %110 : vector<32x32xbf16> to vector<1x32x32xbf16>
    %127 = vector.shape_cast %111 : vector<32x32xbf16> to vector<1x32x32xbf16>
    %128 = vector.shape_cast %112 : vector<32x32xbf16> to vector<1x32x32xbf16>
    %129 = vector.shape_cast %113 : vector<32x32xbf16> to vector<1x32x32xbf16>
    %130 = vector.shape_cast %114 : vector<32x32xbf16> to vector<1x32x32xbf16>
    %131 = vector.shape_cast %115 : vector<32x32xbf16> to vector<1x32x32xbf16>
    %132 = vector.shape_cast %116 : vector<32x32xbf16> to vector<1x32x32xbf16>
    %133 = vector.shape_cast %117 : vector<32x32xbf16> to vector<1x32x32xbf16>
    %134 = vector.shape_cast %118 : vector<32x32xbf16> to vector<1x32x32xbf16>
    %135 = vector.shape_cast %119 : vector<32x32xbf16> to vector<1x32x32xbf16>
    %136 = tpu.concatenate %120, %121, %122, %123, %124, %125, %126, %127, %128, %129, %130, %131, %132, %133, %134, %135 in 0 : vector<1x32x32xbf16>, vector<1x32x32xbf16>, vector<1x32x32xbf16>, vector<1x32x32xbf16>, vector<1x32x32xbf16>, vector<1x32x32xbf16>, vector<1x32x32xbf16>, vector<1x32x32xbf16>, vector<1x32x32xbf16>, vector<1x32x32xbf16>, vector<1x32x32xbf16>, vector<1x32x32xbf16>, vector<1x32x32xbf16>, vector<1x32x32xbf16>, vector<1x32x32xbf16>, vector<1x32x32xbf16> -> vector<16x32x32xbf16>
    %137 = vector.extract_strided_slice %103 {offsets = [0, 0, 0], sizes = [4, 32, 32], strides = [1, 1, 1]} : vector<16x32x32xbf16> to vector<4x32x32xbf16>
    %138 = vector.extract_strided_slice %136 {offsets = [0, 0, 0], sizes = [4, 32, 32], strides = [1, 1, 1]} : vector<16x32x32xbf16> to vector<4x32x32xbf16>
    %139 = vector.extract_strided_slice %70 {offsets = [0, 0, 0], sizes = [4, 8, 32], strides = [1, 1, 1]} : vector<16x32x32xbf16> to vector<4x8x32xbf16>
    %140 = vector.extract_strided_slice %137 {offsets = [0, 0, 0], sizes = [4, 8, 32], strides = [1, 1, 1]} : vector<4x32x32xbf16> to vector<4x8x32xbf16>
    %141 = vector.extract_strided_slice %138 {offsets = [0, 0, 0], sizes = [4, 8, 32], strides = [1, 1, 1]} : vector<4x32x32xbf16> to vector<4x8x32xbf16>
    "tpu.trace_start"() <{level = 10 : i32, message = "htd,hsd->hts"}> : () -> ()
    %cst_14 = arith.constant dense<0.000000e+00> : vector<4x8x8xf32>
    %142 = tpu.matmul %139, %140, %cst_14 {dimension_numbers = #tpu.dot_dimension_numbers<[2], [2], [1], [1], [0, 0, 0, 1, 1, 1], [0], [0]>} : vector<4x8x32xbf16>, vector<4x8x32xbf16>, vector<4x8x8xf32> -> vector<4x8x8xf32>
    "tpu.trace_stop"() : () -> ()
    %143 = tpu.iota {dimensions = array<i32: 0>} : vector<8x8xi32>
    %c0_i32 = arith.constant 0 : i32
    %144 = vector.broadcast %c0_i32 : i32 to vector<8x8xi32>
    %145 = arith.addi %144, %143 : vector<8x8xi32>
    %146 = tpu.iota {dimensions = array<i32: 1>} : vector<8x8xi32>
    %147 = arith.cmpi sge, %145, %146 : vector<8x8xi32>
    %148 = vector.shape_cast %147 : vector<8x8xi1> to vector<1x8x8xi1>
    %cst_15 = arith.constant -1.000000e+30 : f32
    %149 = vector.shape_cast %148 : vector<1x8x8xi1> to vector<1x8x8xi1>
    %150 = vector.broadcast %149 : vector<1x8x8xi1> to vector<4x8x8xi1>
    %151 = vector.broadcast %cst_15 : f32 to vector<4x8x8xf32>
    %152 = arith.select %150, %142, %151 : vector<4x8x8xi1>, vector<4x8x8xf32>
    %cst_16 = arith.constant dense<0xFF800000> : vector<4x8xf32>
    %153 = vector.multi_reduction <maximumf>, %152, %cst_16 [2] : vector<4x8x8xf32> to vector<4x8xf32>
    %154 = vector.shape_cast %153 : vector<4x8xf32> to vector<4x8x1xf32>
    %155 = vector.broadcast %154 : vector<4x8x1xf32> to vector<4x8x8xf32>
    %156 = arith.subf %152, %155 : vector<4x8x8xf32>
    %157 = math.exp %156 : vector<4x8x8xf32>
    %cst_17 = arith.constant dense<0.000000e+00> : vector<4x8xf32>
    %158 = vector.multi_reduction <add>, %157, %cst_17 [2] : vector<4x8x8xf32> to vector<4x8xf32>
    %159 = vector.shape_cast %158 : vector<4x8xf32> to vector<4x8x1xf32>
    %160 = arith.truncf %157 : vector<4x8x8xf32> to vector<4x8x8xbf16>
    "tpu.trace_start"() <{level = 10 : i32, message = "hts,hsd->htd"}> : () -> ()
    %cst_18 = arith.constant dense<0.000000e+00> : vector<4x8x32xf32>
    %161 = tpu.matmul %160, %141, %cst_18 {dimension_numbers = #tpu.dot_dimension_numbers<[2], [1], [1], [2], [0, 0, 0, 1, 1, 2], [0], [0]>} : vector<4x8x8xbf16>, vector<4x8x32xbf16>, vector<4x8x32xf32> -> vector<4x8x32xf32>
    "tpu.trace_stop"() : () -> ()
    %162 = tpu.reciprocal %159 {approx = true} : vector<4x8x1xf32> -> vector<4x8x1xf32>
    %163 = vector.broadcast %162 : vector<4x8x1xf32> to vector<4x8x32xf32>
    %164 = arith.mulf %161, %163 : vector<4x8x32xf32>
    %165 = vector.extract_strided_slice %164 {offsets = [0, 0, 0], sizes = [1, 8, 32], strides = [1, 1, 1]} : vector<4x8x32xf32> to vector<1x8x32xf32>
    %166 = vector.shape_cast %165 : vector<1x8x32xf32> to vector<8x32xf32>
    %167 = vector.extract_strided_slice %164 {offsets = [1, 0, 0], sizes = [1, 8, 32], strides = [1, 1, 1]} : vector<4x8x32xf32> to vector<1x8x32xf32>
    %168 = vector.shape_cast %167 : vector<1x8x32xf32> to vector<8x32xf32>
    %169 = vector.extract_strided_slice %164 {offsets = [2, 0, 0], sizes = [1, 8, 32], strides = [1, 1, 1]} : vector<4x8x32xf32> to vector<1x8x32xf32>
    %170 = vector.shape_cast %169 : vector<1x8x32xf32> to vector<8x32xf32>
    %171 = vector.extract_strided_slice %164 {offsets = [3, 0, 0], sizes = [1, 8, 32], strides = [1, 1, 1]} : vector<4x8x32xf32> to vector<1x8x32xf32>
    %172 = vector.shape_cast %171 : vector<1x8x32xf32> to vector<8x32xf32>
    %173 = tpu.concatenate %166, %168, %170, %172 in 1 : vector<8x32xf32>, vector<8x32xf32>, vector<8x32xf32>, vector<8x32xf32> -> vector<8x128xf32>
    %174 = arith.truncf %173 : vector<8x128xf32> to vector<8x128xbf16>
    %c0_19 = arith.constant 0 : index
    %c0_20 = arith.constant 0 : index
    %175 = vector.load %arg15[%c0_19, %c0_20] : memref<128x128xbf16, #tpu.memory_space<vmem>>, vector<8x128xbf16>
    tpu.vector_store %arg15[%c0_19, %c0_20], %174 {strides = array<i32>} : memref<128x128xbf16, #tpu.memory_space<vmem>>, vector<8x128xbf16>,
    %176 = vector.extract_strided_slice %70 {offsets = [0, 8, 0], sizes = [4, 8, 32], strides = [1, 1, 1]} : vector<16x32x32xbf16> to vector<4x8x32xbf16>
    %177 = vector.extract_strided_slice %137 {offsets = [0, 0, 0], sizes = [4, 16, 32], strides = [1, 1, 1]} : vector<4x32x32xbf16> to vector<4x16x32xbf16>
    %178 = vector.extract_strided_slice %138 {offsets = [0, 0, 0], sizes = [4, 16, 32], strides = [1, 1, 1]} : vector<4x32x32xbf16> to vector<4x16x32xbf16>
    "tpu.trace_start"() <{level = 10 : i32, message = "htd,hsd->hts"}> : () -> ()
    %cst_21 = arith.constant dense<0.000000e+00> : vector<4x8x16xf32>
    %179 = tpu.matmul %176, %177, %cst_21 {dimension_numbers = #tpu.dot_dimension_numbers<[2], [2], [1], [1], [0, 0, 0, 1, 1, 1], [0], [0]>} : vector<4x8x32xbf16>, vector<4x16x32xbf16>, vector<4x8x16xf32> -> vector<4x8x16xf32>
    "tpu.trace_stop"() : () -> ()
    %180 = tpu.iota {dimensions = array<i32: 0>} : vector<8x16xi32>
    %c8_i32 = arith.constant 8 : i32
    %181 = vector.broadcast %c8_i32 : i32 to vector<8x16xi32>
    %182 = arith.addi %181, %180 : vector<8x16xi32>
    %183 = tpu.iota {dimensions = array<i32: 1>} : vector<8x16xi32>
    %184 = arith.cmpi sge, %182, %183 : vector<8x16xi32>
    %185 = vector.shape_cast %184 : vector<8x16xi1> to vector<1x8x16xi1>
    %cst_22 = arith.constant -1.000000e+30 : f32
    %186 = vector.shape_cast %185 : vector<1x8x16xi1> to vector<1x8x16xi1>
    %187 = vector.broadcast %186 : vector<1x8x16xi1> to vector<4x8x16xi1>
    %188 = vector.broadcast %cst_22 : f32 to vector<4x8x16xf32>
    %189 = arith.select %187, %179, %188 : vector<4x8x16xi1>, vector<4x8x16xf32>
    %cst_23 = arith.constant dense<0xFF800000> : vector<4x8xf32>
    %190 = vector.multi_reduction <maximumf>, %189, %cst_23 [2] : vector<4x8x16xf32> to vector<4x8xf32>
    %191 = vector.shape_cast %190 : vector<4x8xf32> to vector<4x8x1xf32>
    %192 = vector.broadcast %191 : vector<4x8x1xf32> to vector<4x8x16xf32>
    %193 = arith.subf %189, %192 : vector<4x8x16xf32>
    %194 = math.exp %193 : vector<4x8x16xf32>
    %cst_24 = arith.constant dense<0.000000e+00> : vector<4x8xf32>
    %195 = vector.multi_reduction <add>, %194, %cst_24 [2] : vector<4x8x16xf32> to vector<4x8xf32>
    %196 = vector.shape_cast %195 : vector<4x8xf32> to vector<4x8x1xf32>
    %197 = arith.truncf %194 : vector<4x8x16xf32> to vector<4x8x16xbf16>
    "tpu.trace_start"() <{level = 10 : i32, message = "hts,hsd->htd"}> : () -> ()
    %cst_25 = arith.constant dense<0.000000e+00> : vector<4x8x32xf32>
    %198 = tpu.matmul %197, %178, %cst_25 {dimension_numbers = #tpu.dot_dimension_numbers<[2], [1], [1], [2], [0, 0, 0, 1, 1, 2], [0], [0]>} : vector<4x8x16xbf16>, vector<4x16x32xbf16>, vector<4x8x32xf32> -> vector<4x8x32xf32>
    "tpu.trace_stop"() : () -> ()
    %199 = tpu.reciprocal %196 {approx = true} : vector<4x8x1xf32> -> vector<4x8x1xf32>
    %200 = vector.broadcast %199 : vector<4x8x1xf32> to vector<4x8x32xf32>
    %201 = arith.mulf %198, %200 : vector<4x8x32xf32>
    %202 = vector.extract_strided_slice %201 {offsets = [0, 0, 0], sizes = [1, 8, 32], strides = [1, 1, 1]} : vector<4x8x32xf32> to vector<1x8x32xf32>
    %203 = vector.shape_cast %202 : vector<1x8x32xf32> to vector<8x32xf32>
    %204 = vector.extract_strided_slice %201 {offsets = [1, 0, 0], sizes = [1, 8, 32], strides = [1, 1, 1]} : vector<4x8x32xf32> to vector<1x8x32xf32>
    %205 = vector.shape_cast %204 : vector<1x8x32xf32> to vector<8x32xf32>
    %206 = vector.extract_strided_slice %201 {offsets = [2, 0, 0], sizes = [1, 8, 32], strides = [1, 1, 1]} : vector<4x8x32xf32> to vector<1x8x32xf32>
    %207 = vector.shape_cast %206 : vector<1x8x32xf32> to vector<8x32xf32>
    %208 = vector.extract_strided_slice %201 {offsets = [3, 0, 0], sizes = [1, 8, 32], strides = [1, 1, 1]} : vector<4x8x32xf32> to vector<1x8x32xf32>
    %209 = vector.shape_cast %208 : vector<1x8x32xf32> to vector<8x32xf32>
    %210 = tpu.concatenate %203, %205, %207, %209 in 1 : vector<8x32xf32>, vector<8x32xf32>, vector<8x32xf32>, vector<8x32xf32> -> vector<8x128xf32>
    %211 = arith.truncf %210 : vector<8x128xf32> to vector<8x128xbf16>
    %c8 = arith.constant 8 : index
    %c0_26 = arith.constant 0 : index
    %212 = vector.load %arg15[%c8, %c0_26] : memref<128x128xbf16, #tpu.memory_space<vmem>>, vector<8x128xbf16>
    tpu.vector_store %arg15[%c8, %c0_26], %211 {strides = array<i32>} : memref<128x128xbf16, #tpu.memory_space<vmem>>, vector<8x128xbf16>,
    %213 = vector.extract_strided_slice %70 {offsets = [0, 16, 0], sizes = [4, 8, 32], strides = [1, 1, 1]} : vector<16x32x32xbf16> to vector<4x8x32xbf16>
    %214 = vector.extract_strided_slice %137 {offsets = [0, 0, 0], sizes = [4, 24, 32], strides = [1, 1, 1]} : vector<4x32x32xbf16> to vector<4x24x32xbf16>
    %215 = vector.extract_strided_slice %138 {offsets = [0, 0, 0], sizes = [4, 24, 32], strides = [1, 1, 1]} : vector<4x32x32xbf16> to vector<4x24x32xbf16>
    "tpu.trace_start"() <{level = 10 : i32, message = "htd,hsd->hts"}> : () -> ()
    %cst_27 = arith.constant dense<0.000000e+00> : vector<4x8x24xf32>
    %216 = tpu.matmul %213, %214, %cst_27 {dimension_numbers = #tpu.dot_dimension_numbers<[2], [2], [1], [1], [0, 0, 0, 1, 1, 1], [0], [0]>} : vector<4x8x32xbf16>, vector<4x24x32xbf16>, vector<4x8x24xf32> -> vector<4x8x24xf32>
    "tpu.trace_stop"() : () -> ()
    %217 = tpu.iota {dimensions = array<i32: 0>} : vector<8x24xi32>
    %c16_i32 = arith.constant 16 : i32
    %218 = vector.broadcast %c16_i32 : i32 to vector<8x24xi32>
    %219 = arith.addi %218, %217 : vector<8x24xi32>
    %220 = tpu.iota {dimensions = array<i32: 1>} : vector<8x24xi32>
    %221 = arith.cmpi sge, %219, %220 : vector<8x24xi32>
    %222 = vector.shape_cast %221 : vector<8x24xi1> to vector<1x8x24xi1>
    %cst_28 = arith.constant -1.000000e+30 : f32
    %223 = vector.shape_cast %222 : vector<1x8x24xi1> to vector<1x8x24xi1>
    %224 = vector.broadcast %223 : vector<1x8x24xi1> to vector<4x8x24xi1>
    %225 = vector.broadcast %cst_28 : f32 to vector<4x8x24xf32>
    %226 = arith.select %224, %216, %225 : vector<4x8x24xi1>, vector<4x8x24xf32>
    %cst_29 = arith.constant dense<0xFF800000> : vector<4x8xf32>
    %227 = vector.multi_reduction <maximumf>, %226, %cst_29 [2] : vector<4x8x24xf32> to vector<4x8xf32>
    %228 = vector.shape_cast %227 : vector<4x8xf32> to vector<4x8x1xf32>
    %229 = vector.broadcast %228 : vector<4x8x1xf32> to vector<4x8x24xf32>
    %230 = arith.subf %226, %229 : vector<4x8x24xf32>
    %231 = math.exp %230 : vector<4x8x24xf32>
    %cst_30 = arith.constant dense<0.000000e+00> : vector<4x8xf32>
    %232 = vector.multi_reduction <add>, %231, %cst_30 [2] : vector<4x8x24xf32> to vector<4x8xf32>
    %233 = vector.shape_cast %232 : vector<4x8xf32> to vector<4x8x1xf32>
    %234 = arith.truncf %231 : vector<4x8x24xf32> to vector<4x8x24xbf16>
    "tpu.trace_start"() <{level = 10 : i32, message = "hts,hsd->htd"}> : () -> ()
    %cst_31 = arith.constant dense<0.000000e+00> : vector<4x8x32xf32>
    %235 = tpu.matmul %234, %215, %cst_31 {dimension_numbers = #tpu.dot_dimension_numbers<[2], [1], [1], [2], [0, 0, 0, 1, 1, 2], [0], [0]>} : vector<4x8x24xbf16>, vector<4x24x32xbf16>, vector<4x8x32xf32> -> vector<4x8x32xf32>
    "tpu.trace_stop"() : () -> ()
    %236 = tpu.reciprocal %233 {approx = true} : vector<4x8x1xf32> -> vector<4x8x1xf32>
    %237 = vector.broadcast %236 : vector<4x8x1xf32> to vector<4x8x32xf32>
    %238 = arith.mulf %235, %237 : vector<4x8x32xf32>
    %239 = vector.extract_strided_slice %238 {offsets = [0, 0, 0], sizes = [1, 8, 32], strides = [1, 1, 1]} : vector<4x8x32xf32> to vector<1x8x32xf32>
    %240 = vector.shape_cast %239 : vector<1x8x32xf32> to vector<8x32xf32>
    %241 = vector.extract_strided_slice %238 {offsets = [1, 0, 0], sizes = [1, 8, 32], strides = [1, 1, 1]} : vector<4x8x32xf32> to vector<1x8x32xf32>
    %242 = vector.shape_cast %241 : vector<1x8x32xf32> to vector<8x32xf32>
    %243 = vector.extract_strided_slice %238 {offsets = [2, 0, 0], sizes = [1, 8, 32], strides = [1, 1, 1]} : vector<4x8x32xf32> to vector<1x8x32xf32>
    %244 = vector.shape_cast %243 : vector<1x8x32xf32> to vector<8x32xf32>
    %245 = vector.extract_strided_slice %238 {offsets = [3, 0, 0], sizes = [1, 8, 32], strides = [1, 1, 1]} : vector<4x8x32xf32> to vector<1x8x32xf32>
    %246 = vector.shape_cast %245 : vector<1x8x32xf32> to vector<8x32xf32>
    %247 = tpu.concatenate %240, %242, %244, %246 in 1 : vector<8x32xf32>, vector<8x32xf32>, vector<8x32xf32>, vector<8x32xf32> -> vector<8x128xf32>
    %248 = arith.truncf %247 : vector<8x128xf32> to vector<8x128xbf16>
    %c16 = arith.constant 16 : index
    %c0_32 = arith.constant 0 : index
    %249 = vector.load %arg15[%c16, %c0_32] : memref<128x128xbf16, #tpu.memory_space<vmem>>, vector<8x128xbf16>
    tpu.vector_store %arg15[%c16, %c0_32], %248 {strides = array<i32>} : memref<128x128xbf16, #tpu.memory_space<vmem>>, vector<8x128xbf16>,
    %250 = vector.extract_strided_slice %70 {offsets = [0, 24, 0], sizes = [4, 8, 32], strides = [1, 1, 1]} : vector<16x32x32xbf16> to vector<4x8x32xbf16>
    "tpu.trace_start"() <{level = 10 : i32, message = "htd,hsd->hts"}> : () -> ()
    %cst_33 = arith.constant dense<0.000000e+00> : vector<4x8x32xf32>
    %251 = tpu.matmul %250, %137, %cst_33 {dimension_numbers = #tpu.dot_dimension_numbers<[2], [2], [1], [1], [0, 0, 0, 1, 1, 1], [0], [0]>} : vector<4x8x32xbf16>, vector<4x32x32xbf16>, vector<4x8x32xf32> -> vector<4x8x32xf32>
    "tpu.trace_stop"() : () -> ()
    %252 = tpu.iota {dimensions = array<i32: 0>} : vector<8x32xi32>
    %c24_i32 = arith.constant 24 : i32
    %253 = vector.broadcast %c24_i32 : i32 to vector<8x32xi32>
    %254 = arith.addi %253, %252 : vector<8x32xi32>
    %255 = tpu.iota {dimensions = array<i32: 1>} : vector<8x32xi32>
    %256 = arith.cmpi sge, %254, %255 : vector<8x32xi32>
    %257 = vector.shape_cast %256 : vector<8x32xi1> to vector<1x8x32xi1>
    %cst_34 = arith.constant -1.000000e+30 : f32
    %258 = vector.shape_cast %257 : vector<1x8x32xi1> to vector<1x8x32xi1>
    %259 = vector.broadcast %258 : vector<1x8x32xi1> to vector<4x8x32xi1>
    %260 = vector.broadcast %cst_34 : f32 to vector<4x8x32xf32>
    %261 = arith.select %259, %251, %260 : vector<4x8x32xi1>, vector<4x8x32xf32>
    %cst_35 = arith.constant dense<0xFF800000> : vector<4x8xf32>
    %262 = vector.multi_reduction <maximumf>, %261, %cst_35 [2] : vector<4x8x32xf32> to vector<4x8xf32>
    %263 = vector.shape_cast %262 : vector<4x8xf32> to vector<4x8x1xf32>
    %264 = vector.broadcast %263 : vector<4x8x1xf32> to vector<4x8x32xf32>
    %265 = arith.subf %261, %264 : vector<4x8x32xf32>
    %266 = math.exp %265 : vector<4x8x32xf32>
    %cst_36 = arith.constant dense<0.000000e+00> : vector<4x8xf32>
    %267 = vector.multi_reduction <add>, %266, %cst_36 [2] : vector<4x8x32xf32> to vector<4x8xf32>
    %268 = vector.shape_cast %267 : vector<4x8xf32> to vector<4x8x1xf32>
    %269 = arith.truncf %266 : vector<4x8x32xf32> to vector<4x8x32xbf16>
    "tpu.trace_start"() <{level = 10 : i32, message = "hts,hsd->htd"}> : () -> ()
    %cst_37 = arith.constant dense<0.000000e+00> : vector<4x8x32xf32>
    %270 = tpu.matmul %269, %138, %cst_37 {dimension_numbers = #tpu.dot_dimension_numbers<[2], [1], [1], [2], [0, 0, 0, 1, 1, 2], [0], [0]>} : vector<4x8x32xbf16>, vector<4x32x32xbf16>, vector<4x8x32xf32> -> vector<4x8x32xf32>
    "tpu.trace_stop"() : () -> ()
    %271 = tpu.reciprocal %268 {approx = true} : vector<4x8x1xf32> -> vector<4x8x1xf32>
    %272 = vector.broadcast %271 : vector<4x8x1xf32> to vector<4x8x32xf32>
    %273 = arith.mulf %270, %272 : vector<4x8x32xf32>
    %274 = vector.extract_strided_slice %273 {offsets = [0, 0, 0], sizes = [1, 8, 32], strides = [1, 1, 1]} : vector<4x8x32xf32> to vector<1x8x32xf32>
    %275 = vector.shape_cast %274 : vector<1x8x32xf32> to vector<8x32xf32>
    %276 = vector.extract_strided_slice %273 {offsets = [1, 0, 0], sizes = [1, 8, 32], strides = [1, 1, 1]} : vector<4x8x32xf32> to vector<1x8x32xf32>
    %277 = vector.shape_cast %276 : vector<1x8x32xf32> to vector<8x32xf32>
    %278 = vector.extract_strided_slice %273 {offsets = [2, 0, 0], sizes = [1, 8, 32], strides = [1, 1, 1]} : vector<4x8x32xf32> to vector<1x8x32xf32>
    %279 = vector.shape_cast %278 : vector<1x8x32xf32> to vector<8x32xf32>
    %280 = vector.extract_strided_slice %273 {offsets = [3, 0, 0], sizes = [1, 8, 32], strides = [1, 1, 1]} : vector<4x8x32xf32> to vector<1x8x32xf32>
    %281 = vector.shape_cast %280 : vector<1x8x32xf32> to vector<8x32xf32>
    %282 = tpu.concatenate %275, %277, %279, %281 in 1 : vector<8x32xf32>, vector<8x32xf32>, vector<8x32xf32>, vector<8x32xf32> -> vector<8x128xf32>
    %283 = arith.truncf %282 : vector<8x128xf32> to vector<8x128xbf16>
    %c24 = arith.constant 24 : index
    %c0_38 = arith.constant 0 : index
    %284 = vector.load %arg15[%c24, %c0_38] : memref<128x128xbf16, #tpu.memory_space<vmem>>, vector<8x128xbf16>
    tpu.vector_store %arg15[%c24, %c0_38], %283 {strides = array<i32>} : memref<128x128xbf16, #tpu.memory_space<vmem>>, vector<8x128xbf16>,
    %285 = vector.extract_strided_slice %103 {offsets = [4, 0, 0], sizes = [4, 32, 32], strides = [1, 1, 1]} : vector<16x32x32xbf16> to vector<4x32x32xbf16>
    %286 = vector.extract_strided_slice %136 {offsets = [4, 0, 0], sizes = [4, 32, 32], strides = [1, 1, 1]} : vector<16x32x32xbf16> to vector<4x32x32xbf16>
    %287 = vector.extract_strided_slice %70 {offsets = [4, 0, 0], sizes = [4, 8, 32], strides = [1, 1, 1]} : vector<16x32x32xbf16> to vector<4x8x32xbf16>
    %288 = vector.extract_strided_slice %285 {offsets = [0, 0, 0], sizes = [4, 8, 32], strides = [1, 1, 1]} : vector<4x32x32xbf16> to vector<4x8x32xbf16>
    %289 = vector.extract_strided_slice %286 {offsets = [0, 0, 0], sizes = [4, 8, 32], strides = [1, 1, 1]} : vector<4x32x32xbf16> to vector<4x8x32xbf16>
    "tpu.trace_start"() <{level = 10 : i32, message = "htd,hsd->hts"}> : () -> ()
    %cst_39 = arith.constant dense<0.000000e+00> : vector<4x8x8xf32>
    %290 = tpu.matmul %287, %288, %cst_39 {dimension_numbers = #tpu.dot_dimension_numbers<[2], [2], [1], [1], [0, 0, 0, 1, 1, 1], [0], [0]>} : vector<4x8x32xbf16>, vector<4x8x32xbf16>, vector<4x8x8xf32> -> vector<4x8x8xf32>
    "tpu.trace_stop"() : () -> ()
    %291 = tpu.iota {dimensions = array<i32: 0>} : vector<8x8xi32>
    %c0_i32_40 = arith.constant 0 : i32
    %292 = vector.broadcast %c0_i32_40 : i32 to vector<8x8xi32>
    %293 = arith.addi %292, %291 : vector<8x8xi32>
    %294 = tpu.iota {dimensions = array<i32: 1>} : vector<8x8xi32>
    %295 = arith.cmpi sge, %293, %294 : vector<8x8xi32>
    %296 = vector.shape_cast %295 : vector<8x8xi1> to vector<1x8x8xi1>
    %cst_41 = arith.constant -1.000000e+30 : f32
    %297 = vector.shape_cast %296 : vector<1x8x8xi1> to vector<1x8x8xi1>
    %298 = vector.broadcast %297 : vector<1x8x8xi1> to vector<4x8x8xi1>
    %299 = vector.broadcast %cst_41 : f32 to vector<4x8x8xf32>
    %300 = arith.select %298, %290, %299 : vector<4x8x8xi1>, vector<4x8x8xf32>
    %cst_42 = arith.constant dense<0xFF800000> : vector<4x8xf32>
    %301 = vector.multi_reduction <maximumf>, %300, %cst_42 [2] : vector<4x8x8xf32> to vector<4x8xf32>
    %302 = vector.shape_cast %301 : vector<4x8xf32> to vector<4x8x1xf32>
    %303 = vector.broadcast %302 : vector<4x8x1xf32> to vector<4x8x8xf32>
    %304 = arith.subf %300, %303 : vector<4x8x8xf32>
    %305 = math.exp %304 : vector<4x8x8xf32>
    %cst_43 = arith.constant dense<0.000000e+00> : vector<4x8xf32>
    %306 = vector.multi_reduction <add>, %305, %cst_43 [2] : vector<4x8x8xf32> to vector<4x8xf32>
    %307 = vector.shape_cast %306 : vector<4x8xf32> to vector<4x8x1xf32>
    %308 = arith.truncf %305 : vector<4x8x8xf32> to vector<4x8x8xbf16>
    "tpu.trace_start"() <{level = 10 : i32, message = "hts,hsd->htd"}> : () -> ()
    %cst_44 = arith.constant dense<0.000000e+00> : vector<4x8x32xf32>
    %309 = tpu.matmul %308, %289, %cst_44 {dimension_numbers = #tpu.dot_dimension_numbers<[2], [1], [1], [2], [0, 0, 0, 1, 1, 2], [0], [0]>} : vector<4x8x8xbf16>, vector<4x8x32xbf16>, vector<4x8x32xf32> -> vector<4x8x32xf32>
    "tpu.trace_stop"() : () -> ()
    %310 = tpu.reciprocal %307 {approx = true} : vector<4x8x1xf32> -> vector<4x8x1xf32>
    %311 = vector.broadcast %310 : vector<4x8x1xf32> to vector<4x8x32xf32>
    %312 = arith.mulf %309, %311 : vector<4x8x32xf32>
    %313 = vector.extract_strided_slice %312 {offsets = [0, 0, 0], sizes = [1, 8, 32], strides = [1, 1, 1]} : vector<4x8x32xf32> to vector<1x8x32xf32>
    %314 = vector.shape_cast %313 : vector<1x8x32xf32> to vector<8x32xf32>
    %315 = vector.extract_strided_slice %312 {offsets = [1, 0, 0], sizes = [1, 8, 32], strides = [1, 1, 1]} : vector<4x8x32xf32> to vector<1x8x32xf32>
    %316 = vector.shape_cast %315 : vector<1x8x32xf32> to vector<8x32xf32>
    %317 = vector.extract_strided_slice %312 {offsets = [2, 0, 0], sizes = [1, 8, 32], strides = [1, 1, 1]} : vector<4x8x32xf32> to vector<1x8x32xf32>
    %318 = vector.shape_cast %317 : vector<1x8x32xf32> to vector<8x32xf32>
    %319 = vector.extract_strided_slice %312 {offsets = [3, 0, 0], sizes = [1, 8, 32], strides = [1, 1, 1]} : vector<4x8x32xf32> to vector<1x8x32xf32>
    %320 = vector.shape_cast %319 : vector<1x8x32xf32> to vector<8x32xf32>
    %321 = tpu.concatenate %314, %316, %318, %320 in 1 : vector<8x32xf32>, vector<8x32xf32>, vector<8x32xf32>, vector<8x32xf32> -> vector<8x128xf32>
    %322 = arith.truncf %321 : vector<8x128xf32> to vector<8x128xbf16>
    %c32 = arith.constant 32 : index
    %c0_45 = arith.constant 0 : index
    %323 = vector.load %arg15[%c32, %c0_45] : memref<128x128xbf16, #tpu.memory_space<vmem>>, vector<8x128xbf16>
    tpu.vector_store %arg15[%c32, %c0_45], %322 {strides = array<i32>} : memref<128x128xbf16, #tpu.memory_space<vmem>>, vector<8x128xbf16>,
    %324 = vector.extract_strided_slice %70 {offsets = [4, 8, 0], sizes = [4, 8, 32], strides = [1, 1, 1]} : vector<16x32x32xbf16> to vector<4x8x32xbf16>
    %325 = vector.extract_strided_slice %285 {offsets = [0, 0, 0], sizes = [4, 16, 32], strides = [1, 1, 1]} : vector<4x32x32xbf16> to vector<4x16x32xbf16>
    %326 = vector.extract_strided_slice %286 {offsets = [0, 0, 0], sizes = [4, 16, 32], strides = [1, 1, 1]} : vector<4x32x32xbf16> to vector<4x16x32xbf16>
    "tpu.trace_start"() <{level = 10 : i32, message = "htd,hsd->hts"}> : () -> ()
    %cst_46 = arith.constant dense<0.000000e+00> : vector<4x8x16xf32>
    %327 = tpu.matmul %324, %325, %cst_46 {dimension_numbers = #tpu.dot_dimension_numbers<[2], [2], [1], [1], [0, 0, 0, 1, 1, 1], [0], [0]>} : vector<4x8x32xbf16>, vector<4x16x32xbf16>, vector<4x8x16xf32> -> vector<4x8x16xf32>
    "tpu.trace_stop"() : () -> ()
    %328 = tpu.iota {dimensions = array<i32: 0>} : vector<8x16xi32>
    %c8_i32_47 = arith.constant 8 : i32
    %329 = vector.broadcast %c8_i32_47 : i32 to vector<8x16xi32>
    %330 = arith.addi %329, %328 : vector<8x16xi32>
    %331 = tpu.iota {dimensions = array<i32: 1>} : vector<8x16xi32>
    %332 = arith.cmpi sge, %330, %331 : vector<8x16xi32>
    %333 = vector.shape_cast %332 : vector<8x16xi1> to vector<1x8x16xi1>
    %cst_48 = arith.constant -1.000000e+30 : f32
    %334 = vector.shape_cast %333 : vector<1x8x16xi1> to vector<1x8x16xi1>
    %335 = vector.broadcast %334 : vector<1x8x16xi1> to vector<4x8x16xi1>
    %336 = vector.broadcast %cst_48 : f32 to vector<4x8x16xf32>
    %337 = arith.select %335, %327, %336 : vector<4x8x16xi1>, vector<4x8x16xf32>
    %cst_49 = arith.constant dense<0xFF800000> : vector<4x8xf32>
    %338 = vector.multi_reduction <maximumf>, %337, %cst_49 [2] : vector<4x8x16xf32> to vector<4x8xf32>
    %339 = vector.shape_cast %338 : vector<4x8xf32> to vector<4x8x1xf32>
    %340 = vector.broadcast %339 : vector<4x8x1xf32> to vector<4x8x16xf32>
    %341 = arith.subf %337, %340 : vector<4x8x16xf32>
    %342 = math.exp %341 : vector<4x8x16xf32>
    %cst_50 = arith.constant dense<0.000000e+00> : vector<4x8xf32>
    %343 = vector.multi_reduction <add>, %342, %cst_50 [2] : vector<4x8x16xf32> to vector<4x8xf32>
    %344 = vector.shape_cast %343 : vector<4x8xf32> to vector<4x8x1xf32>
    %345 = arith.truncf %342 : vector<4x8x16xf32> to vector<4x8x16xbf16>
    "tpu.trace_start"() <{level = 10 : i32, message = "hts,hsd->htd"}> : () -> ()
    %cst_51 = arith.constant dense<0.000000e+00> : vector<4x8x32xf32>
    %346 = tpu.matmul %345, %326, %cst_51 {dimension_numbers = #tpu.dot_dimension_numbers<[2], [1], [1], [2], [0, 0, 0, 1, 1, 2], [0], [0]>} : vector<4x8x16xbf16>, vector<4x16x32xbf16>, vector<4x8x32xf32> -> vector<4x8x32xf32>
    "tpu.trace_stop"() : () -> ()
    %347 = tpu.reciprocal %344 {approx = true} : vector<4x8x1xf32> -> vector<4x8x1xf32>
    %348 = vector.broadcast %347 : vector<4x8x1xf32> to vector<4x8x32xf32>
    %349 = arith.mulf %346, %348 : vector<4x8x32xf32>
    %350 = vector.extract_strided_slice %349 {offsets = [0, 0, 0], sizes = [1, 8, 32], strides = [1, 1, 1]} : vector<4x8x32xf32> to vector<1x8x32xf32>
    %351 = vector.shape_cast %350 : vector<1x8x32xf32> to vector<8x32xf32>
    %352 = vector.extract_strided_slice %349 {offsets = [1, 0, 0], sizes = [1, 8, 32], strides = [1, 1, 1]} : vector<4x8x32xf32> to vector<1x8x32xf32>
    %353 = vector.shape_cast %352 : vector<1x8x32xf32> to vector<8x32xf32>
    %354 = vector.extract_strided_slice %349 {offsets = [2, 0, 0], sizes = [1, 8, 32], strides = [1, 1, 1]} : vector<4x8x32xf32> to vector<1x8x32xf32>
    %355 = vector.shape_cast %354 : vector<1x8x32xf32> to vector<8x32xf32>
    %356 = vector.extract_strided_slice %349 {offsets = [3, 0, 0], sizes = [1, 8, 32], strides = [1, 1, 1]} : vector<4x8x32xf32> to vector<1x8x32xf32>
    %357 = vector.shape_cast %356 : vector<1x8x32xf32> to vector<8x32xf32>
    %358 = tpu.concatenate %351, %353, %355, %357 in 1 : vector<8x32xf32>, vector<8x32xf32>, vector<8x32xf32>, vector<8x32xf32> -> vector<8x128xf32>
    %359 = arith.truncf %358 : vector<8x128xf32> to vector<8x128xbf16>
    %c40 = arith.constant 40 : index
    %c0_52 = arith.constant 0 : index
    %360 = vector.load %arg15[%c40, %c0_52] : memref<128x128xbf16, #tpu.memory_space<vmem>>, vector<8x128xbf16>
    tpu.vector_store %arg15[%c40, %c0_52], %359 {strides = array<i32>} : memref<128x128xbf16, #tpu.memory_space<vmem>>, vector<8x128xbf16>,
    %361 = vector.extract_strided_slice %70 {offsets = [4, 16, 0], sizes = [4, 8, 32], strides = [1, 1, 1]} : vector<16x32x32xbf16> to vector<4x8x32xbf16>
    %362 = vector.extract_strided_slice %285 {offsets = [0, 0, 0], sizes = [4, 24, 32], strides = [1, 1, 1]} : vector<4x32x32xbf16> to vector<4x24x32xbf16>
    %363 = vector.extract_strided_slice %286 {offsets = [0, 0, 0], sizes = [4, 24, 32], strides = [1, 1, 1]} : vector<4x32x32xbf16> to vector<4x24x32xbf16>
    "tpu.trace_start"() <{level = 10 : i32, message = "htd,hsd->hts"}> : () -> ()
    %cst_53 = arith.constant dense<0.000000e+00> : vector<4x8x24xf32>
    %364 = tpu.matmul %361, %362, %cst_53 {dimension_numbers = #tpu.dot_dimension_numbers<[2], [2], [1], [1], [0, 0, 0, 1, 1, 1], [0], [0]>} : vector<4x8x32xbf16>, vector<4x24x32xbf16>, vector<4x8x24xf32> -> vector<4x8x24xf32>
    "tpu.trace_stop"() : () -> ()
    %365 = tpu.iota {dimensions = array<i32: 0>} : vector<8x24xi32>
    %c16_i32_54 = arith.constant 16 : i32
    %366 = vector.broadcast %c16_i32_54 : i32 to vector<8x24xi32>
    %367 = arith.addi %366, %365 : vector<8x24xi32>
    %368 = tpu.iota {dimensions = array<i32: 1>} : vector<8x24xi32>
    %369 = arith.cmpi sge, %367, %368 : vector<8x24xi32>
    %370 = vector.shape_cast %369 : vector<8x24xi1> to vector<1x8x24xi1>
    %cst_55 = arith.constant -1.000000e+30 : f32
    %371 = vector.shape_cast %370 : vector<1x8x24xi1> to vector<1x8x24xi1>
    %372 = vector.broadcast %371 : vector<1x8x24xi1> to vector<4x8x24xi1>
    %373 = vector.broadcast %cst_55 : f32 to vector<4x8x24xf32>
    %374 = arith.select %372, %364, %373 : vector<4x8x24xi1>, vector<4x8x24xf32>
    %cst_56 = arith.constant dense<0xFF800000> : vector<4x8xf32>
    %375 = vector.multi_reduction <maximumf>, %374, %cst_56 [2] : vector<4x8x24xf32> to vector<4x8xf32>
    %376 = vector.shape_cast %375 : vector<4x8xf32> to vector<4x8x1xf32>
    %377 = vector.broadcast %376 : vector<4x8x1xf32> to vector<4x8x24xf32>
    %378 = arith.subf %374, %377 : vector<4x8x24xf32>
    %379 = math.exp %378 : vector<4x8x24xf32>
    %cst_57 = arith.constant dense<0.000000e+00> : vector<4x8xf32>
    %380 = vector.multi_reduction <add>, %379, %cst_57 [2] : vector<4x8x24xf32> to vector<4x8xf32>
    %381 = vector.shape_cast %380 : vector<4x8xf32> to vector<4x8x1xf32>
    %382 = arith.truncf %379 : vector<4x8x24xf32> to vector<4x8x24xbf16>
    "tpu.trace_start"() <{level = 10 : i32, message = "hts,hsd->htd"}> : () -> ()
    %cst_58 = arith.constant dense<0.000000e+00> : vector<4x8x32xf32>
    %383 = tpu.matmul %382, %363, %cst_58 {dimension_numbers = #tpu.dot_dimension_numbers<[2], [1], [1], [2], [0, 0, 0, 1, 1, 2], [0], [0]>} : vector<4x8x24xbf16>, vector<4x24x32xbf16>, vector<4x8x32xf32> -> vector<4x8x32xf32>
    "tpu.trace_stop"() : () -> ()
    %384 = tpu.reciprocal %381 {approx = true} : vector<4x8x1xf32> -> vector<4x8x1xf32>
    %385 = vector.broadcast %384 : vector<4x8x1xf32> to vector<4x8x32xf32>
    %386 = arith.mulf %383, %385 : vector<4x8x32xf32>
    %387 = vector.extract_strided_slice %386 {offsets = [0, 0, 0], sizes = [1, 8, 32], strides = [1, 1, 1]} : vector<4x8x32xf32> to vector<1x8x32xf32>
    %388 = vector.shape_cast %387 : vector<1x8x32xf32> to vector<8x32xf32>
    %389 = vector.extract_strided_slice %386 {offsets = [1, 0, 0], sizes = [1, 8, 32], strides = [1, 1, 1]} : vector<4x8x32xf32> to vector<1x8x32xf32>
    %390 = vector.shape_cast %389 : vector<1x8x32xf32> to vector<8x32xf32>
    %391 = vector.extract_strided_slice %386 {offsets = [2, 0, 0], sizes = [1, 8, 32], strides = [1, 1, 1]} : vector<4x8x32xf32> to vector<1x8x32xf32>
    %392 = vector.shape_cast %391 : vector<1x8x32xf32> to vector<8x32xf32>
    %393 = vector.extract_strided_slice %386 {offsets = [3, 0, 0], sizes = [1, 8, 32], strides = [1, 1, 1]} : vector<4x8x32xf32> to vector<1x8x32xf32>
    %394 = vector.shape_cast %393 : vector<1x8x32xf32> to vector<8x32xf32>
    %395 = tpu.concatenate %388, %390, %392, %394 in 1 : vector<8x32xf32>, vector<8x32xf32>, vector<8x32xf32>, vector<8x32xf32> -> vector<8x128xf32>
    %396 = arith.truncf %395 : vector<8x128xf32> to vector<8x128xbf16>
    %c48 = arith.constant 48 : index
    %c0_59 = arith.constant 0 : index
    %397 = vector.load %arg15[%c48, %c0_59] : memref<128x128xbf16, #tpu.memory_space<vmem>>, vector<8x128xbf16>
    tpu.vector_store %arg15[%c48, %c0_59], %396 {strides = array<i32>} : memref<128x128xbf16, #tpu.memory_space<vmem>>, vector<8x128xbf16>,
    %398 = vector.extract_strided_slice %70 {offsets = [4, 24, 0], sizes = [4, 8, 32], strides = [1, 1, 1]} : vector<16x32x32xbf16> to vector<4x8x32xbf16>
    "tpu.trace_start"() <{level = 10 : i32, message = "htd,hsd->hts"}> : () -> ()
    %cst_60 = arith.constant dense<0.000000e+00> : vector<4x8x32xf32>
    %399 = tpu.matmul %398, %285, %cst_60 {dimension_numbers = #tpu.dot_dimension_numbers<[2], [2], [1], [1], [0, 0, 0, 1, 1, 1], [0], [0]>} : vector<4x8x32xbf16>, vector<4x32x32xbf16>, vector<4x8x32xf32> -> vector<4x8x32xf32>
    "tpu.trace_stop"() : () -> ()
    %400 = tpu.iota {dimensions = array<i32: 0>} : vector<8x32xi32>
    %c24_i32_61 = arith.constant 24 : i32
    %401 = vector.broadcast %c24_i32_61 : i32 to vector<8x32xi32>
    %402 = arith.addi %401, %400 : vector<8x32xi32>
    %403 = tpu.iota {dimensions = array<i32: 1>} : vector<8x32xi32>
    %404 = arith.cmpi sge, %402, %403 : vector<8x32xi32>
    %405 = vector.shape_cast %404 : vector<8x32xi1> to vector<1x8x32xi1>
    %cst_62 = arith.constant -1.000000e+30 : f32
    %406 = vector.shape_cast %405 : vector<1x8x32xi1> to vector<1x8x32xi1>
    %407 = vector.broadcast %406 : vector<1x8x32xi1> to vector<4x8x32xi1>
    %408 = vector.broadcast %cst_62 : f32 to vector<4x8x32xf32>
    %409 = arith.select %407, %399, %408 : vector<4x8x32xi1>, vector<4x8x32xf32>
    %cst_63 = arith.constant dense<0xFF800000> : vector<4x8xf32>
    %410 = vector.multi_reduction <maximumf>, %409, %cst_63 [2] : vector<4x8x32xf32> to vector<4x8xf32>
    %411 = vector.shape_cast %410 : vector<4x8xf32> to vector<4x8x1xf32>
    %412 = vector.broadcast %411 : vector<4x8x1xf32> to vector<4x8x32xf32>
    %413 = arith.subf %409, %412 : vector<4x8x32xf32>
    %414 = math.exp %413 : vector<4x8x32xf32>
    %cst_64 = arith.constant dense<0.000000e+00> : vector<4x8xf32>
    %415 = vector.multi_reduction <add>, %414, %cst_64 [2] : vector<4x8x32xf32> to vector<4x8xf32>
    %416 = vector.shape_cast %415 : vector<4x8xf32> to vector<4x8x1xf32>
    %417 = arith.truncf %414 : vector<4x8x32xf32> to vector<4x8x32xbf16>
    "tpu.trace_start"() <{level = 10 : i32, message = "hts,hsd->htd"}> : () -> ()
    %cst_65 = arith.constant dense<0.000000e+00> : vector<4x8x32xf32>
    %418 = tpu.matmul %417, %286, %cst_65 {dimension_numbers = #tpu.dot_dimension_numbers<[2], [1], [1], [2], [0, 0, 0, 1, 1, 2], [0], [0]>} : vector<4x8x32xbf16>, vector<4x32x32xbf16>, vector<4x8x32xf32> -> vector<4x8x32xf32>
    "tpu.trace_stop"() : () -> ()
    %419 = tpu.reciprocal %416 {approx = true} : vector<4x8x1xf32> -> vector<4x8x1xf32>
    %420 = vector.broadcast %419 : vector<4x8x1xf32> to vector<4x8x32xf32>
    %421 = arith.mulf %418, %420 : vector<4x8x32xf32>
    %422 = vector.extract_strided_slice %421 {offsets = [0, 0, 0], sizes = [1, 8, 32], strides = [1, 1, 1]} : vector<4x8x32xf32> to vector<1x8x32xf32>
    %423 = vector.shape_cast %422 : vector<1x8x32xf32> to vector<8x32xf32>
    %424 = vector.extract_strided_slice %421 {offsets = [1, 0, 0], sizes = [1, 8, 32], strides = [1, 1, 1]} : vector<4x8x32xf32> to vector<1x8x32xf32>
    %425 = vector.shape_cast %424 : vector<1x8x32xf32> to vector<8x32xf32>
    %426 = vector.extract_strided_slice %421 {offsets = [2, 0, 0], sizes = [1, 8, 32], strides = [1, 1, 1]} : vector<4x8x32xf32> to vector<1x8x32xf32>
    %427 = vector.shape_cast %426 : vector<1x8x32xf32> to vector<8x32xf32>
    %428 = vector.extract_strided_slice %421 {offsets = [3, 0, 0], sizes = [1, 8, 32], strides = [1, 1, 1]} : vector<4x8x32xf32> to vector<1x8x32xf32>
    %429 = vector.shape_cast %428 : vector<1x8x32xf32> to vector<8x32xf32>
    %430 = tpu.concatenate %423, %425, %427, %429 in 1 : vector<8x32xf32>, vector<8x32xf32>, vector<8x32xf32>, vector<8x32xf32> -> vector<8x128xf32>
    %431 = arith.truncf %430 : vector<8x128xf32> to vector<8x128xbf16>
    %c56 = arith.constant 56 : index
    %c0_66 = arith.constant 0 : index
    %432 = vector.load %arg15[%c56, %c0_66] : memref<128x128xbf16, #tpu.memory_space<vmem>>, vector<8x128xbf16>
    tpu.vector_store %arg15[%c56, %c0_66], %431 {strides = array<i32>} : memref<128x128xbf16, #tpu.memory_space<vmem>>, vector<8x128xbf16>,
    %433 = vector.extract_strided_slice %103 {offsets = [8, 0, 0], sizes = [4, 32, 32], strides = [1, 1, 1]} : vector<16x32x32xbf16> to vector<4x32x32xbf16>
    %434 = vector.extract_strided_slice %136 {offsets = [8, 0, 0], sizes = [4, 32, 32], strides = [1, 1, 1]} : vector<16x32x32xbf16> to vector<4x32x32xbf16>
    %435 = vector.extract_strided_slice %70 {offsets = [8, 0, 0], sizes = [4, 8, 32], strides = [1, 1, 1]} : vector<16x32x32xbf16> to vector<4x8x32xbf16>
    %436 = vector.extract_strided_slice %433 {offsets = [0, 0, 0], sizes = [4, 8, 32], strides = [1, 1, 1]} : vector<4x32x32xbf16> to vector<4x8x32xbf16>
    %437 = vector.extract_strided_slice %434 {offsets = [0, 0, 0], sizes = [4, 8, 32], strides = [1, 1, 1]} : vector<4x32x32xbf16> to vector<4x8x32xbf16>
    "tpu.trace_start"() <{level = 10 : i32, message = "htd,hsd->hts"}> : () -> ()
    %cst_67 = arith.constant dense<0.000000e+00> : vector<4x8x8xf32>
    %438 = tpu.matmul %435, %436, %cst_67 {dimension_numbers = #tpu.dot_dimension_numbers<[2], [2], [1], [1], [0, 0, 0, 1, 1, 1], [0], [0]>} : vector<4x8x32xbf16>, vector<4x8x32xbf16>, vector<4x8x8xf32> -> vector<4x8x8xf32>
    "tpu.trace_stop"() : () -> ()
    %439 = tpu.iota {dimensions = array<i32: 0>} : vector<8x8xi32>
    %c0_i32_68 = arith.constant 0 : i32
    %440 = vector.broadcast %c0_i32_68 : i32 to vector<8x8xi32>
    %441 = arith.addi %440, %439 : vector<8x8xi32>
    %442 = tpu.iota {dimensions = array<i32: 1>} : vector<8x8xi32>
    %443 = arith.cmpi sge, %441, %442 : vector<8x8xi32>
    %444 = vector.shape_cast %443 : vector<8x8xi1> to vector<1x8x8xi1>
    %cst_69 = arith.constant -1.000000e+30 : f32
    %445 = vector.shape_cast %444 : vector<1x8x8xi1> to vector<1x8x8xi1>
    %446 = vector.broadcast %445 : vector<1x8x8xi1> to vector<4x8x8xi1>
    %447 = vector.broadcast %cst_69 : f32 to vector<4x8x8xf32>
    %448 = arith.select %446, %438, %447 : vector<4x8x8xi1>, vector<4x8x8xf32>
    %cst_70 = arith.constant dense<0xFF800000> : vector<4x8xf32>
    %449 = vector.multi_reduction <maximumf>, %448, %cst_70 [2] : vector<4x8x8xf32> to vector<4x8xf32>
    %450 = vector.shape_cast %449 : vector<4x8xf32> to vector<4x8x1xf32>
    %451 = vector.broadcast %450 : vector<4x8x1xf32> to vector<4x8x8xf32>
    %452 = arith.subf %448, %451 : vector<4x8x8xf32>
    %453 = math.exp %452 : vector<4x8x8xf32>
    %cst_71 = arith.constant dense<0.000000e+00> : vector<4x8xf32>
    %454 = vector.multi_reduction <add>, %453, %cst_71 [2] : vector<4x8x8xf32> to vector<4x8xf32>
    %455 = vector.shape_cast %454 : vector<4x8xf32> to vector<4x8x1xf32>
    %456 = arith.truncf %453 : vector<4x8x8xf32> to vector<4x8x8xbf16>
    "tpu.trace_start"() <{level = 10 : i32, message = "hts,hsd->htd"}> : () -> ()
    %cst_72 = arith.constant dense<0.000000e+00> : vector<4x8x32xf32>
    %457 = tpu.matmul %456, %437, %cst_72 {dimension_numbers = #tpu.dot_dimension_numbers<[2], [1], [1], [2], [0, 0, 0, 1, 1, 2], [0], [0]>} : vector<4x8x8xbf16>, vector<4x8x32xbf16>, vector<4x8x32xf32> -> vector<4x8x32xf32>
    "tpu.trace_stop"() : () -> ()
    %458 = tpu.reciprocal %455 {approx = true} : vector<4x8x1xf32> -> vector<4x8x1xf32>
    %459 = vector.broadcast %458 : vector<4x8x1xf32> to vector<4x8x32xf32>
    %460 = arith.mulf %457, %459 : vector<4x8x32xf32>
    %461 = vector.extract_strided_slice %460 {offsets = [0, 0, 0], sizes = [1, 8, 32], strides = [1, 1, 1]} : vector<4x8x32xf32> to vector<1x8x32xf32>
    %462 = vector.shape_cast %461 : vector<1x8x32xf32> to vector<8x32xf32>
    %463 = vector.extract_strided_slice %460 {offsets = [1, 0, 0], sizes = [1, 8, 32], strides = [1, 1, 1]} : vector<4x8x32xf32> to vector<1x8x32xf32>
    %464 = vector.shape_cast %463 : vector<1x8x32xf32> to vector<8x32xf32>
    %465 = vector.extract_strided_slice %460 {offsets = [2, 0, 0], sizes = [1, 8, 32], strides = [1, 1, 1]} : vector<4x8x32xf32> to vector<1x8x32xf32>
    %466 = vector.shape_cast %465 : vector<1x8x32xf32> to vector<8x32xf32>
    %467 = vector.extract_strided_slice %460 {offsets = [3, 0, 0], sizes = [1, 8, 32], strides = [1, 1, 1]} : vector<4x8x32xf32> to vector<1x8x32xf32>
    %468 = vector.shape_cast %467 : vector<1x8x32xf32> to vector<8x32xf32>
    %469 = tpu.concatenate %462, %464, %466, %468 in 1 : vector<8x32xf32>, vector<8x32xf32>, vector<8x32xf32>, vector<8x32xf32> -> vector<8x128xf32>
    %470 = arith.truncf %469 : vector<8x128xf32> to vector<8x128xbf16>
    %c64 = arith.constant 64 : index
    %c0_73 = arith.constant 0 : index
    %471 = vector.load %arg15[%c64, %c0_73] : memref<128x128xbf16, #tpu.memory_space<vmem>>, vector<8x128xbf16>
    tpu.vector_store %arg15[%c64, %c0_73], %470 {strides = array<i32>} : memref<128x128xbf16, #tpu.memory_space<vmem>>, vector<8x128xbf16>,
    %472 = vector.extract_strided_slice %70 {offsets = [8, 8, 0], sizes = [4, 8, 32], strides = [1, 1, 1]} : vector<16x32x32xbf16> to vector<4x8x32xbf16>
    %473 = vector.extract_strided_slice %433 {offsets = [0, 0, 0], sizes = [4, 16, 32], strides = [1, 1, 1]} : vector<4x32x32xbf16> to vector<4x16x32xbf16>
    %474 = vector.extract_strided_slice %434 {offsets = [0, 0, 0], sizes = [4, 16, 32], strides = [1, 1, 1]} : vector<4x32x32xbf16> to vector<4x16x32xbf16>
    "tpu.trace_start"() <{level = 10 : i32, message = "htd,hsd->hts"}> : () -> ()
    %cst_74 = arith.constant dense<0.000000e+00> : vector<4x8x16xf32>
    %475 = tpu.matmul %472, %473, %cst_74 {dimension_numbers = #tpu.dot_dimension_numbers<[2], [2], [1], [1], [0, 0, 0, 1, 1, 1], [0], [0]>} : vector<4x8x32xbf16>, vector<4x16x32xbf16>, vector<4x8x16xf32> -> vector<4x8x16xf32>
    "tpu.trace_stop"() : () -> ()
    %476 = tpu.iota {dimensions = array<i32: 0>} : vector<8x16xi32>
    %c8_i32_75 = arith.constant 8 : i32
    %477 = vector.broadcast %c8_i32_75 : i32 to vector<8x16xi32>
    %478 = arith.addi %477, %476 : vector<8x16xi32>
    %479 = tpu.iota {dimensions = array<i32: 1>} : vector<8x16xi32>
    %480 = arith.cmpi sge, %478, %479 : vector<8x16xi32>
    %481 = vector.shape_cast %480 : vector<8x16xi1> to vector<1x8x16xi1>
    %cst_76 = arith.constant -1.000000e+30 : f32
    %482 = vector.shape_cast %481 : vector<1x8x16xi1> to vector<1x8x16xi1>
    %483 = vector.broadcast %482 : vector<1x8x16xi1> to vector<4x8x16xi1>
    %484 = vector.broadcast %cst_76 : f32 to vector<4x8x16xf32>
    %485 = arith.select %483, %475, %484 : vector<4x8x16xi1>, vector<4x8x16xf32>
    %cst_77 = arith.constant dense<0xFF800000> : vector<4x8xf32>
    %486 = vector.multi_reduction <maximumf>, %485, %cst_77 [2] : vector<4x8x16xf32> to vector<4x8xf32>
    %487 = vector.shape_cast %486 : vector<4x8xf32> to vector<4x8x1xf32>
    %488 = vector.broadcast %487 : vector<4x8x1xf32> to vector<4x8x16xf32>
    %489 = arith.subf %485, %488 : vector<4x8x16xf32>
    %490 = math.exp %489 : vector<4x8x16xf32>
    %cst_78 = arith.constant dense<0.000000e+00> : vector<4x8xf32>
    %491 = vector.multi_reduction <add>, %490, %cst_78 [2] : vector<4x8x16xf32> to vector<4x8xf32>
    %492 = vector.shape_cast %491 : vector<4x8xf32> to vector<4x8x1xf32>
    %493 = arith.truncf %490 : vector<4x8x16xf32> to vector<4x8x16xbf16>
    "tpu.trace_start"() <{level = 10 : i32, message = "hts,hsd->htd"}> : () -> ()
    %cst_79 = arith.constant dense<0.000000e+00> : vector<4x8x32xf32>
    %494 = tpu.matmul %493, %474, %cst_79 {dimension_numbers = #tpu.dot_dimension_numbers<[2], [1], [1], [2], [0, 0, 0, 1, 1, 2], [0], [0]>} : vector<4x8x16xbf16>, vector<4x16x32xbf16>, vector<4x8x32xf32> -> vector<4x8x32xf32>
    "tpu.trace_stop"() : () -> ()
    %495 = tpu.reciprocal %492 {approx = true} : vector<4x8x1xf32> -> vector<4x8x1xf32>
    %496 = vector.broadcast %495 : vector<4x8x1xf32> to vector<4x8x32xf32>
    %497 = arith.mulf %494, %496 : vector<4x8x32xf32>
    %498 = vector.extract_strided_slice %497 {offsets = [0, 0, 0], sizes = [1, 8, 32], strides = [1, 1, 1]} : vector<4x8x32xf32> to vector<1x8x32xf32>
    %499 = vector.shape_cast %498 : vector<1x8x32xf32> to vector<8x32xf32>
    %500 = vector.extract_strided_slice %497 {offsets = [1, 0, 0], sizes = [1, 8, 32], strides = [1, 1, 1]} : vector<4x8x32xf32> to vector<1x8x32xf32>
    %501 = vector.shape_cast %500 : vector<1x8x32xf32> to vector<8x32xf32>
    %502 = vector.extract_strided_slice %497 {offsets = [2, 0, 0], sizes = [1, 8, 32], strides = [1, 1, 1]} : vector<4x8x32xf32> to vector<1x8x32xf32>
    %503 = vector.shape_cast %502 : vector<1x8x32xf32> to vector<8x32xf32>
    %504 = vector.extract_strided_slice %497 {offsets = [3, 0, 0], sizes = [1, 8, 32], strides = [1, 1, 1]} : vector<4x8x32xf32> to vector<1x8x32xf32>
    %505 = vector.shape_cast %504 : vector<1x8x32xf32> to vector<8x32xf32>
    %506 = tpu.concatenate %499, %501, %503, %505 in 1 : vector<8x32xf32>, vector<8x32xf32>, vector<8x32xf32>, vector<8x32xf32> -> vector<8x128xf32>
    %507 = arith.truncf %506 : vector<8x128xf32> to vector<8x128xbf16>
    %c72 = arith.constant 72 : index
    %c0_80 = arith.constant 0 : index
    %508 = vector.load %arg15[%c72, %c0_80] : memref<128x128xbf16, #tpu.memory_space<vmem>>, vector<8x128xbf16>
    tpu.vector_store %arg15[%c72, %c0_80], %507 {strides = array<i32>} : memref<128x128xbf16, #tpu.memory_space<vmem>>, vector<8x128xbf16>,
    %509 = vector.extract_strided_slice %70 {offsets = [8, 16, 0], sizes = [4, 8, 32], strides = [1, 1, 1]} : vector<16x32x32xbf16> to vector<4x8x32xbf16>
    %510 = vector.extract_strided_slice %433 {offsets = [0, 0, 0], sizes = [4, 24, 32], strides = [1, 1, 1]} : vector<4x32x32xbf16> to vector<4x24x32xbf16>
    %511 = vector.extract_strided_slice %434 {offsets = [0, 0, 0], sizes = [4, 24, 32], strides = [1, 1, 1]} : vector<4x32x32xbf16> to vector<4x24x32xbf16>
    "tpu.trace_start"() <{level = 10 : i32, message = "htd,hsd->hts"}> : () -> ()
    %cst_81 = arith.constant dense<0.000000e+00> : vector<4x8x24xf32>
    %512 = tpu.matmul %509, %510, %cst_81 {dimension_numbers = #tpu.dot_dimension_numbers<[2], [2], [1], [1], [0, 0, 0, 1, 1, 1], [0], [0]>} : vector<4x8x32xbf16>, vector<4x24x32xbf16>, vector<4x8x24xf32> -> vector<4x8x24xf32>
    "tpu.trace_stop"() : () -> ()
    %513 = tpu.iota {dimensions = array<i32: 0>} : vector<8x24xi32>
    %c16_i32_82 = arith.constant 16 : i32
    %514 = vector.broadcast %c16_i32_82 : i32 to vector<8x24xi32>
    %515 = arith.addi %514, %513 : vector<8x24xi32>
    %516 = tpu.iota {dimensions = array<i32: 1>} : vector<8x24xi32>
    %517 = arith.cmpi sge, %515, %516 : vector<8x24xi32>
    %518 = vector.shape_cast %517 : vector<8x24xi1> to vector<1x8x24xi1>
    %cst_83 = arith.constant -1.000000e+30 : f32
    %519 = vector.shape_cast %518 : vector<1x8x24xi1> to vector<1x8x24xi1>
    %520 = vector.broadcast %519 : vector<1x8x24xi1> to vector<4x8x24xi1>
    %521 = vector.broadcast %cst_83 : f32 to vector<4x8x24xf32>
    %522 = arith.select %520, %512, %521 : vector<4x8x24xi1>, vector<4x8x24xf32>
    %cst_84 = arith.constant dense<0xFF800000> : vector<4x8xf32>
    %523 = vector.multi_reduction <maximumf>, %522, %cst_84 [2] : vector<4x8x24xf32> to vector<4x8xf32>
    %524 = vector.shape_cast %523 : vector<4x8xf32> to vector<4x8x1xf32>
    %525 = vector.broadcast %524 : vector<4x8x1xf32> to vector<4x8x24xf32>
    %526 = arith.subf %522, %525 : vector<4x8x24xf32>
    %527 = math.exp %526 : vector<4x8x24xf32>
    %cst_85 = arith.constant dense<0.000000e+00> : vector<4x8xf32>
    %528 = vector.multi_reduction <add>, %527, %cst_85 [2] : vector<4x8x24xf32> to vector<4x8xf32>
    %529 = vector.shape_cast %528 : vector<4x8xf32> to vector<4x8x1xf32>
    %530 = arith.truncf %527 : vector<4x8x24xf32> to vector<4x8x24xbf16>
    "tpu.trace_start"() <{level = 10 : i32, message = "hts,hsd->htd"}> : () -> ()
    %cst_86 = arith.constant dense<0.000000e+00> : vector<4x8x32xf32>
    %531 = tpu.matmul %530, %511, %cst_86 {dimension_numbers = #tpu.dot_dimension_numbers<[2], [1], [1], [2], [0, 0, 0, 1, 1, 2], [0], [0]>} : vector<4x8x24xbf16>, vector<4x24x32xbf16>, vector<4x8x32xf32> -> vector<4x8x32xf32>
    "tpu.trace_stop"() : () -> ()
    %532 = tpu.reciprocal %529 {approx = true} : vector<4x8x1xf32> -> vector<4x8x1xf32>
    %533 = vector.broadcast %532 : vector<4x8x1xf32> to vector<4x8x32xf32>
    %534 = arith.mulf %531, %533 : vector<4x8x32xf32>
    %535 = vector.extract_strided_slice %534 {offsets = [0, 0, 0], sizes = [1, 8, 32], strides = [1, 1, 1]} : vector<4x8x32xf32> to vector<1x8x32xf32>
    %536 = vector.shape_cast %535 : vector<1x8x32xf32> to vector<8x32xf32>
    %537 = vector.extract_strided_slice %534 {offsets = [1, 0, 0], sizes = [1, 8, 32], strides = [1, 1, 1]} : vector<4x8x32xf32> to vector<1x8x32xf32>
    %538 = vector.shape_cast %537 : vector<1x8x32xf32> to vector<8x32xf32>
    %539 = vector.extract_strided_slice %534 {offsets = [2, 0, 0], sizes = [1, 8, 32], strides = [1, 1, 1]} : vector<4x8x32xf32> to vector<1x8x32xf32>
    %540 = vector.shape_cast %539 : vector<1x8x32xf32> to vector<8x32xf32>
    %541 = vector.extract_strided_slice %534 {offsets = [3, 0, 0], sizes = [1, 8, 32], strides = [1, 1, 1]} : vector<4x8x32xf32> to vector<1x8x32xf32>
    %542 = vector.shape_cast %541 : vector<1x8x32xf32> to vector<8x32xf32>
    %543 = tpu.concatenate %536, %538, %540, %542 in 1 : vector<8x32xf32>, vector<8x32xf32>, vector<8x32xf32>, vector<8x32xf32> -> vector<8x128xf32>
    %544 = arith.truncf %543 : vector<8x128xf32> to vector<8x128xbf16>
    %c80 = arith.constant 80 : index
    %c0_87 = arith.constant 0 : index
    %545 = vector.load %arg15[%c80, %c0_87] : memref<128x128xbf16, #tpu.memory_space<vmem>>, vector<8x128xbf16>
    tpu.vector_store %arg15[%c80, %c0_87], %544 {strides = array<i32>} : memref<128x128xbf16, #tpu.memory_space<vmem>>, vector<8x128xbf16>,
    %546 = vector.extract_strided_slice %70 {offsets = [8, 24, 0], sizes = [4, 8, 32], strides = [1, 1, 1]} : vector<16x32x32xbf16> to vector<4x8x32xbf16>
    "tpu.trace_start"() <{level = 10 : i32, message = "htd,hsd->hts"}> : () -> ()
    %cst_88 = arith.constant dense<0.000000e+00> : vector<4x8x32xf32>
    %547 = tpu.matmul %546, %433, %cst_88 {dimension_numbers = #tpu.dot_dimension_numbers<[2], [2], [1], [1], [0, 0, 0, 1, 1, 1], [0], [0]>} : vector<4x8x32xbf16>, vector<4x32x32xbf16>, vector<4x8x32xf32> -> vector<4x8x32xf32>
    "tpu.trace_stop"() : () -> ()
    %548 = tpu.iota {dimensions = array<i32: 0>} : vector<8x32xi32>
    %c24_i32_89 = arith.constant 24 : i32
    %549 = vector.broadcast %c24_i32_89 : i32 to vector<8x32xi32>
    %550 = arith.addi %549, %548 : vector<8x32xi32>
    %551 = tpu.iota {dimensions = array<i32: 1>} : vector<8x32xi32>
    %552 = arith.cmpi sge, %550, %551 : vector<8x32xi32>
    %553 = vector.shape_cast %552 : vector<8x32xi1> to vector<1x8x32xi1>
    %cst_90 = arith.constant -1.000000e+30 : f32
    %554 = vector.shape_cast %553 : vector<1x8x32xi1> to vector<1x8x32xi1>
    %555 = vector.broadcast %554 : vector<1x8x32xi1> to vector<4x8x32xi1>
    %556 = vector.broadcast %cst_90 : f32 to vector<4x8x32xf32>
    %557 = arith.select %555, %547, %556 : vector<4x8x32xi1>, vector<4x8x32xf32>
    %cst_91 = arith.constant dense<0xFF800000> : vector<4x8xf32>
    %558 = vector.multi_reduction <maximumf>, %557, %cst_91 [2] : vector<4x8x32xf32> to vector<4x8xf32>
    %559 = vector.shape_cast %558 : vector<4x8xf32> to vector<4x8x1xf32>
    %560 = vector.broadcast %559 : vector<4x8x1xf32> to vector<4x8x32xf32>
    %561 = arith.subf %557, %560 : vector<4x8x32xf32>
    %562 = math.exp %561 : vector<4x8x32xf32>
    %cst_92 = arith.constant dense<0.000000e+00> : vector<4x8xf32>
    %563 = vector.multi_reduction <add>, %562, %cst_92 [2] : vector<4x8x32xf32> to vector<4x8xf32>
    %564 = vector.shape_cast %563 : vector<4x8xf32> to vector<4x8x1xf32>
    %565 = arith.truncf %562 : vector<4x8x32xf32> to vector<4x8x32xbf16>
    "tpu.trace_start"() <{level = 10 : i32, message = "hts,hsd->htd"}> : () -> ()
    %cst_93 = arith.constant dense<0.000000e+00> : vector<4x8x32xf32>
    %566 = tpu.matmul %565, %434, %cst_93 {dimension_numbers = #tpu.dot_dimension_numbers<[2], [1], [1], [2], [0, 0, 0, 1, 1, 2], [0], [0]>} : vector<4x8x32xbf16>, vector<4x32x32xbf16>, vector<4x8x32xf32> -> vector<4x8x32xf32>
    "tpu.trace_stop"() : () -> ()
    %567 = tpu.reciprocal %564 {approx = true} : vector<4x8x1xf32> -> vector<4x8x1xf32>
    %568 = vector.broadcast %567 : vector<4x8x1xf32> to vector<4x8x32xf32>
    %569 = arith.mulf %566, %568 : vector<4x8x32xf32>
    %570 = vector.extract_strided_slice %569 {offsets = [0, 0, 0], sizes = [1, 8, 32], strides = [1, 1, 1]} : vector<4x8x32xf32> to vector<1x8x32xf32>
    %571 = vector.shape_cast %570 : vector<1x8x32xf32> to vector<8x32xf32>
    %572 = vector.extract_strided_slice %569 {offsets = [1, 0, 0], sizes = [1, 8, 32], strides = [1, 1, 1]} : vector<4x8x32xf32> to vector<1x8x32xf32>
    %573 = vector.shape_cast %572 : vector<1x8x32xf32> to vector<8x32xf32>
    %574 = vector.extract_strided_slice %569 {offsets = [2, 0, 0], sizes = [1, 8, 32], strides = [1, 1, 1]} : vector<4x8x32xf32> to vector<1x8x32xf32>
    %575 = vector.shape_cast %574 : vector<1x8x32xf32> to vector<8x32xf32>
    %576 = vector.extract_strided_slice %569 {offsets = [3, 0, 0], sizes = [1, 8, 32], strides = [1, 1, 1]} : vector<4x8x32xf32> to vector<1x8x32xf32>
    %577 = vector.shape_cast %576 : vector<1x8x32xf32> to vector<8x32xf32>
    %578 = tpu.concatenate %571, %573, %575, %577 in 1 : vector<8x32xf32>, vector<8x32xf32>, vector<8x32xf32>, vector<8x32xf32> -> vector<8x128xf32>
    %579 = arith.truncf %578 : vector<8x128xf32> to vector<8x128xbf16>
    %c88 = arith.constant 88 : index
    %c0_94 = arith.constant 0 : index
    %580 = vector.load %arg15[%c88, %c0_94] : memref<128x128xbf16, #tpu.memory_space<vmem>>, vector<8x128xbf16>
    tpu.vector_store %arg15[%c88, %c0_94], %579 {strides = array<i32>} : memref<128x128xbf16, #tpu.memory_space<vmem>>, vector<8x128xbf16>,
    %581 = vector.extract_strided_slice %103 {offsets = [12, 0, 0], sizes = [4, 32, 32], strides = [1, 1, 1]} : vector<16x32x32xbf16> to vector<4x32x32xbf16>
    %582 = vector.extract_strided_slice %136 {offsets = [12, 0, 0], sizes = [4, 32, 32], strides = [1, 1, 1]} : vector<16x32x32xbf16> to vector<4x32x32xbf16>
    %583 = vector.extract_strided_slice %70 {offsets = [12, 0, 0], sizes = [4, 8, 32], strides = [1, 1, 1]} : vector<16x32x32xbf16> to vector<4x8x32xbf16>
    %584 = vector.extract_strided_slice %581 {offsets = [0, 0, 0], sizes = [4, 8, 32], strides = [1, 1, 1]} : vector<4x32x32xbf16> to vector<4x8x32xbf16>
    %585 = vector.extract_strided_slice %582 {offsets = [0, 0, 0], sizes = [4, 8, 32], strides = [1, 1, 1]} : vector<4x32x32xbf16> to vector<4x8x32xbf16>
    "tpu.trace_start"() <{level = 10 : i32, message = "htd,hsd->hts"}> : () -> ()
    %cst_95 = arith.constant dense<0.000000e+00> : vector<4x8x8xf32>
    %586 = tpu.matmul %583, %584, %cst_95 {dimension_numbers = #tpu.dot_dimension_numbers<[2], [2], [1], [1], [0, 0, 0, 1, 1, 1], [0], [0]>} : vector<4x8x32xbf16>, vector<4x8x32xbf16>, vector<4x8x8xf32> -> vector<4x8x8xf32>
    "tpu.trace_stop"() : () -> ()
    %587 = tpu.iota {dimensions = array<i32: 0>} : vector<8x8xi32>
    %c0_i32_96 = arith.constant 0 : i32
    %588 = vector.broadcast %c0_i32_96 : i32 to vector<8x8xi32>
    %589 = arith.addi %588, %587 : vector<8x8xi32>
    %590 = tpu.iota {dimensions = array<i32: 1>} : vector<8x8xi32>
    %591 = arith.cmpi sge, %589, %590 : vector<8x8xi32>
    %592 = vector.shape_cast %591 : vector<8x8xi1> to vector<1x8x8xi1>
    %cst_97 = arith.constant -1.000000e+30 : f32
    %593 = vector.shape_cast %592 : vector<1x8x8xi1> to vector<1x8x8xi1>
    %594 = vector.broadcast %593 : vector<1x8x8xi1> to vector<4x8x8xi1>
    %595 = vector.broadcast %cst_97 : f32 to vector<4x8x8xf32>
    %596 = arith.select %594, %586, %595 : vector<4x8x8xi1>, vector<4x8x8xf32>
    %cst_98 = arith.constant dense<0xFF800000> : vector<4x8xf32>
    %597 = vector.multi_reduction <maximumf>, %596, %cst_98 [2] : vector<4x8x8xf32> to vector<4x8xf32>
    %598 = vector.shape_cast %597 : vector<4x8xf32> to vector<4x8x1xf32>
    %599 = vector.broadcast %598 : vector<4x8x1xf32> to vector<4x8x8xf32>
    %600 = arith.subf %596, %599 : vector<4x8x8xf32>
    %601 = math.exp %600 : vector<4x8x8xf32>
    %cst_99 = arith.constant dense<0.000000e+00> : vector<4x8xf32>
    %602 = vector.multi_reduction <add>, %601, %cst_99 [2] : vector<4x8x8xf32> to vector<4x8xf32>
    %603 = vector.shape_cast %602 : vector<4x8xf32> to vector<4x8x1xf32>
    %604 = arith.truncf %601 : vector<4x8x8xf32> to vector<4x8x8xbf16>
    "tpu.trace_start"() <{level = 10 : i32, message = "hts,hsd->htd"}> : () -> ()
    %cst_100 = arith.constant dense<0.000000e+00> : vector<4x8x32xf32>
    %605 = tpu.matmul %604, %585, %cst_100 {dimension_numbers = #tpu.dot_dimension_numbers<[2], [1], [1], [2], [0, 0, 0, 1, 1, 2], [0], [0]>} : vector<4x8x8xbf16>, vector<4x8x32xbf16>, vector<4x8x32xf32> -> vector<4x8x32xf32>
    "tpu.trace_stop"() : () -> ()
    %606 = tpu.reciprocal %603 {approx = true} : vector<4x8x1xf32> -> vector<4x8x1xf32>
    %607 = vector.broadcast %606 : vector<4x8x1xf32> to vector<4x8x32xf32>
    %608 = arith.mulf %605, %607 : vector<4x8x32xf32>
    %609 = vector.extract_strided_slice %608 {offsets = [0, 0, 0], sizes = [1, 8, 32], strides = [1, 1, 1]} : vector<4x8x32xf32> to vector<1x8x32xf32>
    %610 = vector.shape_cast %609 : vector<1x8x32xf32> to vector<8x32xf32>
    %611 = vector.extract_strided_slice %608 {offsets = [1, 0, 0], sizes = [1, 8, 32], strides = [1, 1, 1]} : vector<4x8x32xf32> to vector<1x8x32xf32>
    %612 = vector.shape_cast %611 : vector<1x8x32xf32> to vector<8x32xf32>
    %613 = vector.extract_strided_slice %608 {offsets = [2, 0, 0], sizes = [1, 8, 32], strides = [1, 1, 1]} : vector<4x8x32xf32> to vector<1x8x32xf32>
    %614 = vector.shape_cast %613 : vector<1x8x32xf32> to vector<8x32xf32>
    %615 = vector.extract_strided_slice %608 {offsets = [3, 0, 0], sizes = [1, 8, 32], strides = [1, 1, 1]} : vector<4x8x32xf32> to vector<1x8x32xf32>
    %616 = vector.shape_cast %615 : vector<1x8x32xf32> to vector<8x32xf32>
    %617 = tpu.concatenate %610, %612, %614, %616 in 1 : vector<8x32xf32>, vector<8x32xf32>, vector<8x32xf32>, vector<8x32xf32> -> vector<8x128xf32>
    %618 = arith.truncf %617 : vector<8x128xf32> to vector<8x128xbf16>
    %c96 = arith.constant 96 : index
    %c0_101 = arith.constant 0 : index
    %619 = vector.load %arg15[%c96, %c0_101] : memref<128x128xbf16, #tpu.memory_space<vmem>>, vector<8x128xbf16>
    tpu.vector_store %arg15[%c96, %c0_101], %618 {strides = array<i32>} : memref<128x128xbf16, #tpu.memory_space<vmem>>, vector<8x128xbf16>,
    %620 = vector.extract_strided_slice %70 {offsets = [12, 8, 0], sizes = [4, 8, 32], strides = [1, 1, 1]} : vector<16x32x32xbf16> to vector<4x8x32xbf16>
    %621 = vector.extract_strided_slice %581 {offsets = [0, 0, 0], sizes = [4, 16, 32], strides = [1, 1, 1]} : vector<4x32x32xbf16> to vector<4x16x32xbf16>
    %622 = vector.extract_strided_slice %582 {offsets = [0, 0, 0], sizes = [4, 16, 32], strides = [1, 1, 1]} : vector<4x32x32xbf16> to vector<4x16x32xbf16>
    "tpu.trace_start"() <{level = 10 : i32, message = "htd,hsd->hts"}> : () -> ()
    %cst_102 = arith.constant dense<0.000000e+00> : vector<4x8x16xf32>
    %623 = tpu.matmul %620, %621, %cst_102 {dimension_numbers = #tpu.dot_dimension_numbers<[2], [2], [1], [1], [0, 0, 0, 1, 1, 1], [0], [0]>} : vector<4x8x32xbf16>, vector<4x16x32xbf16>, vector<4x8x16xf32> -> vector<4x8x16xf32>
    "tpu.trace_stop"() : () -> ()
    %624 = tpu.iota {dimensions = array<i32: 0>} : vector<8x16xi32>
    %c8_i32_103 = arith.constant 8 : i32
    %625 = vector.broadcast %c8_i32_103 : i32 to vector<8x16xi32>
    %626 = arith.addi %625, %624 : vector<8x16xi32>
    %627 = tpu.iota {dimensions = array<i32: 1>} : vector<8x16xi32>
    %628 = arith.cmpi sge, %626, %627 : vector<8x16xi32>
    %629 = vector.shape_cast %628 : vector<8x16xi1> to vector<1x8x16xi1>
    %cst_104 = arith.constant -1.000000e+30 : f32
    %630 = vector.shape_cast %629 : vector<1x8x16xi1> to vector<1x8x16xi1>
    %631 = vector.broadcast %630 : vector<1x8x16xi1> to vector<4x8x16xi1>
    %632 = vector.broadcast %cst_104 : f32 to vector<4x8x16xf32>
    %633 = arith.select %631, %623, %632 : vector<4x8x16xi1>, vector<4x8x16xf32>
    %cst_105 = arith.constant dense<0xFF800000> : vector<4x8xf32>
    %634 = vector.multi_reduction <maximumf>, %633, %cst_105 [2] : vector<4x8x16xf32> to vector<4x8xf32>
    %635 = vector.shape_cast %634 : vector<4x8xf32> to vector<4x8x1xf32>
    %636 = vector.broadcast %635 : vector<4x8x1xf32> to vector<4x8x16xf32>
    %637 = arith.subf %633, %636 : vector<4x8x16xf32>
    %638 = math.exp %637 : vector<4x8x16xf32>
    %cst_106 = arith.constant dense<0.000000e+00> : vector<4x8xf32>
    %639 = vector.multi_reduction <add>, %638, %cst_106 [2] : vector<4x8x16xf32> to vector<4x8xf32>
    %640 = vector.shape_cast %639 : vector<4x8xf32> to vector<4x8x1xf32>
    %641 = arith.truncf %638 : vector<4x8x16xf32> to vector<4x8x16xbf16>
    "tpu.trace_start"() <{level = 10 : i32, message = "hts,hsd->htd"}> : () -> ()
    %cst_107 = arith.constant dense<0.000000e+00> : vector<4x8x32xf32>
    %642 = tpu.matmul %641, %622, %cst_107 {dimension_numbers = #tpu.dot_dimension_numbers<[2], [1], [1], [2], [0, 0, 0, 1, 1, 2], [0], [0]>} : vector<4x8x16xbf16>, vector<4x16x32xbf16>, vector<4x8x32xf32> -> vector<4x8x32xf32>
    "tpu.trace_stop"() : () -> ()
    %643 = tpu.reciprocal %640 {approx = true} : vector<4x8x1xf32> -> vector<4x8x1xf32>
    %644 = vector.broadcast %643 : vector<4x8x1xf32> to vector<4x8x32xf32>
    %645 = arith.mulf %642, %644 : vector<4x8x32xf32>
    %646 = vector.extract_strided_slice %645 {offsets = [0, 0, 0], sizes = [1, 8, 32], strides = [1, 1, 1]} : vector<4x8x32xf32> to vector<1x8x32xf32>
    %647 = vector.shape_cast %646 : vector<1x8x32xf32> to vector<8x32xf32>
    %648 = vector.extract_strided_slice %645 {offsets = [1, 0, 0], sizes = [1, 8, 32], strides = [1, 1, 1]} : vector<4x8x32xf32> to vector<1x8x32xf32>
    %649 = vector.shape_cast %648 : vector<1x8x32xf32> to vector<8x32xf32>
    %650 = vector.extract_strided_slice %645 {offsets = [2, 0, 0], sizes = [1, 8, 32], strides = [1, 1, 1]} : vector<4x8x32xf32> to vector<1x8x32xf32>
    %651 = vector.shape_cast %650 : vector<1x8x32xf32> to vector<8x32xf32>
    %652 = vector.extract_strided_slice %645 {offsets = [3, 0, 0], sizes = [1, 8, 32], strides = [1, 1, 1]} : vector<4x8x32xf32> to vector<1x8x32xf32>
    %653 = vector.shape_cast %652 : vector<1x8x32xf32> to vector<8x32xf32>
    %654 = tpu.concatenate %647, %649, %651, %653 in 1 : vector<8x32xf32>, vector<8x32xf32>, vector<8x32xf32>, vector<8x32xf32> -> vector<8x128xf32>
    %655 = arith.truncf %654 : vector<8x128xf32> to vector<8x128xbf16>
    %c104 = arith.constant 104 : index
    %c0_108 = arith.constant 0 : index
    %656 = vector.load %arg15[%c104, %c0_108] : memref<128x128xbf16, #tpu.memory_space<vmem>>, vector<8x128xbf16>
    tpu.vector_store %arg15[%c104, %c0_108], %655 {strides = array<i32>} : memref<128x128xbf16, #tpu.memory_space<vmem>>, vector<8x128xbf16>,
    %657 = vector.extract_strided_slice %70 {offsets = [12, 16, 0], sizes = [4, 8, 32], strides = [1, 1, 1]} : vector<16x32x32xbf16> to vector<4x8x32xbf16>
    %658 = vector.extract_strided_slice %581 {offsets = [0, 0, 0], sizes = [4, 24, 32], strides = [1, 1, 1]} : vector<4x32x32xbf16> to vector<4x24x32xbf16>
    %659 = vector.extract_strided_slice %582 {offsets = [0, 0, 0], sizes = [4, 24, 32], strides = [1, 1, 1]} : vector<4x32x32xbf16> to vector<4x24x32xbf16>
    "tpu.trace_start"() <{level = 10 : i32, message = "htd,hsd->hts"}> : () -> ()
    %cst_109 = arith.constant dense<0.000000e+00> : vector<4x8x24xf32>
    %660 = tpu.matmul %657, %658, %cst_109 {dimension_numbers = #tpu.dot_dimension_numbers<[2], [2], [1], [1], [0, 0, 0, 1, 1, 1], [0], [0]>} : vector<4x8x32xbf16>, vector<4x24x32xbf16>, vector<4x8x24xf32> -> vector<4x8x24xf32>
    "tpu.trace_stop"() : () -> ()
    %661 = tpu.iota {dimensions = array<i32: 0>} : vector<8x24xi32>
    %c16_i32_110 = arith.constant 16 : i32
    %662 = vector.broadcast %c16_i32_110 : i32 to vector<8x24xi32>
    %663 = arith.addi %662, %661 : vector<8x24xi32>
    %664 = tpu.iota {dimensions = array<i32: 1>} : vector<8x24xi32>
    %665 = arith.cmpi sge, %663, %664 : vector<8x24xi32>
    %666 = vector.shape_cast %665 : vector<8x24xi1> to vector<1x8x24xi1>
    %cst_111 = arith.constant -1.000000e+30 : f32
    %667 = vector.shape_cast %666 : vector<1x8x24xi1> to vector<1x8x24xi1>
    %668 = vector.broadcast %667 : vector<1x8x24xi1> to vector<4x8x24xi1>
    %669 = vector.broadcast %cst_111 : f32 to vector<4x8x24xf32>
    %670 = arith.select %668, %660, %669 : vector<4x8x24xi1>, vector<4x8x24xf32>
    %cst_112 = arith.constant dense<0xFF800000> : vector<4x8xf32>
    %671 = vector.multi_reduction <maximumf>, %670, %cst_112 [2] : vector<4x8x24xf32> to vector<4x8xf32>
    %672 = vector.shape_cast %671 : vector<4x8xf32> to vector<4x8x1xf32>
    %673 = vector.broadcast %672 : vector<4x8x1xf32> to vector<4x8x24xf32>
    %674 = arith.subf %670, %673 : vector<4x8x24xf32>
    %675 = math.exp %674 : vector<4x8x24xf32>
    %cst_113 = arith.constant dense<0.000000e+00> : vector<4x8xf32>
    %676 = vector.multi_reduction <add>, %675, %cst_113 [2] : vector<4x8x24xf32> to vector<4x8xf32>
    %677 = vector.shape_cast %676 : vector<4x8xf32> to vector<4x8x1xf32>
    %678 = arith.truncf %675 : vector<4x8x24xf32> to vector<4x8x24xbf16>
    "tpu.trace_start"() <{level = 10 : i32, message = "hts,hsd->htd"}> : () -> ()
    %cst_114 = arith.constant dense<0.000000e+00> : vector<4x8x32xf32>
    %679 = tpu.matmul %678, %659, %cst_114 {dimension_numbers = #tpu.dot_dimension_numbers<[2], [1], [1], [2], [0, 0, 0, 1, 1, 2], [0], [0]>} : vector<4x8x24xbf16>, vector<4x24x32xbf16>, vector<4x8x32xf32> -> vector<4x8x32xf32>
    "tpu.trace_stop"() : () -> ()
    %680 = tpu.reciprocal %677 {approx = true} : vector<4x8x1xf32> -> vector<4x8x1xf32>
    %681 = vector.broadcast %680 : vector<4x8x1xf32> to vector<4x8x32xf32>
    %682 = arith.mulf %679, %681 : vector<4x8x32xf32>
    %683 = vector.extract_strided_slice %682 {offsets = [0, 0, 0], sizes = [1, 8, 32], strides = [1, 1, 1]} : vector<4x8x32xf32> to vector<1x8x32xf32>
    %684 = vector.shape_cast %683 : vector<1x8x32xf32> to vector<8x32xf32>
    %685 = vector.extract_strided_slice %682 {offsets = [1, 0, 0], sizes = [1, 8, 32], strides = [1, 1, 1]} : vector<4x8x32xf32> to vector<1x8x32xf32>
    %686 = vector.shape_cast %685 : vector<1x8x32xf32> to vector<8x32xf32>
    %687 = vector.extract_strided_slice %682 {offsets = [2, 0, 0], sizes = [1, 8, 32], strides = [1, 1, 1]} : vector<4x8x32xf32> to vector<1x8x32xf32>
    %688 = vector.shape_cast %687 : vector<1x8x32xf32> to vector<8x32xf32>
    %689 = vector.extract_strided_slice %682 {offsets = [3, 0, 0], sizes = [1, 8, 32], strides = [1, 1, 1]} : vector<4x8x32xf32> to vector<1x8x32xf32>
    %690 = vector.shape_cast %689 : vector<1x8x32xf32> to vector<8x32xf32>
    %691 = tpu.concatenate %684, %686, %688, %690 in 1 : vector<8x32xf32>, vector<8x32xf32>, vector<8x32xf32>, vector<8x32xf32> -> vector<8x128xf32>
    %692 = arith.truncf %691 : vector<8x128xf32> to vector<8x128xbf16>
    %c112 = arith.constant 112 : index
    %c0_115 = arith.constant 0 : index
    %693 = vector.load %arg15[%c112, %c0_115] : memref<128x128xbf16, #tpu.memory_space<vmem>>, vector<8x128xbf16>
    tpu.vector_store %arg15[%c112, %c0_115], %692 {strides = array<i32>} : memref<128x128xbf16, #tpu.memory_space<vmem>>, vector<8x128xbf16>,
    %694 = vector.extract_strided_slice %70 {offsets = [12, 24, 0], sizes = [4, 8, 32], strides = [1, 1, 1]} : vector<16x32x32xbf16> to vector<4x8x32xbf16>
    "tpu.trace_start"() <{level = 10 : i32, message = "htd,hsd->hts"}> : () -> ()
    %cst_116 = arith.constant dense<0.000000e+00> : vector<4x8x32xf32>
    %695 = tpu.matmul %694, %581, %cst_116 {dimension_numbers = #tpu.dot_dimension_numbers<[2], [2], [1], [1], [0, 0, 0, 1, 1, 1], [0], [0]>} : vector<4x8x32xbf16>, vector<4x32x32xbf16>, vector<4x8x32xf32> -> vector<4x8x32xf32>
    "tpu.trace_stop"() : () -> ()
    %696 = tpu.iota {dimensions = array<i32: 0>} : vector<8x32xi32>
    %c24_i32_117 = arith.constant 24 : i32
    %697 = vector.broadcast %c24_i32_117 : i32 to vector<8x32xi32>
    %698 = arith.addi %697, %696 : vector<8x32xi32>
    %699 = tpu.iota {dimensions = array<i32: 1>} : vector<8x32xi32>
    %700 = arith.cmpi sge, %698, %699 : vector<8x32xi32>
    %701 = vector.shape_cast %700 : vector<8x32xi1> to vector<1x8x32xi1>
    %cst_118 = arith.constant -1.000000e+30 : f32
    %702 = vector.shape_cast %701 : vector<1x8x32xi1> to vector<1x8x32xi1>
    %703 = vector.broadcast %702 : vector<1x8x32xi1> to vector<4x8x32xi1>
    %704 = vector.broadcast %cst_118 : f32 to vector<4x8x32xf32>
    %705 = arith.select %703, %695, %704 : vector<4x8x32xi1>, vector<4x8x32xf32>
    %cst_119 = arith.constant dense<0xFF800000> : vector<4x8xf32>
    %706 = vector.multi_reduction <maximumf>, %705, %cst_119 [2] : vector<4x8x32xf32> to vector<4x8xf32>
    %707 = vector.shape_cast %706 : vector<4x8xf32> to vector<4x8x1xf32>
    %708 = vector.broadcast %707 : vector<4x8x1xf32> to vector<4x8x32xf32>
    %709 = arith.subf %705, %708 : vector<4x8x32xf32>
    %710 = math.exp %709 : vector<4x8x32xf32>
    %cst_120 = arith.constant dense<0.000000e+00> : vector<4x8xf32>
    %711 = vector.multi_reduction <add>, %710, %cst_120 [2] : vector<4x8x32xf32> to vector<4x8xf32>
    %712 = vector.shape_cast %711 : vector<4x8xf32> to vector<4x8x1xf32>
    %713 = arith.truncf %710 : vector<4x8x32xf32> to vector<4x8x32xbf16>
    "tpu.trace_start"() <{level = 10 : i32, message = "hts,hsd->htd"}> : () -> ()
    %cst_121 = arith.constant dense<0.000000e+00> : vector<4x8x32xf32>
    %714 = tpu.matmul %713, %582, %cst_121 {dimension_numbers = #tpu.dot_dimension_numbers<[2], [1], [1], [2], [0, 0, 0, 1, 1, 2], [0], [0]>} : vector<4x8x32xbf16>, vector<4x32x32xbf16>, vector<4x8x32xf32> -> vector<4x8x32xf32>
    "tpu.trace_stop"() : () -> ()
    %715 = tpu.reciprocal %712 {approx = true} : vector<4x8x1xf32> -> vector<4x8x1xf32>
    %716 = vector.broadcast %715 : vector<4x8x1xf32> to vector<4x8x32xf32>
    %717 = arith.mulf %714, %716 : vector<4x8x32xf32>
    %718 = vector.extract_strided_slice %717 {offsets = [0, 0, 0], sizes = [1, 8, 32], strides = [1, 1, 1]} : vector<4x8x32xf32> to vector<1x8x32xf32>
    %719 = vector.shape_cast %718 : vector<1x8x32xf32> to vector<8x32xf32>
    %720 = vector.extract_strided_slice %717 {offsets = [1, 0, 0], sizes = [1, 8, 32], strides = [1, 1, 1]} : vector<4x8x32xf32> to vector<1x8x32xf32>
    %721 = vector.shape_cast %720 : vector<1x8x32xf32> to vector<8x32xf32>
    %722 = vector.extract_strided_slice %717 {offsets = [2, 0, 0], sizes = [1, 8, 32], strides = [1, 1, 1]} : vector<4x8x32xf32> to vector<1x8x32xf32>
    %723 = vector.shape_cast %722 : vector<1x8x32xf32> to vector<8x32xf32>
    %724 = vector.extract_strided_slice %717 {offsets = [3, 0, 0], sizes = [1, 8, 32], strides = [1, 1, 1]} : vector<4x8x32xf32> to vector<1x8x32xf32>
    %725 = vector.shape_cast %724 : vector<1x8x32xf32> to vector<8x32xf32>
    %726 = tpu.concatenate %719, %721, %723, %725 in 1 : vector<8x32xf32>, vector<8x32xf32>, vector<8x32xf32>, vector<8x32xf32> -> vector<8x128xf32>
    %727 = arith.truncf %726 : vector<8x128xf32> to vector<8x128xbf16>
    %c120 = arith.constant 120 : index
    %c0_122 = arith.constant 0 : index
    %728 = vector.load %arg15[%c120, %c0_122] : memref<128x128xbf16, #tpu.memory_space<vmem>>, vector<8x128xbf16>
    tpu.vector_store %arg15[%c120, %c0_122], %727 {strides = array<i32>} : memref<128x128xbf16, #tpu.memory_space<vmem>>, vector<8x128xbf16>,
    %c0_123 = arith.constant 0 : index
    %c0_124 = arith.constant 0 : index
    %729 = vector.load %arg15[%c0_123, %c0_124] : memref<128x128xbf16, #tpu.memory_space<vmem>>, vector<128x128xbf16>
    %c0_125 = arith.constant 0 : index
    %c0_126 = arith.constant 0 : index
    %730 = vector.load %arg6[%c0_125, %c0_126] : memref<128x128xbf16, #tpu.memory_space<vmem>>, vector<128x128xbf16>
    %cst_127 = arith.constant dense<0.000000e+00> : vector<128x128xf32>
    %731 = tpu.matmul %729, %730, %cst_127 {dimension_numbers = #tpu.dot_dimension_numbers<[1], [0], [0], [1], [0, 0, 1, 1], [], []>} : vector<128x128xbf16>, vector<128x128xbf16>, vector<128x128xf32> -> vector<128x128xf32>
    %c0_128 = arith.constant 0 : index
    %c0_129 = arith.constant 0 : index
    %732 = vector.load %arg7[%c0_128, %c0_129] : memref<1x128xf32, #tpu.memory_space<vmem>>, vector<1x128xf32>
    %733 = vector.shape_cast %732 : vector<1x128xf32> to vector<128xf32>
    %734 = vector.shape_cast %733 : vector<128xf32> to vector<1x128xf32>
    %735 = vector.broadcast %734 : vector<1x128xf32> to vector<128x128xf32>
    %736 = arith.addf %731, %735 : vector<128x128xf32>
    %737 = arith.addf %0, %736 : vector<128x128xf32>
    %c0_130 = arith.constant 0 : index
    %c0_131 = arith.constant 0 : index
    %738 = vector.load %arg8[%c0_130, %c0_131] : memref<1x128xf32, #tpu.memory_space<vmem>>, vector<1x128xf32>
    %739 = vector.shape_cast %738 : vector<1x128xf32> to vector<128xf32>
    %c0_132 = arith.constant 0 : index
    %c0_133 = arith.constant 0 : index
    %740 = vector.load %arg9[%c0_132, %c0_133] : memref<1x128xf32, #tpu.memory_space<vmem>>, vector<1x128xf32>
    %741 = vector.shape_cast %740 : vector<1x128xf32> to vector<128xf32>
    %cst_134 = arith.constant dense<0.000000e+00> : vector<128xf32>
    %742 = vector.multi_reduction <add>, %737, %cst_134 [1] : vector<128x128xf32> to vector<128xf32>
    %743 = vector.shape_cast %742 : vector<128xf32> to vector<128x1xf32>
    %cst_135 = arith.constant 1.280000e+02 : f32
    %744 = vector.broadcast %cst_135 : f32 to vector<128x1xf32>
    %745 = arith.divf %743, %744 : vector<128x1xf32>
    %746 = vector.broadcast %745 : vector<128x1xf32> to vector<128x128xf32>
    %747 = arith.subf %737, %746 : vector<128x128xf32>
    %748 = arith.mulf %747, %747 : vector<128x128xf32>
    %cst_136 = arith.constant dense<0.000000e+00> : vector<128xf32>
    %749 = vector.multi_reduction <add>, %748, %cst_136 [1] : vector<128x128xf32> to vector<128xf32>
    %750 = vector.shape_cast %749 : vector<128xf32> to vector<128x1xf32>
    %cst_137 = arith.constant 1.280000e+02 : f32
    %751 = vector.broadcast %cst_137 : f32 to vector<128x1xf32>
    %752 = arith.divf %750, %751 : vector<128x1xf32>
    %753 = vector.broadcast %745 : vector<128x1xf32> to vector<128x128xf32>
    %754 = arith.subf %737, %753 : vector<128x128xf32>
    %cst_138 = arith.constant 9.99999974E-6 : f32
    %755 = vector.broadcast %cst_138 : f32 to vector<128x1xf32>
    %756 = arith.addf %752, %755 : vector<128x1xf32>
    %757 = math.rsqrt %756 : vector<128x1xf32>
    %758 = vector.broadcast %757 : vector<128x1xf32> to vector<128x128xf32>
    %759 = arith.mulf %754, %758 : vector<128x128xf32>
    %760 = vector.shape_cast %739 : vector<128xf32> to vector<1x128xf32>
    %761 = vector.broadcast %760 : vector<1x128xf32> to vector<128x128xf32>
    %762 = arith.mulf %759, %761 : vector<128x128xf32>
    %763 = vector.shape_cast %741 : vector<128xf32> to vector<1x128xf32>
    %764 = vector.broadcast %763 : vector<1x128xf32> to vector<128x128xf32>
    %765 = arith.addf %762, %764 : vector<128x128xf32>
    %766 = arith.truncf %765 : vector<128x128xf32> to vector<128x128xbf16>
    %c0_139 = arith.constant 0 : index
    %c0_140 = arith.constant 0 : index
    %767 = vector.load %arg10[%c0_139, %c0_140] : memref<128x512xbf16, #tpu.memory_space<vmem>>, vector<128x512xbf16>
    %cst_141 = arith.constant dense<0.000000e+00> : vector<128x512xf32>
    %768 = tpu.matmul %766, %767, %cst_141 {dimension_numbers = #tpu.dot_dimension_numbers<[1], [0], [0], [1], [0, 0, 1, 1], [], []>} : vector<128x128xbf16>, vector<128x512xbf16>, vector<128x512xf32> -> vector<128x512xf32>
    %c0_142 = arith.constant 0 : index
    %c0_143 = arith.constant 0 : index
    %769 = vector.load %arg11[%c0_142, %c0_143] : memref<1x512xf32, #tpu.memory_space<vmem>>, vector<1x512xf32>
    %770 = vector.shape_cast %769 : vector<1x512xf32> to vector<512xf32>
    %771 = vector.shape_cast %770 : vector<512xf32> to vector<1x512xf32>
    %772 = vector.broadcast %771 : vector<1x512xf32> to vector<128x512xf32>
    %773 = arith.addf %768, %772 : vector<128x512xf32>
    %cst_144 = arith.constant 5.000000e-01 : f32
    %774 = vector.broadcast %cst_144 : f32 to vector<128x512xf32>
    %775 = arith.mulf %774, %773 : vector<128x512xf32>
    %cst_145 = arith.constant 4.471500e-02 : f32
    %776 = vector.broadcast %cst_145 : f32 to vector<128x512xf32>
    %777 = arith.mulf %776, %773 : vector<128x512xf32>
    %778 = arith.mulf %777, %773 : vector<128x512xf32>
    %779 = arith.mulf %778, %773 : vector<128x512xf32>
    %780 = arith.addf %773, %779 : vector<128x512xf32>
    %cst_146 = arith.constant 0.797884583 : f32
    %781 = vector.broadcast %cst_146 : f32 to vector<128x512xf32>
    %782 = arith.mulf %781, %780 : vector<128x512xf32>
    %783 = math.tanh %782 : vector<128x512xf32>
    %cst_147 = arith.constant 1.000000e+00 : f32
    %784 = vector.broadcast %cst_147 : f32 to vector<128x512xf32>
    %785 = arith.addf %784, %783 : vector<128x512xf32>
    %786 = arith.mulf %775, %785 : vector<128x512xf32>
    %787 = arith.truncf %786 : vector<128x512xf32> to vector<128x512xbf16>
    %c0_148 = arith.constant 0 : index
    %c0_149 = arith.constant 0 : index
    %788 = vector.load %arg12[%c0_148, %c0_149] : memref<512x128xbf16, #tpu.memory_space<vmem>>, vector<512x128xbf16>
    %cst_150 = arith.constant dense<0.000000e+00> : vector<128x128xf32>
    %789 = tpu.matmul %787, %788, %cst_150 {dimension_numbers = #tpu.dot_dimension_numbers<[1], [0], [0], [1], [0, 0, 1, 1], [], []>} : vector<128x512xbf16>, vector<512x128xbf16>, vector<128x128xf32> -> vector<128x128xf32>
    %c0_151 = arith.constant 0 : index
    %c0_152 = arith.constant 0 : index
    %790 = vector.load %arg13[%c0_151, %c0_152] : memref<1x128xf32, #tpu.memory_space<vmem>>, vector<1x128xf32>
    %791 = vector.shape_cast %790 : vector<1x128xf32> to vector<128xf32>
    %792 = vector.shape_cast %791 : vector<128xf32> to vector<1x128xf32>
    %793 = vector.broadcast %792 : vector<1x128xf32> to vector<128x128xf32>
    %794 = arith.addf %789, %793 : vector<128x128xf32>
    %795 = arith.addf %737, %794 : vector<128x128xf32>
    %c0_153 = arith.constant 0 : index
    %c0_154 = arith.constant 0 : index
    %796 = vector.load %arg14[%c0_153, %c0_154] : memref<128x128xf32, #tpu.memory_space<vmem>>, vector<128x128xf32>
    tpu.vector_store %arg14[%c0_153, %c0_154], %795 {strides = array<i32>} : memref<128x128xf32, #tpu.memory_space<vmem>>, vector<128x128xf32>,
    return
  }
  func.func @transform_0(%arg0: i32) -> (i32, i32) {
    %c0_i32 = arith.constant 0 : i32
    %c0_i32_0 = arith.constant 0 : i32
    return %arg0, %c0_i32 : i32, i32
  }
  func.func @transform_1(%arg0: i32) -> (i32, i32) {
    %c0_i32 = arith.constant 0 : i32
    %c0_i32_0 = arith.constant 0 : i32
    %c0_i32_1 = arith.constant 0 : i32
    return %c0_i32, %c0_i32_0 : i32, i32
  }
  func.func @transform_2(%arg0: i32) -> (i32, i32) {
    %c0_i32 = arith.constant 0 : i32
    %c0_i32_0 = arith.constant 0 : i32
    %c0_i32_1 = arith.constant 0 : i32
    return %c0_i32, %c0_i32_0 : i32, i32
  }
  func.func @transform_3(%arg0: i32) -> (i32, i32) {
    %c0_i32 = arith.constant 0 : i32
    %c0_i32_0 = arith.constant 0 : i32
    %c0_i32_1 = arith.constant 0 : i32
    return %c0_i32, %c0_i32_0 : i32, i32
  }
  func.func @transform_4(%arg0: i32) -> (i32, i32) {
    %c0_i32 = arith.constant 0 : i32
    %c0_i32_0 = arith.constant 0 : i32
    %c0_i32_1 = arith.constant 0 : i32
    return %c0_i32, %c0_i32_0 : i32, i32
  }
  func.func @transform_5(%arg0: i32) -> (i32, i32) {
    %c0_i32 = arith.constant 0 : i32
    %c0_i32_0 = arith.constant 0 : i32
    %c0_i32_1 = arith.constant 0 : i32
    return %c0_i32, %c0_i32_0 : i32, i32
  }
  func.func @transform_6(%arg0: i32) -> (i32, i32) {
    %c0_i32 = arith.constant 0 : i32
    %c0_i32_0 = arith.constant 0 : i32
    %c0_i32_1 = arith.constant 0 : i32
    return %c0_i32, %c0_i32_0 : i32, i32
  }
  func.func @transform_7(%arg0: i32) -> (i32, i32) {
    %c0_i32 = arith.constant 0 : i32
    %c0_i32_0 = arith.constant 0 : i32
    %c0_i32_1 = arith.constant 0 : i32
    return %c0_i32, %c0_i32_0 : i32, i32
  }
  func.func @transform_8(%arg0: i32) -> (i32, i32) {
    %c0_i32 = arith.constant 0 : i32
    %c0_i32_0 = arith.constant 0 : i32
    %c0_i32_1 = arith.constant 0 : i32
    return %c0_i32, %c0_i32_0 : i32, i32
  }
  func.func @transform_9(%arg0: i32) -> (i32, i32) {
    %c0_i32 = arith.constant 0 : i32
    %c0_i32_0 = arith.constant 0 : i32
    %c0_i32_1 = arith.constant 0 : i32
    return %c0_i32, %c0_i32_0 : i32, i32
  }
  func.func @transform_10(%arg0: i32) -> (i32, i32) {
    %c0_i32 = arith.constant 0 : i32
    %c0_i32_0 = arith.constant 0 : i32
    %c0_i32_1 = arith.constant 0 : i32
    return %c0_i32, %c0_i32_0 : i32, i32
  }
  func.func @transform_11(%arg0: i32) -> (i32, i32) {
    %c0_i32 = arith.constant 0 : i32
    %c0_i32_0 = arith.constant 0 : i32
    %c0_i32_1 = arith.constant 0 : i32
    return %c0_i32, %c0_i32_0 : i32, i32
  }
  func.func @transform_12(%arg0: i32) -> (i32, i32) {
    %c0_i32 = arith.constant 0 : i32
    %c0_i32_0 = arith.constant 0 : i32
    %c0_i32_1 = arith.constant 0 : i32
    return %c0_i32, %c0_i32_0 : i32, i32
  }
  func.func @transform_13(%arg0: i32) -> (i32, i32) {
    %c0_i32 = arith.constant 0 : i32
    %c0_i32_0 = arith.constant 0 : i32
    return %arg0, %c0_i32 : i32, i32
  }
}

</mosaic_0001>

<bundles_post_ra>
// kernel: tpu_custom_call.1
= control target key start
LH: loop header
LB: loop body
LE: loop exit
PB: predicated region body
PF: predicated region fallthrough
CT: control target
= control target key end

     0   :  { %s17050_s0 = inlined_call_operand.hbm [shape: f32[256,128], index: 0, kind: input, shape index: {}]   ;;  %s17051_s1 = inlined_call_operand.hbm [shape: f32[1,128], index: 1, kind: input, shape index: {}]   ;;  %s17052_s2 = inlined_call_operand.hbm [shape: f32[1,128], index: 2, kind: input, shape index: {}]   ;;  %s17053_s3 = inlined_call_operand.hbm [shape: bf16[128,384], index: 3, kind: input, shape index: {}]   ;;  %s17054_s4 = inlined_call_operand.vmem [shape: f32[1,384], index: 4, kind: input, shape index: {}]   ;;  %s17055_s5 = inlined_call_operand.hbm [shape: bf16[128,128], index: 5, kind: input, shape index: {}]   ;;  %s17056_s6 = inlined_call_operand.vmem [shape: f32[1,128], index: 6, kind: input, shape index: {}]   ;;  %s17057_s7 = inlined_call_operand.vmem [shape: f32[1,128], index: 7, kind: input, shape index: {}]   ;;  %s17058_s8 = inlined_call_operand.vmem [shape: f32[1,128], index: 8, kind: input, shape index: {}]   ;;  %s17059_s9 = inlined_call_operand.hbm [shape: bf16[128,512], index: 9, kind: input, shape index: {}]   ;;  %s17060_s10 = inlined_call_operand.vmem [shape: f32[1,512], index: 10, kind: input, shape index: {}]   ;;  %s17061_s11 = inlined_call_operand.hbm [shape: bf16[512,128], index: 11, kind: input, shape index: {}]   ;;  %s17062_s12 = inlined_call_operand.vmem [shape: f32[1,128], index: 12, kind: input, shape index: {}]   ;;  %s17063_s13 = inlined_call_operand.hbm [shape: f32[256,128], index: 13, kind: output, shape index: {}]  }
   0x1   :  { %17131 = sst [smem:[#allocation108_spill]] %s17051_s1 }
   0x2   :  { %17132 = sst [smem:[#allocation109_spill]] %s17052_s2 }
   0x3   :  { %17133 = sst [smem:[#allocation110_spill]] %s17053_s3 }
   0x4   :  { %17134 = sst [smem:[#allocation111_spill]] %s17055_s5 }
   0x5   :  { %17135 = sst [smem:[#allocation112_spill]] %s17059_s9 }
   0x6   :  { %17136 = sst [smem:[#allocation113_spill]] %s17061_s11 }
   0x7   :  { %18 = vsyncpa [#allocation4], 0 }
   0x8   :  { %20 = vsyncpa [#allocation4 + $0x1], 0 }
   0x9   :  { %21 = vsyncpa [#allocation7], 0 }
   0xa   :  { %22 = vsyncpa [#allocation10], 0 }
   0xb   :  { %23 = vsyncpa [#allocation13], 0 }
   0xc   :  { %24 = vsyncpa [#allocation5], 0 }
   0xd   :  { %26 = vsyncpa [#allocation5 + $0x1], 0  ;;  %s13309_s25 = smov 0   ;;  %s13311_s26 = smov 0  }
   0xe   :  { %s13313_s27 = smov 0   ;;  %s13315_s28 = smov 0  }
   0xf LB: > { %s13215_s29 = smov [#allocation6]   ;;  %s13330_s14 = sadd.s32 4294967295, %s13213_s28   ;;  %s13213_s28 = sphi %s13315_s28, %s17397_s28   ;;  %s13209_s27 = sphi %s13313_s27, %s17396_s27   ;;  %s13205_s26 = sphi %s13311_s26, %s17395_s26   ;;  %s13201_s25 = sphi %s13309_s25, %s17394_s25  }
  0x10   : > { %s354_s30 = sshll.u32 %s13215_s29, 4  ;;  %p10413_p0 = scmp.ge.s32.totalorder %s13213_s28, 1  ;;  %s355_s30 = int_to_ptr.vmem [resolvable:$true] %s354_s30 }
  0x11   : > { %p17064_p1 = scmp.eq.s32.totalorder %s13330_s14, 0  ;;  %p341_p2 = scmp.lt.s32.totalorder %s13213_s28, 3 }
  0x12   : > { %s13216_s16 = smov [#allocation9]   ;;  %s13217_s19 = smov [#allocation12]  }
  0x13   : > { %p13335_p3 = pnand %p10413_p0, %p341_p2  ;;  %s375_s17 = sshll.u32 %s13216_s16, 4  ;;  %s13342_s17 = int_to_ptr.vmem [resolvable:$true] %s375_s17 }
  0x14   : > { %s413_s20 = sshll.u32 %s13217_s19, 4  ;;  %s12964_s22 = scalar_lea.vmem %s355_s30, 16  ;;  %s13350_s20 = int_to_ptr.vmem [resolvable:$true] %s413_s20 }
  0x15   : > { %s17137_s15 = scalar_select %p13335_p3, 1, 0 }
  0x16   : > { %p12146_p5 = pneg %p13335_p3  ;;  %p12965_p8 = scmp.ne.s32.totalorder %s355_s30, %s12964_s22 }
  0x17   : > { %s12971_s23 = scalar_lea.vmem %s355_s30, 32  ;;  %p12972_p11 = scmp.lt.s32.totalorder %s355_s30, %s355_s30 }
  0x18   : > { %p13346_p6 = pnand %p12146_p5, %p17064_p1  ;;  %p12973_p12 = scmp.lt.s32.totalorder %s12971_s23, %s12964_s22 }
  0x1a   : > { %p13354_p7 = pneg %p13346_p6  ;;  %p12974_p13 = por %p12973_p12, %p12972_p11 }
  0x1c   : > { %p12967_p9 = pnand %p12965_p8, %p13354_p7 }
  0x1e   : > { %p12968_p10 = pneg %p12967_p9 }
  0x20   : > { %p12975_p0 = pnand %p12974_p13, %p12968_p10 }
  0x22   : > { %12978 = shalt.err (!%p12975_p0)
}
  0x23   : > { %s17140_s1 = sld [smem:[#allocation108_spill]]  ;;  %s12990_s16 = scalar_lea.vmem %s13342_s17, 3072 }
  0x24   : > { %p12991_p2 = scmp.ne.s32.totalorder %s13342_s17, %s12990_s16  ;;  %p12998_p9 = scmp.lt.s32.totalorder %s13342_s17, %s13342_s17 }
  0x25   : > { %p12999_p11 = scmp.lt.s32.totalorder %s12990_s16, %s12990_s16 }
  0x26   : > { %p12993_p5 = pnand %p12991_p2, %p13354_p7 }
  0x27   : > { %p13000_p10 = por %p12999_p11, %p12998_p9 }
  0x28   : > { %p12994_p8 = pneg %p12993_p5 }
  0x29   : > { %12149 = dma.hbm_to_vmem [thread:$0]  (!%p13346_p6), %s17140_s1, 16, %s355_s30, [#allocation7]  }
  0x2a   : > { %p13001_p12 = pnand %p13000_p10, %p12994_p8 }
  0x2c   : > { %13004 = shalt.err (!%p13001_p12)
}
  0x2d   : > { %s13218_s19 = smov 192   ;;  %s13219_s22 = smov 12  }
  0x2e   : > { %s17141_s3 = sld [smem:[#allocation110_spill]]  ;;  %s13016_s24 = scalar_lea.vmem %s13350_s20, 4096 }
  0x2f   : > { %p13017_p13 = scmp.ne.s32.totalorder %s13350_s20, %s13016_s24  ;;  %p13024_p5 = scmp.lt.s32.totalorder %s13350_s20, %s13350_s20 }
  0x30   : > { %p13025_p8 = scmp.lt.s32.totalorder %s13016_s24, %s13016_s24 }
  0x31   : > { %p13019_p0 = pnand %p13017_p13, %p13354_p7 }
  0x32   : > { %p13026_p9 = por %p13025_p8, %p13024_p5 }
  0x33   : > { %p13020_p2 = pneg %p13019_p0 }
  0x34   : > { %12155 = dma.hbm_to_vmem [thread:$0]  (!%p13346_p6), %s17141_s3, 3072, %s13342_s17, [#allocation10], %s13218_s19, %s13218_s19, %s13219_s22  }
  0x35   : > { %p13027_p11 = pnand %p13026_p9, %p13020_p2 }
  0x37   : > { %13030 = shalt.err (!%p13027_p11)
}
  0x38   : > { %s13220_s29 = smov 256   ;;  %s13221_s16 = smov 16  }
  0x39   : > { %s17142_s9 = sld [smem:[#allocation112_spill]]  ;;  %s13222_s17 = smov [#allocation8]  }
  0x3a   : > { %s365_s19 = sshll.u32 %s13222_s17, 4  ;;  %s13223_s22 = smov [#allocation11]   ;;  %s366_s19 = int_to_ptr.vmem [resolvable:$true] %s365_s19 }
  0x3b   : > { %s391_s23 = sshll.u32 %s13223_s22, 4  ;;  %s13042_s3 = scalar_lea.vmem %s366_s19, 16  ;;  %s392_s23 = int_to_ptr.vmem [resolvable:$true] %s391_s23 }
  0x3c   : > { %p13043_p10 = scmp.ne.s32.totalorder %s366_s19, %s13042_s3  ;;  %s13049_s24 = scalar_lea.vmem %s366_s19, 32 }
  0x3d   : > { %p13050_p0 = scmp.lt.s32.totalorder %s366_s19, %s366_s19  ;;  %p13051_p2 = scmp.lt.s32.totalorder %s13049_s24, %s13042_s3 }
  0x3e   : > { %p13045_p12 = pnand %p13043_p10, %p13354_p7 }
  0x3f   : > { %12161 = dma.hbm_to_vmem [thread:$0]  (!%p13346_p6), %s17142_s9, 4096, %s13350_s20, [#allocation13], %s13220_s29, %s13220_s29, %s13221_s16  }
  0x40   : > { %p13046_p13 = pneg %p13045_p12  ;;  %p13052_p5 = por %p13051_p2, %p13050_p0 }
  0x42   : > { %p13053_p8 = pnand %p13052_p5, %p13046_p13 }
  0x44   : > { %13056 = shalt.err (!%p13053_p8)
}
  0x45   : > { %s17143_s2 = sld [smem:[#allocation109_spill]]  ;;  %s13068_s29 = scalar_lea.vmem %s392_s23, 1024 }
  0x46   : > { %p13069_p9 = scmp.ne.s32.totalorder %s392_s23, %s13068_s29  ;;  %p13076_p12 = scmp.lt.s32.totalorder %s392_s23, %s392_s23 }
  0x47   : > { %p13077_p4 = scmp.lt.s32.totalorder %s13068_s29, %s13068_s29 }
  0x48   : > { %p13071_p11 = pnand %p13069_p9, %p13354_p7 }
  0x49   : > { %p13078_p1 = por %p13077_p4, %p13076_p12 }
  0x4a   : > { %p13072_p10 = pneg %p13071_p11 }
  0x4b   : > { %12152 = dma.hbm_to_vmem [thread:$0]  (!%p13346_p6), %s17143_s2, 16, %s366_s19, [#allocation7]  }
  0x4c   : > { %p13079_p3 = pnand %p13078_p1, %p13072_p10 }
  0x4e   : > { %13082 = shalt.err (!%p13079_p3)
}
  0x4f   : > { %s13224_s3 = smov 64   ;;  %s13225_s16 = smov 4  }
  0x50   : > { %s17144_s5 = sld [smem:[#allocation111_spill]]  ;;  %s13226_s19 = smov [#allocation14]  }
  0x51   : > { %s429_s22 = sshll.u32 %s13226_s19, 4  ;;  %s430_s22 = int_to_ptr.vmem [resolvable:$true] %s429_s22 }
  0x52   : > { %s13094_s24 = scalar_lea.vmem %s430_s22, 4096  ;;  %p13102_p4 = scmp.lt.s32.totalorder %s430_s22, %s430_s22 }
  0x53   : > { %p13095_p13 = scmp.ne.s32.totalorder %s430_s22, %s13094_s24  ;;  %p13103_p1 = scmp.lt.s32.totalorder %s13094_s24, %s13094_s24 }
  0x55   : > { %p13097_p0 = pnand %p13095_p13, %p13354_p7  ;;  %p13104_p3 = por %p13103_p1, %p13102_p4 }
  0x56   : > { %12158 = dma.hbm_to_vmem [thread:$0]  (!%p13346_p6), %s17144_s5, 1024, %s392_s23, [#allocation10], %s13224_s3, %s13224_s3, %s13225_s16  }
  0x57   : > { %p13098_p2 = pneg %p13097_p0 }
  0x59   : > { %p13105_p5 = pnand %p13104_p3, %p13098_p2 }
  0x5b   : > { %13108 = shalt.err (!%p13105_p5)
}
  0x5c   : > { %s17145_s11 = sld [smem:[#allocation113_spill]]  ;;  %s10412_s21 = sadd.s32 4294967294, %s13213_s28  }
  0x5d   : > { %s13412_s18 = sadd.s32 1, %s13213_s28   ;;  %s39_s29 = sadd.s32 1, %s13209_s27 }
  0x5e   : > { %s36_s23 = ssub.s32 %s13213_s28, %s13412_s18  ;;  %p46_p8 = scmp.ne.s32.totalorder %s13209_s27, %s13205_s26 }
  0x5f   : > { %p37_p7 = scmp.eq.s32.totalorder %s36_s23, 0  ;;  %p47_p9 = scmp.eq.s32.totalorder %s13213_s28, 0 }
  0x60   : > { %p52_p11 = scmp.ne.s32.totalorder %s13205_s26, %s13201_s25  ;;  %p17148_p12 = scmp.eq.s32.totalorder %s13330_s14, 0 }
  0x61   : > { %s13423_s30 = scalar_select %p37_p7, %s13209_s27, %s39_s29  }
  0x62   : > { %12164 = dma.hbm_to_vmem [thread:$0]  (!%p13346_p6), %s17145_s11, 4096, %s430_s22, [#allocation13], %s13224_s3, %s13224_s3, %s13225_s16  }
  0x63   : > { %17146 = sst [smem:[#allocation21_spill]] %s13423_s30  ;;  %p13425_p10 = por %p47_p9, %p46_p8 }
  0x64   : > { %p13431_p6 = por %p17148_p12, %p52_p11  ;;  %p328_p13 = scmp.eq.s32.totalorder %s13330_s14, 1 }
  0x65   : > { %p334_p0 = scmp.eq.s32.totalorder %s10412_s21, 1  ;;  %p12179_p2 = scmp.lt.s32.totalorder %s13213_s28, 2 }
  0x66   : > { %s17149_s3 = scalar_select %p13431_p6, 1, 0 }
  0x67   : > { %s446_s16 = sand.u32 1, %s13209_s27   ;;  %p13438_p4 = por %p328_p13, %p46_p8 }
  0x68   : > { %p13442_p1 = por %p334_p0, %p52_p11  ;;  %s10421_s24 = sshll.u32 %s446_s16, 7 }
  0x69   : > { %s17150_s19 = scalar_select %p13438_p4, 1, 0 }
  0x6a   : > { %s17151_s22 = scalar_select %p13442_p1, 1, 0 }
  0x6b   : > { %s10676_s1 = sshll.u32 %s13213_s28, 11  ;;  %s450_s21 = scalar_lea.vmem [#allocation3], %s10421_s24 }
  0x6c   : > { %s13450_s29 = scalar_lea.hbm %s17050_s0, %s10676_s1  ;;  %s457_s2 = sshll.u32 %s450_s21, 4  ;;  %s13452_s2 = int_to_ptr.vmem [resolvable:$true] %s457_s2 }
  0x6d   : > { %p13456_p3 = pnand %p12179_p2, %p13425_p10  ;;  %s13460_s9 = scalar_lea.sflag [#allocation4], %s446_s16 }
  0x6e   : > { %s13109_s11 = scalar_lea.hbm %s13450_s29, 2048  ;;  %s13114_s24 = scalar_lea.hbm %s17050_s0, 4096 }
  0x6f   : > { %p13110_p5 = scmp.ne.s32.totalorder %s13450_s29, %s13109_s11  ;;  %p13111_p7 = pneg %p13456_p3 }
  0x70   : > { %p13115_p11 = scmp.lt.s32.totalorder %s13450_s29, %s17050_s0  ;;  %p13116_p10 = scmp.lt.s32.totalorder %s13114_s24, %s13109_s11 }
  0x71   : > { %p13112_p8 = pnand %p13111_p7, %p13110_p5 }
  0x72   : > { %p13117_p12 = por %p13116_p10, %p13115_p11 }
  0x73   : > { %p13113_p9 = pneg %p13112_p8 }
  0x75   : > { %p13118_p13 = pnand %p13117_p12, %p13113_p9 }
  0x77   : > { %13121 = shalt.err (!%p13118_p13)
}
  0x78   : > { %s13122_s17 = scalar_lea.vmem %s13452_s2, 2048  ;;  %s13227_s16 = smov [#allocation3]  }
  0x79   : > { %p13123_p0 = scmp.ne.s32.totalorder %s13452_s2, %s13122_s17  ;;  %s13127_s30 = sshll.u32 %s13227_s16, 4  ;;  %s13128_s30 = int_to_ptr.vmem [resolvable:$false] %s13127_s30 }
  0x7a   : > { %s13129_s1 = scalar_lea.vmem %s13128_s30, 4096  ;;  %p13130_p8 = scmp.lt.s32.totalorder %s13452_s2, %s13128_s30 }
  0x7b   : > { %p13125_p2 = pnand %p13123_p0, %p13111_p7  ;;  %p13131_p1 = scmp.lt.s32.totalorder %s13129_s1, %s13122_s17 }
  0x7d   : > { %p13126_p5 = pneg %p13125_p2  ;;  %p13132_p4 = por %p13131_p1, %p13130_p8 }
  0x7f   : > { %p13133_p6 = pnand %p13132_p4, %p13126_p5 }
  0x81   : > { %13136 = shalt.err (!%p13133_p6)
}
  0x82   : > { %s13228_s11 = smov 128   ;;  %s13229_s20 = smov 8  }
  0x83   : > { %12168 = dma.hbm_to_vmem [thread:$0]  (!%p13456_p3), %s13450_s29, 2048, %s13452_s2, %s13460_s9, %s13228_s11, %s13228_s11, %s13229_s20  }
  0x84   : > { %p17153_p7 = scmp.ne.s32.totalorder %s17137_s15, 0 }
  0x86   : > { %469 = sbr.rel (%p17153_p7) target bundleno = 8341 (0x2095), region = 72 }
  0x8b   : > { %s13484_s24 = sand.u32 1, %s13205_s26   ;;  %p17154_p6 = scmp.ne.s32.totalorder %s17149_s3, 0 }
  0x8c   : > { %s10425_s30 = sshll.u32 %s13484_s24, 7  ;;  %s472_s23 = scalar_lea.sflag [#allocation4], %s13484_s24 }
  0x8d   : > { %s13490_s21 = scalar_lea.vmem [#allocation3], %s10425_s30 }
  0x8e   : > { %13180 = dma.done.wait (%p17154_p6), %s472_s23, 2048  }
  0x8f   : > { %13182 = vsyncadd (%p17154_p6), %s472_s23, 4294965248  ;;  %p17155_p4 = scmp.eq.s32.totalorder %s13330_s14, 0 }
  0x91   : > { %13184 = dma.done.wait (%p17155_p4), [#allocation7], 32   ;;  %p17156_p1 = pmov %p17155_p4 }
  0x93   : > { %13186 = vsyncadd (%p17156_p1), [#allocation7], 4294967264  ;;  %p17157_p3 = pmov %p17156_p1 }
  0x94   : > { %p17158_p9 = pmov %p17156_p1 }
  0x95   : > { %13188 = dma.done.wait (%p17157_p3), [#allocation10], 4096  }
  0x96   : > { %13190 = vsyncadd (%p17158_p9), [#allocation10], 4294963200  ;;  %p17159_p11 = pmov %p17156_p1 }
  0x97   : > { %p17160_p10 = pmov %p17156_p1 }
  0x98   : > { %13192 = dma.done.wait (%p17159_p11), [#allocation13], 8192  }
  0x99   : > { %13194 = vsyncadd (%p17160_p10), [#allocation13], 4294959104  ;;  %v545_v0 = vld [vmem:[%s13490_s21] sm:$0xff]  ;;  %v546_v1 = vld [vmem:[%s13490_s21 + $0x8] sm:$0xff]  ;;  %vm13232_vm0 = vmmov 0   ;;  %vm1395_vm1 = vcmask 261120  }
  0x9a   : > { %563 = vadd.xlane.f32.xlu0 %v545_v0  ;;  %v547_v2 = vld [vmem:[%s13490_s21 + $0x10] sm:$0xff]  ;;  %v549_v3 = vld [vmem:[%s13490_s21 + $0x20] sm:$0xff]  ;;  %v12363_v10 = vld [vmem:[#allocation9 + $0xa8] ss:$12 sps:$4 sm:$0xff]   ;;  %s13233_s9 = smov 96   ;;  %s13234_s15 = smov 64  }
  0x9b   : > { %v551_v4 = vld [vmem:[%s13490_s21 + $0x30] sm:$0xff]  ;;  %v553_v5 = vld [vmem:[%s13490_s21 + $0x40] sm:$0xff]  ;;  %v13534_v22 = vld [vmem:[%s13490_s21 + $0x18] sm:$0xff]  ;;  %s13235_s3 = smov 32   ;;  %vm1635_vm2 = vcmask 1043456   ;;  %vm1591_vm4 = vcmask 64512  }
  0x9c   : > { %v555_v6 = vld [vmem:[%s13490_s21 + $0x50] sm:$0xff]  ;;  %v13516_v7 = vld [vmem:[%s13490_s21 + $0x60] sm:$0xff]  ;;  %v13542_v27 = vld [vmem:[%s13490_s21 + $0x28] sm:$0xff]  ;;  %vm2028_vm6 = vcmask 130048   ;;  %vm2458_vm8 = vcmask 195584   ;;  %vm1838_vm10 = vcmask 523264  }
  0x9d   : > { %v13520_v8 = vld [vmem:[%s13490_s21 + $0x70] sm:$0xff]  ;;  %v12364_v31 = vld [vmem:[#allocation9 + $0x94] ss:$12 sps:$4 sm:$0xff]   ;;  %v12367_v38 = vld [vmem:[#allocation9 + $0x7c] ss:$12 sps:$4 sm:$0xff]   ;;  %vm1840_vm11 = vcmask 785408  }
  0x9e   : > { %565 = vadd.xlane.f32.xlu0 %v546_v1  ;;  %v12361_v9 = vld [vmem:[#allocation9 + $0xac] ss:$12 sps:$4 sm:$0xff]   ;;  %v12366_v32 = vld [vmem:[#allocation9 + $0x90] ss:$12 sps:$4 sm:$0xff]   ;;  %v13558_v41 = vld [vmem:[%s13490_s21 + $0x48] sm:$0xff]  ;;  %s10269_s16 = scalar_lea.sflag [#allocation5], %s13484_s24 }
  0x9f   : > { %969 = vmatprep.subr.bf16.mxu0 %v12361_v9  ;;  %v13550_v34 = vld [vmem:[%s13490_s21 + $0x38] sm:$0xff]  ;;  %v12370_v45 = vld [vmem:[#allocation9 + $0x64] ss:$12 sps:$4 sm:$0xff]   ;;  %v12372_v46 = vld [vmem:[#allocation9 + $0x60] ss:$12 sps:$4 sm:$0xff]   ;;  %p17390_p13 = scmp.ne.s32.totalorder %s17150_s19, 0 }
  0xa0   : > { %970 = vmatpush1.bf16.msra.mxu0 %v12363_v10  ;;  %v12369_v39 = vld [vmem:[#allocation9 + $0x78] ss:$12 sps:$4 sm:$0xff]   ;;  %v12375_v53 = vld [vmem:[#allocation9 + $0x48] ss:$12 sps:$4 sm:$0xff]   ;;  %v12378_v60 = vld [vmem:[#allocation9 + $0x30] ss:$12 sps:$4 sm:$0xff]  }
  0xa1   : > { %971 = vmatprep.subr.bf16.mxu0 %v12364_v31  ;;  %v13566_v48 = vld [vmem:[%s13490_s21 + $0x58] sm:$0xff]  ;;  %v13575_v55 = vld [vmem:[%s13490_s21 + $0x68] sm:$0xff] }
  0xa2   : > { %567 = vadd.xlane.f32.xlu0 %v547_v2  ;;  %v12373_v52 = vld [vmem:[#allocation9 + $0x4c] ss:$12 sps:$4 sm:$0xff]   ;;  %v12376_v59 = vld [vmem:[#allocation9 + $0x34] ss:$12 sps:$4 sm:$0xff]  }
  0xa3   : > { %v13584_v62 = vld [vmem:[%s13490_s21 + $0x78] sm:$0xff] }
  0xa4   : > { %972 = vmatpush1.bf16.msra.mxu0 %v12366_v32  ;;  %v13604_v32 = vld [vmem:[#allocation6] ss:$0 sm:$0xff] }
  0xa5   : > { %973 = vmatprep.subr.bf16.mxu0 %v12367_v38 }
  0xa6   : > { %571 = vadd.xlane.f32.xlu0 %v549_v3 }
  0xa8   : > { %974 = vmatpush1.bf16.msra.mxu0 %v12369_v39 }
  0xa9   : > { %975 = vmatprep.subr.bf16.mxu0 %v12370_v45  ;;  %v12387_v45 = vld [vmem:[#allocation9 + $0x80] ss:$12 sps:$4 sm:$0xff]  }
  0xaa   : > { %575 = vadd.xlane.f32.xlu0 %v551_v4 }
  0xac   : > { %976 = vmatpush1.bf16.msra.mxu0 %v12372_v46 }
  0xad   : > { %977 = vmatprep.subr.bf16.mxu0 %v12373_v52 }
  0xae   : > { %579 = vadd.xlane.f32.xlu0 %v553_v5 }
  0xb0   : > { %978 = vmatpush1.bf16.msra.mxu0 %v12375_v53  ;;  %v12388_v53 = vld [vmem:[#allocation9 + $0x68] ss:$12 sps:$4 sm:$0xff]  }
  0xb1   : > { %979 = vmatprep.subr.bf16.mxu0 %v12376_v59  ;;  %v12389_v59 = vld [vmem:[#allocation9 + $0x50] ss:$12 sps:$4 sm:$0xff]  }
  0xb2   : > { %583 = vadd.xlane.f32.xlu0 %v555_v6 }
  0xb4   : > { %980 = vmatpush1.bf16.msra.mxu0 %v12378_v60 }
  0xb6   : > { %587 = vadd.xlane.f32.xlu0 %v13516_v7 }
  0xba   : > { %591 = vadd.xlane.f32.xlu0 %v13520_v8 }
 0x123   : > { %v564_v11 = vpop.xlane.xlu0 %563 }
 0x124   : > { %v596_v12 = vmul.f32 0.0078125, %v564_v11 }
 0x126   : > { %v13523_v13 = vsub.f32 %v545_v0, %v596_v12  ;;  %v12379_v0 = vld [vmem:[#allocation9 + $0x1c] ss:$12 sps:$4 sm:$0xff]  }
 0x127   : > { %v566_v14 = vpop.xlane.xlu0 %565  ;;  %981 = vmatprep.subr.bf16.mxu0 %v12379_v0  ;;  %v12391_v0 = vld [vmem:[#allocation9 + $0x20] ss:$12 sps:$4 sm:$0xff]  }
 0x128   : > { %v597_v15 = vmul.f32 0.0078125, %v566_v14  ;;  %v628_v16 = vmul.f32 %v13523_v13, %v13523_v13 }
 0x12a   : > { %644 = vadd.xlane.f32.xlu1 %v628_v16  ;;  %v13527_v17 = vsub.f32 %v546_v1, %v597_v15  ;;  %v12381_v1 = vld [vmem:[#allocation9 + $0x18] ss:$12 sps:$4 sm:$0xff]  }
 0x12b   : > { %v568_v18 = vpop.xlane.xlu0 %567  ;;  %982 = vmatpush1.bf16.msra.mxu0 %v12381_v1  ;;  %v12392_v1 = vld [vmem:[#allocation9 + $0x8] ss:$12 sps:$4 sm:$0xff]  }
 0x12c   : > { %v629_v19 = vmul.f32 %v13527_v17, %v13527_v17  ;;  %v598_v20 = vmul.f32 0.0078125, %v568_v18 }
 0x12e   : > { %646 = vadd.xlane.f32.xlu1 %v629_v19  ;;  %v13531_v21 = vsub.f32 %v547_v2, %v598_v20  ;;  %v12382_v2 = vld [vmem:[#allocation9 + $0x4] ss:$12 sps:$4 sm:$0xff]  }
 0x12f   : > { %v572_v23 = vpop.xlane.xlu0 %571  ;;  %983 = vmatprep.subr.bf16.mxu0 %v12382_v2  ;;  %v17076_v2 = vmov 0.0  }
 0x130   : > { %v600_v24 = vmul.f32 0.0078125, %v572_v23  ;;  %v630_v25 = vmul.f32 %v13531_v21, %v13531_v21 }
 0x132   : > { %569 = vadd.xlane.f32.xlu1 %v13534_v22  ;;  %648 = vadd.xlane.f32.xlu0 %v630_v25  ;;  %v13539_v26 = vsub.f32 %v549_v3, %v600_v24  ;;  %v12384_v3 = vld [vmem:[#allocation9] ss:$12 sps:$4 sm:$0xff]  }
 0x133   : > { %v576_v28 = vpop.xlane.xlu0 %575  ;;  %984 = vmatpush1.bf16.msra.mxu0 %v12384_v3 }
 0x134   : > { %v602_v29 = vmul.f32 0.0078125, %v576_v28  ;;  %v632_v30 = vmul.f32 %v13539_v26, %v13539_v26  ;;  %11214 = vmatprep.subr.bf16.mxu0 %v17076_v2 }
 0x136   : > { %573 = vadd.xlane.f32.xlu1 %v13542_v27  ;;  %652 = vadd.xlane.f32.xlu0 %v632_v30  ;;  %v13547_v33 = vsub.f32 %v551_v4, %v602_v29  ;;  %v17071_v4 = vmov 0  }
 0x137   : > { %v580_v35 = vpop.xlane.xlu0 %579  ;;  %1001 = vmatprep.mubr.bf16.mxu0 %v17071_v4 }
 0x138   : > { %v604_v36 = vmul.f32 0.0078125, %v580_v35  ;;  %v634_v37 = vmul.f32 %v13547_v33, %v13547_v33 }
 0x13a   : > { %577 = vadd.xlane.f32.xlu1 %v13550_v34  ;;  %656 = vadd.xlane.f32.xlu0 %v634_v37  ;;  %v13555_v40 = vsub.f32 %v553_v5, %v604_v36  ;;  %v12385_v5 = vld [vmem:[#allocation9 + $0xb0] ss:$12 sps:$4 sm:$0xff]  }
 0x13b   : > { %v584_v42 = vpop.xlane.xlu0 %583  ;;  %11158 = vmatprep.subr.bf16.mxu1 %v12385_v5 }
 0x13c   : > { %v606_v43 = vmul.f32 0.0078125, %v584_v42  ;;  %v636_v44 = vmul.f32 %v13555_v40, %v13555_v40  ;;  %11159 = vmatpush3.bf16.msra.mxu1 %v12385_v5  ;;  %v13613_v42 = vld [vmem:[#allocation8] ss:$0 sm:$0xff] }
 0x13e   : > { %581 = vadd.xlane.f32.xlu1 %v13558_v41  ;;  %660 = vadd.xlane.f32.xlu0 %v636_v44  ;;  %v13563_v47 = vsub.f32 %v555_v6, %v606_v43  ;;  %v12386_v6 = vld [vmem:[#allocation9 + $0x98] ss:$12 sps:$4 sm:$0xff]  }
 0x13f   : > { %v588_v49 = vpop.xlane.xlu0 %587  ;;  %11160 = vmatprep.subr.bf16.mxu1 %v12386_v6 }
 0x140   : > { %v608_v50 = vmul.f32 0.0078125, %v588_v49  ;;  %v638_v51 = vmul.f32 %v13563_v47, %v13563_v47  ;;  %11161 = vmatpush3.bf16.msra.mxu1 %v12386_v6 }
 0x141   : > { %11162 = vmatprep.subr.bf16.mxu1 %v12387_v45 }
 0x142   : > { %585 = vadd.xlane.f32.xlu1 %v13566_v48  ;;  %664 = vadd.xlane.f32.xlu0 %v638_v51  ;;  %v13572_v54 = vsub.f32 %v13516_v7, %v608_v50 }
 0x143   : > { %v592_v56 = vpop.xlane.xlu0 %591 }
 0x144   : > { %v610_v57 = vmul.f32 0.0078125, %v592_v56  ;;  %v640_v58 = vmul.f32 %v13572_v54, %v13572_v54  ;;  %11163 = vmatpush3.bf16.msra.mxu1 %v12387_v45 }
 0x145   : > { %11164 = vmatprep.subr.bf16.mxu1 %v12388_v53 }
 0x146   : > { %589 = vadd.xlane.f32.xlu1 %v13575_v55  ;;  %668 = vadd.xlane.f32.xlu0 %v640_v58  ;;  %v13581_v61 = vsub.f32 %v13520_v8, %v610_v57 }
 0x148   : > { %v642_v63 = vmul.f32 %v13581_v61, %v13581_v61  ;;  %11165 = vmatpush3.bf16.msra.mxu1 %v12388_v53 }
 0x149   : > { %11166 = vmatprep.subr.bf16.mxu1 %v12389_v59 }
 0x14a   : > { %593 = vadd.xlane.f32.xlu1 %v13584_v62  ;;  %672 = vadd.xlane.f32.xlu0 %v642_v63  ;;  %v12390_v63 = vld [vmem:[#allocation9 + $0x38] ss:$12 sps:$4 sm:$0xff]  }
 0x14c   : > { %11167 = vmatpush3.bf16.msra.mxu1 %v12389_v59 }
 0x14d   : > { %11168 = vmatprep.subr.bf16.mxu1 %v12390_v63 }
 0x150   : > { %11169 = vmatpush3.bf16.msra.mxu1 %v12390_v63 }
 0x151   : > { %11170 = vmatprep.subr.bf16.mxu1 %v12391_v0 }
 0x154   : > { %11171 = vmatpush3.bf16.msra.mxu1 %v12391_v0 }
 0x155   : > { %11172 = vmatprep.subr.bf16.mxu1 %v12392_v1 }
 0x158   : > { %11173 = vmatpush3.bf16.msra.mxu1 %v12392_v1 }
 0x159   : > { %11190 = vmatprep.subr.bf16.mxu1 %v17076_v2 }
 0x1b3   : > { %v645_v7 = vpop.xlane.xlu1 %644 }
 0x1b4   : > { %v676_v8 = vmul.f32 0.0078125, %v645_v7 }
 0x1b6   : > { %v692_v9 = vadd.f32 1e-05, %v676_v8 }
 0x1b7   : > { %v647_v10 = vpop.xlane.xlu1 %646 }
 0x1b8   : > { %12489 = vrsqrt.f32 %v692_v9  ;;  %v677_v11 = vmul.f32 0.0078125, %v647_v10 }
 0x1ba   : > { %v693_v12 = vadd.f32 1e-05, %v677_v11 }
 0x1bb   : > { %v570_v14 = vpop.xlane.xlu1 %569 }
 0x1bc   : > { %12491 = vrsqrt.f32 %v693_v12  ;;  %v599_v15 = vmul.f32 0.0078125, %v570_v14 }
 0x1be   : > { %v13591_v16 = vsub.f32 %v13534_v22, %v599_v15 }
 0x1bf   : > { %v574_v18 = vpop.xlane.xlu1 %573 }
 0x1c0   : > { %v601_v19 = vmul.f32 0.0078125, %v574_v18  ;;  %v631_v20 = vmul.f32 %v13591_v16, %v13591_v16 }
 0x1c2   : > { %650 = vadd.xlane.f32.xlu1 %v631_v20  ;;  %v13596_v23 = vsub.f32 %v13542_v27, %v601_v19 }
 0x1c3   : > { %v578_v24 = vpop.xlane.xlu1 %577 }
 0x1c4   : > { %v603_v25 = vmul.f32 0.0078125, %v578_v24  ;;  %v633_v28 = vmul.f32 %v13596_v23, %v13596_v23 }
 0x1c5   : > { %v12490_v29 = vpop.eup %12489 }
 0x1c6   : > { %654 = vadd.xlane.f32.xlu1 %v633_v28  ;;  %v13601_v30 = vsub.f32 %v13550_v34, %v603_v25  ;;  %v724_v22 = vmul.f32 %v12490_v29, %v13523_v13 }
 0x1c7   : > { %v582_v31 = vpop.xlane.xlu1 %581 }
 0x1c8   : > { %v605_v35 = vmul.f32 0.0078125, %v582_v31  ;;  %v635_v27 = vmul.f32 %v13601_v30, %v13601_v30  ;;  %v746_v39 = vmul.f32 %v13604_v32, %v724_v22 }
 0x1c9   : > { %v12492_v36 = vpop.eup %12491 }
 0x1ca   : > { %658 = vadd.xlane.f32.xlu1 %v635_v27  ;;  %v13609_v37 = vsub.f32 %v13558_v41, %v605_v35  ;;  %v725_v38 = vmul.f32 %v12492_v36, %v13527_v17  ;;  %v768_v46 = vadd.f32 %v13613_v42, %v746_v39 }
 0x1cb   : > { %v586_v34 = vpop.xlane.xlu1 %585 }
 0x1cc   : > { %v607_v13 = vmul.f32 0.0078125, %v586_v34  ;;  %v637_v43 = vmul.f32 %v13609_v37, %v13609_v37  ;;  %v747_v44 = vmul.f32 %v13604_v32, %v725_v38 }
 0x1ce   : > { %662 = vadd.xlane.f32.xlu1 %v637_v43  ;;  %v769_v41 = vadd.f32 %v13613_v42, %v747_v44  ;;  %v13621_v49 = vsub.f32 %v13566_v48, %v607_v13 }
 0x1cf   : > { %v590_v17 = vpop.xlane.xlu1 %589 }
 0x1d0   : > { %v609_v50 = vmul.f32 0.0078125, %v590_v17  ;;  %v784_v51 = vpack.c.bf16 %v769_v41, %v768_v46  ;;  %v639_v52 = vmul.f32 %v13621_v49, %v13621_v49 }
 0x1d2   : > { %1002 = vmatmul.mubr.bf16.vlgmr.msra.gmra.mxu0 %v784_v51  ;;  %11174 = vmatprep.mubr.bf16.mxu1 %v784_v51  ;;  %v13626_v56 = vsub.f32 %v13575_v55, %v609_v50 }
 0x1d3   : > { %666 = vadd.xlane.f32.xlu1 %v639_v52  ;;  %v594_v57 = vpop.xlane.xlu1 %593  ;;  %1011 = vmatprep.mubr.bf16.mxu0 %v17071_v4 }
 0x1d4   : > { %v611_v58 = vmul.f32 0.0078125, %v594_v57  ;;  %v641_v48 = vmul.f32 %v13626_v56, %v13626_v56 }
 0x1d6   : > { %v13632_v60 = vsub.f32 %v13584_v62, %v611_v58  ;;  %v649_v62 = vpop.xlane.xlu0 %648 }
 0x1d7   : > { %670 = vadd.xlane.f32.xlu1 %v641_v48  ;;  %v678_v6 = vmul.f32 0.0078125, %v649_v62 }
 0x1d8   : > { %v643_v55 = vmul.f32 %v13632_v60, %v13632_v60 }
 0x1d9   : > { %v694_v8 = vadd.f32 1e-05, %v678_v6 }
 0x1da   : > { %v653_v3 = vpop.xlane.xlu0 %652 }
 0x1db   : > { %674 = vadd.xlane.f32.xlu1 %v643_v55  ;;  %v680_v7 = vmul.f32 0.0078125, %v653_v3  ;;  %12493 = vrsqrt.f32 %v694_v8 }
 0x1dd   : > { %v696_v10 = vadd.f32 1e-05, %v680_v7 }
 0x1de   : > { %v657_v5 = vpop.xlane.xlu0 %656 }
 0x1df   : > { %v682_v11 = vmul.f32 0.0078125, %v657_v5  ;;  %12495 = vrsqrt.f32 %v696_v10 }
 0x1e1   : > { %v698_v18 = vadd.f32 1e-05, %v682_v11 }
 0x1e2   : > { %v661_v9 = vpop.xlane.xlu0 %660 }
 0x1e3   : > { %v684_v19 = vmul.f32 0.0078125, %v661_v9 }
 0x1e5   : > { %v700_v28 = vadd.f32 1e-05, %v684_v19 }
 0x1e6   : > { %v665_v14 = vpop.xlane.xlu0 %664 }
 0x1e7   : > { %v686_v31 = vmul.f32 0.0078125, %v665_v14 }
 0x1e8   : > { %v12494_v39 = vpop.eup %12493 }
 0x1e9   : > { %v702_v34 = vadd.f32 1e-05, %v686_v31  ;;  %v726_v17 = vmul.f32 %v12494_v39, %v13531_v21 }
 0x1ea   : > { %v669_v29 = vpop.xlane.xlu0 %668 }
 0x1eb   : > { %v688_v36 = vmul.f32 0.0078125, %v669_v29  ;;  %v748_v59 = vmul.f32 %v13604_v32, %v726_v17 }
 0x1ec   : > { %v12496_v45 = vpop.eup %12495 }
 0x1ed   : > { %v704_v46 = vadd.f32 1e-05, %v688_v36  ;;  %v728_v57 = vmul.f32 %v12496_v45, %v13539_v26  ;;  %v770_v26 = vadd.f32 %v13613_v42, %v748_v59 }
 0x1ee   : > { %v673_v43 = vpop.xlane.xlu0 %672 }
 0x1ef   : > { %v690_v50 = vmul.f32 0.0078125, %v673_v43  ;;  %v750_v3 = vmul.f32 %v13604_v32, %v728_v57 }
 0x1f1   : > { %v706_v55 = vadd.f32 1e-05, %v690_v50 }
 0x24b   : > { %v651_v12 = vpop.xlane.xlu1 %650 }
 0x24c   : > { %v679_v15 = vmul.f32 0.0078125, %v651_v12 }
 0x24e   : > { %v695_v20 = vadd.f32 1e-05, %v679_v15  ;;  %v772_v15 = vadd.f32 %v13613_v42, %v750_v3 }
 0x24f   : > { %v655_v24 = vpop.xlane.xlu1 %654 }
 0x250   : > { %12497 = vrsqrt.f32 %v695_v20  ;;  %v681_v25 = vmul.f32 0.0078125, %v655_v24 }
 0x251   : > { %12499 = vrsqrt.f32 %v698_v18 }
 0x252   : > { %v697_v22 = vadd.f32 1e-05, %v681_v25 }
 0x253   : > { %v659_v35 = vpop.xlane.xlu1 %658 }
 0x254   : > { %12501 = vrsqrt.f32 %v697_v22  ;;  %v683_v27 = vmul.f32 0.0078125, %v659_v35 }
 0x255   : > { %12503 = vrsqrt.f32 %v700_v28 }
 0x256   : > { %v699_v38 = vadd.f32 1e-05, %v683_v27 }
 0x257   : > { %v663_v13 = vpop.xlane.xlu1 %662 }
 0x258   : > { %12505 = vrsqrt.f32 %v699_v38  ;;  %v685_v44 = vmul.f32 0.0078125, %v663_v13 }
 0x259   : > { %12507 = vrsqrt.f32 %v702_v34 }
 0x25a   : > { %v701_v41 = vadd.f32 1e-05, %v685_v44 }
 0x25c   : > { %12509 = vrsqrt.f32 %v701_v41  ;;  %v667_v51 = vpop.xlane.xlu1 %666 }
 0x25d   : > { %v12498_v52 = vpop.eup %12497  ;;  %v687_v53 = vmul.f32 0.0078125, %v667_v51  ;;  %12511 = vrsqrt.f32 %v704_v46 }
 0x25e   : > { %v12500_v58 = vpop.eup %12499  ;;  %v727_v48 = vmul.f32 %v12498_v52, %v13591_v16 }
 0x25f   : > { %v703_v63 = vadd.f32 1e-05, %v687_v53  ;;  %v730_v5 = vmul.f32 %v12500_v58, %v13547_v33 }
 0x260   : > { %v671_v0 = vpop.xlane.xlu1 %670  ;;  %v749_v1 = vmul.f32 %v13604_v32, %v727_v48 }
 0x261   : > { %v12502_v21 = vpop.eup %12501  ;;  %12513 = vrsqrt.f32 %v703_v63  ;;  %v689_v62 = vmul.f32 0.0078125, %v671_v0  ;;  %v752_v33 = vmul.f32 %v13604_v32, %v730_v5 }
 0x262   : > { %v771_v6 = vadd.f32 %v13613_v42, %v749_v1  ;;  %v729_v16 = vmul.f32 %v12502_v21, %v13596_v23  ;;  %v12504_v7 = vpop.eup %12503  ;;  %12515 = vrsqrt.f32 %v706_v55 }
 0x263   : > { %v705_v8 = vadd.f32 1e-05, %v689_v62  ;;  %v732_v19 = vmul.f32 %v12504_v7, %v13555_v40  ;;  %v774_v22 = vadd.f32 %v13613_v42, %v752_v33 }
 0x264   : > { %v675_v9 = vpop.xlane.xlu1 %674  ;;  %v785_v10 = vpack.c.bf16 %v771_v6, %v770_v26  ;;  %v751_v11 = vmul.f32 %v13604_v32, %v729_v16 }
 0x265   : > { %v12506_v12 = vpop.eup %12505  ;;  %12517 = vrsqrt.f32 %v705_v8  ;;  %v691_v14 = vmul.f32 0.0078125, %v675_v9 }
 0x266   : > { %1012 = vmatmul.mubr.bf16.gmra.mxu0 %v785_v10  ;;  %11175 = vmatmul.mubr.bf16.vlgmr.msra.gmra.mxu1 %v785_v10  ;;  %v773_v18 = vadd.f32 %v13613_v42, %v751_v11  ;;  %v731_v23 = vmul.f32 %v12506_v12, %v13601_v30  ;;  %v12508_v24 = vpop.eup %12507  ;;  %v754_v30 = vmul.f32 %v13604_v32, %v732_v19 }
 0x267   : > { %v707_v20 = vadd.f32 1e-05, %v691_v14  ;;  %1021 = vmatprep.mubr.bf16.mxu0 %v17071_v4  ;;  %v734_v40 = vmul.f32 %v12508_v24, %v13563_v47 }
 0x268   : > { %v786_v25 = vpack.c.bf16 %v773_v18, %v772_v15  ;;  %v753_v28 = vmul.f32 %v13604_v32, %v731_v23  ;;  %v776_v34 = vadd.f32 %v13613_v42, %v754_v30 }
 0x269   : > { %v12510_v29 = vpop.eup %12509  ;;  %12519 = vrsqrt.f32 %v707_v20  ;;  %v756_v44 = vmul.f32 %v13604_v32, %v734_v40 }
 0x26a   : > { %11178 = vmatprep.mubr.bf16.mxu1 %v786_v25  ;;  %v775_v31 = vadd.f32 %v13613_v42, %v753_v28  ;;  %v733_v35 = vmul.f32 %v12510_v29, %v13609_v37  ;;  %v12512_v27 = vpop.eup %12511 }
 0x26b   : > { %v736_v43 = vmul.f32 %v12512_v27, %v13572_v54  ;;  %v778_v50 = vadd.f32 %v13613_v42, %v756_v44 }
 0x26c   : > { %v787_v36 = vpack.c.bf16 %v775_v31, %v774_v22  ;;  %v755_v38 = vmul.f32 %v13604_v32, %v733_v35 }
 0x26d   : > { %v758_v17 = vmul.f32 %v13604_v32, %v736_v43 }
 0x26e   : > { %v12514_v39 = vpop.eup %12513  ;;  %1022 = vmatmul.mubr.bf16.gmra.mxu0 %v786_v25  ;;  %11179 = vmatmul.mubr.bf16.gmra.mxu1 %v787_v36  ;;  %v777_v13 = vadd.f32 %v13613_v42, %v755_v38 }
 0x26f   : > { %1031 = vmatprep.mubr.bf16.mxu0 %v17071_v4  ;;  %v735_v37 = vmul.f32 %v12514_v39, %v13621_v49  ;;  %v12516_v45 = vpop.eup %12515  ;;  %v780_v58 = vadd.f32 %v13613_v42, %v758_v17 }
 0x270   : > { %v788_v47 = vpack.c.bf16 %v777_v13, %v776_v34  ;;  %v738_v52 = vmul.f32 %v12516_v45, %v13581_v61 }
 0x271   : > { %v757_v46 = vmul.f32 %v13604_v32, %v735_v37 }
 0x272   : > { %v12518_v41 = vpop.eup %12517  ;;  %11182 = vmatprep.mubr.bf16.mxu1 %v788_v47  ;;  %v760_v55 = vmul.f32 %v13604_v32, %v738_v52 }
 0x273   : > { %v779_v51 = vadd.f32 %v13613_v42, %v757_v46  ;;  %v737_v54 = vmul.f32 %v12518_v41, %v13626_v56 }
 0x274   : > { %v782_v61 = vadd.f32 %v13613_v42, %v760_v55 }
 0x275   : > { %v789_v53 = vpack.c.bf16 %v779_v51, %v778_v50  ;;  %v759_v49 = vmul.f32 %v13604_v32, %v737_v54 }
 0x276   : > { %v12520_v57 = vpop.eup %12519  ;;  %1032 = vmatmul.mubr.bf16.gmra.mxu0 %v787_v36 }
 0x277   : > { %11183 = vmatmul.mubr.bf16.gmra.mxu1 %v789_v53  ;;  %v781_v48 = vadd.f32 %v13613_v42, %v759_v49  ;;  %1041 = vmatprep.mubr.bf16.mxu0 %v17071_v4  ;;  %v739_v59 = vmul.f32 %v12520_v57, %v13632_v60  ;;  %v826_v60 = vlaneseq }
 0x279   : > { %v790_v63 = vpack.c.bf16 %v781_v48, %v780_v58  ;;  %v761_v56 = vmul.f32 %v13604_v32, %v739_v59  ;;  %v13688_v32 = vshrl.u32 %v826_v60, 7 }
 0x27b   : > { %11186 = vmatprep.mubr.bf16.mxu1 %v790_v63  ;;  %v783_v0 = vadd.f32 %v13613_v42, %v761_v56  ;;  %17161 = vst [vmem:[#allocation22_spill] sm:$0xff] %v13688_v32  ;;  %v17070_v21 = vsub.s32 0, %v13688_v32  ;;  %v824_v42 = vld [vmem:[%s17054_s4] sm:$0x7]  ;;  %v17068_v62 = vsub.s32 1, %v13688_v32  ;;  %v17069_v28 = vsub.s32 2, %v13688_v32 }
 0x27d   : > { %v791_v1 = vpack.c.bf16 %v783_v0, %v782_v61  ;;  %v13698_v5 = vrot.slane %v824_v42, %v17070_v21  ;;  %v13702_v6 = vrot.slane %v824_v42, %v17068_v62  ;;  %v13760_v22 = vrot.slane %v824_v42, %v17069_v28 }
 0x27e   : > { %1042 = vmatmul.mubr.bf16.gmra.mxu0 %v788_v47 }
 0x27f   : > { %11187 = vmatmul.mubr.bf16.gmra.mxu1 %v791_v1  ;;  %1051 = vmatprep.mubr.bf16.mxu0 %v17071_v4 }
 0x280   : > { %11192 = vmatprep.mubr.msk.bf16.mxu1 %vm13232_vm0, %v17076_v2 }
 0x286   : > { %1052 = vmatmul.mubr.bf16.gmra.mxu0 %v789_v53 }
 0x287   : > { %1061 = vmatprep.mubr.bf16.mxu0 %v17071_v4 }
 0x28e   : > { %1062 = vmatmul.mubr.bf16.gmra.mxu0 %v790_v63 }
 0x28f   : > { %1071 = vmatprep.mubr.bf16.mxu0 %v17071_v4 }
 0x292   : > { %v1003_v3 = vpop.f32.mrf.mxu0 }
 0x293   : > { %v1004_v7 = vadd.f32 %v1003_v3, %v13698_v5 }
 0x294   : > { %v1005_v26 = vpop.f32.mrf.mxu0 }
 0x295   : > { %v1006_v10 = vadd.f32 %v1005_v26, %v13702_v6 }
 0x296   : > { %v1007_v16 = vpop.f32.mrf.mxu0  ;;  %1072 = vmatmul.mubr.bf16.gmra.mxu0 %v791_v1 }
 0x297   : > { %v1008_v8 = vadd.f32 %v1007_v16, %v13698_v5  ;;  %11216 = vmatprep.mubr.msk.bf16.mxu0 %vm13232_vm0, %v17076_v2 }
 0x298   : > { %v1009_v9 = vpop.f32.mrf.mxu0 }
 0x299   : > { %v13709_v11 = vpack.c.bf16 %v1008_v8, %v1004_v7  ;;  %v1010_v12 = vadd.f32 %v1009_v9, %v13702_v6 }
 0x29b   : > { %v1180_v14 = vpack.c.bf16 %v1010_v12, %v1006_v10  ;;  %1205 = vrot.lane.b32.xlu1 %v13709_v11, %s13233_s9 }
 0x29d   : > { %1261 = vrot.lane.b32.xlu0 %v1180_v14, %s13233_s9  ;;  %v13716_v15 = vsel %vm1395_vm1, %v1180_v14, 0 }
 0x29e   : > { %11191 = vmatpush3.bf16.xpose.msra.mxu1 %v13716_v15 }
 0x29f   : > { %1265 = vrot.lane.b32.xlu1 %v1180_v14, %s13234_s15  ;;  %11196 = vmatprep.subr.bf16.mxu1 %v17076_v2 }
 0x2a1   : > { %1269 = vrot.lane.b32.xlu0 %v1180_v14, %s13235_s3 }
 0x2a3   : > { %1209 = vrot.lane.b32.xlu1 %v13709_v11, %s13234_s15 }
 0x2a5   : > { %11193 = vmatmul.mubr.msk.bf16.vlgmr.msra.gmra.mxu1 %vm1395_vm1, %v13709_v11 }
 0x2a6   : > { %11198 = vmatprep.mubr.msk.bf16.mxu1 %vm13232_vm0, %v17076_v2 }
 0x2a7   : > { %1213 = vrot.lane.b32.xlu1 %v13709_v11, %s13235_s3 }
 0x30d   : > { %v13730_v33 = vpop.permute.xlu1 %1205 }
 0x30f   : > { %v1262_v18 = vpop.permute.xlu0 %1261 }
 0x310   : > { %v13733_v23 = vsel %vm1395_vm1, %v1262_v18, 0 }
 0x311   : > { %11197 = vmatpush3.bf16.xpose.msra.mxu1 %v13733_v23  ;;  %v1266_v19 = vpop.permute.xlu1 %1265 }
 0x312   : > { %11202 = vmatprep.subr.bf16.mxu1 %v17076_v2  ;;  %v13738_v20 = vsel %vm1395_vm1, %v1266_v19, 0 }
 0x313   : > { %v1270_v24 = vpop.permute.xlu0 %1269 }
 0x314   : > { %v13750_v29 = vsel %vm1395_vm1, %v1270_v24, 0 }
 0x315   : > { %v13746_v25 = vpop.permute.xlu1 %1209 }
 0x318   : > { %11199 = vmatmul.mubr.msk.bf16.vlgmr.msra.gmra.mxu1 %vm1395_vm1, %v13730_v33 }
 0x319   : > { %11203 = vmatpush3.bf16.xpose.msra.mxu1 %v13738_v20  ;;  %11204 = vmatprep.mubr.msk.bf16.mxu1 %vm13232_vm0, %v17076_v2  ;;  %v13762_v30 = vpop.permute.xlu1 %1213 }
 0x31a   : > { %11208 = vmatprep.subr.bf16.mxu1 %v17076_v2 }
 0x320   : > { %11205 = vmatmul.mubr.msk.bf16.vlgmr.msra.gmra.mxu1 %vm1395_vm1, %v13746_v25 }
 0x321   : > { %11209 = vmatpush3.bf16.xpose.msra.mxu1 %v13750_v29  ;;  %11210 = vmatprep.mubr.msk.bf16.mxu1 %vm13232_vm0, %v17076_v2 }
 0x322   : > { %11220 = vmatprep.subr.bf16.mxu1 %v17076_v2 }
 0x326   : > { %v1013_v31 = vpop.f32.mrf.mxu0  ;;  %v11176_v35 = vpop.f32.mrf.mxu1 }
 0x327   : > { %v1125_v27 = vadd.f32 %v11176_v35, %v13760_v22  ;;  %v1014_v34 = vadd.f32 %v1013_v31, %v13698_v5 }
 0x328   : > { %v13765_v40 = vpop.f32.mrf.mxu0  ;;  %v1116_v36 = vpop.f32.mrf.mxu1  ;;  %11211 = vmatmul.mubr.msk.bf16.vlgmr.msra.gmra.mxu1 %vm1395_vm1, %v13762_v30 }
 0x329   : > { %11222 = vmatprep.mubr.msk.bf16.mxu1 %vm13232_vm0, %v17076_v2  ;;  %v1117_v45 = vadd.f32 %v1116_v36, %v13760_v22 }
 0x32a   : > { %v1017_v38 = vpop.f32.mrf.mxu0  ;;  %v11177_v39 = vpop.f32.mrf.mxu1 }
 0x32b   : > { %v1018_v13 = vadd.f32 %v1017_v38, %v13698_v5  ;;  %v1128_v43 = vadd.f32 %v11177_v39, %v13760_v22 }
 0x32c   : > { %v13774_v37 = vpop.f32.mrf.mxu0  ;;  %v1119_v44 = vpop.f32.mrf.mxu1 }
 0x32d   : > { %v13777_v47 = vpack.c.bf16 %v1018_v13, %v1014_v34  ;;  %v13779_v46 = vpack.c.bf16 %v1128_v43, %v1125_v27  ;;  %v1120_v41 = vadd.f32 %v1119_v44, %v13760_v22  ;;  %v1020_v62 = vadd.f32 %v13774_v37, %v13702_v6 }
 0x32e   : > { %v1023_v17 = vpop.f32.mrf.mxu0  ;;  %v11180_v50 = vpop.f32.mrf.mxu1 }
 0x32f   : > { %v13782_v51 = vpack.c.bf16 %v1120_v41, %v1117_v45  ;;  %v1141_v54 = vadd.f32 %v11180_v50, %v13760_v22  ;;  %v1024_v59 = vadd.f32 %v1023_v17, %v13698_v5 }
 0x330   : > { %v13785_v52 = vpop.f32.mrf.mxu0  ;;  %v1132_v53 = vpop.f32.mrf.mxu1 }
 0x331   : > { %v1133_v49 = vadd.f32 %v1132_v53, %v13760_v22  ;;  %v1637_v57 = vsel %vm1635_vm2, %v13782_v51, 0 }
 0x332   : > { %v1027_v58 = vpop.f32.mrf.mxu0  ;;  %v11181_v48 = vpop.f32.mrf.mxu1  ;;  %11215 = vmatpush3.bf16.msra.mxu0 %v1637_v57 }
 0x333   : > { %v1028_v55 = vadd.f32 %v1027_v58, %v13698_v5  ;;  %v1144_v63 = vadd.f32 %v11181_v48, %v13760_v22  ;;  %11226 = vmatprep.subr.bf16.mxu0 %v17076_v2 }
 0x334   : > { %v13794_v56 = vpop.f32.mrf.mxu0  ;;  %v1135_v61 = vpop.f32.mrf.mxu1 }
 0x335   : > { %v13796_v0 = vpack.c.bf16 %v1028_v55, %v1024_v59  ;;  %v13798_v1 = vpack.c.bf16 %v1144_v63, %v1141_v54  ;;  %v1136_v42 = vadd.f32 %v1135_v61, %v13760_v22 }
 0x336   : > { %v1033_v3 = vpop.f32.mrf.mxu0 }
 0x337   : > { %v13801_v26 = vpack.c.bf16 %v1136_v42, %v1133_v49  ;;  %v11184_v16 = vpop.f32.mrf.mxu1  ;;  %v1034_v14 = vadd.f32 %v1033_v3, %v13698_v5 }
 0x338   : > { %v1157_v7 = vadd.f32 %v11184_v16, %v13760_v22  ;;  %v13804_v8 = vpop.f32.mrf.mxu0 }
 0x339   : > { %v1148_v9 = vpop.f32.mrf.mxu1 }
 0x33a   : > { %v1149_v10 = vadd.f32 %v1148_v9, %v13760_v22  ;;  %v1037_v12 = vpop.f32.mrf.mxu0 }
 0x33b   : > { %v1038_v18 = vadd.f32 %v1037_v12, %v13698_v5  ;;  %v11185_v19 = vpop.f32.mrf.mxu1 }
 0x33c   : > { %v1160_v24 = vadd.f32 %v11185_v19, %v13760_v22  ;;  %v13810_v31 = vpop.f32.mrf.mxu0 }
 0x33d   : > { %v13812_v35 = vpack.c.bf16 %v1038_v18, %v1034_v14  ;;  %v1151_v27 = vpop.f32.mrf.mxu1 }
 0x33e   : > { %v13814_v36 = vpack.c.bf16 %v1160_v24, %v1157_v7  ;;  %v1152_v38 = vadd.f32 %v1151_v27, %v13760_v22  ;;  %v1043_v39 = vpop.f32.mrf.mxu0 }
 0x33f   : > { %v11188_v34 = vpop.f32.mrf.mxu1  ;;  %v1044_v50 = vadd.f32 %v1043_v39, %v13698_v5 }
 0x340   : > { %v13817_v13 = vpack.c.bf16 %v1152_v38, %v1149_v10  ;;  %v1173_v43 = vadd.f32 %v11188_v34, %v13760_v22  ;;  %v13820_v44 = vpop.f32.mrf.mxu0 }
 0x341   : > { %v1164_v45 = vpop.f32.mrf.mxu1 }
 0x342   : > { %v1165_v41 = vadd.f32 %v1164_v45, %v13760_v22  ;;  %v1047_v17 = vpop.f32.mrf.mxu0 }
 0x343   : > { %v1048_v54 = vadd.f32 %v1047_v17, %v13698_v5  ;;  %v11189_v53 = vpop.f32.mrf.mxu1  ;;  %v13858_v17 = vand.u32 127, %v826_v60 }
 0x344   : > { %v1176_v49 = vadd.f32 %v11189_v53, %v13760_v22  ;;  %v13826_v57 = vpop.f32.mrf.mxu0 }
 0x345   : > { %v13828_v58 = vpack.c.bf16 %v1048_v54, %v1044_v50  ;;  %v1167_v48 = vpop.f32.mrf.mxu1  ;;  %vm13862_vm3 = vcmp.ge.s32.totalorder %v13688_v32, %v13858_v17 }
 0x346   : > { %v13830_v59 = vpack.c.bf16 %v1176_v49, %v1173_v43  ;;  %v1168_v55 = vadd.f32 %v1167_v48, %v13760_v22  ;;  %v1053_v63 = vpop.f32.mrf.mxu0 }
 0x347   : > { %v1054_v16 = vadd.f32 %v1053_v63, %v13698_v5 }
 0x348   : > { %v13833_v61 = vpack.c.bf16 %v1168_v55, %v1165_v41  ;;  %v13835_v42 = vpop.f32.mrf.mxu0 }
 0x34a   : > { %v1057_v3 = vpop.f32.mrf.mxu0 }
 0x34b   : > { %v1058_v7 = vadd.f32 %v1057_v3, %v13698_v5 }
 0x34c   : > { %v13839_v9 = vpop.f32.mrf.mxu0 }
 0x34d   : > { %v13841_v10 = vpack.c.bf16 %v1058_v7, %v1054_v16 }
 0x34e   : > { %v1063_v12 = vpop.f32.mrf.mxu0 }
 0x34f   : > { %v1064_v22 = vadd.f32 %v1063_v12, %v13698_v5 }
 0x350   : > { %v13843_v14 = vpop.f32.mrf.mxu0 }
 0x352   : > { %v1067_v18 = vpop.f32.mrf.mxu0 }
 0x353   : > { %v1068_v19 = vadd.f32 %v1067_v18, %v13698_v5 }
 0x354   : > { %v13847_v24 = vpop.f32.mrf.mxu0 }
 0x355   : > { %v13849_v27 = vpack.c.bf16 %v1068_v19, %v1064_v22 }
 0x356   : > { %v1073_v38 = vpop.f32.mrf.mxu0 }
 0x357   : > { %v1074_v43 = vadd.f32 %v1073_v38, %v13698_v5 }
 0x358   : > { %v13851_v39 = vpop.f32.mrf.mxu0 }
 0x35a   : > { %v1077_v34 = vpop.f32.mrf.mxu0 }
 0x35b   : > { %v1078_v45 = vadd.f32 %v1077_v34, %v13698_v5 }
 0x35d   : > { %v13855_v41 = vpack.c.bf16 %v1078_v45, %v1074_v43 }
 0x365   : > { %v1436_v54 = vpop.f32.mrf.mxu1 }
 0x366   : > { %v1587_v53 = vsel %vm13862_vm3, %v1436_v54, -1e+30 }
 0x367   : > { %v11194_v49 = vpop.f32.mrf.mxu1  ;;  %v1592_v48 = vsel %vm1591_vm4, %v1587_v53, -inf }
 0x368   : > { %1593 = vmax.xlane.f32.xlu1 %v1592_v48 }
 0x369   : > { %v1439_v5 = vpop.f32.mrf.mxu1 }
 0x36b   : > { %v11195_v55 = vpop.f32.mrf.mxu1 }
 0x3d8   : > { %v1482_v63 = vpop.f32.mrf.mxu1 }
 0x3d9   : > { %v1588_v60 = vsel %vm13862_vm3, %v1482_v63, -1e+30 }
 0x3da   : > { %v11200_v3 = vpop.f32.mrf.mxu1  ;;  %v1595_v16 = vsel %vm1591_vm4, %v1588_v60, -inf }
 0x3db   : > { %1596 = vmax.xlane.f32.xlu0 %v1595_v16 }
 0x3dc   : > { %v1485_v7 = vpop.f32.mrf.mxu1 }
 0x3de   : > { %v11201_v12 = vpop.f32.mrf.mxu1 }
 0x3e0   : > { %v1528_v18 = vpop.f32.mrf.mxu1 }
 0x3e2   : > { %v11206_v22 = vpop.f32.mrf.mxu1 }
 0x3e4   : > { %v1531_v19 = vpop.f32.mrf.mxu1 }
 0x3e6   : > { %v11207_v38 = vpop.f32.mrf.mxu1 }
 0x3e8   : > { %v1574_v34 = vpop.f32.mrf.mxu1 }
 0x3e9   : > { %v1590_v43 = vsel %vm13862_vm3, %v1574_v34, -1e+30 }
 0x3ea   : > { %v11212_v45 = vpop.f32.mrf.mxu1  ;;  %v1601_v54 = vsel %vm1591_vm4, %v1590_v43, -inf }
 0x3eb   : > { %1602 = vmax.xlane.f32.xlu1 %v1601_v54 }
 0x3ec   : > { %v1577_v49 = vpop.f32.mrf.mxu1 }
 0x3ee   : > { %v11213_v48 = vpop.f32.mrf.mxu1 }
 0x3f1   : > { %v1594_v5 = vpop.xlane.xlu1 %1593  ;;  %1317 = vrot.lane.b32.xlu0 %v13782_v51, %s13233_s9 }
 0x3f2   : > { %v1604_v55 = vsub.f32 %v1587_v53, %v1594_v5  ;;  %v1589_v53 = vsel %vm13862_vm3, %v1528_v18, -1e+30 }
 0x3f3   : > { %v1598_v7 = vsel %vm1591_vm4, %v1589_v53, -inf }
 0x3f4   : > { %v1608_v63 = vmul.f32 1.442695, %v1604_v55 }
 0x3f6   : > { %12521 = vpow2.f32 %v1608_v63 }
 0x3fc   : > { %1329 = vrot.lane.b32.xlu1 %v13782_v51, %s13235_s3 }
 0x400   : > { %1323 = vrot.lane.b32.xlu1 %v13782_v51, %s13234_s15 }
 0x403   : > { %v13881_v3 = vpop.eup %12521 }
 0x404   : > { %17164 = vst [vmem:[#allocation23_spill] sm:$0xff] %v13881_v3  ;;  %v1628_v16 = vpack.c.bf16 %v13881_v3, %v13881_v3  ;;  %v2450_v3 = vadd.s32 16, %v13688_v32 }
 0x406   : > { %11217 = vmatmul.mubr.msk.bf16.vlgmr.msra.gmra.mxu0 %vm1591_vm4, %v1628_v16  ;;  %vm14098_vm7 = vcmp.ge.s32.totalorder %v2450_v3, %v13858_v17 }
 0x407   : > { %11228 = vmatprep.mubr.msk.bf16.mxu0 %vm13232_vm0, %v17076_v2 }
 0x410   : > { %1599 = vmax.xlane.f32.xlu0 %v1598_v7  ;;  %v1888_v7 = vrot.slane %v13730_v33, 4 }
 0x464   : > { %v1597_v12 = vpop.xlane.xlu0 %1596 }
 0x465   : > { %v1605_v22 = vsub.f32 %v1588_v60, %v1597_v12  ;;  %v1976_v12 = vrot.slane %v13762_v30, 4  ;;  %v1844_v30 = vrot.slane %v13709_v11, 4  ;;  %v13955_v11 = vpop.f32.mrf.mxu0 }
 0x467   : > { %v1610_v19 = vmul.f32 1.442695, %v1605_v22 }
 0x468   : > { %v13891_v38 = vpop.permute.xlu0 %1317 }
 0x469   : > { %12523 = vpow2.f32 %v1610_v19  ;;  %v1683_v34 = vsel %vm1635_vm2, %v13891_v38, 0 }
 0x46a   : > { %11221 = vmatpush3.bf16.msra.mxu1 %v1683_v34 }
 0x46b   : > { %11232 = vmatprep.subr.bf16.mxu1 %v17076_v2 }
 0x474   : > { %v1603_v45 = vpop.xlane.xlu1 %1602 }
 0x475   : > { %v1607_v54 = vsub.f32 %v1590_v43, %v1603_v45 }
 0x476   : > { %v13896_v49 = vpop.eup %12523 }
 0x477   : > { %17165 = vst [vmem:[#allocation24_spill] sm:$0xff] %v13896_v49  ;;  %v1614_v18 = vmul.f32 1.442695, %v1607_v54  ;;  %v1629_v48 = vpack.c.bf16 %v13896_v49, %v13896_v49 }
 0x478   : > { %v13900_v5 = vpop.permute.xlu1 %1329 }
 0x479   : > { %12525 = vpow2.f32 %v1614_v18  ;;  %11223 = vmatmul.mubr.msk.bf16.vlgmr.msra.gmra.mxu1 %vm1591_vm4, %v1629_v48  ;;  %v1775_v60 = vsel %vm1635_vm2, %v13900_v5, 0 }
 0x47a   : > { %11233 = vmatpush3.bf16.msra.mxu1 %v1775_v60  ;;  %11234 = vmatprep.mubr.msk.bf16.mxu1 %vm13232_vm0, %v17076_v2 }
 0x47b   : > { %11244 = vmatprep.subr.bf16.mxu1 %v17076_v2 }
 0x47c   : > { %v13908_v43 = vpop.permute.xlu1 %1323 }
 0x47d   : > { %v1729_v55 = vsel %vm1635_vm2, %v13908_v43, 0 }
 0x47e   : > { %11227 = vmatpush3.bf16.msra.mxu0 %v1729_v55 }
 0x47f   : > { %11238 = vmatprep.subr.bf16.mxu0 %v17076_v2 }
 0x486   : > { %v13913_v63 = vpop.eup %12525 }
 0x487   : > { %17166 = vst [vmem:[#allocation25_spill] sm:$0xff] %v13913_v63  ;;  %v1631_v16 = vpack.c.bf16 %v13913_v63, %v13913_v63 }
 0x489   : > { %11235 = vmatmul.mubr.msk.bf16.vlgmr.msra.gmra.mxu1 %vm1591_vm4, %v1631_v16 }
 0x48a   : > { %11245 = vmatpush3.bf16.xpose.msra.mxu1 %v13733_v23  ;;  %11246 = vmatprep.mubr.msk.bf16.mxu1 %vm13232_vm0, %v17076_v2 }
 0x48b   : > { %11256 = vmatprep.subr.bf16.mxu1 %v17076_v2 }
 0x491   : > { %11247 = vmatmul.mubr.msk.bf16.vlgmr.msra.gmra.mxu1 %vm1395_vm1, %v1888_v7 }
 0x492   : > { %11257 = vmatpush3.bf16.xpose.msra.mxu1 %v13750_v29  ;;  %11258 = vmatprep.mubr.msk.bf16.mxu1 %vm13232_vm0, %v17076_v2 }
 0x493   : > { %11268 = vmatprep.subr.bf16.mxu1 %v17076_v2 }
 0x499   : > { %11259 = vmatmul.mubr.msk.bf16.vlgmr.msra.gmra.mxu1 %vm1395_vm1, %v1976_v12  ;;  %v1600_v22 = vpop.xlane.xlu0 %1599 }
 0x49a   : > { %11269 = vmatpush3.bf16.msra.mxu1 %v13891_v38  ;;  %v1606_v19 = vsub.f32 %v1589_v53, %v1600_v22  ;;  %11270 = vmatprep.mubr.msk.bf16.mxu1 %vm13232_vm0, %v17076_v2  ;;  %v1932_v53 = vrot.slane %v13746_v25, 4 }
 0x49b   : > { %11280 = vmatprep.subr.bf16.mxu1 %v17076_v2 }
 0x49c   : > { %v1612_v33 = vmul.f32 1.442695, %v1606_v19  ;;  %v2020_v19 = vadd.s32 8, %v13688_v32 }
 0x49e   : > { %12527 = vpow2.f32 %v1612_v33  ;;  %vm13965_vm5 = vcmp.ge.s32.totalorder %v2020_v19, %v13858_v17 }
 0x4ab   : > { %v13934_v34 = vpop.eup %12527 }
 0x4ac   : > { %17167 = vst [vmem:[#allocation26_spill] sm:$0xff] %v13934_v34  ;;  %v1630_v45 = vpack.c.bf16 %v13934_v34, %v13934_v34 }
 0x4ae   : > { %11229 = vmatmul.mubr.msk.bf16.vlgmr.msra.gmra.mxu0 %vm1591_vm4, %v1630_v45 }
 0x4af   : > { %11239 = vmatpush3.bf16.xpose.msra.mxu0 %v13716_v15  ;;  %11240 = vmatprep.mubr.msk.bf16.mxu0 %vm13232_vm0, %v17076_v2 }
 0x4b0   : > { %11250 = vmatprep.subr.bf16.mxu0 %v17076_v2 }
 0x4b6   : > { %11241 = vmatmul.mubr.msk.bf16.vlgmr.msra.gmra.mxu0 %vm1395_vm1, %v1844_v30 }
 0x4b7   : > { %11251 = vmatpush3.bf16.xpose.msra.mxu0 %v13738_v20  ;;  %11252 = vmatprep.mubr.msk.bf16.mxu0 %vm13232_vm0, %v17076_v2 }
 0x4b8   : > { %11262 = vmatprep.subr.bf16.mxu0 %v17076_v2 }
 0x4be   : > { %11253 = vmatmul.mubr.msk.bf16.vlgmr.msra.gmra.mxu0 %vm1395_vm1, %v1932_v53 }
 0x4bf   : > { %11263 = vmatpush3.bf16.msra.mxu0 %v13782_v51  ;;  %11264 = vmatprep.mubr.msk.bf16.mxu0 %vm13232_vm0, %v17076_v2 }
 0x4c0   : > { %11274 = vmatprep.subr.bf16.mxu0 %v17076_v2 }
 0x4c6   : > { %v13957_v54 = vpop.f32.mrf.mxu0 }
 0x4c7   : > { %17168 = vst [vmem:[#allocation27_spill] sm:$0xff] %v13957_v54 }
 0x4c8   : > { %v11218_v18 = vpop.f32.mrf.mxu0 }
 0x4ca   : > { %v1676_v48 = vpop.f32.mrf.mxu0 }
 0x4cc   : > { %v11219_v60 = vpop.f32.mrf.mxu0 }
 0x539   : > { %v13959_v55 = vpop.f32.mrf.mxu1 }
 0x53a   : > { %17169 = vst [vmem:[#allocation28_spill] sm:$0xff] %v13959_v55 }
 0x53b   : > { %v11224_v16 = vpop.f32.mrf.mxu1 }
 0x53d   : > { %v1722_v25 = vpop.f32.mrf.mxu1 }
 0x53f   : > { %v11225_v7 = vpop.f32.mrf.mxu1 }
 0x549   : > { %v13961_v12 = vpop.f32.mrf.mxu1 }
 0x54a   : > { %17170 = vst [vmem:[#allocation29_spill] sm:$0xff] %v13961_v12 }
 0x54b   : > { %v11236_v22 = vpop.f32.mrf.mxu1 }
 0x54d   : > { %v1814_v33 = vpop.f32.mrf.mxu1 }
 0x54f   : > { %v11237_v45 = vpop.f32.mrf.mxu1 }
 0x551   : > { %v1926_v53 = vpop.f32.mrf.mxu1 }
 0x552   : > { %v2025_v18 = vsel %vm13965_vm5, %v1926_v53, -1e+30  ;;  %v1016_v53 = vadd.f32 %v13765_v40, %v13702_v6 }
 0x553   : > { %v11248_v48 = vpop.f32.mrf.mxu1  ;;  %v2032_v60 = vsel %vm2028_vm6, %v2025_v18, -inf }
 0x554   : > { %2033 = vmax.xlane.f32.xlu1 %v2032_v60  ;;  %v1183_v48 = vpack.c.bf16 %v1020_v62, %v1016_v53 }
 0x555   : > { %v1929_v16 = vpop.f32.mrf.mxu1 }
 0x557   : > { %v11249_v25 = vpop.f32.mrf.mxu1 }
 0x559   : > { %v2014_v7 = vpop.f32.mrf.mxu1 }
 0x55a   : > { %v2027_v22 = vsel %vm13965_vm5, %v2014_v7, -1e+30 }
 0x55b   : > { %v11260_v33 = vpop.f32.mrf.mxu1  ;;  %v2038_v19 = vsel %vm2028_vm6, %v2027_v22, -inf }
 0x55c   : > { %2039 = vmax.xlane.f32.xlu0 %v2038_v19 }
 0x55d   : > { %v2017_v45 = vpop.f32.mrf.mxu1 }
 0x55f   : > { %v11261_v28 = vpop.f32.mrf.mxu1 }
 0x565   : > { %1267 = vrot.lane.b32.xlu1 %v1183_v48, %s13234_s15 }
 0x569   : > { %1271 = vrot.lane.b32.xlu1 %v1183_v48, %s13235_s3 }
 0x56d   : > { %1211 = vrot.lane.b32.xlu1 %v13777_v47, %s13234_s15 }
 0x56e   : > { %v13983_v60 = vpop.f32.mrf.mxu0 }
 0x56f   : > { %17173 = vst [vmem:[#allocation30_spill] sm:$0xff] %v13983_v60 }
 0x570   : > { %v11230_v16 = vpop.f32.mrf.mxu0 }
 0x571   : > { %1319 = vrot.lane.b32.xlu1 %v13779_v46, %s13233_s9 }
 0x572   : > { %v1768_v25 = vpop.f32.mrf.mxu0 }
 0x574   : > { %v11231_v37 = vpop.f32.mrf.mxu0 }
 0x576   : > { %v1882_v28 = vpop.f32.mrf.mxu0 }
 0x577   : > { %v2024_v40 = vsel %vm13965_vm5, %v1882_v28, -1e+30 }
 0x578   : > { %v11242_v62 = vpop.f32.mrf.mxu0  ;;  %v2029_v7 = vsel %vm2028_vm6, %v2024_v40, -inf }
 0x579   : > { %2030 = vmax.xlane.f32.xlu0 %v2029_v7 }
 0x57a   : > { %v1885_v33 = vpop.f32.mrf.mxu0 }
 0x57c   : > { %v11243_v19 = vpop.f32.mrf.mxu0 }
 0x57e   : > { %v1970_v45 = vpop.f32.mrf.mxu0 }
 0x57f   : > { %v2026_v53 = vsel %vm13965_vm5, %v1970_v45, -1e+30 }
 0x580   : > { %v11254_v16 = vpop.f32.mrf.mxu0  ;;  %v2035_v21 = vsel %vm2028_vm6, %v2026_v53, -inf }
 0x581   : > { %2036 = vmax.xlane.f32.xlu0 %v2035_v21 }
 0x582   : > { %v1973_v25 = vpop.f32.mrf.mxu0 }
 0x583   : > { %v14013_v25 = vsel %vm1395_vm1, %v1183_v48, 0 }
 0x584   : > { %v11255_v37 = vpop.f32.mrf.mxu0 }
 0x597   : > { %1263 = vrot.lane.b32.xlu0 %v1183_v48, %s13233_s9 }
 0x59b   : > { %1207 = vrot.lane.b32.xlu0 %v13777_v47, %s13233_s9 }
 0x59f   : > { %1215 = vrot.lane.b32.xlu0 %v13777_v47, %s13235_s3 }
 0x5dd   : > { %v2034_v28 = vpop.xlane.xlu1 %2033 }
 0x5de   : > { %v2042_v62 = vsub.f32 %v2025_v18, %v2034_v28 }
 0x5e0   : > { %v2047_v7 = vmul.f32 1.442695, %v2042_v62 }
 0x5e2   : > { %12529 = vpow2.f32 %v2047_v7 }
 0x5e5   : > { %v2040_v33 = vpop.xlane.xlu0 %2039 }
 0x5e6   : > { %v2044_v19 = vsub.f32 %v2027_v22, %v2040_v33 }
 0x5e8   : > { %v2051_v45 = vmul.f32 1.442695, %v2044_v19 }
 0x5ea   : > { %12531 = vpow2.f32 %v2051_v45 }
 0x5ef   : > { %v13998_v16 = vpop.eup %12529 }
 0x5f0   : > { %17174 = vst [vmem:[#allocation31_spill] sm:$0xff] %v13998_v16  ;;  %v2066_v21 = vpack.c.bf16 %v13998_v16, %v13998_v16 }
 0x5f2   : > { %11271 = vmatmul.mubr.msk.bf16.vlgmr.msra.gmra.mxu1 %vm2028_vm6, %v2066_v21 }
 0x5f3   : > { %11281 = vmatpush3.bf16.msra.mxu1 %v13900_v5  ;;  %11282 = vmatprep.mubr.msk.bf16.mxu1 %vm13232_vm0, %v17076_v2 }
 0x5f4   : > { %11286 = vmatprep.subr.bf16.mxu1 %v17076_v2 }
 0x5f7   : > { %v14007_v18 = vpop.eup %12531 }
 0x5f8   : > { %17175 = vst [vmem:[#allocation32_spill] sm:$0xff] %v14007_v18  ;;  %v2068_v22 = vpack.c.bf16 %v14007_v18, %v14007_v18 }
 0x5fa   : > { %11283 = vmatmul.mubr.msk.bf16.vlgmr.msra.gmra.mxu1 %vm2028_vm6, %v2068_v22  ;;  %v1268_v22 = vpop.permute.xlu1 %1267 }
 0x5fb   : > { %11287 = vmatpush3.bf16.xpose.msra.mxu1 %v14013_v25  ;;  %11290 = vmatprep.mubr.msk.bf16.mxu1 %vm13232_vm0, %v17076_v2 }
 0x5fc   : > { %11288 = vmatprep.subr.bf16.mxu1 %v17076_v2 }
 0x602   : > { %v2031_v37 = vpop.xlane.xlu0 %2030 }
 0x603   : > { %11289 = vmatpush3.bf16.xpose.msra.mxu1 %v13716_v15  ;;  %v2041_v28 = vsub.f32 %v2024_v40, %v2031_v37  ;;  %v1272_v37 = vpop.permute.xlu1 %1271 }
 0x604   : > { %11294 = vmatprep.subr.bf16.mxu1 %v17076_v2 }
 0x605   : > { %v2045_v62 = vmul.f32 1.442695, %v2041_v28 }
 0x607   : > { %12533 = vpow2.f32 %v2045_v62 }
 0x60a   : > { %11291 = vmatmul.mubr.msk.bf16.vlgmr.msra.gmra.mxu1 %vm1395_vm1, %v13777_v47  ;;  %v2037_v48 = vpop.xlane.xlu0 %2036 }
 0x60b   : > { %v2043_v7 = vsub.f32 %v2026_v53, %v2037_v48  ;;  %11298 = vmatprep.mubr.msk.bf16.mxu1 %vm13232_vm0, %v17076_v2  ;;  %v14048_v48 = vsel %vm1395_vm1, %v1268_v22, 0  ;;  %v2503_v22 = vsel %vm1635_vm2, %v13779_v46, 0 }
 0x60d   : > { %v2049_v33 = vmul.f32 1.442695, %v2043_v7  ;;  %v14051_v7 = vsel %vm1395_vm1, %v1272_v37, 0 }
 0x60e   : > { %v1264_v19 = vpop.permute.xlu0 %1263 }
 0x60f   : > { %12535 = vpow2.f32 %v2049_v33  ;;  %v14026_v45 = vsel %vm1395_vm1, %v1264_v19, 0  ;;  %v14064_v33 = vpop.permute.xlu1 %1211 }
 0x610   : > { %11295 = vmatpush3.bf16.xpose.msra.mxu1 %v14026_v45 }
 0x611   : > { %11296 = vmatprep.subr.bf16.mxu1 %v17076_v2 }
 0x612   : > { %v14045_v62 = vpop.permute.xlu0 %1207 }
 0x613   : > { %v14070_v19 = vpop.permute.xlu1 %1319 }
 0x614   : > { %v14030_v40 = vpop.eup %12533  ;;  %v2549_v37 = vsel %vm1635_vm2, %v14070_v19, 0 }
 0x615   : > { %17176 = vst [vmem:[#allocation33_spill] sm:$0xff] %v14030_v40  ;;  %v2065_v21 = vpack.c.bf16 %v14030_v40, %v14030_v40 }
 0x617   : > { %11265 = vmatmul.mubr.msk.bf16.vlgmr.msra.gmra.mxu0 %vm2028_vm6, %v2065_v21  ;;  %v14072_v21 = vpop.permute.xlu0 %1215 }
 0x618   : > { %11275 = vmatpush3.bf16.msra.mxu0 %v13908_v43  ;;  %11297 = vmatpush3.bf16.xpose.msra.mxu1 %v13733_v23 }
 0x619   : > { %11276 = vmatprep.mubr.msk.bf16.mxu0 %vm13232_vm0, %v17076_v2  ;;  %11302 = vmatprep.subr.bf16.mxu0 %v17076_v2 }
 0x61a   : > { %11310 = vmatprep.subr.bf16.mxu1 %v17076_v2 }
 0x61c   : > { %v14041_v53 = vpop.eup %12535 }
 0x61d   : > { %17177 = vst [vmem:[#allocation34_spill] sm:$0xff] %v14041_v53  ;;  %v2067_v28 = vpack.c.bf16 %v14041_v53, %v14041_v53 }
 0x61f   : > { %11277 = vmatmul.mubr.msk.bf16.vlgmr.msra.gmra.mxu0 %vm2028_vm6, %v2067_v28  ;;  %11299 = vmatmul.mubr.msk.bf16.vlgmr.msra.gmra.mxu1 %vm1395_vm1, %v14045_v62 }
 0x620   : > { %11303 = vmatpush3.bf16.xpose.msra.mxu0 %v14048_v48  ;;  %11311 = vmatpush3.bf16.xpose.msra.mxu1 %v14051_v7 }
 0x621   : > { %11304 = vmatprep.subr.bf16.mxu0 %v17076_v2  ;;  %11312 = vmatprep.subr.bf16.mxu1 %v17076_v2 }
 0x622   : > { %11306 = vmatprep.mubr.msk.bf16.mxu0 %vm13232_vm0, %v17076_v2  ;;  %11314 = vmatprep.mubr.msk.bf16.mxu1 %vm13232_vm0, %v17076_v2 }
 0x628   : > { %11305 = vmatpush3.bf16.xpose.msra.mxu0 %v13738_v20  ;;  %11313 = vmatpush3.bf16.xpose.msra.mxu1 %v13750_v29 }
 0x629   : > { %11318 = vmatprep.subr.bf16.mxu0 %v17076_v2  ;;  %11326 = vmatprep.subr.bf16.mxu1 %v17076_v2 }
 0x62f   : > { %11307 = vmatmul.mubr.msk.bf16.vlgmr.msra.gmra.mxu0 %vm1395_vm1, %v14064_v33  ;;  %11315 = vmatmul.mubr.msk.bf16.vlgmr.msra.gmra.mxu1 %vm1395_vm1, %v14072_v21 }
 0x630   : > { %11319 = vmatpush3.bf16.msra.mxu0 %v2503_v22  ;;  %11327 = vmatpush3.bf16.msra.mxu1 %v2549_v37 }
 0x631   : > { %11320 = vmatprep.subr.bf16.mxu0 %v17076_v2  ;;  %11328 = vmatprep.subr.bf16.mxu1 %v17076_v2 }
 0x632   : > { %11322 = vmatprep.mubr.msk.bf16.mxu0 %vm13232_vm0, %v17076_v2  ;;  %11330 = vmatprep.mubr.msk.bf16.mxu1 %vm13232_vm0, %v17076_v2 }
 0x634   : > { %11321 = vmatpush3.bf16.msra.mxu0 %v13782_v51  ;;  %11329 = vmatpush3.bf16.msra.mxu1 %v13891_v38 }
 0x635   : > { %11334 = vmatprep.subr.bf16.mxu0 %v17076_v2  ;;  %11342 = vmatprep.subr.bf16.mxu1 %v17076_v2 }
 0x6b2   : > { %v14092_v28 = vpop.f32.mrf.mxu1 }
 0x6b3   : > { %17178 = vst [vmem:[#allocation35_spill] sm:$0xff] %v14092_v28 }
 0x6b4   : > { %v11272_v22 = vpop.f32.mrf.mxu1 }
 0x6b6   : > { %v2152_v37 = vpop.f32.mrf.mxu1 }
 0x6b8   : > { %v11273_v4 = vpop.f32.mrf.mxu1 }
 0x6ba   : > { %v14094_v54 = vpop.f32.mrf.mxu1 }
 0x6bb   : > { %17179 = vst [vmem:[#allocation36_spill] sm:$0xff] %v14094_v54 }
 0x6bc   : > { %v11284_v12 = vpop.f32.mrf.mxu1 }
 0x6be   : > { %v2238_v60 = vpop.f32.mrf.mxu1 }
 0x6c0   : > { %v11285_v55 = vpop.f32.mrf.mxu1 }
 0x6ca   : > { %v2306_v63 = vpop.f32.mrf.mxu1 }
 0x6cb   : > { %v2454_v2 = vsel %vm14098_vm7, %v2306_v63, -1e+30 }
 0x6cc   : > { %v11292_v22 = vpop.f32.mrf.mxu1  ;;  %v2459_v4 = vsel %vm2458_vm8, %v2454_v2, -inf }
 0x6cd   : > { %2460 = vmax.xlane.f32.xlu1 %v2459_v4 }
 0x6ce   : > { %v2309_v37 = vpop.f32.mrf.mxu1 }
 0x6d0   : > { %v11293_v12 = vpop.f32.mrf.mxu1 }
 0x6d7   : > { %v14105_v60 = vpop.f32.mrf.mxu0 }
 0x6d8   : > { %17182 = vst [vmem:[#allocation37_spill] sm:$0xff] %v14105_v60 }
 0x6d9   : > { %v11266_v55 = vpop.f32.mrf.mxu0 }
 0x6db   : > { %v2109_v54 = vpop.f32.mrf.mxu0 }
 0x6dd   : > { %v11267_v28 = vpop.f32.mrf.mxu0 }
 0x6de   : > { %1331 = vrot.lane.b32.xlu1 %v13779_v46, %s13235_s3 }
 0x6df   : > { %v14109_v3 = vpop.f32.mrf.mxu0  ;;  %v2352_v34 = vpop.f32.mrf.mxu1 }
 0x6e0   : > { %17183 = vst [vmem:[#allocation38_spill] sm:$0xff] %v14109_v3  ;;  %v2455_v60 = vsel %vm14098_vm7, %v2352_v34, -1e+30 }
 0x6e1   : > { %v11278_v49 = vpop.f32.mrf.mxu0  ;;  %v11300_v18 = vpop.f32.mrf.mxu1 }
 0x6e3   : > { %v2195_v63 = vpop.f32.mrf.mxu0  ;;  %v2355_v22 = vpop.f32.mrf.mxu1 }
 0x6e4   : > { %v2462_v63 = vsel %vm2458_vm8, %v2455_v60, -inf }
 0x6e5   : > { %v11279_v53 = vpop.f32.mrf.mxu0  ;;  %v11301_v16 = vpop.f32.mrf.mxu1 }
 0x6ef   : > { %v2398_v4 = vpop.f32.mrf.mxu0  ;;  %v2444_v37 = vpop.f32.mrf.mxu1 }
 0x6f0   : > { %v2456_v12 = vsel %vm14098_vm7, %v2398_v4, -1e+30  ;;  %v2457_v16 = vsel %vm14098_vm7, %v2444_v37, -1e+30 }
 0x6f1   : > { %v11308_v55 = vpop.f32.mrf.mxu0  ;;  %v2465_v54 = vsel %vm2458_vm8, %v2456_v12, -inf  ;;  %v11316_v28 = vpop.f32.mrf.mxu1  ;;  %v2468_v22 = vsel %vm2458_vm8, %v2457_v16, -inf }
 0x6f2   : > { %2466 = vmax.xlane.f32.xlu0 %v2465_v54  ;;  %v17185_v28 = vmov 0.0  }
 0x6f3   : > { %v2401_v3 = vpop.f32.mrf.mxu0  ;;  %v2447_v49 = vpop.f32.mrf.mxu1 }
 0x6f5   : > { %v11309_v18 = vpop.f32.mrf.mxu0  ;;  %v11317_v53 = vpop.f32.mrf.mxu1 }
 0x6f6   : > { %2463 = vmax.xlane.f32.xlu0 %v2462_v63 }
 0x6fa   : > { %2469 = vmax.xlane.f32.xlu0 %v2468_v22 }
 0x710   : > { %1325 = vrot.lane.b32.xlu0 %v13779_v46, %s13234_s15 }
 0x756   : > { %v2461_v4 = vpop.xlane.xlu1 %2460 }
 0x757   : > { %v2471_v55 = vsub.f32 %v2454_v2, %v2461_v4 }
 0x759   : > { %v2475_v34 = vmul.f32 1.442695, %v2471_v55 }
 0x75b   : > { %12537 = vpow2.f32 %v2475_v34 }
 0x768   : > { %v14122_v3 = vpop.eup %12537 }
 0x769   : > { %17184 = vst [vmem:[#allocation39_spill] sm:$0xff] %v14122_v3  ;;  %v2495_v54 = vpack.c.bf16 %v14122_v3, %v14122_v3 }
 0x76b   : > { %11323 = vmatmul.mubr.msk.bf16.vlgmr.msra.gmra.mxu0 %vm2458_vm8, %v2495_v54 }
 0x76c   : > { %11338 = vmatprep.mubr.msk.bf16.mxu0 %vm13232_vm0, %v17185_v28 }
 0x77b   : > { %v2467_v37 = vpop.xlane.xlu0 %2466 }
 0x77c   : > { %v2473_v49 = vsub.f32 %v2456_v12, %v2467_v37 }
 0x77e   : > { %v2479_v18 = vmul.f32 1.442695, %v2473_v49 }
 0x77f   : > { %v2464_v63 = vpop.xlane.xlu0 %2463 }
 0x780   : > { %12539 = vpow2.f32 %v2479_v18  ;;  %v2472_v53 = vsub.f32 %v2455_v60, %v2464_v63  ;;  %v2708_v18 = vrot.slane %v13777_v47, 4  ;;  %v2796_v47 = vrot.slane %v14064_v33, 4 }
 0x782   : > { %v2477_v22 = vmul.f32 1.442695, %v2472_v53  ;;  %v2884_v53 = vadd.s32 24, %v13688_v32 }
 0x783   : > { %v2470_v2 = vpop.xlane.xlu0 %2469 }
 0x784   : > { %12541 = vpow2.f32 %v2477_v22  ;;  %v2474_v4 = vsub.f32 %v2457_v16, %v2470_v2  ;;  %v14143_v16 = vpop.permute.xlu1 %1331  ;;  %vm14214_vm9 = vcmp.ge.s32.totalorder %v2884_v53, %v13858_v17  ;;  %v1030_v17 = vadd.f32 %v13794_v56, %v13702_v6 }
 0x785   : > { %v2641_v37 = vsel %vm1635_vm2, %v14143_v16, 0 }
 0x786   : > { %v2481_v55 = vmul.f32 1.442695, %v2474_v4 }
 0x787   : > { %v14129_v34 = vpop.permute.xlu0 %1325 }
 0x788   : > { %v2595_v3 = vsel %vm1635_vm2, %v14129_v34, 0  ;;  %12543 = vpow2.f32 %v2481_v55 }
 0x789   : > { %11335 = vmatpush3.bf16.msra.mxu0 %v2595_v3 }
 0x78a   : > { %11336 = vmatprep.subr.bf16.mxu0 %v17185_v28 }
 0x78d   : > { %v14134_v54 = vpop.eup %12539  ;;  %11337 = vmatpush3.bf16.msra.mxu0 %v13908_v43 }
 0x78e   : > { %17186 = vst [vmem:[#allocation40_spill] sm:$0xff] %v14134_v54  ;;  %v2497_v60 = vpack.c.bf16 %v14134_v54, %v14134_v54  ;;  %11350 = vmatprep.subr.bf16.mxu0 %v17185_v28 }
 0x790   : > { %11339 = vmatmul.mubr.msk.bf16.vlgmr.msra.gmra.mxu0 %vm2458_vm8, %v2497_v60 }
 0x791   : > { %v14141_v12 = vpop.eup %12541  ;;  %11351 = vmatpush3.bf16.xpose.msra.mxu0 %v14013_v25  ;;  %11354 = vmatprep.mubr.msk.bf16.mxu0 %vm13232_vm0, %v17185_v28 }
 0x792   : > { %v2496_v3 = vpack.c.bf16 %v14141_v12, %v14141_v12  ;;  %11352 = vmatprep.subr.bf16.mxu0 %v17185_v28 }
 0x794   : > { %11331 = vmatmul.mubr.msk.bf16.vlgmr.msra.gmra.mxu1 %vm2458_vm8, %v2496_v3 }
 0x795   : > { %11343 = vmatpush3.bf16.msra.mxu1 %v2641_v37  ;;  %11346 = vmatprep.mubr.msk.bf16.mxu1 %vm13232_vm0, %v17185_v28  ;;  %v14157_v25 = vpop.eup %12543 }
 0x796   : > { %11344 = vmatprep.subr.bf16.mxu1 %v17185_v28  ;;  %17187 = vst [vmem:[#allocation41_spill] sm:$0xff] %v14157_v25  ;;  %v2498_v49 = vpack.c.bf16 %v14157_v25, %v14157_v25 }
 0x799   : > { %11345 = vmatpush3.bf16.msra.mxu1 %v13900_v5  ;;  %11353 = vmatpush3.bf16.xpose.msra.mxu0 %v13716_v15  ;;  %v2752_v15 = vrot.slane %v14045_v62, 4 }
 0x79a   : > { %11358 = vmatprep.subr.bf16.mxu1 %v17185_v28  ;;  %11366 = vmatprep.subr.bf16.mxu0 %v17185_v28 }
 0x79c   : > { %11347 = vmatmul.mubr.msk.bf16.vlgmr.msra.gmra.mxu1 %vm2458_vm8, %v2498_v49 }
 0x79d   : > { %11359 = vmatpush3.bf16.xpose.msra.mxu1 %v14026_v45  ;;  %11362 = vmatprep.mubr.msk.bf16.mxu1 %vm13232_vm0, %v17185_v28 }
 0x79e   : > { %11360 = vmatprep.subr.bf16.mxu1 %v17185_v28 }
 0x7a0   : > { %11355 = vmatmul.mubr.msk.bf16.vlgmr.msra.gmra.mxu0 %vm1395_vm1, %v2708_v18 }
 0x7a1   : > { %11367 = vmatpush3.bf16.xpose.msra.mxu0 %v14048_v48  ;;  %11370 = vmatprep.mubr.msk.bf16.mxu0 %vm13232_vm0, %v17185_v28 }
 0x7a2   : > { %11368 = vmatprep.subr.bf16.mxu0 %v17185_v28 }
 0x7a5   : > { %11361 = vmatpush3.bf16.xpose.msra.mxu1 %v13733_v23  ;;  %v2840_v23 = vrot.slane %v14072_v21, 4 }
 0x7a6   : > { %11374 = vmatprep.subr.bf16.mxu1 %v17185_v28 }
 0x7a9   : > { %11369 = vmatpush3.bf16.xpose.msra.mxu0 %v13738_v20 }
 0x7aa   : > { %11382 = vmatprep.subr.bf16.mxu0 %v17185_v28 }
 0x7ac   : > { %11363 = vmatmul.mubr.msk.bf16.vlgmr.msra.gmra.mxu1 %vm1395_vm1, %v2752_v15 }
 0x7ad   : > { %11375 = vmatpush3.bf16.xpose.msra.mxu1 %v14051_v7  ;;  %11378 = vmatprep.mubr.msk.bf16.mxu1 %vm13232_vm0, %v17185_v28 }
 0x7ae   : > { %11376 = vmatprep.subr.bf16.mxu1 %v17185_v28 }
 0x7b0   : > { %11371 = vmatmul.mubr.msk.bf16.vlgmr.msra.gmra.mxu0 %vm1395_vm1, %v2796_v47 }
 0x7b1   : > { %11383 = vmatpush3.bf16.msra.mxu0 %v13779_v46  ;;  %11386 = vmatprep.mubr.msk.bf16.mxu0 %vm13232_vm0, %v17185_v28 }
 0x7b2   : > { %11384 = vmatprep.subr.bf16.mxu0 %v17185_v28 }
 0x7b5   : > { %11377 = vmatpush3.bf16.xpose.msra.mxu1 %v13750_v29  ;;  %11385 = vmatpush3.bf16.msra.mxu0 %v13782_v51 }
 0x7b6   : > { %11390 = vmatprep.subr.bf16.mxu1 %v17185_v28  ;;  %11398 = vmatprep.subr.bf16.mxu0 %v17185_v28 }
 0x7bc   : > { %11379 = vmatmul.mubr.msk.bf16.vlgmr.msra.gmra.mxu1 %vm1395_vm1, %v2840_v23 }
 0x7bd   : > { %11391 = vmatpush3.bf16.msra.mxu1 %v14070_v19  ;;  %11394 = vmatprep.mubr.msk.bf16.mxu1 %vm13232_vm0, %v17185_v28 }
 0x7be   : > { %11392 = vmatprep.subr.bf16.mxu1 %v17185_v28 }
 0x7c1   : > { %11393 = vmatpush3.bf16.msra.mxu1 %v13891_v38 }
 0x7c2   : > { %11406 = vmatprep.subr.bf16.mxu1 %v17185_v28 }
 0x82b   : > { %v14204_v20 = vpop.f32.mrf.mxu0 }
 0x82c   : > { %17188 = vst [vmem:[#allocation42_spill] sm:$0xff] %v14204_v20 }
 0x82d   : > { %v11324_v29 = vpop.f32.mrf.mxu0 }
 0x82f   : > { %v2542_v46 = vpop.f32.mrf.mxu0 }
 0x831   : > { %v11325_v51 = vpop.f32.mrf.mxu0 }
 0x832   : > { %v1026_v51 = vadd.f32 %v13785_v52, %v13702_v6 }
 0x850   : > { %v14206_v45 = vpop.f32.mrf.mxu0 }
 0x851   : > { %17189 = vst [vmem:[#allocation43_spill] sm:$0xff] %v14206_v45 }
 0x852   : > { %v11340_v62 = vpop.f32.mrf.mxu0 }
 0x854   : > { %v14208_v48 = vpop.f32.mrf.mxu1  ;;  %v2634_v7 = vpop.f32.mrf.mxu0 }
 0x855   : > { %17190 = vst [vmem:[#allocation44_spill] sm:$0xff] %v14208_v48 }
 0x856   : > { %v11332_v33 = vpop.f32.mrf.mxu1  ;;  %v11341_v19 = vpop.f32.mrf.mxu0 }
 0x857   : > { %v1186_v19 = vpack.c.bf16 %v1030_v17, %v1026_v51 }
 0x858   : > { %v2588_v21 = vpop.f32.mrf.mxu1 }
 0x85a   : > { %v11333_v63 = vpop.f32.mrf.mxu1 }
 0x85c   : > { %v14211_v38 = vpop.f32.mrf.mxu1 }
 0x85d   : > { %17191 = vst [vmem:[#allocation45_spill] sm:$0xff] %v14211_v38 }
 0x85e   : > { %v11348_v22 = vpop.f32.mrf.mxu1 }
 0x860   : > { %v2680_v4 = vpop.f32.mrf.mxu1  ;;  %v2746_v55 = vpop.f32.mrf.mxu0 }
 0x861   : > { %v2888_v60 = vsel %vm14214_vm9, %v2746_v55, -1e+30 }
 0x862   : > { %v11349_v3 = vpop.f32.mrf.mxu1  ;;  %v11356_v37 = vpop.f32.mrf.mxu0  ;;  %v2892_v49 = vsel %vm1395_vm1, %v2888_v60, -inf }
 0x863   : > { %2893 = vmax.xlane.f32.xlu1 %v2892_v49 }
 0x864   : > { %v2749_v18 = vpop.f32.mrf.mxu0 }
 0x866   : > { %v11357_v15 = vpop.f32.mrf.mxu0 }
 0x86c   : > { %v2790_v47 = vpop.f32.mrf.mxu1 }
 0x86d   : > { %v2889_v23 = vsel %vm14214_vm9, %v2790_v47, -1e+30 }
 0x86e   : > { %v11364_v29 = vpop.f32.mrf.mxu1  ;;  %v2895_v46 = vsel %vm1395_vm1, %v2889_v23, -inf }
 0x86f   : > { %2896 = vmax.xlane.f32.xlu0 %v2895_v46 }
 0x870   : > { %v2793_v62 = vpop.f32.mrf.mxu1  ;;  %v2834_v7 = vpop.f32.mrf.mxu0 }
 0x871   : > { %v2890_v33 = vsel %vm14214_vm9, %v2834_v7, -1e+30 }
 0x872   : > { %v11365_v21 = vpop.f32.mrf.mxu1  ;;  %v11372_v63 = vpop.f32.mrf.mxu0  ;;  %v2898_v53 = vsel %vm1395_vm1, %v2890_v33, -inf }
 0x873   : > { %2899 = vmax.xlane.f32.xlu0 %v2898_v53 }
 0x874   : > { %1279 = vrot.lane.b32.xlu1 %v1186_v19, %s13234_s15  ;;  %v2837_v56 = vpop.f32.mrf.mxu0 }
 0x876   : > { %v11373_v22 = vpop.f32.mrf.mxu0 }
 0x877   : > { %v3361_v22 = vsel %vm1635_vm2, %v13801_v26, 0 }
 0x87c   : > { %v2878_v4 = vpop.f32.mrf.mxu1 }
 0x87d   : > { %v2891_v52 = vsel %vm14214_vm9, %v2878_v4, -1e+30 }
 0x87e   : > { %v11380_v55 = vpop.f32.mrf.mxu1  ;;  %v2901_v49 = vsel %vm1395_vm1, %v2891_v52, -inf }
 0x880   : > { %v2881_v3 = vpop.f32.mrf.mxu1 }
 0x882   : > { %v11381_v37 = vpop.f32.mrf.mxu1 }
 0x889   : > { %1275 = vrot.lane.b32.xlu0 %v1186_v19, %s13233_s9 }
 0x88d   : > { %1223 = vrot.lane.b32.xlu0 %v13796_v0, %s13234_s15 }
 0x898   : > { %2902 = vmax.xlane.f32.xlu1 %v2901_v49 }
 0x8a9   : > { %1219 = vrot.lane.b32.xlu1 %v13796_v0, %s13233_s9 }
 0x8ad   : > { %1283 = vrot.lane.b32.xlu1 %v1186_v19, %s13235_s3 }
 0x8b1   : > { %1227 = vrot.lane.b32.xlu1 %v13796_v0, %s13235_s3 }
 0x8ec   : > { %v2894_v18 = vpop.xlane.xlu1 %2893 }
 0x8ed   : > { %v2904_v15 = vsub.f32 %v2888_v60, %v2894_v18 }
 0x8ef   : > { %v2908_v47 = vmul.f32 1.442695, %v2904_v15 }
 0x8f1   : > { %12545 = vpow2.f32 %v2908_v47 }
 0x8f8   : > { %v2897_v17 = vpop.xlane.xlu0 %2896 }
 0x8f9   : > { %v2905_v29 = vsub.f32 %v2889_v23, %v2897_v17 }
 0x8fb   : > { %v2910_v46 = vmul.f32 1.442695, %v2905_v29 }
 0x8fc   : > { %v2900_v51 = vpop.xlane.xlu0 %2899 }
 0x8fd   : > { %12547 = vpow2.f32 %v2910_v46  ;;  %v2906_v62 = vsub.f32 %v2890_v33, %v2900_v51 }
 0x8fe   : > { %v14243_v7 = vpop.eup %12545 }
 0x8ff   : > { %17194 = vst [vmem:[#allocation46_spill] sm:$0xff] %v14243_v7  ;;  %v2912_v21 = vmul.f32 1.442695, %v2906_v62  ;;  %v2928_v63 = vpack.c.bf16 %v14243_v7, %v14243_v7 }
 0x901   : > { %12549 = vpow2.f32 %v2912_v21  ;;  %11387 = vmatmul.mubr.msk.bf16.vlgmr.msra.gmra.mxu0 %vm1395_vm1, %v2928_v63 }
 0x902   : > { %11399 = vmatpush3.bf16.msra.mxu0 %v14129_v34  ;;  %11402 = vmatprep.mubr.msk.bf16.mxu0 %vm13232_vm0, %v17185_v28  ;;  %v14269_v34 = vsel %vm1395_vm1, %v1186_v19, 0  ;;  %v1276_v19 = vpop.permute.xlu0 %1275 }
 0x903   : > { %11400 = vmatprep.subr.bf16.mxu0 %v17185_v28  ;;  %v14302_v18 = vsel %vm1395_vm1, %v1276_v19, 0 }
 0x906   : > { %11401 = vmatpush3.bf16.msra.mxu0 %v13908_v43 }
 0x907   : > { %11414 = vmatprep.subr.bf16.mxu0 %v17185_v28 }
 0x90a   : > { %v14254_v60 = vpop.eup %12547 }
 0x90b   : > { %v2929_v23 = vpack.c.bf16 %v14254_v60, %v14254_v60 }
 0x90d   : > { %11395 = vmatmul.mubr.msk.bf16.vlgmr.msra.gmra.mxu1 %vm1395_vm1, %v2929_v23 }
 0x90e   : > { %v14259_v33 = vpop.eup %12549  ;;  %11407 = vmatpush3.bf16.msra.mxu1 %v14143_v16  ;;  %11410 = vmatprep.mubr.msk.bf16.mxu1 %vm13232_vm0, %v17185_v28  ;;  %v1280_v16 = vpop.permute.xlu1 %1279 }
 0x90f   : > { %11408 = vmatprep.subr.bf16.mxu1 %v17185_v28  ;;  %v2930_v43 = vpack.c.bf16 %v14259_v33, %v14259_v33  ;;  %v14278_v53 = vsel %vm1395_vm1, %v1280_v16, 0 }
 0x911   : > { %11403 = vmatmul.mubr.msk.bf16.vlgmr.msra.gmra.mxu0 %vm1395_vm1, %v2930_v43 }
 0x912   : > { %11409 = vmatpush3.bf16.msra.mxu1 %v13900_v5  ;;  %11415 = vmatpush3.bf16.xpose.msra.mxu0 %v14269_v34  ;;  %v14286_v5 = vpop.permute.xlu0 %1223 }
 0x913   : > { %11416 = vmatprep.mubr.msk.bf16.mxu0 %vm13232_vm0, %v17185_v28  ;;  %11426 = vmatprep.subr.bf16.mxu0 %v17185_v28 }
 0x914   : > { %11420 = vmatprep.subr.bf16.mxu1 %v17185_v28 }
 0x919   : > { %11417 = vmatmul.mubr.msk.bf16.vlgmr.msra.gmra.mxu0 %vm1395_vm1, %v13796_v0 }
 0x91a   : > { %11427 = vmatpush3.bf16.xpose.msra.mxu0 %v14278_v53  ;;  %11428 = vmatprep.mubr.msk.bf16.mxu0 %vm13232_vm0, %v17185_v28 }
 0x91b   : > { %11438 = vmatprep.subr.bf16.mxu0 %v17185_v28 }
 0x921   : > { %v2903_v56 = vpop.xlane.xlu1 %2902  ;;  %11429 = vmatmul.mubr.msk.bf16.vlgmr.msra.gmra.mxu0 %vm1395_vm1, %v14286_v5 }
 0x922   : > { %v2907_v4 = vsub.f32 %v2891_v52, %v2903_v56  ;;  %11439 = vmatpush3.bf16.msra.mxu0 %v3361_v22  ;;  %11440 = vmatprep.mubr.msk.bf16.mxu0 %vm13232_vm0, %v17185_v28 }
 0x923   : > { %11450 = vmatprep.subr.bf16.mxu0 %v17185_v28 }
 0x924   : > { %v2914_v55 = vmul.f32 1.442695, %v2907_v4 }
 0x925   : > { %v14299_v49 = vpop.permute.xlu1 %1219 }
 0x926   : > { %12551 = vpow2.f32 %v2914_v55 }
 0x929   : > { %v1284_v52 = vpop.permute.xlu1 %1283 }
 0x92a   : > { %v14310_v15 = vsel %vm1395_vm1, %v1284_v52, 0 }
 0x92d   : > { %v14318_v47 = vpop.permute.xlu1 %1227 }
 0x933   : > { %v14295_v3 = vpop.eup %12551 }
 0x934   : > { %v2931_v37 = vpack.c.bf16 %v14295_v3, %v14295_v3 }
 0x936   : > { %11411 = vmatmul.mubr.msk.bf16.vlgmr.msra.gmra.mxu1 %vm1395_vm1, %v2931_v37 }
 0x937   : > { %11421 = vmatpush3.bf16.xpose.msra.mxu1 %v14302_v18  ;;  %11422 = vmatprep.mubr.msk.bf16.mxu1 %vm13232_vm0, %v17185_v28 }
 0x938   : > { %11432 = vmatprep.subr.bf16.mxu1 %v17185_v28 }
 0x93e   : > { %11423 = vmatmul.mubr.msk.bf16.vlgmr.msra.gmra.mxu1 %vm1395_vm1, %v14299_v49 }
 0x93f   : > { %11433 = vmatpush3.bf16.xpose.msra.mxu1 %v14310_v15  ;;  %11434 = vmatprep.mubr.msk.bf16.mxu1 %vm13232_vm0, %v17185_v28 }
 0x940   : > { %11444 = vmatprep.subr.bf16.mxu1 %v17185_v28 }
 0x946   : > { %11435 = vmatmul.mubr.msk.bf16.vlgmr.msra.gmra.mxu1 %vm1395_vm1, %v14318_v47 }
 0x947   : > { %11446 = vmatprep.mubr.msk.bf16.mxu1 %vm13232_vm0, %v17185_v28 }
 0x9c1   : > { %v14324_v17 = vpop.f32.mrf.mxu0 }
 0x9c2   : > { %17195 = vst [vmem:[#allocation47_spill] sm:$0xff] %v14324_v17 }
 0x9c3   : > { %v11388_v29 = vpop.f32.mrf.mxu0 }
 0x9c5   : > { %v2972_v46 = vpop.f32.mrf.mxu0 }
 0x9c7   : > { %v11389_v51 = vpop.f32.mrf.mxu0 }
 0x9cd   : > { %v14326_v62 = vpop.f32.mrf.mxu1 }
 0x9ce   : > { %17196 = vst [vmem:[#allocation48_spill] sm:$0xff] %v14326_v62 }
 0x9cf   : > { %v11396_v21 = vpop.f32.mrf.mxu1 }
 0x9d1   : > { %v3015_v63 = vpop.f32.mrf.mxu1  ;;  %v14328_v23 = vpop.f32.mrf.mxu0 }
 0x9d2   : > { %17197 = vst [vmem:[#allocation49_spill] sm:$0xff] %v14328_v23 }
 0x9d3   : > { %v11397_v43 = vpop.f32.mrf.mxu1  ;;  %v11404_v16 = vpop.f32.mrf.mxu0 }
 0x9d5   : > { %v3058_v19 = vpop.f32.mrf.mxu0 }
 0x9d7   : > { %v11405_v56 = vpop.f32.mrf.mxu0 }
 0x9d9   : > { %v3169_v22 = vpop.f32.mrf.mxu0 }
 0x9da   : > { %v3313_v4 = vsel %vm13862_vm3, %v3169_v22, -1e+30 }
 0x9db   : > { %v11418_v55 = vpop.f32.mrf.mxu0  ;;  %v3317_v37 = vsel %vm1591_vm4, %v3313_v4, -inf }
 0x9dc   : > { %3318 = vmax.xlane.f32.xlu0 %v3317_v37 }
 0x9dd   : > { %v3172_v52 = vpop.f32.mrf.mxu0 }
 0x9df   : > { %v11419_v29 = vpop.f32.mrf.mxu0 }
 0x9e1   : > { %v3261_v46 = vpop.f32.mrf.mxu0 }
 0x9e2   : > { %v3315_v51 = vsel %vm13862_vm3, %v3261_v46, -1e+30 }
 0x9e3   : > { %v11430_v21 = vpop.f32.mrf.mxu0  ;;  %v3323_v63 = vsel %vm1591_vm4, %v3315_v51, -inf }
 0x9e4   : > { %3324 = vmax.xlane.f32.xlu0 %v3323_v63 }
 0x9e5   : > { %v3264_v43 = vpop.f32.mrf.mxu0 }
 0x9e7   : > { %v11431_v16 = vpop.f32.mrf.mxu0 }
 0x9f6   : > { %v14336_v19 = vpop.f32.mrf.mxu1 }
 0x9f7   : > { %17198 = vst [vmem:[#allocation50_spill] sm:$0xff] %v14336_v19 }
 0x9f8   : > { %v11412_v56 = vpop.f32.mrf.mxu1 }
 0x9fa   : > { %v3101_v22 = vpop.f32.mrf.mxu1 }
 0x9fc   : > { %v11413_v55 = vpop.f32.mrf.mxu1 }
 0x9fe   : > { %v3215_v32 = vpop.f32.mrf.mxu1 }
 0x9ff   : > { %v3314_v37 = vsel %vm13862_vm3, %v3215_v32, -1e+30 }
 0xa00   : > { %v11424_v52 = vpop.f32.mrf.mxu1  ;;  %v3320_v29 = vsel %vm1591_vm4, %v3314_v37, -inf }
 0xa01   : > { %3321 = vmax.xlane.f32.xlu1 %v3320_v29 }
 0xa02   : > { %v3218_v46 = vpop.f32.mrf.mxu1 }
 0xa04   : > { %v11425_v21 = vpop.f32.mrf.mxu1 }
 0xa06   : > { %v3307_v17 = vpop.f32.mrf.mxu1 }
 0xa07   : > { %v3316_v63 = vsel %vm13862_vm3, %v3307_v17, -1e+30 }
 0xa08   : > { %v11436_v43 = vpop.f32.mrf.mxu1  ;;  %v3326_v16 = vsel %vm1591_vm4, %v3316_v63, -inf }
 0xa09   : > { %3327 = vmax.xlane.f32.xlu0 %v3326_v16 }
 0xa0a   : > { %v3310_v56 = vpop.f32.mrf.mxu1 }
 0xa0c   : > { %v11437_v22 = vpop.f32.mrf.mxu1 }
 0xa12   : > { %1343 = vrot.lane.b32.xlu1 %v13801_v26, %s13234_s15 }
 0xa16   : > { %1349 = vrot.lane.b32.xlu1 %v13801_v26, %s13235_s3 }
 0xa1f   : > { %1337 = vrot.lane.b32.xlu0 %v13801_v26, %s13233_s9 }
 0xa65   : > { %v3319_v32 = vpop.xlane.xlu0 %3318 }
 0xa66   : > { %v3329_v55 = vsub.f32 %v3313_v4, %v3319_v32 }
 0xa68   : > { %v3333_v52 = vmul.f32 1.442695, %v3329_v55 }
 0xa6a   : > { %12553 = vpow2.f32 %v3333_v52 }
 0xa6d   : > { %v3325_v17 = vpop.xlane.xlu0 %3324 }
 0xa6e   : > { %v3331_v21 = vsub.f32 %v3315_v51, %v3325_v17 }
 0xa70   : > { %v3337_v43 = vmul.f32 1.442695, %v3331_v21 }
 0xa72   : > { %12555 = vpow2.f32 %v3337_v43  ;;  %v3566_v43 = vrot.slane %v13796_v0, 4 }
 0xa77   : > { %v14350_v29 = vpop.eup %12553 }
 0xa78   : > { %17199 = vst [vmem:[#allocation51_spill] sm:$0xff] %v14350_v29  ;;  %v3353_v46 = vpack.c.bf16 %v14350_v29, %v14350_v29 }
 0xa7a   : > { %11441 = vmatmul.mubr.msk.bf16.vlgmr.msra.gmra.mxu0 %vm1591_vm4, %v3353_v46 }
 0xa7b   : > { %11452 = vmatprep.mubr.msk.bf16.mxu0 %vm13232_vm0, %v17185_v28 }
 0xa7f   : > { %v14357_v4 = vpop.eup %12555 }
 0xa80   : > { %17200 = vst [vmem:[#allocation52_spill] sm:$0xff] %v14357_v4  ;;  %v3355_v51 = vpack.c.bf16 %v14357_v4, %v14357_v4 }
 0xa8a   : > { %v3322_v16 = vpop.xlane.xlu1 %3321 }
 0xa8b   : > { %v3330_v56 = vsub.f32 %v3314_v37, %v3322_v16 }
 0xa8d   : > { %v3335_v22 = vmul.f32 1.442695, %v3330_v56 }
 0xa8e   : > { %v14359_v32 = vpop.permute.xlu1 %1343 }
 0xa8f   : > { %12557 = vpow2.f32 %v3335_v22  ;;  %v3453_v55 = vsel %vm1635_vm2, %v14359_v32, 0  ;;  %v3654_v22 = vrot.slane %v14286_v5, 4  ;;  %v3610_v5 = vrot.slane %v14299_v49, 4 }
 0xa90   : > { %11451 = vmatpush3.bf16.msra.mxu0 %v3453_v55 }
 0xa91   : > { %11462 = vmatprep.subr.bf16.mxu0 %v17185_v28 }
 0xa92   : > { %v3328_v52 = vpop.xlane.xlu0 %3327  ;;  %v14380_v16 = vpop.permute.xlu1 %1349 }
 0xa93   : > { %v3332_v17 = vsub.f32 %v3316_v63, %v3328_v52  ;;  %11453 = vmatmul.mubr.msk.bf16.vlgmr.msra.gmra.mxu0 %vm1591_vm4, %v3355_v51  ;;  %v3499_v0 = vsel %vm1635_vm2, %v14380_v16, 0  ;;  %v3698_v52 = vrot.slane %v14318_v47, 4 }
 0xa94   : > { %11463 = vmatpush3.bf16.xpose.msra.mxu0 %v14269_v34  ;;  %11464 = vmatprep.mubr.msk.bf16.mxu0 %vm13232_vm0, %v17185_v28 }
 0xa95   : > { %v3339_v37 = vmul.f32 1.442695, %v3332_v17  ;;  %11474 = vmatprep.subr.bf16.mxu0 %v17185_v28 }
 0xa96   : > { %v14371_v46 = vpop.permute.xlu0 %1337 }
 0xa97   : > { %12559 = vpow2.f32 %v3339_v37  ;;  %v3407_v21 = vsel %vm1635_vm2, %v14371_v46, 0 }
 0xa98   : > { %11445 = vmatpush3.bf16.msra.mxu1 %v3407_v21 }
 0xa99   : > { %11456 = vmatprep.subr.bf16.mxu1 %v17185_v28 }
 0xa9b   : > { %11465 = vmatmul.mubr.msk.bf16.vlgmr.msra.gmra.mxu0 %vm1395_vm1, %v3566_v43 }
 0xa9c   : > { %v14378_v63 = vpop.eup %12557  ;;  %11475 = vmatpush3.bf16.xpose.msra.mxu0 %v14278_v53  ;;  %11476 = vmatprep.mubr.msk.bf16.mxu0 %vm13232_vm0, %v17185_v28 }
 0xa9d   : > { %17201 = vst [vmem:[#allocation53_spill] sm:$0xff] %v14378_v63  ;;  %v3354_v56 = vpack.c.bf16 %v14378_v63, %v14378_v63  ;;  %11486 = vmatprep.subr.bf16.mxu0 %v17185_v28 }
 0xa9f   : > { %11447 = vmatmul.mubr.msk.bf16.vlgmr.msra.gmra.mxu1 %vm1591_vm4, %v3354_v56 }
 0xaa0   : > { %11457 = vmatpush3.bf16.msra.mxu1 %v3499_v0  ;;  %11458 = vmatprep.mubr.msk.bf16.mxu1 %vm13232_vm0, %v17185_v28 }
 0xaa1   : > { %11468 = vmatprep.subr.bf16.mxu1 %v17185_v28 }
 0xaa3   : > { %11477 = vmatmul.mubr.msk.bf16.vlgmr.msra.gmra.mxu0 %vm1395_vm1, %v3654_v22 }
 0xaa4   : > { %v14396_v55 = vpop.eup %12559  ;;  %11487 = vmatpush3.bf16.msra.mxu0 %v13801_v26  ;;  %11488 = vmatprep.mubr.msk.bf16.mxu0 %vm13232_vm0, %v17185_v28 }
 0xaa5   : > { %17202 = vst [vmem:[#allocation54_spill] sm:$0xff] %v14396_v55  ;;  %v3356_v51 = vpack.c.bf16 %v14396_v55, %v14396_v55  ;;  %11498 = vmatprep.subr.bf16.mxu0 %v17185_v28 }
 0xaa7   : > { %11459 = vmatmul.mubr.msk.bf16.vlgmr.msra.gmra.mxu1 %vm1591_vm4, %v3356_v51 }
 0xaa8   : > { %11469 = vmatpush3.bf16.xpose.msra.mxu1 %v14302_v18  ;;  %11470 = vmatprep.mubr.msk.bf16.mxu1 %vm13232_vm0, %v17185_v28 }
 0xaa9   : > { %11480 = vmatprep.subr.bf16.mxu1 %v17185_v28 }
 0xaaf   : > { %11471 = vmatmul.mubr.msk.bf16.vlgmr.msra.gmra.mxu1 %vm1395_vm1, %v3610_v5 }
 0xab0   : > { %11481 = vmatpush3.bf16.xpose.msra.mxu1 %v14310_v15  ;;  %11482 = vmatprep.mubr.msk.bf16.mxu1 %vm13232_vm0, %v17185_v28 }
 0xab1   : > { %11492 = vmatprep.subr.bf16.mxu1 %v17185_v28 }
 0xab7   : > { %11483 = vmatmul.mubr.msk.bf16.vlgmr.msra.gmra.mxu1 %vm1395_vm1, %v3698_v52 }
 0xab8   : > { %11493 = vmatpush3.bf16.msra.mxu1 %v14371_v46  ;;  %11494 = vmatprep.mubr.msk.bf16.mxu1 %vm13232_vm0, %v17185_v28 }
 0xab9   : > { %11504 = vmatprep.subr.bf16.mxu1 %v17185_v28 }
 0xb3a   : > { %v14421_v49 = vpop.f32.mrf.mxu0 }
 0xb3b   : > { %17203 = vst [vmem:[#allocation55_spill] sm:$0xff] %v14421_v49 }
 0xb3c   : > { %v11442_v17 = vpop.f32.mrf.mxu0 }
 0xb3e   : > { %v3400_v37 = vpop.f32.mrf.mxu0 }
 0xb40   : > { %v11443_v21 = vpop.f32.mrf.mxu0 }
 0xb53   : > { %v14423_v43 = vpop.f32.mrf.mxu0 }
 0xb54   : > { %17204 = vst [vmem:[#allocation56_spill] sm:$0xff] %v14423_v43 }
 0xb55   : > { %v11454_v56 = vpop.f32.mrf.mxu0 }
 0xb57   : > { %v3492_v0 = vpop.f32.mrf.mxu0 }
 0xb59   : > { %v11455_v22 = vpop.f32.mrf.mxu0 }
 0xb5a   : > { %v1040_v22 = vadd.f32 %v13810_v31, %v13702_v6 }
 0xb5b   : > { %v3604_v47 = vpop.f32.mrf.mxu0 }
 0xb5c   : > { %v3742_v51 = vsel %vm13965_vm5, %v3604_v47, -1e+30 }
 0xb5d   : > { %v11466_v5 = vpop.f32.mrf.mxu0  ;;  %v3746_v52 = vsel %vm2028_vm6, %v3742_v51, -inf }
 0xb5e   : > { %3747 = vmax.xlane.f32.xlu1 %v3746_v52  ;;  %v1036_v52 = vadd.f32 %v13804_v8, %v13702_v6 }
 0xb5f   : > { %v14428_v20 = vpop.f32.mrf.mxu1  ;;  %v3607_v19 = vpop.f32.mrf.mxu0 }
 0xb60   : > { %17205 = vst [vmem:[#allocation57_spill] sm:$0xff] %v14428_v20  ;;  %v1189_v20 = vpack.c.bf16 %v1040_v22, %v1036_v52 }
 0xb61   : > { %v11448_v49 = vpop.f32.mrf.mxu1  ;;  %v11467_v17 = vpop.f32.mrf.mxu0 }
 0xb63   : > { %v3446_v37 = vpop.f32.mrf.mxu1  ;;  %v3692_v21 = vpop.f32.mrf.mxu0 }
 0xb64   : > { %v3744_v31 = vsel %vm13965_vm5, %v3692_v21, -1e+30 }
 0xb65   : > { %v11449_v38 = vpop.f32.mrf.mxu1  ;;  %v11478_v43 = vpop.f32.mrf.mxu0 }
 0xb67   : > { %v14430_v56 = vpop.f32.mrf.mxu1  ;;  %v3695_v0 = vpop.f32.mrf.mxu0 }
 0xb68   : > { %17206 = vst [vmem:[#allocation58_spill] sm:$0xff] %v14430_v56 }
 0xb69   : > { %v11460_v47 = vpop.f32.mrf.mxu1  ;;  %v11479_v5 = vpop.f32.mrf.mxu0 }
 0xb6b   : > { %v3538_v23 = vpop.f32.mrf.mxu1 }
 0xb6c   : > { %v3752_v23 = vsel %vm2028_vm6, %v3744_v31, -inf }
 0xb6d   : > { %v11461_v19 = vpop.f32.mrf.mxu1 }
 0xb6f   : > { %1277 = vrot.lane.b32.xlu1 %v1189_v20, %s13233_s9  ;;  %v3648_v49 = vpop.f32.mrf.mxu1 }
 0xb70   : > { %v3743_v38 = vsel %vm13965_vm5, %v3648_v49, -1e+30 }
 0xb71   : > { %v11472_v43 = vpop.f32.mrf.mxu1  ;;  %v3749_v17 = vsel %vm2028_vm6, %v3743_v38, -inf }
 0xb72   : > { %3750 = vmax.xlane.f32.xlu0 %v3749_v17 }
 0xb73   : > { %1285 = vrot.lane.b32.xlu1 %v1189_v20, %s13235_s3  ;;  %v3651_v37 = vpop.f32.mrf.mxu1 }
 0xb75   : > { %v11473_v8 = vpop.f32.mrf.mxu1 }
 0xb76   : > { %3753 = vmax.xlane.f32.xlu0 %v3752_v23 }
 0xb77   : > { %1221 = vrot.lane.b32.xlu1 %v13812_v35, %s13233_s9  ;;  %v3736_v0 = vpop.f32.mrf.mxu1 }
 0xb78   : > { %v3745_v22 = vsel %vm13965_vm5, %v3736_v0, -1e+30 }
 0xb79   : > { %v11484_v47 = vpop.f32.mrf.mxu1  ;;  %v3755_v5 = vsel %vm2028_vm6, %v3745_v22, -inf }
 0xb7a   : > { %3756 = vmax.xlane.f32.xlu0 %v3755_v5 }
 0xb7b   : > { %1225 = vrot.lane.b32.xlu1 %v13812_v35, %s13234_s15  ;;  %v3739_v21 = vpop.f32.mrf.mxu1 }
 0xb7d   : > { %v11485_v52 = vpop.f32.mrf.mxu1 }
 0xb7f   : > { %1339 = vrot.lane.b32.xlu1 %v13798_v1, %s13233_s9 }
 0xb90   : > { %1281 = vrot.lane.b32.xlu0 %v1189_v20, %s13234_s15 }
 0xb94   : > { %1229 = vrot.lane.b32.xlu0 %v13812_v35, %s13235_s3 }
 0xbe7   : > { %v3748_v19 = vpop.xlane.xlu1 %3747 }
 0xbe8   : > { %v3758_v49 = vsub.f32 %v3742_v51, %v3748_v19 }
 0xbea   : > { %v3762_v43 = vmul.f32 1.442695, %v3758_v49 }
 0xbec   : > { %12561 = vpow2.f32 %v3762_v43 }
 0xbf9   : > { %v14456_v17 = vpop.eup %12561 }
 0xbfa   : > { %17207 = vst [vmem:[#allocation59_spill] sm:$0xff] %v14456_v17  ;;  %v3782_v37 = vpack.c.bf16 %v14456_v17, %v14456_v17 }
 0xbfb   : > { %v3751_v8 = vpop.xlane.xlu0 %3750 }
 0xbfc   : > { %v3759_v23 = vsub.f32 %v3743_v38, %v3751_v8  ;;  %11489 = vmatmul.mubr.msk.bf16.vlgmr.msra.gmra.mxu0 %vm2028_vm6, %v3782_v37  ;;  %v1278_v8 = vpop.permute.xlu1 %1277 }
 0xbfd   : > { %11499 = vmatpush3.bf16.msra.mxu0 %v14359_v32  ;;  %11500 = vmatprep.mubr.msk.bf16.mxu0 %vm13232_vm0, %v17185_v28 }
 0xbfe   : > { %v3764_v0 = vmul.f32 1.442695, %v3759_v23  ;;  %11510 = vmatprep.subr.bf16.mxu0 %v17185_v28 }
 0xbff   : > { %v3754_v51 = vpop.xlane.xlu0 %3753 }
 0xc00   : > { %12563 = vpow2.f32 %v3764_v0  ;;  %v3760_v47 = vsub.f32 %v3744_v31, %v3754_v51  ;;  %v14491_v0 = vsel %vm1395_vm1, %v1278_v8, 0 }
 0xc02   : > { %v3766_v5 = vmul.f32 1.442695, %v3760_v47 }
 0xc03   : > { %v3757_v21 = vpop.xlane.xlu0 %3756 }
 0xc04   : > { %12565 = vpow2.f32 %v3766_v5  ;;  %v3761_v52 = vsub.f32 %v3745_v22, %v3757_v21  ;;  %v14480_v22 = vsel %vm1395_vm1, %v1189_v20, 0  ;;  %v1286_v20 = vpop.permute.xlu1 %1285 }
 0xc05   : > { %v14514_v21 = vsel %vm1395_vm1, %v1286_v20, 0 }
 0xc06   : > { %v3768_v19 = vmul.f32 1.442695, %v3761_v52 }
 0xc07   : > { %v1282_v51 = vpop.permute.xlu0 %1281 }
 0xc08   : > { %12567 = vpow2.f32 %v3768_v19  ;;  %v14503_v47 = vsel %vm1395_vm1, %v1282_v51, 0  ;;  %v14511_v5 = vpop.permute.xlu1 %1221  ;;  %v4215_v19 = vsel %vm1635_vm2, %v13798_v1, 0 }
 0xc0c   : > { %v14524_v52 = vpop.permute.xlu1 %1225 }
 0xc0d   : > { %v14465_v38 = vpop.eup %12563 }
 0xc0e   : > { %v3783_v49 = vpack.c.bf16 %v14465_v38, %v14465_v38 }
 0xc10   : > { %11495 = vmatmul.mubr.msk.bf16.vlgmr.msra.gmra.mxu1 %vm2028_vm6, %v3783_v49  ;;  %v14532_v49 = vpop.permute.xlu1 %1339 }
 0xc11   : > { %v14470_v43 = vpop.eup %12565  ;;  %11505 = vmatpush3.bf16.msra.mxu1 %v14380_v16  ;;  %11506 = vmatprep.mubr.msk.bf16.mxu1 %vm13232_vm0, %v17185_v28  ;;  %v4261_v8 = vsel %vm1635_vm2, %v14532_v49, 0 }
 0xc12   : > { %v3784_v31 = vpack.c.bf16 %v14470_v43, %v14470_v43  ;;  %11518 = vmatprep.subr.bf16.mxu1 %v17185_v28 }
 0xc14   : > { %11501 = vmatmul.mubr.msk.bf16.vlgmr.msra.gmra.mxu0 %vm2028_vm6, %v3784_v31  ;;  %v14537_v31 = vpop.permute.xlu0 %1229 }
 0xc15   : > { %v14482_v37 = vpop.eup %12567  ;;  %11511 = vmatpush3.bf16.xpose.msra.mxu0 %v14480_v22  ;;  %11514 = vmatprep.mubr.msk.bf16.mxu0 %vm13232_vm0, %v17185_v28 }
 0xc16   : > { %v3785_v23 = vpack.c.bf16 %v14482_v37, %v14482_v37  ;;  %11512 = vmatprep.subr.bf16.mxu0 %v17185_v28 }
 0xc18   : > { %11507 = vmatmul.mubr.msk.bf16.vlgmr.msra.gmra.mxu1 %vm2028_vm6, %v3785_v23 }
 0xc19   : > { %11519 = vmatpush3.bf16.xpose.msra.mxu1 %v14491_v0  ;;  %11522 = vmatprep.mubr.msk.bf16.mxu1 %vm13232_vm0, %v17185_v28 }
 0xc1a   : > { %11520 = vmatprep.subr.bf16.mxu1 %v17185_v28 }
 0xc1d   : > { %11513 = vmatpush3.bf16.xpose.msra.mxu0 %v14269_v34 }
 0xc1e   : > { %11526 = vmatprep.subr.bf16.mxu0 %v17185_v28 }
 0xc21   : > { %11521 = vmatpush3.bf16.xpose.msra.mxu1 %v14302_v18 }
 0xc22   : > { %11534 = vmatprep.subr.bf16.mxu1 %v17185_v28 }
 0xc24   : > { %11515 = vmatmul.mubr.msk.bf16.vlgmr.msra.gmra.mxu0 %vm1395_vm1, %v13812_v35 }
 0xc25   : > { %11527 = vmatpush3.bf16.xpose.msra.mxu0 %v14503_v47  ;;  %11530 = vmatprep.mubr.msk.bf16.mxu0 %vm13232_vm0, %v17185_v28 }
 0xc26   : > { %11528 = vmatprep.subr.bf16.mxu0 %v17185_v28 }
 0xc28   : > { %11523 = vmatmul.mubr.msk.bf16.vlgmr.msra.gmra.mxu1 %vm1395_vm1, %v14511_v5 }
 0xc29   : > { %11535 = vmatpush3.bf16.xpose.msra.mxu1 %v14514_v21  ;;  %11538 = vmatprep.mubr.msk.bf16.mxu1 %vm13232_vm0, %v17185_v28 }
 0xc2a   : > { %11536 = vmatprep.subr.bf16.mxu1 %v17185_v28 }
 0xc2d   : > { %11529 = vmatpush3.bf16.xpose.msra.mxu0 %v14278_v53 }
 0xc2e   : > { %11542 = vmatprep.subr.bf16.mxu0 %v17185_v28 }
 0xc31   : > { %11537 = vmatpush3.bf16.xpose.msra.mxu1 %v14310_v15 }
 0xc32   : > { %11550 = vmatprep.subr.bf16.mxu1 %v17185_v28 }
 0xc34   : > { %11531 = vmatmul.mubr.msk.bf16.vlgmr.msra.gmra.mxu0 %vm1395_vm1, %v14524_v52 }
 0xc35   : > { %11543 = vmatpush3.bf16.msra.mxu0 %v4215_v19  ;;  %11546 = vmatprep.mubr.msk.bf16.mxu0 %vm13232_vm0, %v17185_v28 }
 0xc36   : > { %11544 = vmatprep.subr.bf16.mxu0 %v17185_v28 }
 0xc38   : > { %11539 = vmatmul.mubr.msk.bf16.vlgmr.msra.gmra.mxu1 %vm1395_vm1, %v14537_v31 }
 0xc39   : > { %11545 = vmatpush3.bf16.msra.mxu0 %v13801_v26  ;;  %11551 = vmatpush3.bf16.msra.mxu1 %v4261_v8 }
 0xc3a   : > { %11552 = vmatprep.subr.bf16.mxu1 %v17185_v28  ;;  %11558 = vmatprep.subr.bf16.mxu0 %v17185_v28 }
 0xc3b   : > { %11554 = vmatprep.mubr.msk.bf16.mxu1 %vm13232_vm0, %v17185_v28 }
 0xc3d   : > { %11553 = vmatpush3.bf16.msra.mxu1 %v14371_v46 }
 0xc3e   : > { %11566 = vmatprep.subr.bf16.mxu1 %v17185_v28 }
 0xcbc   : > { %v14550_v23 = vpop.f32.mrf.mxu0 }
 0xcbd   : > { %17208 = vst [vmem:[#allocation60_spill] sm:$0xff] %v14550_v23 }
 0xcbe   : > { %v11490_v20 = vpop.f32.mrf.mxu0 }
 0xcc0   : > { %v3826_v51 = vpop.f32.mrf.mxu0 }
 0xcc2   : > { %v11491_v19 = vpop.f32.mrf.mxu0 }
 0xcd0   : > { %v14552_v56 = vpop.f32.mrf.mxu1 }
 0xcd1   : > { %17209 = vst [vmem:[#allocation61_spill] sm:$0xff] %v14552_v56 }
 0xcd2   : > { %v11496_v45 = vpop.f32.mrf.mxu1 }
 0xcd4   : > { %v3869_v8 = vpop.f32.mrf.mxu1  ;;  %v14554_v62 = vpop.f32.mrf.mxu0 }
 0xcd5   : > { %17210 = vst [vmem:[#allocation62_spill] sm:$0xff] %v14554_v62 }
 0xcd6   : > { %v11497_v48 = vpop.f32.mrf.mxu1  ;;  %v11502_v29 = vpop.f32.mrf.mxu0 }
 0xcd8   : > { %v3912_v17 = vpop.f32.mrf.mxu0  ;;  %v14556_v7 = vpop.f32.mrf.mxu1 }
 0xcd9   : > { %17211 = vst [vmem:[#allocation63_spill] sm:$0xff] %v14556_v7 }
 0xcda   : > { %v11503_v55 = vpop.f32.mrf.mxu0  ;;  %v11508_v4 = vpop.f32.mrf.mxu1 }
 0xcdc   : > { %v3955_v63 = vpop.f32.mrf.mxu1 }
 0xcde   : > { %v11509_v25 = vpop.f32.mrf.mxu1 }
 0xce4   : > { %v4023_v54 = vpop.f32.mrf.mxu0 }
 0xce5   : > { %v4167_v20 = vsel %vm14098_vm7, %v4023_v54, -1e+30 }
 0xce6   : > { %v11516_v51 = vpop.f32.mrf.mxu0  ;;  %v4171_v19 = vsel %vm2458_vm8, %v4167_v20, -inf }
 0xce7   : > { %4172 = vmax.xlane.f32.xlu1 %v4171_v19 }
 0xce8   : > { %v4026_v45 = vpop.f32.mrf.mxu0  ;;  %v4069_v8 = vpop.f32.mrf.mxu1 }
 0xce9   : > { %v4168_v54 = vsel %vm14098_vm7, %v4069_v8, -1e+30 }
 0xcea   : > { %v11517_v23 = vpop.f32.mrf.mxu0  ;;  %v11524_v48 = vpop.f32.mrf.mxu1  ;;  %v4174_v45 = vsel %vm2458_vm8, %v4168_v54, -inf }
 0xcec   : > { %v4072_v29 = vpop.f32.mrf.mxu1 }
 0xcee   : > { %v11525_v17 = vpop.f32.mrf.mxu1 }
 0xcf4   : > { %v4115_v56 = vpop.f32.mrf.mxu0 }
 0xcf5   : > { %v4169_v4 = vsel %vm14098_vm7, %v4115_v56, -1e+30 }
 0xcf6   : > { %v11532_v63 = vpop.f32.mrf.mxu0  ;;  %v4177_v25 = vsel %vm2458_vm8, %v4169_v4, -inf }
 0xcf7   : > { %4178 = vmax.xlane.f32.xlu0 %v4177_v25 }
 0xcf8   : > { %1351 = vrot.lane.b32.xlu1 %v13798_v1, %s13235_s3  ;;  %v4118_v55 = vpop.f32.mrf.mxu0  ;;  %v4161_v51 = vpop.f32.mrf.mxu1 }
 0xcf9   : > { %v4170_v48 = vsel %vm14098_vm7, %v4161_v51, -1e+30 }
 0xcfa   : > { %v11533_v23 = vpop.f32.mrf.mxu0  ;;  %v11540_v19 = vpop.f32.mrf.mxu1  ;;  %v4180_v17 = vsel %vm2458_vm8, %v4170_v48, -inf }
 0xcfb   : > { %4175 = vmax.xlane.f32.xlu0 %v4174_v45 }
 0xcfc   : > { %v4164_v56 = vpop.f32.mrf.mxu1 }
 0xcfe   : > { %v11541_v29 = vpop.f32.mrf.mxu1 }
 0xcff   : > { %4181 = vmax.xlane.f32.xlu0 %v4180_v17 }
 0xd15   : > { %1345 = vrot.lane.b32.xlu0 %v13798_v1, %s13234_s15 }
 0xd70   : > { %v4173_v8 = vpop.xlane.xlu1 %4172 }
 0xd71   : > { %v4183_v63 = vsub.f32 %v4167_v20, %v4173_v8 }
 0xd73   : > { %v4187_v25 = vmul.f32 1.442695, %v4183_v63 }
 0xd75   : > { %12569 = vpow2.f32 %v4187_v25 }
 0xd80   : > { %v4179_v55 = vpop.xlane.xlu0 %4178 }
 0xd81   : > { %v4185_v23 = vsub.f32 %v4169_v4, %v4179_v55 }
 0xd82   : > { %v14574_v19 = vpop.eup %12569 }
 0xd83   : > { %17212 = vst [vmem:[#allocation64_spill] sm:$0xff] %v14574_v19  ;;  %v4207_v51 = vpack.c.bf16 %v14574_v19, %v14574_v19  ;;  %v4191_v45 = vmul.f32 1.442695, %v4185_v23  ;;  %v14595_v23 = vpop.permute.xlu1 %1351 }
 0xd84   : > { %v4176_v56 = vpop.xlane.xlu0 %4175 }
 0xd85   : > { %12571 = vpow2.f32 %v4191_v45  ;;  %v4184_v29 = vsub.f32 %v4168_v54, %v4176_v56  ;;  %11547 = vmatmul.mubr.msk.bf16.vlgmr.msra.gmra.mxu0 %vm2458_vm8, %v4207_v51  ;;  %v4353_v45 = vsel %vm1635_vm2, %v14595_v23, 0 }
 0xd86   : > { %11562 = vmatprep.mubr.msk.bf16.mxu0 %vm13232_vm0, %v17185_v28 }
 0xd87   : > { %v4189_v17 = vmul.f32 1.442695, %v4184_v29  ;;  %v4420_v29 = vrot.slane %v13812_v35, 4  ;;  %v4508_v35 = vrot.slane %v14524_v52, 4 }
 0xd88   : > { %v4182_v20 = vpop.xlane.xlu0 %4181 }
 0xd89   : > { %12573 = vpow2.f32 %v4189_v17  ;;  %v4186_v8 = vsub.f32 %v4170_v48, %v4182_v20 }
 0xd8b   : > { %v4193_v63 = vmul.f32 1.442695, %v4186_v8 }
 0xd8c   : > { %v14581_v4 = vpop.permute.xlu0 %1345 }
 0xd8d   : > { %v4307_v25 = vsel %vm1635_vm2, %v14581_v4, 0  ;;  %12575 = vpow2.f32 %v4193_v63 }
 0xd8e   : > { %11559 = vmatpush3.bf16.msra.mxu0 %v4307_v25 }
 0xd8f   : > { %11560 = vmatprep.subr.bf16.mxu0 %v17185_v28 }
 0xd92   : > { %v14586_v54 = vpop.eup %12571  ;;  %11561 = vmatpush3.bf16.msra.mxu0 %v14359_v32 }
 0xd93   : > { %v4209_v55 = vpack.c.bf16 %v14586_v54, %v14586_v54  ;;  %11574 = vmatprep.subr.bf16.mxu0 %v17185_v28 }
 0xd95   : > { %11563 = vmatmul.mubr.msk.bf16.vlgmr.msra.gmra.mxu0 %vm2458_vm8, %v4209_v55 }
 0xd96   : > { %v14593_v48 = vpop.eup %12573  ;;  %11575 = vmatpush3.bf16.xpose.msra.mxu0 %v14480_v22  ;;  %11578 = vmatprep.mubr.msk.bf16.mxu0 %vm13232_vm0, %v17185_v28 }
 0xd97   : > { %v4208_v51 = vpack.c.bf16 %v14593_v48, %v14593_v48  ;;  %11576 = vmatprep.subr.bf16.mxu0 %v17185_v28 }
 0xd99   : > { %11555 = vmatmul.mubr.msk.bf16.vlgmr.msra.gmra.mxu1 %vm2458_vm8, %v4208_v51 }
 0xd9a   : > { %11567 = vmatpush3.bf16.msra.mxu1 %v4353_v45  ;;  %11570 = vmatprep.mubr.msk.bf16.mxu1 %vm13232_vm0, %v17185_v28  ;;  %v14609_v22 = vpop.eup %12575 }
 0xd9b   : > { %11568 = vmatprep.subr.bf16.mxu1 %v17185_v28  ;;  %17213 = vst [vmem:[#allocation65_spill] sm:$0xff] %v14609_v22  ;;  %v4210_v56 = vpack.c.bf16 %v14609_v22, %v14609_v22 }
 0xd9e   : > { %11569 = vmatpush3.bf16.msra.mxu1 %v14380_v16  ;;  %11577 = vmatpush3.bf16.xpose.msra.mxu0 %v14269_v34  ;;  %v4464_v34 = vrot.slane %v14511_v5, 4 }
 0xd9f   : > { %11582 = vmatprep.subr.bf16.mxu1 %v17185_v28  ;;  %11590 = vmatprep.subr.bf16.mxu0 %v17185_v28 }
 0xda1   : > { %11571 = vmatmul.mubr.msk.bf16.vlgmr.msra.gmra.mxu1 %vm2458_vm8, %v4210_v56 }
 0xda2   : > { %11583 = vmatpush3.bf16.xpose.msra.mxu1 %v14491_v0  ;;  %11586 = vmatprep.mubr.msk.bf16.mxu1 %vm13232_vm0, %v17185_v28 }
 0xda3   : > { %11584 = vmatprep.subr.bf16.mxu1 %v17185_v28 }
 0xda5   : > { %11579 = vmatmul.mubr.msk.bf16.vlgmr.msra.gmra.mxu0 %vm1395_vm1, %v4420_v29 }
 0xda6   : > { %11591 = vmatpush3.bf16.xpose.msra.mxu0 %v14503_v47  ;;  %11594 = vmatprep.mubr.msk.bf16.mxu0 %vm13232_vm0, %v17185_v28 }
 0xda7   : > { %11592 = vmatprep.subr.bf16.mxu0 %v17185_v28 }
 0xdaa   : > { %11585 = vmatpush3.bf16.xpose.msra.mxu1 %v14302_v18 }
 0xdab   : > { %11598 = vmatprep.subr.bf16.mxu1 %v17185_v28 }
 0xdae   : > { %11593 = vmatpush3.bf16.xpose.msra.mxu0 %v14278_v53  ;;  %v4552_v53 = vrot.slane %v14537_v31, 4 }
 0xdaf   : > { %11606 = vmatprep.subr.bf16.mxu0 %v17185_v28 }
 0xdb1   : > { %11587 = vmatmul.mubr.msk.bf16.vlgmr.msra.gmra.mxu1 %vm1395_vm1, %v4464_v34 }
 0xdb2   : > { %11599 = vmatpush3.bf16.xpose.msra.mxu1 %v14514_v21  ;;  %11602 = vmatprep.mubr.msk.bf16.mxu1 %vm13232_vm0, %v17185_v28 }
 0xdb3   : > { %11600 = vmatprep.subr.bf16.mxu1 %v17185_v28 }
 0xdb5   : > { %11595 = vmatmul.mubr.msk.bf16.vlgmr.msra.gmra.mxu0 %vm1395_vm1, %v4508_v35 }
 0xdb6   : > { %11607 = vmatpush3.bf16.msra.mxu0 %v13798_v1  ;;  %11610 = vmatprep.mubr.msk.bf16.mxu0 %vm13232_vm0, %v17185_v28 }
 0xdb7   : > { %11608 = vmatprep.subr.bf16.mxu0 %v17185_v28 }
 0xdba   : > { %11601 = vmatpush3.bf16.xpose.msra.mxu1 %v14310_v15  ;;  %11609 = vmatpush3.bf16.msra.mxu0 %v13801_v26 }
 0xdbb   : > { %11614 = vmatprep.subr.bf16.mxu1 %v17185_v28  ;;  %11622 = vmatprep.subr.bf16.mxu0 %v17185_v28 }
 0xdc1   : > { %11603 = vmatmul.mubr.msk.bf16.vlgmr.msra.gmra.mxu1 %vm1395_vm1, %v4552_v53  ;;  %v1050_v53 = vadd.f32 %v13826_v57, %v13702_v6 }
 0xdc2   : > { %11615 = vmatpush3.bf16.msra.mxu1 %v14532_v49  ;;  %11618 = vmatprep.mubr.msk.bf16.mxu1 %vm13232_vm0, %v17185_v28 }
 0xdc3   : > { %11616 = vmatprep.subr.bf16.mxu1 %v17185_v28 }
 0xdc6   : > { %11617 = vmatpush3.bf16.msra.mxu1 %v14371_v46 }
 0xdc7   : > { %11630 = vmatprep.subr.bf16.mxu1 %v17185_v28 }
 0xe45   : > { %v14656_v1 = vpop.f32.mrf.mxu0 }
 0xe46   : > { %17214 = vst [vmem:[#allocation66_spill] sm:$0xff] %v14656_v1 }
 0xe47   : > { %v11548_v26 = vpop.f32.mrf.mxu0 }
 0xe49   : > { %v4254_v18 = vpop.f32.mrf.mxu0 }
 0xe4b   : > { %v11549_v15 = vpop.f32.mrf.mxu0 }
 0xe4c   : > { %v1046_v15 = vadd.f32 %v13820_v44, %v13702_v6 }
 0xe55   : > { %v14658_v0 = vpop.f32.mrf.mxu0 }
 0xe56   : > { %17215 = vst [vmem:[#allocation67_spill] sm:$0xff] %v14658_v0 }
 0xe57   : > { %v11564_v47 = vpop.f32.mrf.mxu0 }
 0xe59   : > { %v14660_v5 = vpop.f32.mrf.mxu1  ;;  %v4346_v21 = vpop.f32.mrf.mxu0 }
 0xe5a   : > { %17216 = vst [vmem:[#allocation68_spill] sm:$0xff] %v14660_v5 }
 0xe5b   : > { %v11556_v52 = vpop.f32.mrf.mxu1  ;;  %v11565_v49 = vpop.f32.mrf.mxu0 }
 0xe5c   : > { %v1192_v49 = vpack.c.bf16 %v1050_v53, %v1046_v15 }
 0xe5d   : > { %v4300_v31 = vpop.f32.mrf.mxu1 }
 0xe5f   : > { %v11557_v17 = vpop.f32.mrf.mxu1 }
 0xe61   : > { %v14662_v20 = vpop.f32.mrf.mxu1 }
 0xe62   : > { %17217 = vst [vmem:[#allocation69_spill] sm:$0xff] %v14662_v20 }
 0xe63   : > { %v11572_v46 = vpop.f32.mrf.mxu1 }
 0xe65   : > { %v4392_v8 = vpop.f32.mrf.mxu1  ;;  %v4458_v63 = vpop.f32.mrf.mxu0 }
 0xe66   : > { %v4596_v25 = vsel %vm14214_vm9, %v4458_v63, -1e+30 }
 0xe67   : > { %v11573_v55 = vpop.f32.mrf.mxu1  ;;  %v11580_v51 = vpop.f32.mrf.mxu0  ;;  %v4600_v45 = vsel %vm1395_vm1, %v4596_v25, -inf }
 0xe68   : > { %4601 = vmax.xlane.f32.xlu1 %v4600_v45 }
 0xe69   : > { %v4461_v56 = vpop.f32.mrf.mxu0 }
 0xe6b   : > { %v11581_v29 = vpop.f32.mrf.mxu0 }
 0xe71   : > { %v4502_v34 = vpop.f32.mrf.mxu1 }
 0xe72   : > { %v4597_v35 = vsel %vm14214_vm9, %v4502_v34, -1e+30 }
 0xe73   : > { %v11588_v26 = vpop.f32.mrf.mxu1  ;;  %v4603_v18 = vsel %vm1395_vm1, %v4597_v35, -inf }
 0xe74   : > { %4604 = vmax.xlane.f32.xlu0 %v4603_v18 }
 0xe75   : > { %v4505_v47 = vpop.f32.mrf.mxu1  ;;  %v4546_v21 = vpop.f32.mrf.mxu0 }
 0xe76   : > { %v4598_v52 = vsel %vm14214_vm9, %v4546_v21, -1e+30 }
 0xe77   : > { %v4606_v31 = vsel %vm1395_vm1, %v4598_v52, -inf  ;;  %v11589_v17 = vpop.f32.mrf.mxu1  ;;  %v11596_v46 = vpop.f32.mrf.mxu0 }
 0xe78   : > { %4607 = vmax.xlane.f32.xlu0 %v4606_v31 }
 0xe79   : > { %1293 = vrot.lane.b32.xlu1 %v1192_v49, %s13234_s15  ;;  %v4549_v57 = vpop.f32.mrf.mxu0 }
 0xe7b   : > { %v11597_v8 = vpop.f32.mrf.mxu0 }
 0xe7c   : > { %v5069_v8 = vsel %vm1635_vm2, %v13817_v13, 0 }
 0xe81   : > { %v4590_v63 = vpop.f32.mrf.mxu1 }
 0xe82   : > { %v4599_v44 = vsel %vm14214_vm9, %v4590_v63, -1e+30 }
 0xe83   : > { %v11604_v55 = vpop.f32.mrf.mxu1  ;;  %v4609_v56 = vsel %vm1395_vm1, %v4599_v44, -inf }
 0xe85   : > { %v4593_v51 = vpop.f32.mrf.mxu1 }
 0xe87   : > { %v11605_v45 = vpop.f32.mrf.mxu1 }
 0xe8e   : > { %1289 = vrot.lane.b32.xlu0 %v1192_v49, %s13233_s9 }
 0xe92   : > { %1237 = vrot.lane.b32.xlu0 %v13828_v58, %s13234_s15 }
 0xe9d   : > { %4610 = vmax.xlane.f32.xlu1 %v4609_v56 }
 0xeae   : > { %1233 = vrot.lane.b32.xlu1 %v13828_v58, %s13233_s9 }
 0xeb2   : > { %1297 = vrot.lane.b32.xlu1 %v1192_v49, %s13235_s3 }
 0xeb6   : > { %1241 = vrot.lane.b32.xlu1 %v13828_v58, %s13235_s3 }
 0xef1   : > { %v4602_v29 = vpop.xlane.xlu1 %4601 }
 0xef2   : > { %v4612_v34 = vsub.f32 %v4596_v25, %v4602_v29 }
 0xef4   : > { %v4616_v53 = vmul.f32 1.442695, %v4612_v34 }
 0xef6   : > { %12577 = vpow2.f32 %v4616_v53 }
 0xefd   : > { %v4605_v26 = vpop.xlane.xlu0 %4604 }
 0xefe   : > { %v4613_v18 = vsub.f32 %v4597_v35, %v4605_v26 }
 0xf00   : > { %v4618_v15 = vmul.f32 1.442695, %v4613_v18 }
 0xf01   : > { %v4608_v47 = vpop.xlane.xlu0 %4607 }
 0xf02   : > { %12579 = vpow2.f32 %v4618_v15  ;;  %v4614_v21 = vsub.f32 %v4598_v52, %v4608_v47 }
 0xf03   : > { %v14689_v31 = vpop.eup %12577 }
 0xf04   : > { %17218 = vst [vmem:[#allocation70_spill] sm:$0xff] %v14689_v31  ;;  %v4636_v17 = vpack.c.bf16 %v14689_v31, %v14689_v31  ;;  %v4620_v46 = vmul.f32 1.442695, %v4614_v21 }
 0xf06   : > { %12581 = vpow2.f32 %v4620_v46  ;;  %11611 = vmatmul.mubr.msk.bf16.vlgmr.msra.gmra.mxu0 %vm1395_vm1, %v4636_v17 }
 0xf07   : > { %11623 = vmatpush3.bf16.msra.mxu0 %v14581_v4  ;;  %11626 = vmatprep.mubr.msk.bf16.mxu0 %vm13232_vm0, %v17185_v28 }
 0xf08   : > { %11624 = vmatprep.subr.bf16.mxu0 %v17185_v28 }
 0xf0b   : > { %11625 = vmatpush3.bf16.msra.mxu0 %v14359_v32  ;;  %v14715_v32 = vsel %vm1395_vm1, %v1192_v49, 0  ;;  %v1290_v49 = vpop.permute.xlu0 %1289 }
 0xf0c   : > { %11638 = vmatprep.subr.bf16.mxu0 %v17185_v28  ;;  %v14748_v34 = vsel %vm1395_vm1, %v1290_v49, 0 }
 0xf0f   : > { %v14700_v25 = vpop.eup %12579 }
 0xf10   : > { %v4637_v35 = vpack.c.bf16 %v14700_v25, %v14700_v25 }
 0xf12   : > { %11619 = vmatmul.mubr.msk.bf16.vlgmr.msra.gmra.mxu1 %vm1395_vm1, %v4637_v35 }
 0xf13   : > { %v14705_v52 = vpop.eup %12581  ;;  %11631 = vmatpush3.bf16.msra.mxu1 %v14595_v23  ;;  %11634 = vmatprep.mubr.msk.bf16.mxu1 %vm13232_vm0, %v17185_v28  ;;  %v1294_v23 = vpop.permute.xlu1 %1293 }
 0xf14   : > { %v4638_v4 = vpack.c.bf16 %v14705_v52, %v14705_v52  ;;  %11632 = vmatprep.subr.bf16.mxu1 %v17185_v28  ;;  %v14724_v57 = vsel %vm1395_vm1, %v1294_v23, 0 }
 0xf16   : > { %11627 = vmatmul.mubr.msk.bf16.vlgmr.msra.gmra.mxu0 %vm1395_vm1, %v4638_v4 }
 0xf17   : > { %11633 = vmatpush3.bf16.msra.mxu1 %v14380_v16  ;;  %11639 = vmatpush3.bf16.xpose.msra.mxu0 %v14715_v32  ;;  %v14732_v16 = vpop.permute.xlu0 %1237 }
 0xf18   : > { %11640 = vmatprep.mubr.msk.bf16.mxu0 %vm13232_vm0, %v17185_v28  ;;  %11650 = vmatprep.subr.bf16.mxu0 %v17185_v28 }
 0xf19   : > { %11644 = vmatprep.subr.bf16.mxu1 %v17185_v28 }
 0xf1e   : > { %11641 = vmatmul.mubr.msk.bf16.vlgmr.msra.gmra.mxu0 %vm1395_vm1, %v13828_v58 }
 0xf1f   : > { %11651 = vmatpush3.bf16.xpose.msra.mxu0 %v14724_v57  ;;  %11652 = vmatprep.mubr.msk.bf16.mxu0 %vm13232_vm0, %v17185_v28 }
 0xf20   : > { %11662 = vmatprep.subr.bf16.mxu0 %v17185_v28 }
 0xf26   : > { %11653 = vmatmul.mubr.msk.bf16.vlgmr.msra.gmra.mxu0 %vm1395_vm1, %v14732_v16  ;;  %v4611_v63 = vpop.xlane.xlu1 %4610 }
 0xf27   : > { %11663 = vmatpush3.bf16.msra.mxu0 %v5069_v8  ;;  %v4615_v55 = vsub.f32 %v4599_v44, %v4611_v63  ;;  %11664 = vmatprep.mubr.msk.bf16.mxu0 %vm13232_vm0, %v17185_v28 }
 0xf28   : > { %11674 = vmatprep.subr.bf16.mxu0 %v17185_v28 }
 0xf29   : > { %v4622_v51 = vmul.f32 1.442695, %v4615_v55 }
 0xf2a   : > { %v14745_v29 = vpop.permute.xlu1 %1233 }
 0xf2b   : > { %12583 = vpow2.f32 %v4622_v51 }
 0xf2e   : > { %v1298_v44 = vpop.permute.xlu1 %1297 }
 0xf2f   : > { %v14756_v53 = vsel %vm1395_vm1, %v1298_v44, 0 }
 0xf32   : > { %v14764_v26 = vpop.permute.xlu1 %1241 }
 0xf38   : > { %v14741_v45 = vpop.eup %12583 }
 0xf39   : > { %v4639_v56 = vpack.c.bf16 %v14741_v45, %v14741_v45 }
 0xf3b   : > { %11635 = vmatmul.mubr.msk.bf16.vlgmr.msra.gmra.mxu1 %vm1395_vm1, %v4639_v56 }
 0xf3c   : > { %11645 = vmatpush3.bf16.xpose.msra.mxu1 %v14748_v34  ;;  %11646 = vmatprep.mubr.msk.bf16.mxu1 %vm13232_vm0, %v17185_v28 }
 0xf3d   : > { %11656 = vmatprep.subr.bf16.mxu1 %v17185_v28 }
 0xf43   : > { %11647 = vmatmul.mubr.msk.bf16.vlgmr.msra.gmra.mxu1 %vm1395_vm1, %v14745_v29 }
 0xf44   : > { %11657 = vmatpush3.bf16.xpose.msra.mxu1 %v14756_v53  ;;  %11658 = vmatprep.mubr.msk.bf16.mxu1 %vm13232_vm0, %v17185_v28 }
 0xf45   : > { %11668 = vmatprep.subr.bf16.mxu1 %v17185_v28 }
 0xf4b   : > { %11659 = vmatmul.mubr.msk.bf16.vlgmr.msra.gmra.mxu1 %vm1395_vm1, %v14764_v26 }
 0xf4c   : > { %11670 = vmatprep.mubr.msk.bf16.mxu1 %vm13232_vm0, %v17185_v28 }
 0xfc6   : > { %v14770_v18 = vpop.f32.mrf.mxu0 }
 0xfc7   : > { %17219 = vst [vmem:[#allocation71_spill] sm:$0xff] %v14770_v18 }
 0xfc8   : > { %v11612_v15 = vpop.f32.mrf.mxu0 }
 0xfca   : > { %v4680_v47 = vpop.f32.mrf.mxu0 }
 0xfcc   : > { %v11613_v21 = vpop.f32.mrf.mxu0 }
 0xfd2   : > { %v14772_v17 = vpop.f32.mrf.mxu1 }
 0xfd3   : > { %17220 = vst [vmem:[#allocation72_spill] sm:$0xff] %v14772_v17 }
 0xfd4   : > { %v11620_v46 = vpop.f32.mrf.mxu1 }
 0xfd6   : > { %v4723_v35 = vpop.f32.mrf.mxu1  ;;  %v14774_v4 = vpop.f32.mrf.mxu0 }
 0xfd7   : > { %17221 = vst [vmem:[#allocation73_spill] sm:$0xff] %v14774_v4 }
 0xfd8   : > { %v11621_v23 = vpop.f32.mrf.mxu1  ;;  %v11628_v49 = vpop.f32.mrf.mxu0 }
 0xfda   : > { %v4766_v8 = vpop.f32.mrf.mxu0 }
 0xfdc   : > { %v11629_v63 = vpop.f32.mrf.mxu0 }
 0xfde   : > { %v4877_v55 = vpop.f32.mrf.mxu0 }
 0xfdf   : > { %v5021_v51 = vsel %vm13862_vm3, %v4877_v55, -1e+30 }
 0xfe0   : > { %v5025_v56 = vsel %vm1591_vm4, %v5021_v51, -inf  ;;  %v11642_v44 = vpop.f32.mrf.mxu0 }
 0xfe1   : > { %5026 = vmax.xlane.f32.xlu0 %v5025_v56 }
 0xfe2   : > { %v4880_v15 = vpop.f32.mrf.mxu0 }
 0xfe4   : > { %v11643_v47 = vpop.f32.mrf.mxu0 }
 0xfe6   : > { %v4969_v21 = vpop.f32.mrf.mxu0 }
 0xfe7   : > { %v5023_v46 = vsel %vm13862_vm3, %v4969_v21, -1e+30 }
 0xfe8   : > { %v5031_v35 = vsel %vm1591_vm4, %v5023_v46, -inf  ;;  %v11654_v23 = vpop.f32.mrf.mxu0 }
 0xfe9   : > { %5032 = vmax.xlane.f32.xlu0 %v5031_v35 }
 0xfea   : > { %v4972_v49 = vpop.f32.mrf.mxu0 }
 0xfec   : > { %v11655_v8 = vpop.f32.mrf.mxu0 }
 0xffb   : > { %v14782_v63 = vpop.f32.mrf.mxu1 }
 0xffc   : > { %17222 = vst [vmem:[#allocation74_spill] sm:$0xff] %v14782_v63 }
 0xffd   : > { %v11636_v18 = vpop.f32.mrf.mxu1 }
 0xfff   : > { %v4809_v55 = vpop.f32.mrf.mxu1 }
0x1001   : > { %v11637_v1 = vpop.f32.mrf.mxu1 }
0x1003   : > { %v4923_v20 = vpop.f32.mrf.mxu1 }
0x1004   : > { %v5022_v56 = vsel %vm13862_vm3, %v4923_v20, -1e+30 }
0x1005   : > { %v5028_v44 = vsel %vm1591_vm4, %v5022_v56, -inf  ;;  %v11648_v15 = vpop.f32.mrf.mxu1 }
0x1006   : > { %5029 = vmax.xlane.f32.xlu1 %v5028_v44 }
0x1007   : > { %v4926_v47 = vpop.f32.mrf.mxu1 }
0x1009   : > { %v11649_v21 = vpop.f32.mrf.mxu1 }
0x100b   : > { %v5015_v7 = vpop.f32.mrf.mxu1 }
0x100c   : > { %v5024_v35 = vsel %vm13862_vm3, %v5015_v7, -1e+30 }
0x100d   : > { %v5034_v23 = vsel %vm1591_vm4, %v5024_v35, -inf  ;;  %v11660_v49 = vpop.f32.mrf.mxu1 }
0x100e   : > { %5035 = vmax.xlane.f32.xlu0 %v5034_v23 }
0x100f   : > { %v5018_v18 = vpop.f32.mrf.mxu1 }
0x1011   : > { %v11661_v1 = vpop.f32.mrf.mxu1 }
0x1017   : > { %1363 = vrot.lane.b32.xlu1 %v13817_v13, %s13234_s15 }
0x101b   : > { %1369 = vrot.lane.b32.xlu1 %v13817_v13, %s13235_s3 }
0x1024   : > { %1357 = vrot.lane.b32.xlu0 %v13817_v13, %s13233_s9 }
0x106a   : > { %v5027_v20 = vpop.xlane.xlu0 %5026 }
0x106b   : > { %v5037_v8 = vsub.f32 %v5021_v51, %v5027_v20 }
0x106d   : > { %v5041_v55 = vmul.f32 1.442695, %v5037_v8 }
0x106f   : > { %12585 = vpow2.f32 %v5041_v55 }
0x1072   : > { %v5033_v7 = vpop.xlane.xlu0 %5032 }
0x1073   : > { %v5039_v47 = vsub.f32 %v5023_v46, %v5033_v7 }
0x1075   : > { %v5045_v21 = vmul.f32 1.442695, %v5039_v47  ;;  %v5274_v47 = vrot.slane %v13828_v58, 4 }
0x1077   : > { %12587 = vpow2.f32 %v5045_v21 }
0x107c   : > { %v14796_v44 = vpop.eup %12585 }
0x107d   : > { %17223 = vst [vmem:[#allocation75_spill] sm:$0xff] %v14796_v44  ;;  %v5061_v15 = vpack.c.bf16 %v14796_v44, %v14796_v44 }
0x107f   : > { %11665 = vmatmul.mubr.msk.bf16.vlgmr.msra.gmra.mxu0 %vm1591_vm4, %v5061_v15 }
0x1080   : > { %11676 = vmatprep.mubr.msk.bf16.mxu0 %vm13232_vm0, %v17185_v28 }
0x1084   : > { %v14803_v51 = vpop.eup %12587 }
0x1085   : > { %17224 = vst [vmem:[#allocation76_spill] sm:$0xff] %v14803_v51  ;;  %v5063_v46 = vpack.c.bf16 %v14803_v51, %v14803_v51 }
0x108c   : > { %v17269_v2 = vld [vmem:[#allocation76_spill] sm:$0xff] }
0x108f   : > { %v5030_v23 = vpop.xlane.xlu1 %5029 }
0x1090   : > { %v5038_v49 = vsub.f32 %v5022_v56, %v5030_v23 }
0x1092   : > { %v5043_v18 = vmul.f32 1.442695, %v5038_v49  ;;  %v5362_v49 = vrot.slane %v14732_v16, 4  ;;  %v5318_v16 = vrot.slane %v14745_v29, 4 }
0x1093   : > { %v14805_v1 = vpop.permute.xlu1 %1363 }
0x1094   : > { %12589 = vpow2.f32 %v5043_v18  ;;  %v5161_v20 = vsel %vm1635_vm2, %v14805_v1, 0 }
0x1095   : > { %11675 = vmatpush3.bf16.msra.mxu0 %v5161_v20 }
0x1096   : > { %11686 = vmatprep.subr.bf16.mxu0 %v17185_v28 }
0x1097   : > { %v5036_v8 = vpop.xlane.xlu0 %5035  ;;  %v14826_v21 = vpop.permute.xlu1 %1369 }
0x1098   : > { %v5040_v55 = vsub.f32 %v5024_v35, %v5036_v8  ;;  %11677 = vmatmul.mubr.msk.bf16.vlgmr.msra.gmra.mxu0 %vm1591_vm4, %v5063_v46  ;;  %v5207_v58 = vsel %vm1635_vm2, %v14826_v21, 0  ;;  %v5406_v46 = vrot.slane %v14764_v26, 4 }
0x1099   : > { %11687 = vmatpush3.bf16.xpose.msra.mxu0 %v14715_v32  ;;  %11688 = vmatprep.mubr.msk.bf16.mxu0 %vm13232_vm0, %v17185_v28 }
0x109a   : > { %v5047_v56 = vmul.f32 1.442695, %v5040_v55  ;;  %11698 = vmatprep.subr.bf16.mxu0 %v17185_v28 }
0x109b   : > { %v14817_v7 = vpop.permute.xlu0 %1357 }
0x109c   : > { %12591 = vpow2.f32 %v5047_v56  ;;  %v5115_v15 = vsel %vm1635_vm2, %v14817_v7, 0 }
0x109d   : > { %11669 = vmatpush3.bf16.msra.mxu1 %v5115_v15 }
0x109e   : > { %11680 = vmatprep.subr.bf16.mxu1 %v17185_v28 }
0x10a0   : > { %11689 = vmatmul.mubr.msk.bf16.vlgmr.msra.gmra.mxu0 %vm1395_vm1, %v5274_v47 }
0x10a1   : > { %v14824_v35 = vpop.eup %12589  ;;  %11699 = vmatpush3.bf16.xpose.msra.mxu0 %v14724_v57  ;;  %11700 = vmatprep.mubr.msk.bf16.mxu0 %vm13232_vm0, %v17185_v28 }
0x10a2   : > { %17225 = vst [vmem:[#allocation77_spill] sm:$0xff] %v14824_v35  ;;  %v5062_v23 = vpack.c.bf16 %v14824_v35, %v14824_v35  ;;  %11710 = vmatprep.subr.bf16.mxu0 %v17185_v28 }
0x10a4   : > { %11671 = vmatmul.mubr.msk.bf16.vlgmr.msra.gmra.mxu1 %vm1591_vm4, %v5062_v23 }
0x10a5   : > { %11681 = vmatpush3.bf16.msra.mxu1 %v5207_v58  ;;  %11682 = vmatprep.mubr.msk.bf16.mxu1 %vm13232_vm0, %v17185_v28 }
0x10a6   : > { %11692 = vmatprep.subr.bf16.mxu1 %v17185_v28 }
0x10a8   : > { %11701 = vmatmul.mubr.msk.bf16.vlgmr.msra.gmra.mxu0 %vm1395_vm1, %v5362_v49 }
0x10a9   : > { %v14842_v18 = vpop.eup %12591  ;;  %11711 = vmatpush3.bf16.msra.mxu0 %v13817_v13  ;;  %11712 = vmatprep.mubr.msk.bf16.mxu0 %vm13232_vm0, %v17185_v28 }
0x10aa   : > { %17226 = vst [vmem:[#allocation78_spill] sm:$0xff] %v14842_v18  ;;  %v5064_v20 = vpack.c.bf16 %v14842_v18, %v14842_v18  ;;  %11722 = vmatprep.subr.bf16.mxu0 %v17185_v28 }
0x10ac   : > { %11683 = vmatmul.mubr.msk.bf16.vlgmr.msra.gmra.mxu1 %vm1591_vm4, %v5064_v20 }
0x10ad   : > { %11693 = vmatpush3.bf16.xpose.msra.mxu1 %v14748_v34  ;;  %11694 = vmatprep.mubr.msk.bf16.mxu1 %vm13232_vm0, %v17185_v28 }
0x10ae   : > { %11704 = vmatprep.subr.bf16.mxu1 %v17185_v28 }
0x10b4   : > { %11695 = vmatmul.mubr.msk.bf16.vlgmr.msra.gmra.mxu1 %vm1395_vm1, %v5318_v16 }
0x10b5   : > { %11705 = vmatpush3.bf16.xpose.msra.mxu1 %v14756_v53  ;;  %11706 = vmatprep.mubr.msk.bf16.mxu1 %vm13232_vm0, %v17185_v28 }
0x10b6   : > { %11716 = vmatprep.subr.bf16.mxu1 %v17185_v28 }
0x10bc   : > { %11707 = vmatmul.mubr.msk.bf16.vlgmr.msra.gmra.mxu1 %vm1395_vm1, %v5406_v46 }
0x10bd   : > { %11717 = vmatpush3.bf16.msra.mxu1 %v14817_v7  ;;  %11718 = vmatprep.mubr.msk.bf16.mxu1 %vm13232_vm0, %v17185_v28 }
0x10be   : > { %11728 = vmatprep.subr.bf16.mxu1 %v17185_v28 }
0x113f   : > { %v14867_v29 = vpop.f32.mrf.mxu0 }
0x1140   : > { %17227 = vst [vmem:[#allocation79_spill] sm:$0xff] %v14867_v29 }
0x1141   : > { %v11666_v8 = vpop.f32.mrf.mxu0 }
0x1143   : > { %v5108_v55 = vpop.f32.mrf.mxu0 }
0x1145   : > { %v11667_v56 = vpop.f32.mrf.mxu0 }
0x1158   : > { %v14869_v15 = vpop.f32.mrf.mxu0 }
0x1159   : > { %17228 = vst [vmem:[#allocation80_spill] sm:$0xff] %v14869_v15 }
0x115a   : > { %v11678_v47 = vpop.f32.mrf.mxu0 }
0x115c   : > { %v5200_v23 = vpop.f32.mrf.mxu0 }
0x115e   : > { %v11679_v58 = vpop.f32.mrf.mxu0 }
0x115f   : > { %v1060_v58 = vadd.f32 %v13839_v9, %v13702_v6 }
0x1160   : > { %v5312_v26 = vpop.f32.mrf.mxu0 }
0x1161   : > { %v5450_v49 = vsel %vm13965_vm5, %v5312_v26, -1e+30 }
0x1162   : > { %v5454_v20 = vsel %vm2028_vm6, %v5450_v49, -inf  ;;  %v11690_v16 = vpop.f32.mrf.mxu0 }
0x1163   : > { %5455 = vmax.xlane.f32.xlu1 %v5454_v20  ;;  %v1056_v20 = vadd.f32 %v13835_v42, %v13702_v6 }
0x1164   : > { %v14874_v46 = vpop.f32.mrf.mxu1  ;;  %v5315_v63 = vpop.f32.mrf.mxu0 }
0x1165   : > { %17229 = vst [vmem:[#allocation81_spill] sm:$0xff] %v14874_v46  ;;  %v1195_v46 = vpack.c.bf16 %v1060_v58, %v1056_v20 }
0x1166   : > { %v11672_v29 = vpop.f32.mrf.mxu1  ;;  %v11691_v8 = vpop.f32.mrf.mxu0 }
0x1168   : > { %v5154_v55 = vpop.f32.mrf.mxu1  ;;  %v5400_v56 = vpop.f32.mrf.mxu0 }
0x1169   : > { %v5452_v9 = vsel %vm13965_vm5, %v5400_v56, -1e+30 }
0x116a   : > { %v11673_v4 = vpop.f32.mrf.mxu1  ;;  %v11702_v0 = vpop.f32.mrf.mxu0  ;;  %v5460_v42 = vsel %vm2028_vm6, %v5452_v9, -inf }
0x116c   : > { %v14876_v47 = vpop.f32.mrf.mxu1  ;;  %v5403_v23 = vpop.f32.mrf.mxu0 }
0x116d   : > { %17230 = vst [vmem:[#allocation82_spill] sm:$0xff] %v14876_v47 }
0x116e   : > { %v11684_v26 = vpop.f32.mrf.mxu1  ;;  %v11703_v17 = vpop.f32.mrf.mxu0 }
0x1170   : > { %v5246_v16 = vpop.f32.mrf.mxu1 }
0x1172   : > { %v11685_v63 = vpop.f32.mrf.mxu1 }
0x1174   : > { %1291 = vrot.lane.b32.xlu1 %v1195_v46, %s13233_s9  ;;  %v5356_v29 = vpop.f32.mrf.mxu1 }
0x1175   : > { %v5451_v0 = vsel %vm13965_vm5, %v5356_v29, -1e+30 }
0x1176   : > { %v5457_v4 = vsel %vm2028_vm6, %v5451_v0, -inf  ;;  %v11696_v8 = vpop.f32.mrf.mxu1 }
0x1177   : > { %5458 = vmax.xlane.f32.xlu0 %v5457_v4 }
0x1178   : > { %1299 = vrot.lane.b32.xlu1 %v1195_v46, %s13235_s3  ;;  %v5359_v17 = vpop.f32.mrf.mxu1 }
0x117a   : > { %v11697_v55 = vpop.f32.mrf.mxu1 }
0x117b   : > { %5461 = vmax.xlane.f32.xlu0 %v5460_v42 }
0x117c   : > { %1235 = vrot.lane.b32.xlu1 %v13841_v10, %s13233_s9  ;;  %v5444_v23 = vpop.f32.mrf.mxu1 }
0x117d   : > { %v5453_v58 = vsel %vm13965_vm5, %v5444_v23, -1e+30 }
0x117e   : > { %v5463_v26 = vsel %vm2028_vm6, %v5453_v58, -inf  ;;  %v11708_v20 = vpop.f32.mrf.mxu1 }
0x117f   : > { %5464 = vmax.xlane.f32.xlu0 %v5463_v26 }
0x1180   : > { %1239 = vrot.lane.b32.xlu1 %v13841_v10, %s13234_s15  ;;  %v5447_v56 = vpop.f32.mrf.mxu1 }
0x1182   : > { %v11709_v16 = vpop.f32.mrf.mxu1 }
0x1184   : > { %1359 = vrot.lane.b32.xlu1 %v13814_v36, %s13233_s9 }
0x1195   : > { %1295 = vrot.lane.b32.xlu0 %v1195_v46, %s13234_s15 }
0x1199   : > { %1243 = vrot.lane.b32.xlu0 %v13841_v10, %s13235_s3 }
0x11ec   : > { %v5456_v63 = vpop.xlane.xlu1 %5455 }
0x11ed   : > { %v5466_v29 = vsub.f32 %v5450_v49, %v5456_v63 }
0x11ef   : > { %v5470_v4 = vmul.f32 1.442695, %v5466_v29 }
0x11f1   : > { %12593 = vpow2.f32 %v5470_v4 }
0x11fe   : > { %v14902_v8 = vpop.eup %12593 }
0x11ff   : > { %17231 = vst [vmem:[#allocation83_spill] sm:$0xff] %v14902_v8  ;;  %v5490_v17 = vpack.c.bf16 %v14902_v8, %v14902_v8 }
0x1200   : > { %v5459_v42 = vpop.xlane.xlu0 %5458 }
0x1201   : > { %v5467_v55 = vsub.f32 %v5451_v0, %v5459_v42  ;;  %11713 = vmatmul.mubr.msk.bf16.vlgmr.msra.gmra.mxu0 %vm2028_vm6, %v5490_v17  ;;  %v1292_v42 = vpop.permute.xlu1 %1291 }
0x1202   : > { %11723 = vmatpush3.bf16.msra.mxu0 %v14805_v1  ;;  %11724 = vmatprep.mubr.msk.bf16.mxu0 %vm13232_vm0, %v17185_v28 }
0x1203   : > { %v5472_v23 = vmul.f32 1.442695, %v5467_v55  ;;  %11734 = vmatprep.subr.bf16.mxu0 %v17185_v28 }
0x1204   : > { %v5462_v49 = vpop.xlane.xlu0 %5461 }
0x1205   : > { %12595 = vpow2.f32 %v5472_v23  ;;  %v5468_v26 = vsub.f32 %v5452_v9, %v5462_v49  ;;  %v14937_v23 = vsel %vm1395_vm1, %v1292_v42, 0 }
0x1207   : > { %v5474_v20 = vmul.f32 1.442695, %v5468_v26 }
0x1208   : > { %v5465_v56 = vpop.xlane.xlu0 %5464 }
0x1209   : > { %12597 = vpow2.f32 %v5474_v20  ;;  %v5469_v16 = vsub.f32 %v5453_v58, %v5465_v56  ;;  %v14926_v58 = vsel %vm1395_vm1, %v1195_v46, 0  ;;  %v1300_v46 = vpop.permute.xlu1 %1299 }
0x120a   : > { %v14960_v56 = vsel %vm1395_vm1, %v1300_v46, 0 }
0x120b   : > { %v5476_v63 = vmul.f32 1.442695, %v5469_v16 }
0x120c   : > { %v1296_v49 = vpop.permute.xlu0 %1295 }
0x120d   : > { %12599 = vpow2.f32 %v5476_v63  ;;  %v14949_v26 = vsel %vm1395_vm1, %v1296_v49, 0  ;;  %v14957_v20 = vpop.permute.xlu1 %1235  ;;  %v5923_v63 = vsel %vm1635_vm2, %v13814_v36, 0 }
0x1211   : > { %v14970_v16 = vpop.permute.xlu1 %1239 }
0x1212   : > { %v14911_v0 = vpop.eup %12595 }
0x1213   : > { %v5491_v29 = vpack.c.bf16 %v14911_v0, %v14911_v0 }
0x1215   : > { %11719 = vmatmul.mubr.msk.bf16.vlgmr.msra.gmra.mxu1 %vm2028_vm6, %v5491_v29  ;;  %v14978_v29 = vpop.permute.xlu1 %1359 }
0x1216   : > { %v14916_v4 = vpop.eup %12597  ;;  %11729 = vmatpush3.bf16.msra.mxu1 %v14826_v21  ;;  %11730 = vmatprep.mubr.msk.bf16.mxu1 %vm13232_vm0, %v17185_v28  ;;  %v5969_v42 = vsel %vm1635_vm2, %v14978_v29, 0 }
0x1217   : > { %v5492_v9 = vpack.c.bf16 %v14916_v4, %v14916_v4  ;;  %11742 = vmatprep.subr.bf16.mxu1 %v17185_v28 }
0x1219   : > { %11725 = vmatmul.mubr.msk.bf16.vlgmr.msra.gmra.mxu0 %vm2028_vm6, %v5492_v9  ;;  %v14983_v9 = vpop.permute.xlu0 %1243 }
0x121a   : > { %v14928_v17 = vpop.eup %12599  ;;  %11735 = vmatpush3.bf16.xpose.msra.mxu0 %v14926_v58  ;;  %11738 = vmatprep.mubr.msk.bf16.mxu0 %vm13232_vm0, %v17185_v28 }
0x121b   : > { %v5493_v55 = vpack.c.bf16 %v14928_v17, %v14928_v17  ;;  %11736 = vmatprep.subr.bf16.mxu0 %v17185_v28 }
0x121d   : > { %11731 = vmatmul.mubr.msk.bf16.vlgmr.msra.gmra.mxu1 %vm2028_vm6, %v5493_v55 }
0x121e   : > { %11743 = vmatpush3.bf16.xpose.msra.mxu1 %v14937_v23  ;;  %11746 = vmatprep.mubr.msk.bf16.mxu1 %vm13232_vm0, %v17185_v28 }
0x121f   : > { %11744 = vmatprep.subr.bf16.mxu1 %v17185_v28 }
0x1222   : > { %11737 = vmatpush3.bf16.xpose.msra.mxu0 %v14715_v32 }
0x1223   : > { %11750 = vmatprep.subr.bf16.mxu0 %v17185_v28 }
0x1226   : > { %11745 = vmatpush3.bf16.xpose.msra.mxu1 %v14748_v34 }
0x1227   : > { %11758 = vmatprep.subr.bf16.mxu1 %v17185_v28 }
0x1229   : > { %11739 = vmatmul.mubr.msk.bf16.vlgmr.msra.gmra.mxu0 %vm1395_vm1, %v13841_v10 }
0x122a   : > { %11751 = vmatpush3.bf16.xpose.msra.mxu0 %v14949_v26  ;;  %11754 = vmatprep.mubr.msk.bf16.mxu0 %vm13232_vm0, %v17185_v28 }
0x122b   : > { %11752 = vmatprep.subr.bf16.mxu0 %v17185_v28 }
0x122d   : > { %11747 = vmatmul.mubr.msk.bf16.vlgmr.msra.gmra.mxu1 %vm1395_vm1, %v14957_v20 }
0x122e   : > { %11759 = vmatpush3.bf16.xpose.msra.mxu1 %v14960_v56  ;;  %11762 = vmatprep.mubr.msk.bf16.mxu1 %vm13232_vm0, %v17185_v28 }
0x122f   : > { %11760 = vmatprep.subr.bf16.mxu1 %v17185_v28 }
0x1232   : > { %11753 = vmatpush3.bf16.xpose.msra.mxu0 %v14724_v57 }
0x1233   : > { %11766 = vmatprep.subr.bf16.mxu0 %v17185_v28 }
0x1236   : > { %11761 = vmatpush3.bf16.xpose.msra.mxu1 %v14756_v53 }
0x1237   : > { %11774 = vmatprep.subr.bf16.mxu1 %v17185_v28 }
0x1239   : > { %11755 = vmatmul.mubr.msk.bf16.vlgmr.msra.gmra.mxu0 %vm1395_vm1, %v14970_v16 }
0x123a   : > { %11767 = vmatpush3.bf16.msra.mxu0 %v5923_v63  ;;  %11770 = vmatprep.mubr.msk.bf16.mxu0 %vm13232_vm0, %v17185_v28 }
0x123b   : > { %11768 = vmatprep.subr.bf16.mxu0 %v17185_v28 }
0x123d   : > { %11763 = vmatmul.mubr.msk.bf16.vlgmr.msra.gmra.mxu1 %vm1395_vm1, %v14983_v9 }
0x123e   : > { %11769 = vmatpush3.bf16.msra.mxu0 %v13817_v13  ;;  %11775 = vmatpush3.bf16.msra.mxu1 %v5969_v42 }
0x123f   : > { %11776 = vmatprep.subr.bf16.mxu1 %v17185_v28  ;;  %11782 = vmatprep.subr.bf16.mxu0 %v17185_v28 }
0x1240   : > { %11778 = vmatprep.mubr.msk.bf16.mxu1 %vm13232_vm0, %v17185_v28 }
0x1242   : > { %11777 = vmatpush3.bf16.msra.mxu1 %v14817_v7 }
0x1243   : > { %11790 = vmatprep.subr.bf16.mxu1 %v17185_v28 }
0x12c1   : > { %v14996_v55 = vpop.f32.mrf.mxu0 }
0x12c2   : > { %17232 = vst [vmem:[#allocation84_spill] sm:$0xff] %v14996_v55 }
0x12c3   : > { %v11714_v46 = vpop.f32.mrf.mxu0 }
0x12c5   : > { %v5534_v49 = vpop.f32.mrf.mxu0 }
0x12c7   : > { %v11715_v63 = vpop.f32.mrf.mxu0 }
0x12d5   : > { %v14998_v5 = vpop.f32.mrf.mxu1 }
0x12d6   : > { %17233 = vst [vmem:[#allocation85_spill] sm:$0xff] %v14998_v5 }
0x12d7   : > { %v11720_v62 = vpop.f32.mrf.mxu1 }
0x12d9   : > { %v5577_v42 = vpop.f32.mrf.mxu1  ;;  %v15000_v47 = vpop.f32.mrf.mxu0 }
0x12da   : > { %17234 = vst [vmem:[#allocation86_spill] sm:$0xff] %v15000_v47 }
0x12db   : > { %v11721_v8 = vpop.f32.mrf.mxu1  ;;  %v11726_v15 = vpop.f32.mrf.mxu0 }
0x12dd   : > { %v5620_v44 = vpop.f32.mrf.mxu0  ;;  %v15002_v19 = vpop.f32.mrf.mxu1 }
0x12de   : > { %17235 = vst [vmem:[#allocation87_spill] sm:$0xff] %v15002_v19 }
0x12df   : > { %v11727_v31 = vpop.f32.mrf.mxu0  ;;  %v11732_v18 = vpop.f32.mrf.mxu1 }
0x12e1   : > { %v5663_v51 = vpop.f32.mrf.mxu1 }
0x12e3   : > { %v11733_v35 = vpop.f32.mrf.mxu1 }
0x12e9   : > { %v5731_v22 = vpop.f32.mrf.mxu0 }
0x12ea   : > { %v5875_v46 = vsel %vm14098_vm7, %v5731_v22, -1e+30 }
0x12eb   : > { %v5879_v49 = vsel %vm2458_vm8, %v5875_v46, -inf  ;;  %v11740_v63 = vpop.f32.mrf.mxu0 }
0x12ec   : > { %5880 = vmax.xlane.f32.xlu1 %v5879_v49 }
0x12ed   : > { %v5734_v62 = vpop.f32.mrf.mxu0  ;;  %v5777_v42 = vpop.f32.mrf.mxu1 }
0x12ee   : > { %v5876_v22 = vsel %vm14098_vm7, %v5777_v42, -1e+30 }
0x12ef   : > { %v11741_v55 = vpop.f32.mrf.mxu0  ;;  %v11748_v8 = vpop.f32.mrf.mxu1 }
0x12f0   : > { %v5882_v55 = vsel %vm2458_vm8, %v5876_v22, -inf }
0x12f1   : > { %v5780_v15 = vpop.f32.mrf.mxu1 }
0x12f3   : > { %v11749_v44 = vpop.f32.mrf.mxu1 }
0x12f9   : > { %v5823_v5 = vpop.f32.mrf.mxu0 }
0x12fa   : > { %v5877_v31 = vsel %vm14098_vm7, %v5823_v5, -1e+30 }
0x12fb   : > { %v5885_v51 = vsel %vm2458_vm8, %v5877_v31, -inf  ;;  %v11756_v35 = vpop.f32.mrf.mxu0 }
0x12fc   : > { %5886 = vmax.xlane.f32.xlu0 %v5885_v51 }
0x12fd   : > { %1371 = vrot.lane.b32.xlu1 %v13814_v36, %s13235_s3  ;;  %v5826_v18 = vpop.f32.mrf.mxu0  ;;  %v5869_v49 = vpop.f32.mrf.mxu1 }
0x12fe   : > { %v5878_v8 = vsel %vm14098_vm7, %v5869_v49, -1e+30 }
0x12ff   : > { %v11757_v63 = vpop.f32.mrf.mxu0  ;;  %v11764_v62 = vpop.f32.mrf.mxu1  ;;  %v5888_v15 = vsel %vm2458_vm8, %v5878_v8, -inf }
0x1300   : > { %5883 = vmax.xlane.f32.xlu0 %v5882_v55 }
0x1301   : > { %v5872_v5 = vpop.f32.mrf.mxu1 }
0x1303   : > { %v11765_v44 = vpop.f32.mrf.mxu1 }
0x1304   : > { %5889 = vmax.xlane.f32.xlu0 %v5888_v15 }
0x131a   : > { %1365 = vrot.lane.b32.xlu0 %v13814_v36, %s13234_s15 }
0x1375   : > { %v5881_v42 = vpop.xlane.xlu1 %5880 }
0x1376   : > { %v5891_v51 = vsub.f32 %v5875_v46, %v5881_v42 }
0x1378   : > { %v5895_v35 = vmul.f32 1.442695, %v5891_v51 }
0x137a   : > { %12601 = vpow2.f32 %v5895_v35  ;;  %v15041_v35 = vpop.permute.xlu1 %1371 }
0x1385   : > { %v5887_v18 = vpop.xlane.xlu0 %5886 }
0x1386   : > { %v5893_v19 = vsub.f32 %v5877_v31, %v5887_v18 }
0x1387   : > { %v15020_v63 = vpop.eup %12601 }
0x1388   : > { %17236 = vst [vmem:[#allocation88_spill] sm:$0xff] %v15020_v63  ;;  %v5915_v49 = vpack.c.bf16 %v15020_v63, %v15020_v63  ;;  %v5899_v55 = vmul.f32 1.442695, %v5893_v19 }
0x1389   : > { %v5884_v62 = vpop.xlane.xlu0 %5883 }
0x138a   : > { %12603 = vpow2.f32 %v5899_v55  ;;  %v5892_v5 = vsub.f32 %v5876_v22, %v5884_v62  ;;  %11771 = vmatmul.mubr.msk.bf16.vlgmr.msra.gmra.mxu0 %vm2458_vm8, %v5915_v49  ;;  %v6061_v49 = vsel %vm1635_vm2, %v15041_v35, 0  ;;  %v6128_v62 = vrot.slane %v13841_v10, 4 }
0x138b   : > { %11786 = vmatprep.mubr.msk.bf16.mxu0 %vm13232_vm0, %v17185_v28  ;;  %v6216_v10 = vrot.slane %v14970_v16, 4 }
0x138c   : > { %v5897_v15 = vmul.f32 1.442695, %v5892_v5 }
0x138d   : > { %v5890_v46 = vpop.xlane.xlu0 %5889 }
0x138e   : > { %12605 = vpow2.f32 %v5897_v15  ;;  %v5894_v44 = vsub.f32 %v5878_v8, %v5890_v46 }
0x1390   : > { %v5901_v42 = vmul.f32 1.442695, %v5894_v44 }
0x1391   : > { %v15027_v31 = vpop.permute.xlu0 %1365 }
0x1392   : > { %v6015_v51 = vsel %vm1635_vm2, %v15027_v31, 0  ;;  %12607 = vpow2.f32 %v5901_v42 }
0x1393   : > { %11783 = vmatpush3.bf16.msra.mxu0 %v6015_v51 }
0x1394   : > { %11784 = vmatprep.subr.bf16.mxu0 %v17185_v28 }
0x1397   : > { %v15032_v19 = vpop.eup %12603  ;;  %11785 = vmatpush3.bf16.msra.mxu0 %v14805_v1 }
0x1398   : > { %v5917_v22 = vpack.c.bf16 %v15032_v19, %v15032_v19  ;;  %11798 = vmatprep.subr.bf16.mxu0 %v17185_v28 }
0x139a   : > { %11787 = vmatmul.mubr.msk.bf16.vlgmr.msra.gmra.mxu0 %vm2458_vm8, %v5917_v22 }
0x139b   : > { %v15039_v8 = vpop.eup %12605  ;;  %11799 = vmatpush3.bf16.xpose.msra.mxu0 %v14926_v58  ;;  %11802 = vmatprep.mubr.msk.bf16.mxu0 %vm13232_vm0, %v17185_v28 }
0x139c   : > { %v5916_v18 = vpack.c.bf16 %v15039_v8, %v15039_v8  ;;  %11800 = vmatprep.subr.bf16.mxu0 %v17185_v28 }
0x139e   : > { %11779 = vmatmul.mubr.msk.bf16.vlgmr.msra.gmra.mxu1 %vm2458_vm8, %v5916_v18 }
0x139f   : > { %11791 = vmatpush3.bf16.msra.mxu1 %v6061_v49  ;;  %11794 = vmatprep.mubr.msk.bf16.mxu1 %vm13232_vm0, %v17185_v28  ;;  %v15055_v58 = vpop.eup %12607 }
0x13a0   : > { %11792 = vmatprep.subr.bf16.mxu1 %v17185_v28  ;;  %v5918_v55 = vpack.c.bf16 %v15055_v58, %v15055_v58 }
0x13a3   : > { %11793 = vmatpush3.bf16.msra.mxu1 %v14826_v21  ;;  %11801 = vmatpush3.bf16.xpose.msra.mxu0 %v14715_v32  ;;  %v6172_v32 = vrot.slane %v14957_v20, 4 }
0x13a4   : > { %11806 = vmatprep.subr.bf16.mxu1 %v17185_v28  ;;  %11814 = vmatprep.subr.bf16.mxu0 %v17185_v28 }
0x13a6   : > { %11795 = vmatmul.mubr.msk.bf16.vlgmr.msra.gmra.mxu1 %vm2458_vm8, %v5918_v55 }
0x13a7   : > { %11807 = vmatpush3.bf16.xpose.msra.mxu1 %v14937_v23  ;;  %11810 = vmatprep.mubr.msk.bf16.mxu1 %vm13232_vm0, %v17185_v28 }
0x13a8   : > { %11808 = vmatprep.subr.bf16.mxu1 %v17185_v28 }
0x13aa   : > { %11803 = vmatmul.mubr.msk.bf16.vlgmr.msra.gmra.mxu0 %vm1395_vm1, %v6128_v62 }
0x13ab   : > { %11815 = vmatpush3.bf16.xpose.msra.mxu0 %v14949_v26  ;;  %11818 = vmatprep.mubr.msk.bf16.mxu0 %vm13232_vm0, %v17185_v28 }
0x13ac   : > { %11816 = vmatprep.subr.bf16.mxu0 %v17185_v28 }
0x13af   : > { %11809 = vmatpush3.bf16.xpose.msra.mxu1 %v14748_v34 }
0x13b0   : > { %11822 = vmatprep.subr.bf16.mxu1 %v17185_v28 }
0x13b3   : > { %11817 = vmatpush3.bf16.xpose.msra.mxu0 %v14724_v57  ;;  %v6260_v57 = vrot.slane %v14983_v9, 4 }
0x13b4   : > { %11830 = vmatprep.subr.bf16.mxu0 %v17185_v28 }
0x13b6   : > { %11811 = vmatmul.mubr.msk.bf16.vlgmr.msra.gmra.mxu1 %vm1395_vm1, %v6172_v32 }
0x13b7   : > { %11823 = vmatpush3.bf16.xpose.msra.mxu1 %v14960_v56  ;;  %11826 = vmatprep.mubr.msk.bf16.mxu1 %vm13232_vm0, %v17185_v28 }
0x13b8   : > { %11824 = vmatprep.subr.bf16.mxu1 %v17185_v28 }
0x13ba   : > { %11819 = vmatmul.mubr.msk.bf16.vlgmr.msra.gmra.mxu0 %vm1395_vm1, %v6216_v10  ;;  %v1070_v10 = vadd.f32 %v13847_v24, %v13702_v6 }
0x13bb   : > { %11831 = vmatpush3.bf16.msra.mxu0 %v13814_v36  ;;  %11834 = vmatprep.mubr.msk.bf16.mxu0 %vm13232_vm0, %v17185_v28 }
0x13bc   : > { %11832 = vmatprep.subr.bf16.mxu0 %v17185_v28 }
0x13bf   : > { %11825 = vmatpush3.bf16.xpose.msra.mxu1 %v14756_v53  ;;  %11833 = vmatpush3.bf16.msra.mxu0 %v13817_v13 }
0x13c0   : > { %11838 = vmatprep.subr.bf16.mxu1 %v17185_v28  ;;  %11846 = vmatprep.subr.bf16.mxu0 %v17185_v28 }
0x13c6   : > { %11827 = vmatmul.mubr.msk.bf16.vlgmr.msra.gmra.mxu1 %vm1395_vm1, %v6260_v57 }
0x13c7   : > { %11839 = vmatpush3.bf16.msra.mxu1 %v14978_v29  ;;  %11842 = vmatprep.mubr.msk.bf16.mxu1 %vm13232_vm0, %v17185_v28 }
0x13c8   : > { %11840 = vmatprep.subr.bf16.mxu1 %v17185_v28 }
0x13cb   : > { %11841 = vmatpush3.bf16.msra.mxu1 %v14817_v7 }
0x13cc   : > { %11854 = vmatprep.subr.bf16.mxu1 %v17185_v28 }
0x144a   : > { %v15102_v36 = vpop.f32.mrf.mxu0 }
0x144b   : > { %17237 = vst [vmem:[#allocation89_spill] sm:$0xff] %v15102_v36 }
0x144c   : > { %v11772_v13 = vpop.f32.mrf.mxu0 }
0x144e   : > { %v5962_v34 = vpop.f32.mrf.mxu0 }
0x144f   : > { %v1066_v34 = vadd.f32 %v13843_v14, %v13702_v6 }
0x1450   : > { %v11773_v53 = vpop.f32.mrf.mxu0 }
0x145a   : > { %v15104_v23 = vpop.f32.mrf.mxu0 }
0x145b   : > { %17238 = vst [vmem:[#allocation90_spill] sm:$0xff] %v15104_v23 }
0x145c   : > { %v11788_v26 = vpop.f32.mrf.mxu0 }
0x145e   : > { %v15106_v20 = vpop.f32.mrf.mxu1  ;;  %v6054_v56 = vpop.f32.mrf.mxu0 }
0x145f   : > { %17239 = vst [vmem:[#allocation91_spill] sm:$0xff] %v15106_v20 }
0x1460   : > { %v11780_v16 = vpop.f32.mrf.mxu1  ;;  %v11789_v29 = vpop.f32.mrf.mxu0 }
0x1461   : > { %v1198_v16 = vpack.c.bf16 %v1070_v10, %v1066_v34 }
0x1462   : > { %v6008_v9 = vpop.f32.mrf.mxu1 }
0x1464   : > { %v11781_v5 = vpop.f32.mrf.mxu1 }
0x1466   : > { %v15108_v15 = vpop.f32.mrf.mxu1 }
0x1467   : > { %17240 = vst [vmem:[#allocation92_spill] sm:$0xff] %v15108_v15 }
0x1468   : > { %v11796_v7 = vpop.f32.mrf.mxu1 }
0x146a   : > { %v6100_v46 = vpop.f32.mrf.mxu1  ;;  %v6166_v44 = vpop.f32.mrf.mxu0 }
0x146b   : > { %v6304_v42 = vsel %vm14214_vm9, %v6166_v44, -1e+30 }
0x146c   : > { %v6308_v51 = vsel %vm1395_vm1, %v6304_v42, -inf  ;;  %v11797_v22 = vpop.f32.mrf.mxu1  ;;  %v11804_v18 = vpop.f32.mrf.mxu0 }
0x146d   : > { %6309 = vmax.xlane.f32.xlu1 %v6308_v51 }
0x146e   : > { %v6169_v49 = vpop.f32.mrf.mxu0 }
0x1470   : > { %v11805_v55 = vpop.f32.mrf.mxu0 }
0x1476   : > { %v6210_v62 = vpop.f32.mrf.mxu1 }
0x1477   : > { %v6305_v32 = vsel %vm14214_vm9, %v6210_v62, -1e+30 }
0x1478   : > { %v6311_v57 = vsel %vm1395_vm1, %v6305_v32, -inf  ;;  %v11812_v13 = vpop.f32.mrf.mxu1 }
0x1479   : > { %6312 = vmax.xlane.f32.xlu0 %v6311_v57 }
0x147a   : > { %v6213_v53 = vpop.f32.mrf.mxu1  ;;  %v6254_v26 = vpop.f32.mrf.mxu0 }
0x147b   : > { %v6306_v56 = vsel %vm14214_vm9, %v6254_v26, -1e+30 }
0x147c   : > { %v6314_v29 = vsel %vm1395_vm1, %v6306_v56, -inf  ;;  %v11813_v9 = vpop.f32.mrf.mxu1  ;;  %v11820_v5 = vpop.f32.mrf.mxu0 }
0x147d   : > { %6315 = vmax.xlane.f32.xlu0 %v6314_v29 }
0x147e   : > { %1307 = vrot.lane.b32.xlu1 %v1198_v16, %s13234_s15  ;;  %v6257_v24 = vpop.f32.mrf.mxu0 }
0x147f   : > { %v6777_v24 = vsel %vm1635_vm2, %v13833_v61, 0 }
0x1480   : > { %v11821_v7 = vpop.f32.mrf.mxu0 }
0x1486   : > { %v6298_v46 = vpop.f32.mrf.mxu1 }
0x1487   : > { %v6307_v14 = vsel %vm14214_vm9, %v6298_v46, -1e+30 }
0x1488   : > { %v11828_v44 = vpop.f32.mrf.mxu1  ;;  %v6317_v18 = vsel %vm1395_vm1, %v6307_v14, -inf }
0x148a   : > { %v6301_v51 = vpop.f32.mrf.mxu1 }
0x148c   : > { %v11829_v22 = vpop.f32.mrf.mxu1 }
0x1493   : > { %1303 = vrot.lane.b32.xlu0 %v1198_v16, %s13233_s9 }
0x1497   : > { %1251 = vrot.lane.b32.xlu0 %v13849_v27, %s13234_s15 }
0x14a2   : > { %6318 = vmax.xlane.f32.xlu1 %v6317_v18 }
0x14b3   : > { %1247 = vrot.lane.b32.xlu1 %v13849_v27, %s13233_s9 }
0x14b7   : > { %1311 = vrot.lane.b32.xlu1 %v1198_v16, %s13235_s3 }
0x14bb   : > { %1255 = vrot.lane.b32.xlu1 %v13849_v27, %s13235_s3 }
0x14f6   : > { %v6310_v49 = vpop.xlane.xlu1 %6309 }
0x14f7   : > { %v6320_v55 = vsub.f32 %v6304_v42, %v6310_v49 }
0x14f9   : > { %v6324_v62 = vmul.f32 1.442695, %v6320_v55 }
0x14fb   : > { %12609 = vpow2.f32 %v6324_v62 }
0x1502   : > { %v6313_v10 = vpop.xlane.xlu0 %6312 }
0x1503   : > { %v6321_v57 = vsub.f32 %v6305_v32, %v6313_v10 }
0x1505   : > { %v6326_v13 = vmul.f32 1.442695, %v6321_v57 }
0x1506   : > { %v6316_v34 = vpop.xlane.xlu0 %6315 }
0x1507   : > { %12611 = vpow2.f32 %v6326_v13  ;;  %v6322_v53 = vsub.f32 %v6306_v56, %v6316_v34 }
0x1508   : > { %v15135_v26 = vpop.eup %12609 }
0x1509   : > { %17241 = vst [vmem:[#allocation93_spill] sm:$0xff] %v15135_v26  ;;  %v6344_v29 = vpack.c.bf16 %v15135_v26, %v15135_v26  ;;  %v6328_v9 = vmul.f32 1.442695, %v6322_v53 }
0x150b   : > { %12613 = vpow2.f32 %v6328_v9  ;;  %11835 = vmatmul.mubr.msk.bf16.vlgmr.msra.gmra.mxu0 %vm1395_vm1, %v6344_v29 }
0x150c   : > { %11847 = vmatpush3.bf16.msra.mxu0 %v15027_v31  ;;  %11850 = vmatprep.mubr.msk.bf16.mxu0 %vm13232_vm0, %v17185_v28 }
0x150d   : > { %11848 = vmatprep.subr.bf16.mxu0 %v17185_v28 }
0x1510   : > { %11849 = vmatpush3.bf16.msra.mxu0 %v14805_v1  ;;  %v15161_v1 = vsel %vm1395_vm1, %v1198_v16, 0  ;;  %v1304_v16 = vpop.permute.xlu0 %1303 }
0x1511   : > { %11862 = vmatprep.subr.bf16.mxu0 %v17185_v28  ;;  %v15194_v49 = vsel %vm1395_vm1, %v1304_v16, 0 }
0x1514   : > { %v15146_v42 = vpop.eup %12611 }
0x1515   : > { %v6345_v32 = vpack.c.bf16 %v15146_v42, %v15146_v42 }
0x1517   : > { %11843 = vmatmul.mubr.msk.bf16.vlgmr.msra.gmra.mxu1 %vm1395_vm1, %v6345_v32 }
0x1518   : > { %v15151_v56 = vpop.eup %12613  ;;  %11855 = vmatpush3.bf16.msra.mxu1 %v15041_v35  ;;  %11858 = vmatprep.mubr.msk.bf16.mxu1 %vm13232_vm0, %v17185_v28  ;;  %v1308_v35 = vpop.permute.xlu1 %1307 }
0x1519   : > { %v6346_v31 = vpack.c.bf16 %v15151_v56, %v15151_v56  ;;  %11856 = vmatprep.subr.bf16.mxu1 %v17185_v28  ;;  %v15170_v5 = vsel %vm1395_vm1, %v1308_v35, 0 }
0x151b   : > { %11851 = vmatmul.mubr.msk.bf16.vlgmr.msra.gmra.mxu0 %vm1395_vm1, %v6346_v31 }
0x151c   : > { %11857 = vmatpush3.bf16.msra.mxu1 %v14826_v21  ;;  %11863 = vmatpush3.bf16.xpose.msra.mxu0 %v15161_v1  ;;  %v15178_v21 = vpop.permute.xlu0 %1251 }
0x151d   : > { %11864 = vmatprep.mubr.msk.bf16.mxu0 %vm13232_vm0, %v17185_v28  ;;  %11874 = vmatprep.subr.bf16.mxu0 %v17185_v28 }
0x151e   : > { %11868 = vmatprep.subr.bf16.mxu1 %v17185_v28 }
0x1523   : > { %11865 = vmatmul.mubr.msk.bf16.vlgmr.msra.gmra.mxu0 %vm1395_vm1, %v13849_v27 }
0x1524   : > { %11875 = vmatpush3.bf16.xpose.msra.mxu0 %v15170_v5  ;;  %11876 = vmatprep.mubr.msk.bf16.mxu0 %vm13232_vm0, %v17185_v28 }
0x1525   : > { %11886 = vmatprep.subr.bf16.mxu0 %v17185_v28 }
0x152b   : > { %11877 = vmatmul.mubr.msk.bf16.vlgmr.msra.gmra.mxu0 %vm1395_vm1, %v15178_v21  ;;  %v6319_v7 = vpop.xlane.xlu1 %6318 }
0x152c   : > { %11887 = vmatpush3.bf16.msra.mxu0 %v6777_v24  ;;  %v6323_v46 = vsub.f32 %v6307_v14, %v6319_v7  ;;  %11888 = vmatprep.mubr.msk.bf16.mxu0 %vm13232_vm0, %v17185_v28 }
0x152d   : > { %11898 = vmatprep.subr.bf16.mxu0 %v17185_v28 }
0x152e   : > { %v6330_v44 = vmul.f32 1.442695, %v6323_v46 }
0x152f   : > { %v15191_v18 = vpop.permute.xlu1 %1247 }
0x1530   : > { %12615 = vpow2.f32 %v6330_v44 }
0x1533   : > { %v1312_v14 = vpop.permute.xlu1 %1311 }
0x1534   : > { %v15202_v55 = vsel %vm1395_vm1, %v1312_v14, 0 }
0x1537   : > { %v15210_v62 = vpop.permute.xlu1 %1255 }
0x153d   : > { %v15187_v51 = vpop.eup %12615 }
0x153e   : > { %v6347_v22 = vpack.c.bf16 %v15187_v51, %v15187_v51 }
0x1540   : > { %11859 = vmatmul.mubr.msk.bf16.vlgmr.msra.gmra.mxu1 %vm1395_vm1, %v6347_v22 }
0x1541   : > { %11869 = vmatpush3.bf16.xpose.msra.mxu1 %v15194_v49  ;;  %11870 = vmatprep.mubr.msk.bf16.mxu1 %vm13232_vm0, %v17185_v28 }
0x1542   : > { %11880 = vmatprep.subr.bf16.mxu1 %v17185_v28 }
0x1548   : > { %11871 = vmatmul.mubr.msk.bf16.vlgmr.msra.gmra.mxu1 %vm1395_vm1, %v15191_v18 }
0x1549   : > { %11881 = vmatpush3.bf16.xpose.msra.mxu1 %v15202_v55  ;;  %11882 = vmatprep.mubr.msk.bf16.mxu1 %vm13232_vm0, %v17185_v28 }
0x154a   : > { %11892 = vmatprep.subr.bf16.mxu1 %v17185_v28 }
0x1550   : > { %11883 = vmatmul.mubr.msk.bf16.vlgmr.msra.gmra.mxu1 %vm1395_vm1, %v15210_v62 }
0x1551   : > { %11894 = vmatprep.mubr.msk.bf16.mxu1 %vm13232_vm0, %v17185_v28 }
0x15cb   : > { %v15216_v10 = vpop.f32.mrf.mxu0 }
0x15cc   : > { %17242 = vst [vmem:[#allocation94_spill] sm:$0xff] %v15216_v10 }
0x15cd   : > { %v11836_v57 = vpop.f32.mrf.mxu0 }
0x15cf   : > { %v6388_v13 = vpop.f32.mrf.mxu0 }
0x15d1   : > { %v11837_v34 = vpop.f32.mrf.mxu0 }
0x15d7   : > { %v15218_v53 = vpop.f32.mrf.mxu1 }
0x15d8   : > { %17243 = vst [vmem:[#allocation95_spill] sm:$0xff] %v15218_v53 }
0x15d9   : > { %v11844_v29 = vpop.f32.mrf.mxu1 }
0x15db   : > { %v6431_v9 = vpop.f32.mrf.mxu1  ;;  %v15220_v32 = vpop.f32.mrf.mxu0 }
0x15dc   : > { %17244 = vst [vmem:[#allocation96_spill] sm:$0xff] %v15220_v32 }
0x15dd   : > { %v11845_v31 = vpop.f32.mrf.mxu1  ;;  %v11852_v35 = vpop.f32.mrf.mxu0 }
0x15df   : > { %v6474_v16 = vpop.f32.mrf.mxu0 }
0x15e1   : > { %v11853_v24 = vpop.f32.mrf.mxu0 }
0x15e3   : > { %v6585_v7 = vpop.f32.mrf.mxu0 }
0x15e4   : > { %v6729_v46 = vsel %vm13862_vm3, %v6585_v7, -1e+30 }
0x15e5   : > { %v6733_v44 = vsel %vm1591_vm4, %v6729_v46, -inf  ;;  %v11866_v22 = vpop.f32.mrf.mxu0 }
0x15e6   : > { %6734 = vmax.xlane.f32.xlu0 %v6733_v44 }
0x15e7   : > { %v6588_v14 = vpop.f32.mrf.mxu0 }
0x15e9   : > { %v11867_v57 = vpop.f32.mrf.mxu0 }
0x15eb   : > { %v6677_v13 = vpop.f32.mrf.mxu0 }
0x15ec   : > { %v6731_v34 = vsel %vm13862_vm3, %v6677_v13, -1e+30 }
0x15ed   : > { %v6739_v29 = vsel %vm1591_vm4, %v6731_v34, -inf  ;;  %v11878_v9 = vpop.f32.mrf.mxu0 }
0x15ee   : > { %6740 = vmax.xlane.f32.xlu0 %v6739_v29 }
0x15ef   : > { %v6680_v31 = vpop.f32.mrf.mxu0 }
0x15f1   : > { %v11879_v35 = vpop.f32.mrf.mxu0 }
0x1600   : > { %v15228_v16 = vpop.f32.mrf.mxu1 }
0x1601   : > { %17245 = vst [vmem:[#allocation97_spill] sm:$0xff] %v15228_v16 }
0x1602   : > { %v11860_v24 = vpop.f32.mrf.mxu1 }
0x1604   : > { %v6517_v7 = vpop.f32.mrf.mxu1 }
0x1606   : > { %v11861_v10 = vpop.f32.mrf.mxu1 }
0x1608   : > { %v6631_v36 = vpop.f32.mrf.mxu1 }
0x1609   : > { %v6730_v44 = vsel %vm13862_vm3, %v6631_v36, -1e+30 }
0x160a   : > { %v6736_v22 = vsel %vm1591_vm4, %v6730_v44, -inf  ;;  %v11872_v14 = vpop.f32.mrf.mxu1 }
0x160b   : > { %6737 = vmax.xlane.f32.xlu1 %v6736_v22 }
0x160c   : > { %v6634_v57 = vpop.f32.mrf.mxu1 }
0x160e   : > { %v11873_v13 = vpop.f32.mrf.mxu1 }
0x1610   : > { %v6723_v32 = vpop.f32.mrf.mxu1 }
0x1611   : > { %v6732_v29 = vsel %vm13862_vm3, %v6723_v32, -1e+30 }
0x1612   : > { %v6742_v9 = vsel %vm1591_vm4, %v6732_v29, -inf  ;;  %v11884_v31 = vpop.f32.mrf.mxu1 }
0x1613   : > { %6743 = vmax.xlane.f32.xlu0 %v6742_v9 }
0x1614   : > { %v6726_v35 = vpop.f32.mrf.mxu1 }
0x1616   : > { %v11885_v10 = vpop.f32.mrf.mxu1 }
0x161c   : > { %1383 = vrot.lane.b32.xlu1 %v13833_v61, %s13234_s15 }
0x1620   : > { %1389 = vrot.lane.b32.xlu1 %v13833_v61, %s13235_s3 }
0x1629   : > { %1377 = vrot.lane.b32.xlu0 %v13833_v61, %s13233_s9 }
0x166f   : > { %v6735_v36 = vpop.xlane.xlu0 %6734 }
0x1670   : > { %v6745_v24 = vsub.f32 %v6729_v46, %v6735_v36 }
0x1672   : > { %v6749_v7 = vmul.f32 1.442695, %v6745_v24 }
0x1674   : > { %12617 = vpow2.f32 %v6749_v7 }
0x1677   : > { %v6741_v50 = vpop.xlane.xlu0 %6740 }
0x1678   : > { %v6747_v14 = vsub.f32 %v6731_v34, %v6741_v50 }
0x167a   : > { %v6753_v57 = vmul.f32 1.442695, %v6747_v14 }
0x167c   : > { %12619 = vpow2.f32 %v6753_v57 }
0x1681   : > { %v15242_v32 = vpop.eup %12617 }
0x1682   : > { %17246 = vst [vmem:[#allocation98_spill] sm:$0xff] %v15242_v32  ;;  %v6769_v22 = vpack.c.bf16 %v15242_v32, %v15242_v32 }
0x1684   : > { %11889 = vmatmul.mubr.msk.bf16.vlgmr.msra.gmra.mxu0 %vm1591_vm4, %v6769_v22  ;;  %v6982_v22 = vrot.slane %v13849_v27, 4 }
0x1685   : > { %11900 = vmatprep.mubr.msk.bf16.mxu0 %vm13232_vm0, %v17185_v28 }
0x1689   : > { %v15249_v46 = vpop.eup %12619 }
0x168a   : > { %v6771_v34 = vpack.c.bf16 %v15249_v46, %v15249_v46 }
0x1694   : > { %v6738_v13 = vpop.xlane.xlu1 %6737 }
0x1695   : > { %v6746_v9 = vsub.f32 %v6730_v44, %v6738_v13  ;;  %v7070_v13 = vrot.slane %v15178_v21, 4  ;;  %v7026_v21 = vrot.slane %v15191_v18, 4 }
0x1697   : > { %v6751_v31 = vmul.f32 1.442695, %v6746_v9 }
0x1698   : > { %v15251_v35 = vpop.permute.xlu1 %1383 }
0x1699   : > { %12621 = vpow2.f32 %v6751_v31  ;;  %v6869_v10 = vsel %vm1635_vm2, %v15251_v35, 0 }
0x169a   : > { %11899 = vmatpush3.bf16.msra.mxu0 %v6869_v10  ;;  %v7114_v10 = vrot.slane %v15210_v62, 4 }
0x169b   : > { %11910 = vmatprep.subr.bf16.mxu0 %v17185_v28 }
0x169c   : > { %v6744_v36 = vpop.xlane.xlu0 %6743  ;;  %v15272_v14 = vpop.permute.xlu1 %1389 }
0x169d   : > { %v6748_v24 = vsub.f32 %v6732_v29, %v6744_v36  ;;  %11901 = vmatmul.mubr.msk.bf16.vlgmr.msra.gmra.mxu0 %vm1591_vm4, %v6771_v34  ;;  %v6915_v27 = vsel %vm1635_vm2, %v15272_v14, 0 }
0x169e   : > { %11911 = vmatpush3.bf16.xpose.msra.mxu0 %v15161_v1  ;;  %11912 = vmatprep.mubr.msk.bf16.mxu0 %vm13232_vm0, %v17185_v28 }
0x169f   : > { %v6755_v44 = vmul.f32 1.442695, %v6748_v24  ;;  %11922 = vmatprep.subr.bf16.mxu0 %v17185_v28 }
0x16a0   : > { %v15263_v7 = vpop.permute.xlu0 %1377 }
0x16a1   : > { %12623 = vpow2.f32 %v6755_v44  ;;  %v6823_v50 = vsel %vm1635_vm2, %v15263_v7, 0 }
0x16a2   : > { %11893 = vmatpush3.bf16.msra.mxu1 %v6823_v50 }
0x16a3   : > { %11904 = vmatprep.subr.bf16.mxu1 %v17185_v28 }
0x16a5   : > { %11913 = vmatmul.mubr.msk.bf16.vlgmr.msra.gmra.mxu0 %vm1395_vm1, %v6982_v22 }
0x16a6   : > { %v15270_v29 = vpop.eup %12621  ;;  %11923 = vmatpush3.bf16.xpose.msra.mxu0 %v15170_v5  ;;  %11924 = vmatprep.mubr.msk.bf16.mxu0 %vm13232_vm0, %v17185_v28 }
0x16a7   : > { %v6770_v57 = vpack.c.bf16 %v15270_v29, %v15270_v29  ;;  %11934 = vmatprep.subr.bf16.mxu0 %v17185_v28 }
0x16a9   : > { %11895 = vmatmul.mubr.msk.bf16.vlgmr.msra.gmra.mxu1 %vm1591_vm4, %v6770_v57 }
0x16aa   : > { %11905 = vmatpush3.bf16.msra.mxu1 %v6915_v27  ;;  %11906 = vmatprep.mubr.msk.bf16.mxu1 %vm13232_vm0, %v17185_v28 }
0x16ab   : > { %11916 = vmatprep.subr.bf16.mxu1 %v17185_v28 }
0x16ad   : > { %11925 = vmatmul.mubr.msk.bf16.vlgmr.msra.gmra.mxu0 %vm1395_vm1, %v7070_v13 }
0x16ae   : > { %v15288_v9 = vpop.eup %12623  ;;  %11935 = vmatpush3.bf16.msra.mxu0 %v13833_v61  ;;  %11936 = vmatprep.mubr.msk.bf16.mxu0 %vm13232_vm0, %v17185_v28 }
0x16af   : > { %17247 = vst [vmem:[#allocation99_spill] sm:$0xff] %v15288_v9  ;;  %v6772_v31 = vpack.c.bf16 %v15288_v9, %v15288_v9  ;;  %11946 = vmatprep.subr.bf16.mxu0 %v17185_v28 }
0x16b1   : > { %11907 = vmatmul.mubr.msk.bf16.vlgmr.msra.gmra.mxu1 %vm1591_vm4, %v6772_v31 }
0x16b2   : > { %11917 = vmatpush3.bf16.xpose.msra.mxu1 %v15194_v49  ;;  %11918 = vmatprep.mubr.msk.bf16.mxu1 %vm13232_vm0, %v17185_v28 }
0x16b3   : > { %11928 = vmatprep.subr.bf16.mxu1 %v17185_v28 }
0x16b9   : > { %11919 = vmatmul.mubr.msk.bf16.vlgmr.msra.gmra.mxu1 %vm1395_vm1, %v7026_v21 }
0x16ba   : > { %11929 = vmatpush3.bf16.xpose.msra.mxu1 %v15202_v55  ;;  %11930 = vmatprep.mubr.msk.bf16.mxu1 %vm13232_vm0, %v17185_v28 }
0x16bb   : > { %11940 = vmatprep.subr.bf16.mxu1 %v17185_v28 }
0x16c1   : > { %11931 = vmatmul.mubr.msk.bf16.vlgmr.msra.gmra.mxu1 %vm1395_vm1, %v7114_v10 }
0x16c2   : > { %11941 = vmatpush3.bf16.msra.mxu1 %v15263_v7  ;;  %11942 = vmatprep.mubr.msk.bf16.mxu1 %vm13232_vm0, %v17185_v28 }
0x16c3   : > { %11952 = vmatprep.subr.bf16.mxu1 %v17185_v28 }
0x1744   : > { %v15313_v18 = vpop.f32.mrf.mxu0 }
0x1745   : > { %17248 = vst [vmem:[#allocation100_spill] sm:$0xff] %v15313_v18 }
0x1746   : > { %v11890_v34 = vpop.f32.mrf.mxu0 }
0x1748   : > { %v6816_v36 = vpop.f32.mrf.mxu0 }
0x174a   : > { %v11891_v24 = vpop.f32.mrf.mxu0 }
0x175d   : > { %v15315_v44 = vpop.f32.mrf.mxu0 }
0x175e   : > { %17249 = vst [vmem:[#allocation101_spill] sm:$0xff] %v15315_v44 }
0x175f   : > { %v11902_v50 = vpop.f32.mrf.mxu0 }
0x1761   : > { %v6908_v22 = vpop.f32.mrf.mxu0 }
0x1763   : > { %v11903_v57 = vpop.f32.mrf.mxu0 }
0x1764   : > { %v1080_v57 = vadd.f32 %v13955_v11, %v13702_v6 }
0x1765   : > { %v7020_v62 = vpop.f32.mrf.mxu0 }
0x1766   : > { %v7158_v27 = vsel %vm13965_vm5, %v7020_v62, -1e+30 }
0x1767   : > { %v7162_v13 = vsel %vm2028_vm6, %v7158_v27, -inf  ;;  %v11914_v31 = vpop.f32.mrf.mxu0 }
0x1768   : > { %7163 = vmax.xlane.f32.xlu1 %v7162_v13  ;;  %v1076_v13 = vadd.f32 %v13851_v39, %v13702_v6 }
0x1769   : > { %v15320_v21 = vpop.f32.mrf.mxu1  ;;  %v7023_v10 = vpop.f32.mrf.mxu0 }
0x176a   : > { %17250 = vst [vmem:[#allocation102_spill] sm:$0xff] %v15320_v21  ;;  %v1201_v21 = vpack.c.bf16 %v1080_v57, %v1076_v13 }
0x176b   : > { %v11896_v18 = vpop.f32.mrf.mxu1  ;;  %v11915_v34 = vpop.f32.mrf.mxu0 }
0x176d   : > { %v6862_v36 = vpop.f32.mrf.mxu1  ;;  %v7108_v24 = vpop.f32.mrf.mxu0 }
0x176e   : > { %v7160_v11 = vsel %vm13965_vm5, %v7108_v24, -1e+30 }
0x176f   : > { %v11897_v23 = vpop.f32.mrf.mxu1  ;;  %v11926_v32 = vpop.f32.mrf.mxu0  ;;  %v7168_v6 = vsel %vm2028_vm6, %v7160_v11, -inf }
0x1771   : > { %v15322_v50 = vpop.f32.mrf.mxu1  ;;  %v7111_v22 = vpop.f32.mrf.mxu0 }
0x1772   : > { %17251 = vst [vmem:[#allocation103_spill] sm:$0xff] %v15322_v50 }
0x1773   : > { %v11908_v62 = vpop.f32.mrf.mxu1  ;;  %v11927_v44 = vpop.f32.mrf.mxu0 }
0x1775   : > { %v6954_v31 = vpop.f32.mrf.mxu1 }
0x1777   : > { %v11909_v10 = vpop.f32.mrf.mxu1 }
0x1779   : > { %1305 = vrot.lane.b32.xlu1 %v1201_v21, %s13233_s9  ;;  %v7064_v18 = vpop.f32.mrf.mxu1 }
0x177a   : > { %v7159_v23 = vsel %vm13965_vm5, %v7064_v18, -1e+30 }
0x177b   : > { %v7165_v32 = vsel %vm2028_vm6, %v7159_v23, -inf  ;;  %v11920_v34 = vpop.f32.mrf.mxu1 }
0x177c   : > { %7166 = vmax.xlane.f32.xlu0 %v7165_v32 }
0x177d   : > { %1313 = vrot.lane.b32.xlu1 %v1201_v21, %s13235_s3  ;;  %v7067_v44 = vpop.f32.mrf.mxu1 }
0x177f   : > { %v11921_v39 = vpop.f32.mrf.mxu1 }
0x1780   : > { %7169 = vmax.xlane.f32.xlu0 %v7168_v6 }
0x1781   : > { %1249 = vrot.lane.b32.xlu1 %v13855_v41, %s13233_s9  ;;  %v7152_v36 = vpop.f32.mrf.mxu1 }
0x1782   : > { %v7161_v22 = vsel %vm13965_vm5, %v7152_v36, -1e+30 }
0x1783   : > { %v7171_v57 = vsel %vm2028_vm6, %v7161_v22, -inf  ;;  %v11932_v62 = vpop.f32.mrf.mxu1 }
0x1784   : > { %7172 = vmax.xlane.f32.xlu0 %v7171_v57 }
0x1785   : > { %1253 = vrot.lane.b32.xlu1 %v13855_v41, %s13234_s15  ;;  %v7155_v24 = vpop.f32.mrf.mxu1 }
0x1787   : > { %v11933_v13 = vpop.f32.mrf.mxu1 }
0x1789   : > { %1379 = vrot.lane.b32.xlu1 %v13830_v59, %s13233_s9 }
0x179a   : > { %1309 = vrot.lane.b32.xlu0 %v1201_v21, %s13234_s15 }
0x179e   : > { %1257 = vrot.lane.b32.xlu0 %v13855_v41, %s13235_s3 }
0x17f1   : > { %v7164_v31 = vpop.xlane.xlu1 %7163 }
0x17f2   : > { %v7174_v30 = vsub.f32 %v7158_v27, %v7164_v31 }
0x17f4   : > { %v7178_v10 = vmul.f32 1.442695, %v7174_v30 }
0x17f6   : > { %12625 = vpow2.f32 %v7178_v10  ;;  %v1306_v10 = vpop.permute.xlu1 %1305 }
0x1803   : > { %v15348_v18 = vpop.eup %12625 }
0x1804   : > { %17252 = vst [vmem:[#allocation104_spill] sm:$0xff] %v15348_v18  ;;  %v7198_v32 = vpack.c.bf16 %v15348_v18, %v15348_v18 }
0x1805   : > { %v7167_v34 = vpop.xlane.xlu0 %7166 }
0x1806   : > { %v7175_v44 = vsub.f32 %v7159_v23, %v7167_v34  ;;  %11937 = vmatmul.mubr.msk.bf16.vlgmr.msra.gmra.mxu0 %vm2028_vm6, %v7198_v32  ;;  %v15383_v34 = vsel %vm1395_vm1, %v1306_v10, 0 }
0x1807   : > { %11947 = vmatpush3.bf16.msra.mxu0 %v15251_v35  ;;  %11948 = vmatprep.mubr.msk.bf16.mxu0 %vm13232_vm0, %v17185_v28 }
0x1808   : > { %v7180_v6 = vmul.f32 1.442695, %v7175_v44  ;;  %11958 = vmatprep.subr.bf16.mxu0 %v17185_v28 }
0x1809   : > { %v7170_v27 = vpop.xlane.xlu0 %7169 }
0x180a   : > { %12627 = vpow2.f32 %v7180_v6  ;;  %v7176_v39 = vsub.f32 %v7160_v11, %v7170_v27 }
0x180c   : > { %v7182_v36 = vmul.f32 1.442695, %v7176_v39 }
0x180d   : > { %v7173_v57 = vpop.xlane.xlu0 %7172 }
0x180e   : > { %12629 = vpow2.f32 %v7182_v36  ;;  %v7177_v62 = vsub.f32 %v7161_v22, %v7173_v57  ;;  %v15372_v22 = vsel %vm1395_vm1, %v1201_v21, 0  ;;  %v1314_v21 = vpop.permute.xlu1 %1313  ;;  %v7631_v57 = vsel %vm1635_vm2, %v13830_v59, 0 }
0x180f   : > { %v15406_v39 = vsel %vm1395_vm1, %v1314_v21, 0 }
0x1810   : > { %v7184_v24 = vmul.f32 1.442695, %v7177_v62 }
0x1811   : > { %v1310_v44 = vpop.permute.xlu0 %1309 }
0x1812   : > { %12631 = vpow2.f32 %v7184_v24  ;;  %v15395_v6 = vsel %vm1395_vm1, %v1310_v44, 0  ;;  %v15403_v27 = vpop.permute.xlu1 %1249 }
0x1815   : > { %v15429_v24 = vpop.permute.xlu0 %1257 }
0x1816   : > { %v15416_v36 = vpop.permute.xlu1 %1253 }
0x1817   : > { %v15357_v23 = vpop.eup %12627 }
0x1818   : > { %v7199_v13 = vpack.c.bf16 %v15357_v23, %v15357_v23 }
0x181a   : > { %11943 = vmatmul.mubr.msk.bf16.vlgmr.msra.gmra.mxu1 %vm2028_vm6, %v7199_v13  ;;  %v15424_v62 = vpop.permute.xlu1 %1379 }
0x181b   : > { %v15362_v31 = vpop.eup %12629  ;;  %11953 = vmatpush3.bf16.msra.mxu1 %v15272_v14  ;;  %11954 = vmatprep.mubr.msk.bf16.mxu1 %vm13232_vm0, %v17185_v28  ;;  %v7677_v13 = vsel %vm1635_vm2, %v15424_v62, 0 }
0x181c   : > { %v7200_v11 = vpack.c.bf16 %v15362_v31, %v15362_v31  ;;  %11966 = vmatprep.subr.bf16.mxu1 %v17185_v28 }
0x181e   : > { %11949 = vmatmul.mubr.msk.bf16.vlgmr.msra.gmra.mxu0 %vm2028_vm6, %v7200_v11 }
0x181f   : > { %v15374_v30 = vpop.eup %12631  ;;  %11959 = vmatpush3.bf16.xpose.msra.mxu0 %v15372_v22  ;;  %11962 = vmatprep.mubr.msk.bf16.mxu0 %vm13232_vm0, %v17185_v28 }
0x1820   : > { %v7201_v32 = vpack.c.bf16 %v15374_v30, %v15374_v30  ;;  %11960 = vmatprep.subr.bf16.mxu0 %v17185_v28 }
0x1822   : > { %11955 = vmatmul.mubr.msk.bf16.vlgmr.msra.gmra.mxu1 %vm2028_vm6, %v7201_v32 }
0x1823   : > { %11967 = vmatpush3.bf16.xpose.msra.mxu1 %v15383_v34  ;;  %11970 = vmatprep.mubr.msk.bf16.mxu1 %vm13232_vm0, %v17185_v28 }
0x1824   : > { %11968 = vmatprep.subr.bf16.mxu1 %v17185_v28 }
0x1827   : > { %11961 = vmatpush3.bf16.xpose.msra.mxu0 %v15161_v1 }
0x1828   : > { %11974 = vmatprep.subr.bf16.mxu0 %v17185_v28 }
0x182b   : > { %11969 = vmatpush3.bf16.xpose.msra.mxu1 %v15194_v49 }
0x182c   : > { %11982 = vmatprep.subr.bf16.mxu1 %v17185_v28 }
0x182e   : > { %11963 = vmatmul.mubr.msk.bf16.vlgmr.msra.gmra.mxu0 %vm1395_vm1, %v13855_v41 }
0x182f   : > { %11975 = vmatpush3.bf16.xpose.msra.mxu0 %v15395_v6  ;;  %11978 = vmatprep.mubr.msk.bf16.mxu0 %vm13232_vm0, %v17185_v28 }
0x1830   : > { %11976 = vmatprep.subr.bf16.mxu0 %v17185_v28 }
0x1832   : > { %11971 = vmatmul.mubr.msk.bf16.vlgmr.msra.gmra.mxu1 %vm1395_vm1, %v15403_v27 }
0x1833   : > { %11983 = vmatpush3.bf16.xpose.msra.mxu1 %v15406_v39  ;;  %11986 = vmatprep.mubr.msk.bf16.mxu1 %vm13232_vm0, %v17185_v28 }
0x1834   : > { %11984 = vmatprep.subr.bf16.mxu1 %v17185_v28 }
0x1837   : > { %11977 = vmatpush3.bf16.xpose.msra.mxu0 %v15170_v5 }
0x1838   : > { %11990 = vmatprep.subr.bf16.mxu0 %v17185_v28 }
0x183b   : > { %11985 = vmatpush3.bf16.xpose.msra.mxu1 %v15202_v55 }
0x183c   : > { %11998 = vmatprep.subr.bf16.mxu1 %v17185_v28 }
0x183e   : > { %11979 = vmatmul.mubr.msk.bf16.vlgmr.msra.gmra.mxu0 %vm1395_vm1, %v15416_v36 }
0x183f   : > { %11991 = vmatpush3.bf16.msra.mxu0 %v7631_v57  ;;  %11994 = vmatprep.mubr.msk.bf16.mxu0 %vm13232_vm0, %v17185_v28 }
0x1840   : > { %11992 = vmatprep.subr.bf16.mxu0 %v17185_v28 }
0x1842   : > { %11987 = vmatmul.mubr.msk.bf16.vlgmr.msra.gmra.mxu1 %vm1395_vm1, %v15429_v24 }
0x1843   : > { %11993 = vmatpush3.bf16.msra.mxu0 %v13833_v61  ;;  %11999 = vmatpush3.bf16.msra.mxu1 %v7677_v13 }
0x1844   : > { %12000 = vmatprep.subr.bf16.mxu1 %v17185_v28  ;;  %12006 = vmatprep.subr.bf16.mxu0 %v17185_v28 }
0x1845   : > { %12002 = vmatprep.mubr.msk.bf16.mxu1 %vm13232_vm0, %v17185_v28 }
0x1847   : > { %12001 = vmatpush3.bf16.msra.mxu1 %v15263_v7 }
0x1848   : > { %12014 = vmatprep.subr.bf16.mxu1 %v17185_v28 }
0x18c6   : > { %v15442_v11 = vpop.f32.mrf.mxu0 }
0x18c7   : > { %17253 = vst [vmem:[#allocation105_spill] sm:$0xff] %v15442_v11 }
0x18c8   : > { %v11938_v10 = vpop.f32.mrf.mxu0 }
0x18ca   : > { %v7242_v32 = vpop.f32.mrf.mxu0 }
0x18cc   : > { %v11939_v21 = vpop.f32.mrf.mxu0 }
0x18da   : > { %v15444_v44 = vpop.f32.mrf.mxu1 }
0x18db   : > { %17254 = vst [vmem:[#allocation106_spill] sm:$0xff] %v15444_v44 }
0x18dc   : > { %v11944_v57 = vpop.f32.mrf.mxu1 }
0x18de   : > { %v7285_v13 = vpop.f32.mrf.mxu1  ;;  %v15446_v18 = vpop.f32.mrf.mxu0 }
0x18e0   : > { %v11945_v50 = vpop.f32.mrf.mxu1  ;;  %v11950_v16 = vpop.f32.mrf.mxu0 }
0x18e2   : > { %v7328_v15 = vpop.f32.mrf.mxu0  ;;  %v15448_v26 = vpop.f32.mrf.mxu1 }
0x18e3   : > { %17255 = vst [vmem:[#allocation107_spill] sm:$0xff] %v15448_v26 }
0x18e4   : > { %v11951_v53 = vpop.f32.mrf.mxu0  ;;  %v11956_v20 = vpop.f32.mrf.mxu1 }
0x18e6   : > { %v7371_v63 = vpop.f32.mrf.mxu1 }
0x18e8   : > { %v11957_v47 = vpop.f32.mrf.mxu1 }
0x18ee   : > { %v7439_v9 = vpop.f32.mrf.mxu0 }
0x18ef   : > { %v7583_v10 = vsel %vm14098_vm7, %v7439_v9, -1e+30 }
0x18f0   : > { %v7587_v32 = vsel %vm2458_vm8, %v7583_v10, -inf  ;;  %v11964_v21 = vpop.f32.mrf.mxu0 }
0x18f1   : > { %7588 = vmax.xlane.f32.xlu1 %v7587_v32 }
0x18f2   : > { %v7442_v57 = vpop.f32.mrf.mxu0  ;;  %v7485_v13 = vpop.f32.mrf.mxu1 }
0x18f3   : > { %v7584_v53 = vsel %vm14098_vm7, %v7485_v13, -1e+30 }
0x18f4   : > { %v11965_v11 = vpop.f32.mrf.mxu0  ;;  %v11972_v50 = vpop.f32.mrf.mxu1 }
0x18f5   : > { %v7590_v11 = vsel %vm2458_vm8, %v7584_v53, -inf }
0x18f6   : > { %v7488_v16 = vpop.f32.mrf.mxu1 }
0x18f8   : > { %v11973_v15 = vpop.f32.mrf.mxu1 }
0x18fe   : > { %v7531_v44 = vpop.f32.mrf.mxu0 }
0x18ff   : > { %v7585_v20 = vsel %vm14098_vm7, %v7531_v44, -1e+30 }
0x1900   : > { %v7593_v47 = vsel %vm2458_vm8, %v7585_v20, -inf  ;;  %v11980_v63 = vpop.f32.mrf.mxu0 }
0x1901   : > { %7594 = vmax.xlane.f32.xlu0 %v7593_v47 }
0x1902   : > { %1391 = vrot.lane.b32.xlu1 %v13830_v59, %s13235_s3  ;;  %v7534_v9 = vpop.f32.mrf.mxu0  ;;  %v7577_v32 = vpop.f32.mrf.mxu1 }
0x1903   : > { %v7586_v50 = vsel %vm14098_vm7, %v7577_v32, -1e+30 }
0x1904   : > { %v11981_v21 = vpop.f32.mrf.mxu0  ;;  %v11988_v57 = vpop.f32.mrf.mxu1  ;;  %v7596_v16 = vsel %vm2458_vm8, %v7586_v50, -inf }
0x1905   : > { %7591 = vmax.xlane.f32.xlu0 %v7590_v11 }
0x1906   : > { %v7580_v44 = vpop.f32.mrf.mxu1 }
0x1908   : > { %v11989_v15 = vpop.f32.mrf.mxu1 }
0x1909   : > { %7597 = vmax.xlane.f32.xlu0 %v7596_v16 }
0x191f   : > { %1385 = vrot.lane.b32.xlu0 %v13830_v59, %s13234_s15 }
0x197a   : > { %v7589_v13 = vpop.xlane.xlu1 %7588 }
0x197b   : > { %v7599_v47 = vsub.f32 %v7583_v10, %v7589_v13 }
0x197d   : > { %v7603_v63 = vmul.f32 1.442695, %v7599_v47 }
0x197e   : > { %v15487_v47 = vpop.permute.xlu1 %1391 }
0x197f   : > { %12633 = vpow2.f32 %v7603_v63 }
0x198a   : > { %v7595_v9 = vpop.xlane.xlu0 %7594 }
0x198b   : > { %v7601_v26 = vsub.f32 %v7585_v20, %v7595_v9  ;;  %v7769_v9 = vsel %vm1635_vm2, %v15487_v47, 0 }
0x198c   : > { %v15466_v21 = vpop.eup %12633 }
0x198d   : > { %v7623_v40 = vpack.c.bf16 %v15466_v21, %v15466_v21  ;;  %v7607_v32 = vmul.f32 1.442695, %v7601_v26 }
0x198e   : > { %v7592_v11 = vpop.xlane.xlu0 %7591 }
0x198f   : > { %12635 = vpow2.f32 %v7607_v32  ;;  %v7600_v57 = vsub.f32 %v7584_v53, %v7592_v11  ;;  %11995 = vmatmul.mubr.msk.bf16.vlgmr.msra.gmra.mxu0 %vm2458_vm8, %v7623_v40  ;;  %v7836_v32 = vrot.slane %v13855_v41, 4  ;;  %v7924_v41 = vrot.slane %v15416_v36, 4 }
0x1990   : > { %12010 = vmatprep.mubr.msk.bf16.mxu0 %vm13232_vm0, %v17185_v28 }
0x1991   : > { %v7605_v44 = vmul.f32 1.442695, %v7600_v57 }
0x1992   : > { %v7598_v10 = vpop.xlane.xlu0 %7597 }
0x1993   : > { %12637 = vpow2.f32 %v7605_v44  ;;  %v7602_v16 = vsub.f32 %v7586_v50, %v7598_v10 }
0x1995   : > { %v7609_v15 = vmul.f32 1.442695, %v7602_v16 }
0x1996   : > { %v15473_v20 = vpop.permute.xlu0 %1385 }
0x1997   : > { %v7723_v13 = vsel %vm1635_vm2, %v15473_v20, 0  ;;  %12639 = vpow2.f32 %v7609_v15 }
0x1998   : > { %12007 = vmatpush3.bf16.msra.mxu0 %v7723_v13 }
0x1999   : > { %12008 = vmatprep.subr.bf16.mxu0 %v17185_v28 }
0x199c   : > { %v15478_v26 = vpop.eup %12635  ;;  %12009 = vmatpush3.bf16.msra.mxu0 %v15251_v35 }
0x199d   : > { %v7625_v53 = vpack.c.bf16 %v15478_v26, %v15478_v26  ;;  %12022 = vmatprep.subr.bf16.mxu0 %v17185_v28 }
0x199f   : > { %12011 = vmatmul.mubr.msk.bf16.vlgmr.msra.gmra.mxu0 %vm2458_vm8, %v7625_v53 }
0x19a0   : > { %v15485_v50 = vpop.eup %12637  ;;  %12023 = vmatpush3.bf16.xpose.msra.mxu0 %v15372_v22  ;;  %12026 = vmatprep.mubr.msk.bf16.mxu0 %vm13232_vm0, %v17185_v28 }
0x19a1   : > { %v7624_v63 = vpack.c.bf16 %v15485_v50, %v15485_v50  ;;  %12024 = vmatprep.subr.bf16.mxu0 %v17185_v28 }
0x19a3   : > { %12003 = vmatmul.mubr.msk.bf16.vlgmr.msra.gmra.mxu1 %vm2458_vm8, %v7624_v63 }
0x19a4   : > { %12015 = vmatpush3.bf16.msra.mxu1 %v7769_v9  ;;  %12018 = vmatprep.mubr.msk.bf16.mxu1 %vm13232_vm0, %v17185_v28  ;;  %v15501_v22 = vpop.eup %12639 }
0x19a5   : > { %12016 = vmatprep.subr.bf16.mxu1 %v17185_v28  ;;  %v7626_v40 = vpack.c.bf16 %v15501_v22, %v15501_v22 }
0x19a8   : > { %12017 = vmatpush3.bf16.msra.mxu1 %v15272_v14  ;;  %12025 = vmatpush3.bf16.xpose.msra.mxu0 %v15161_v1  ;;  %v7880_v1 = vrot.slane %v15403_v27, 4 }
0x19a9   : > { %12030 = vmatprep.subr.bf16.mxu1 %v17185_v28  ;;  %12038 = vmatprep.subr.bf16.mxu0 %v17185_v28 }
0x19ab   : > { %12019 = vmatmul.mubr.msk.bf16.vlgmr.msra.gmra.mxu1 %vm2458_vm8, %v7626_v40  ;;  %v17256_v40 = vld [vmem:[#allocation31_spill] sm:$0xff] }
0x19ac   : > { %12031 = vmatpush3.bf16.xpose.msra.mxu1 %v15383_v34  ;;  %12034 = vmatprep.mubr.msk.bf16.mxu1 %vm13232_vm0, %v17185_v28 }
0x19ad   : > { %12032 = vmatprep.subr.bf16.mxu1 %v17185_v28 }
0x19af   : > { %12027 = vmatmul.mubr.msk.bf16.vlgmr.msra.gmra.mxu0 %vm1395_vm1, %v7836_v32  ;;  %v2056_v32 = vsel %vm2028_vm6, %v17256_v40, 0.0 }
0x19b0   : > { %12039 = vmatpush3.bf16.xpose.msra.mxu0 %v15395_v6  ;;  %12042 = vmatprep.mubr.msk.bf16.mxu0 %vm13232_vm0, %v17185_v28 }
0x19b1   : > { %12040 = vmatprep.subr.bf16.mxu0 %v17185_v28 }
0x19b4   : > { %12033 = vmatpush3.bf16.xpose.msra.mxu1 %v15194_v49 }
0x19b5   : > { %12046 = vmatprep.subr.bf16.mxu1 %v17185_v28 }
0x19b8   : > { %12041 = vmatpush3.bf16.xpose.msra.mxu0 %v15170_v5  ;;  %v7968_v5 = vrot.slane %v15429_v24, 4 }
0x19b9   : > { %12054 = vmatprep.subr.bf16.mxu0 %v17185_v28 }
0x19bb   : > { %12035 = vmatmul.mubr.msk.bf16.vlgmr.msra.gmra.mxu1 %vm1395_vm1, %v7880_v1  ;;  %v17257_v1 = vld [vmem:[#allocation34_spill] sm:$0xff] }
0x19bc   : > { %12047 = vmatpush3.bf16.xpose.msra.mxu1 %v15406_v39  ;;  %12050 = vmatprep.mubr.msk.bf16.mxu1 %vm13232_vm0, %v17185_v28 }
0x19bd   : > { %12048 = vmatprep.subr.bf16.mxu1 %v17185_v28 }
0x19bf   : > { %12043 = vmatmul.mubr.msk.bf16.vlgmr.msra.gmra.mxu0 %vm1395_vm1, %v7924_v41  ;;  %v2059_v41 = vsel %vm2028_vm6, %v17257_v1, 0.0  ;;  %v3773_v1 = vsel %vm2028_vm6, %v14465_v38, 0.0 }
0x19c0   : > { %12055 = vmatpush3.bf16.msra.mxu0 %v13830_v59  ;;  %12058 = vmatprep.mubr.msk.bf16.mxu0 %vm13232_vm0, %v17185_v28 }
0x19c1   : > { %12056 = vmatprep.subr.bf16.mxu0 %v17185_v28 }
0x19c4   : > { %12049 = vmatpush3.bf16.xpose.msra.mxu1 %v15202_v55  ;;  %12057 = vmatpush3.bf16.msra.mxu0 %v13833_v61 }
0x19c5   : > { %12062 = vmatprep.subr.bf16.mxu1 %v17185_v28  ;;  %12070 = vmatprep.subr.bf16.mxu0 %v17185_v28 }
0x19cb   : > { %12051 = vmatmul.mubr.msk.bf16.vlgmr.msra.gmra.mxu1 %vm1395_vm1, %v7968_v5 }
0x19cc   : > { %12063 = vmatpush3.bf16.msra.mxu1 %v15424_v62  ;;  %12066 = vmatprep.mubr.msk.bf16.mxu1 %vm13232_vm0, %v17185_v28 }
0x19cd   : > { %12064 = vmatprep.subr.bf16.mxu1 %v17185_v28 }
0x19d0   : > { %12065 = vmatpush3.bf16.msra.mxu1 %v15263_v7 }
0x19d1   : > { %12078 = vmatprep.subr.bf16.mxu1 %v17185_v28 }
0x1a4f   : > { %v15548_v59 = vpop.f32.mrf.mxu0 }
0x1a51   : > { %v11996_v61 = vpop.f32.mrf.mxu0 }
0x1a53   : > { %v7670_v49 = vpop.f32.mrf.mxu0 }
0x1a54   : > { %v2919_v49 = vsel %vm1395_vm1, %v14254_v60, 0.0 }
0x1a55   : > { %v11997_v55 = vpop.f32.mrf.mxu0 }
0x1a5f   : > { %v15550_v34 = vpop.f32.mrf.mxu0 }
0x1a61   : > { %v12012_v6 = vpop.f32.mrf.mxu0 }
0x1a63   : > { %v15552_v27 = vpop.f32.mrf.mxu1  ;;  %v7762_v39 = vpop.f32.mrf.mxu0 }
0x1a65   : > { %v12004_v36 = vpop.f32.mrf.mxu1  ;;  %v12013_v62 = vpop.f32.mrf.mxu0 }
0x1a67   : > { %v7716_v24 = vpop.f32.mrf.mxu1 }
0x1a69   : > { %v12005_v11 = vpop.f32.mrf.mxu1 }
0x1a6a   : > { %v17258_v11 = vld [vmem:[#allocation32_spill] sm:$0xff] }
0x1a6b   : > { %v15554_v57 = vpop.f32.mrf.mxu1 }
0x1a6d   : > { %v12020_v7 = vpop.f32.mrf.mxu1 }
0x1a6e   : > { %v2062_v7 = vsel %vm2028_vm6, %v17258_v11, 0.0 }
0x1a6f   : > { %v7808_v44 = vpop.f32.mrf.mxu1  ;;  %v7874_v10 = vpop.f32.mrf.mxu0 }
0x1a70   : > { %v15558_v16 = vsel %vm14214_vm9, %v7874_v10, -1e+30 }
0x1a71   : > { %v8016_v15 = vsel %vm1395_vm1, %v15558_v16, -inf  ;;  %v12021_v13 = vpop.f32.mrf.mxu1  ;;  %v12028_v53 = vpop.f32.mrf.mxu0 }
0x1a72   : > { %8017 = vmax.xlane.f32.xlu1 %v8016_v15  ;;  %v2922_v13 = vsel %vm1395_vm1, %v14259_v33, 0.0  ;;  %v2925_v53 = vsel %vm1395_vm1, %v14295_v3, 0.0  ;;  %v3776_v3 = vsel %vm2028_vm6, %v14470_v43, 0.0  ;;  %v17263_v43 = vld [vmem:[#allocation41_spill] sm:$0xff] }
0x1a73   : > { %v7877_v63 = vpop.f32.mrf.mxu0  ;;  %v2492_v11 = vsel %vm2458_vm8, %v17263_v43, 0.0  ;;  %v7620_v43 = vsel %vm2458_vm8, %v15501_v22, 0.0 }
0x1a74   : > { %v17259_v63 = vld [vmem:[#allocation24_spill] sm:$0xff] }
0x1a75   : > { %v12029_v9 = vpop.f32.mrf.mxu0 }
0x1a76   : > { %2057 = vadd.xlane.f32.xlu1 %v2056_v32  ;;  %v1619_v9 = vsel %vm1591_vm4, %v17259_v63, 0.0 }
0x1a7a   : > { %2060 = vadd.xlane.f32.xlu1 %v2059_v41  ;;  %v17260_v41 = vld [vmem:[#allocation26_spill] sm:$0xff] }
0x1a7b   : > { %v7918_v5 = vpop.f32.mrf.mxu1 }
0x1a7c   : > { %v15578_v44 = vsel %vm14214_vm9, %v7918_v5, -1e+30  ;;  %v1622_v5 = vsel %vm1591_vm4, %v17260_v41, 0.0  ;;  %v6341_v41 = vsel %vm1395_vm1, %v15187_v51, 0.0  ;;  %v5909_v51 = vsel %vm2458_vm8, %v15032_v19, 0.0 }
0x1a7d   : > { %v12036_v61 = vpop.f32.mrf.mxu1  ;;  %v8019_v10 = vsel %vm1395_vm1, %v15578_v44, -inf  ;;  %v6763_v19 = vsel %vm1591_vm4, %v15249_v46, 0.0  ;;  %v7617_v46 = vsel %vm2458_vm8, %v15478_v26, 0.0 }
0x1a7e   : > { %2920 = vadd.xlane.f32.xlu1 %v2919_v49  ;;  %v2486_v49 = vsel %vm2458_vm8, %v14141_v12, 0.0  ;;  %v4630_v12 = vsel %vm1395_vm1, %v14705_v52, 0.0  ;;  %v5484_v52 = vsel %vm2028_vm6, %v14916_v4, 0.0 }
0x1a7f   : > { %v7921_v55 = vpop.f32.mrf.mxu1  ;;  %v7962_v6 = vpop.f32.mrf.mxu0 }
0x1a80   : > { %v15570_v39 = vsel %vm14214_vm9, %v7962_v6, -1e+30  ;;  %v4627_v55 = vsel %vm1395_vm1, %v14700_v25, 0.0  ;;  %v17261_v6 = vld [vmem:[#allocation25_spill] sm:$0xff]  ;;  %v4633_v25 = vsel %vm1395_vm1, %v14741_v45, 0.0  ;;  %v6335_v45 = vsel %vm1395_vm1, %v15146_v42, 0.0 }
0x1a81   : > { %v8022_v36 = vsel %vm1395_vm1, %v15570_v39, -inf  ;;  %v12037_v62 = vpop.f32.mrf.mxu1  ;;  %v12044_v24 = vpop.f32.mrf.mxu0  ;;  %v1625_v38 = vsel %vm1591_vm4, %v17261_v6, 0.0  ;;  %v17267_v42 = vld [vmem:[#allocation65_spill] sm:$0xff]  ;;  %v17272_v6 = vld [vmem:[#allocation46_spill] sm:$0xff] }
0x1a82   : > { %2063 = vadd.xlane.f32.xlu1 %v2062_v7  ;;  %8023 = vmax.xlane.f32.xlu0 %v8022_v36  ;;  %v3779_v36 = vsel %vm2028_vm6, %v14482_v37, 0.0  ;;  %v17262_v62 = vld [vmem:[#allocation40_spill] sm:$0xff]  ;;  %v17264_v7 = vld [vmem:[#allocation53_spill] sm:$0xff]  ;;  %v5481_v37 = vsel %vm2028_vm6, %v14911_v0, 0.0  ;;  %v5487_v0 = vsel %vm2028_vm6, %v14928_v17, 0.0 }
0x1a83   : > { %v7965_v60 = vpop.f32.mrf.mxu0  ;;  %v2489_v24 = vsel %vm2458_vm8, %v17262_v62, 0.0  ;;  %v17274_v62 = vld [vmem:[#allocation70_spill] sm:$0xff] }
0x1a84   : > { %v3344_v60 = vsel %vm1591_vm4, %v17264_v7, 0.0 }
0x1a85   : > { %v12045_v15 = vpop.f32.mrf.mxu0 }
0x1a86   : > { %2923 = vadd.xlane.f32.xlu1 %v2922_v13  ;;  %8020 = vmax.xlane.f32.xlu0 %v8019_v10  ;;  %v17265_v10 = vld [vmem:[#allocation52_spill] sm:$0xff]  ;;  %v4198_v13 = vsel %vm2458_vm8, %v14593_v48, 0.0 }
0x1a87   : > { %v3347_v15 = vsel %vm1591_vm4, %v17265_v10, 0.0  ;;  %v17279_v10 = vld [vmem:[#allocation64_spill] sm:$0xff] }
0x1a88   : > { %v4195_v26 = vsel %vm2458_vm8, %v17279_v10, 0.0  ;;  %v17284_v10 = vld [vmem:[#allocation44_spill] sm:$0xff] }
0x1a8a   : > { %2926 = vadd.xlane.f32.xlu1 %v2925_v53  ;;  %1620 = vadd.xlane.f32.xlu0 %v1619_v9  ;;  %v17266_v53 = vld [vmem:[#allocation54_spill] sm:$0xff]  ;;  %v4201_v9 = vsel %vm2458_vm8, %v14586_v54, 0.0  ;;  %v6338_v54 = vsel %vm1395_vm1, %v15151_v56, 0.0 }
0x1a8b   : > { %v8006_v40 = vpop.f32.mrf.mxu1  ;;  %v3350_v63 = vsel %vm1591_vm4, %v17266_v53, 0.0 }
0x1a8c   : > { %v15630_v4 = vsel %vm14214_vm9, %v8006_v40, -1e+30  ;;  %v5055_v40 = vsel %vm1591_vm4, %v17269_v2, 0.0 }
0x1a8d   : > { %v12052_v32 = vpop.f32.mrf.mxu1  ;;  %v8025_v48 = vsel %vm1395_vm1, %v15630_v4, -inf }
0x1a8e   : > { %3774 = vadd.xlane.f32.xlu1 %v3773_v1  ;;  %1623 = vadd.xlane.f32.xlu0 %v1622_v5  ;;  %v4204_v32 = vsel %vm2458_vm8, %v17267_v42, 0.0  ;;  %v17268_v1 = vld [vmem:[#allocation77_spill] sm:$0xff]  ;;  %v5906_v5 = vsel %vm2458_vm8, %v15039_v8, 0.0  ;;  %v5912_v8 = vsel %vm2458_vm8, %v15055_v58, 0.0  ;;  %v7614_v58 = vsel %vm2458_vm8, %v15485_v50, 0.0 }
0x1a8f   : > { %v8009_v33 = vpop.f32.mrf.mxu1  ;;  %v5052_v17 = vsel %vm1591_vm4, %v17268_v1, 0.0 }
0x1a90   : > { %v7189_v33 = vsel %vm2028_vm6, %v15357_v23, 0.0  ;;  %v17271_v23 = vld [vmem:[#allocation33_spill] sm:$0xff] }
0x1a91   : > { %v12053_v61 = vpop.f32.mrf.mxu1 }
0x1a92   : > { %3777 = vadd.xlane.f32.xlu1 %v3776_v3  ;;  %2487 = vadd.xlane.f32.xlu0 %v2486_v49  ;;  %v17270_v61 = vld [vmem:[#allocation78_spill] sm:$0xff]  ;;  %v7192_v3 = vsel %vm2028_vm6, %v15362_v31, 0.0  ;;  %v7195_v49 = vsel %vm2028_vm6, %v15374_v30, 0.0  ;;  %v6760_v31 = vsel %vm1591_vm4, %v15270_v29, 0.0  ;;  %v17273_v30 = vld [vmem:[#allocation59_spill] sm:$0xff] }
0x1a93   : > { %v5058_v56 = vsel %vm1591_vm4, %v17270_v61, 0.0  ;;  %v17275_v29 = vld [vmem:[#allocation99_spill] sm:$0xff] }
0x1a96   : > { %4628 = vadd.xlane.f32.xlu1 %v4627_v55  ;;  %1626 = vadd.xlane.f32.xlu0 %v1625_v38  ;;  %v2053_v55 = vsel %vm2028_vm6, %v17271_v23, 0.0  ;;  %v2916_v38 = vsel %vm1395_vm1, %v17272_v6, 0.0  ;;  %v12395_v6 = vld [vmem:[#allocation11 + $0x28] sm:$0xff]  }
0x1a9a   : > { %3780 = vadd.xlane.f32.xlu1 %v3779_v36  ;;  %2490 = vadd.xlane.f32.xlu0 %v2489_v24  ;;  %v3770_v36 = vsel %vm2028_vm6, %v17273_v30, 0.0  ;;  %v4624_v24 = vsel %vm1395_vm1, %v17274_v62, 0.0 }
0x1a9e   : > { %4631 = vadd.xlane.f32.xlu1 %v4630_v12  ;;  %2493 = vadd.xlane.f32.xlu0 %v2492_v11  ;;  %v6766_v12 = vsel %vm1591_vm4, %v17275_v29, 0.0  ;;  %v17276_v11 = vld [vmem:[#allocation23_spill] sm:$0xff] }
0x1a9f   : > { %v1616_v50 = vsel %vm1591_vm4, %v17276_v11, 0.0  ;;  %v17283_v11 = vld [vmem:[#allocation38_spill] sm:$0xff] }
0x1aa2   : > { %4634 = vadd.xlane.f32.xlu1 %v4633_v25  ;;  %3345 = vadd.xlane.f32.xlu0 %v3344_v60  ;;  %v17277_v25 = vld [vmem:[#allocation39_spill] sm:$0xff] }
0x1aa3   : > { %v2483_v7 = vsel %vm2458_vm8, %v17277_v25, 0.0  ;;  %v17278_v60 = vld [vmem:[#allocation51_spill] sm:$0xff]  ;;  %v12396_v25 = vld [vmem:[#allocation11 + $0x20] sm:$0xff]  }
0x1aa6   : > { %5482 = vadd.xlane.f32.xlu1 %v5481_v37  ;;  %3348 = vadd.xlane.f32.xlu0 %v3347_v15  ;;  %v3341_v37 = vsel %vm1591_vm4, %v17278_v60, 0.0 }
0x1aaa   : > { %5485 = vadd.xlane.f32.xlu1 %v5484_v52  ;;  %4199 = vadd.xlane.f32.xlu0 %v4198_v13 }
0x1aae   : > { %6336 = vadd.xlane.f32.xlu1 %v6335_v45  ;;  %3351 = vadd.xlane.f32.xlu0 %v3350_v63 }
0x1ab2   : > { %5488 = vadd.xlane.f32.xlu1 %v5487_v0  ;;  %4202 = vadd.xlane.f32.xlu0 %v4201_v9 }
0x1ab6   : > { %4205 = vadd.xlane.f32.xlu0 %v4204_v32  ;;  %8026 = vmax.xlane.f32.xlu1 %v8025_v48 }
0x1aba   : > { %5053 = vadd.xlane.f32.xlu0 %v5052_v17  ;;  %6339 = vadd.xlane.f32.xlu1 %v6338_v54 }
0x1abe   : > { %5056 = vadd.xlane.f32.xlu0 %v5055_v40  ;;  %6342 = vadd.xlane.f32.xlu1 %v6341_v41 }
0x1ac2   : > { %5907 = vadd.xlane.f32.xlu0 %v5906_v5  ;;  %7190 = vadd.xlane.f32.xlu1 %v7189_v33  ;;  %v12393_v5 = vld [vmem:[#allocation11 + $0x38] sm:$0xff]  }
0x1ac6   : > { %5059 = vadd.xlane.f32.xlu0 %v5058_v56  ;;  %7193 = vadd.xlane.f32.xlu1 %v7192_v3  ;;  %v12394_v3 = vld [vmem:[#allocation11 + $0x30] sm:$0xff]  }
0x1aca   : > { %5910 = vadd.xlane.f32.xlu0 %v5909_v51  ;;  %7196 = vadd.xlane.f32.xlu1 %v7195_v49 }
0x1ace   : > { %5913 = vadd.xlane.f32.xlu0 %v5912_v8  ;;  %2054 = vadd.xlane.f32.xlu1 %v2053_v55 }
0x1ad2   : > { %6761 = vadd.xlane.f32.xlu0 %v6760_v31  ;;  %2917 = vadd.xlane.f32.xlu1 %v2916_v38 }
0x1ad6   : > { %6764 = vadd.xlane.f32.xlu0 %v6763_v19  ;;  %3771 = vadd.xlane.f32.xlu1 %v3770_v36  ;;  %v17280_v19 = vld [vmem:[#allocation28_spill] sm:$0xff]  ;;  %v17281_v36 = vld [vmem:[#allocation35_spill] sm:$0xff] }
0x1ada   : > { %7615 = vadd.xlane.f32.xlu0 %v7614_v58  ;;  %4625 = vadd.xlane.f32.xlu1 %v4624_v24 }
0x1ade   : > { %6767 = vadd.xlane.f32.xlu0 %v6766_v12 }
0x1ae2   : > { %7618 = vadd.xlane.f32.xlu0 %v7617_v46  ;;  %v17282_v46 = vld [vmem:[#allocation30_spill] sm:$0xff] }
0x1ae6   : > { %7621 = vadd.xlane.f32.xlu0 %v7620_v43 }
0x1aea   : > { %1617 = vadd.xlane.f32.xlu0 %v1616_v50 }
0x1aee   : > { %2484 = vadd.xlane.f32.xlu0 %v2483_v7 }
0x1af2   : > { %3342 = vadd.xlane.f32.xlu0 %v3341_v37 }
0x1af6   : > { %4196 = vadd.xlane.f32.xlu0 %v4195_v26 }
0x1afb   : > { %v8018_v15 = vpop.xlane.xlu1 %8017 }
0x1afc   : > { %v8028_v22 = vsub.f32 %v15558_v16, %v8018_v15  ;;  %v17285_v15 = vld [vmem:[#allocation48_spill] sm:$0xff] }
0x1afe   : > { %v8032_v52 = vmul.f32 1.442695, %v8028_v22 }
0x1aff   : > { %v2058_v13 = vpop.xlane.xlu1 %2057 }
0x1b00   : > { %12641 = vpow2.f32 %v8032_v52  ;;  %v12397_v52 = vld [vmem:[#allocation11 + $0x18] sm:$0xff]  }
0x1b03   : > { %v2061_v45 = vpop.xlane.xlu1 %2060 }
0x1b07   : > { %v2921_v53 = vpop.xlane.xlu1 %2920 }
0x1b0b   : > { %v2064_v63 = vpop.xlane.xlu1 %2063  ;;  %v8024_v0 = vpop.xlane.xlu0 %8023 }
0x1b0c   : > { %v8030_v9 = vsub.f32 %v15570_v39, %v8024_v0  ;;  %v17286_v0 = vld [vmem:[#allocation29_spill] sm:$0xff] }
0x1b0d   : > { %v15688_v48 = vpop.eup %12641 }
0x1b0e   : > { %v8052_v42 = vpack.c.bf16 %v15688_v48, %v15688_v48  ;;  %v8036_v32 = vmul.f32 1.442695, %v8030_v9 }
0x1b0f   : > { %v2924_v1 = vpop.xlane.xlu1 %2923  ;;  %v8021_v17 = vpop.xlane.xlu0 %8020 }
0x1b10   : > { %12643 = vpow2.f32 %v8036_v32  ;;  %v8029_v16 = vsub.f32 %v15578_v44, %v8021_v17  ;;  %12059 = vmatmul.mubr.msk.bf16.vlgmr.msra.gmra.mxu0 %vm1395_vm1, %v8052_v42  ;;  %v17287_v42 = vld [vmem:[#allocation36_spill] sm:$0xff] }
0x1b11   : > { %12071 = vmatpush3.bf16.msra.mxu0 %v15473_v20  ;;  %12074 = vmatprep.mubr.msk.bf16.mxu0 %vm13232_vm0, %v17185_v28  ;;  %12645 = vrcp.f32 %v2058_v13 }
0x1b12   : > { %v8034_v54 = vmul.f32 1.442695, %v8029_v16  ;;  %12072 = vmatprep.subr.bf16.mxu0 %v17185_v28 }
0x1b13   : > { %v2927_v39 = vpop.xlane.xlu1 %2926  ;;  %v1621_v2 = vpop.xlane.xlu0 %1620 }
0x1b14   : > { %12647 = vpow2.f32 %v8034_v54 }
0x1b15   : > { %12073 = vmatpush3.bf16.msra.mxu0 %v15251_v35  ;;  %12649 = vrcp.f32 %v1621_v2 }
0x1b16   : > { %12651 = vrcp.f32 %v2061_v45  ;;  %12086 = vmatprep.subr.bf16.mxu0 %v12393_v5 }
0x1b17   : > { %v15699_v40 = vpop.xlane.xlu1 %3774  ;;  %v1624_v44 = vpop.xlane.xlu0 %1623 }
0x1b18   : > { %12653 = vrcp.f32 %v1624_v44  ;;  %v17288_v44 = vld [vmem:[#allocation43_spill] sm:$0xff] }
0x1b19   : > { %12655 = vrcp.f32 %v2921_v53 }
0x1b1b   : > { %v15701_v20 = vpop.xlane.xlu1 %3777  ;;  %v2488_v41 = vpop.xlane.xlu0 %2487 }
0x1b1c   : > { %12657 = vrcp.f32 %v2488_v41 }
0x1b1d   : > { %v15703_v33 = vpop.eup %12643  ;;  %12659 = vrcp.f32 %v2064_v63 }
0x1b1e   : > { %v8054_v61 = vpack.c.bf16 %v15703_v33, %v15703_v33  ;;  %v12646_v51 = vpop.eup %12645 }
0x1b1f   : > { %v15707_v35 = vpop.xlane.xlu1 %4628  ;;  %v1627_v56 = vpop.xlane.xlu0 %1626  ;;  %v2246_v58 = vmul.f32 %v12646_v51, %v17281_v36  ;;  %v12401_v36 = vld [vmem:[#allocation11] sm:$0xff]  }
0x1b20   : > { %12075 = vmatmul.mubr.msk.bf16.vlgmr.msra.gmra.mxu0 %vm1395_vm1, %v8054_v61  ;;  %12661 = vrcp.f32 %v1627_v56  ;;  %v12399_v56 = vld [vmem:[#allocation11 + $0x8] sm:$0xff]  }
0x1b21   : > { %v15710_v49 = vpop.eup %12647  ;;  %12087 = vmatpush3.bf16.msra.mxu0 %v12393_v5  ;;  %12663 = vrcp.f32 %v2924_v1  ;;  %v12398_v1 = vld [vmem:[#allocation11 + $0x10] sm:$0xff]   ;;  %v17289_v5 = vld [vmem:[#allocation49_spill] sm:$0xff] }
0x1b22   : > { %v8053_v8 = vpack.c.bf16 %v15710_v49, %v15710_v49  ;;  %12088 = vmatprep.subr.bf16.mxu0 %v12394_v3  ;;  %v12650_v23 = vpop.eup %12649 }
0x1b23   : > { %v15714_v55 = vpop.xlane.xlu1 %3780  ;;  %v2491_v31 = vpop.xlane.xlu0 %2490  ;;  %v1822_v30 = vmul.f32 %v12650_v23, %v17280_v19  ;;  %v17291_v19 = vld [vmem:[#allocation50_spill] sm:$0xff] }
0x1b24   : > { %v12652_v38 = vpop.eup %12651  ;;  %12067 = vmatmul.mubr.msk.bf16.vlgmr.msra.gmra.mxu1 %vm1395_vm1, %v8053_v8  ;;  %12665 = vrcp.f32 %v2491_v31 }
0x1b25   : > { %12079 = vmatpush3.bf16.msra.mxu1 %v15487_v47  ;;  %12082 = vmatprep.mubr.msk.bf16.mxu1 %vm13232_vm0, %v17185_v28  ;;  %v12654_v62 = vpop.eup %12653  ;;  %v12241_v24 = vpack.i.bf16 %v2246_v58, %v1822_v30  ;;  %12667 = vrcp.f32 %v2927_v39  ;;  %v2247_v50 = vmul.f32 %v12652_v38, %v17283_v11 }
0x1b26   : > { %12080 = vmatprep.subr.bf16.mxu1 %v17185_v28  ;;  %12089 = vmatpush3.bf16.msra.mxu0 %v12394_v3  ;;  %v1823_v43 = vmul.f32 %v12654_v62, %v17282_v46  ;;  %v12656_v7 = vpop.eup %12655 }
0x1b27   : > { %v15723_v29 = vpop.xlane.xlu1 %4631  ;;  %v2494_v12 = vpop.xlane.xlu0 %2493  ;;  %12090 = vmatprep.subr.bf16.mxu0 %v12395_v6  ;;  %12242 = vrot.lane.b32.xlu0 %v12241_v24, %s13235_s3  ;;  %v3109_v22 = vmul.f32 %v12656_v7, %v17285_v15 }
0x1b28   : > { %12669 = vrcp.f32 %v2494_v12  ;;  %v12246_v47 = vpack.i.bf16 %v2247_v50, %v1823_v43 }
0x1b29   : > { %12081 = vmatpush3.bf16.msra.mxu1 %v15272_v14  ;;  %v12658_v60 = vpop.eup %12657 }
0x1b2a   : > { %12091 = vmatpush3.bf16.msra.mxu0 %v12395_v6  ;;  %12247 = vrot.lane.b32.xlu1 %v12246_v47, %s13234_s15  ;;  %v2688_v26 = vmul.f32 %v12658_v60, %v17284_v10  ;;  %v12660_v13 = vpop.eup %12659  ;;  %v17290_v6 = vld [vmem:[#allocation45_spill] sm:$0xff] }
0x1b2b   : > { %v15730_v28 = vpop.xlane.xlu1 %4634  ;;  %v15732_v37 = vpop.xlane.xlu0 %3345  ;;  %12092 = vmatprep.subr.bf16.mxu0 %v12396_v25  ;;  %v2248_v32 = vmul.f32 %v12660_v13, %v17287_v42 }
0x1b2c   : > { %v12251_v45 = vpack.i.bf16 %v3109_v22, %v2688_v26 }
0x1b2d   : > { %v12662_v53 = vpop.eup %12661 }
0x1b2e   : > { %12093 = vmatpush3.bf16.msra.mxu0 %v12396_v25  ;;  %12252 = vrot.lane.b32.xlu1 %v12251_v45, %s13235_s3  ;;  %v1824_v9 = vmul.f32 %v12662_v53, %v17286_v0  ;;  %v12664_v17 = vpop.eup %12663  ;;  %v17292_v45 = vld [vmem:[#allocation75_spill] sm:$0xff]  ;;  %v17293_v0 = vmov 0  }
0x1b2f   : > { %v15737_v14 = vpop.xlane.xlu1 %5482  ;;  %v15739_v63 = vpop.xlane.xlu0 %3348  ;;  %12094 = vmatprep.subr.bf16.mxu0 %v12397_v52  ;;  %v3110_v61 = vmul.f32 %v12664_v17, %v17289_v5  ;;  %v5049_v53 = vsel %vm1591_vm4, %v17292_v45, 0.0  ;;  %v17297_v5 = vld [vmem:[#allocation91_spill] sm:$0xff] }
0x1b30   : > { %v12256_v16 = vpack.i.bf16 %v2248_v32, %v1824_v9  ;;  %v17294_v9 = vld [vmem:[#allocation80_spill] sm:$0xff]  ;;  %v17295_v32 = vld [vmem:[#allocation86_spill] sm:$0xff] }
0x1b31   : > { %v12666_v54 = vpop.eup %12665 }
0x1b32   : > { %12095 = vmatpush3.bf16.msra.mxu0 %v12397_v52  ;;  %12257 = vrot.lane.b32.xlu1 %v12256_v16, %s13233_s9  ;;  %v2689_v41 = vmul.f32 %v12666_v54, %v17288_v44  ;;  %v12668_v3 = vpop.eup %12667  ;;  %v17296_v44 = vld [vmem:[#allocation88_spill] sm:$0xff] }
0x1b33   : > { %v5486_v39 = vpop.xlane.xlu1 %5485  ;;  %v15744_v2 = vpop.xlane.xlu0 %4199  ;;  %12096 = vmatprep.subr.bf16.mxu0 %v12398_v1  ;;  %v3111_v30 = vmul.f32 %v12668_v3, %v17291_v19  ;;  %v17300_v19 = vld [vmem:[#allocation83_spill] sm:$0xff] }
0x1b34   : > { %v12261_v51 = vpack.i.bf16 %v3110_v61, %v2689_v41  ;;  %v5903_v41 = vsel %vm2458_vm8, %v17296_v44, 0.0  ;;  %v17307_v44 = vld [vmem:[#allocation57_spill] sm:$0xff] }
0x1b35   : > { %v12670_v8 = vpop.eup %12669 }
0x1b36   : > { %12097 = vmatpush3.bf16.msra.mxu0 %v12398_v1  ;;  %12262 = vrot.lane.b32.xlu0 %v12261_v51, %s13234_s15  ;;  %v2690_v38 = vmul.f32 %v12670_v8, %v17290_v6 }
0x1b37   : > { %v6337_v23 = vpop.xlane.xlu1 %6336  ;;  %v15749_v31 = vpop.xlane.xlu0 %3351  ;;  %12098 = vmatprep.subr.bf16.mxu0 %v12399_v56 }
0x1b38   : > { %v12266_v58 = vpack.i.bf16 %v3111_v30, %v2690_v38  ;;  %v5478_v30 = vsel %vm2028_vm6, %v17300_v19, 0.0 }
0x1b3a   : > { %12099 = vmatpush3.bf16.msra.mxu0 %v12399_v56  ;;  %12267 = vrot.lane.b32.xlu1 %v12266_v58, %s13233_s9  ;;  %v17298_v56 = vld [vmem:[#allocation95_spill] sm:$0xff] }
0x1b3b   : > { %v5489_v62 = vpop.xlane.xlu1 %5488  ;;  %v15754_v24 = vpop.xlane.xlu0 %4202  ;;  %12100 = vmatprep.subr.bf16.mxu0 %v12401_v36  ;;  %v17302_v58 = vld [vmem:[#allocation87_spill] sm:$0xff] }
0x1b3e   : > { %12101 = vmatpush3.bf16.msra.mxu0 %v12401_v36 }
0x1b3f   : > { %v15756_v12 = vpop.xlane.xlu0 %4205  ;;  %v8027_v46 = vpop.xlane.xlu1 %8026 }
0x1b40   : > { %v8031_v43 = vsub.f32 %v15630_v4, %v8027_v46 }
0x1b42   : > { %v8038_v11 = vmul.f32 1.442695, %v8031_v43 }
0x1b43   : > { %v15759_v50 = vpop.xlane.xlu0 %5053  ;;  %v15761_v7 = vpop.xlane.xlu1 %6339 }
0x1b44   : > { %12671 = vpow2.f32 %v8038_v11 }
0x1b45   : > { %12673 = vrcp.f32 %v5486_v39 }
0x1b47   : > { %v5057_v25 = vpop.xlane.xlu0 %5056  ;;  %v6343_v60 = vpop.xlane.xlu1 %6342 }
0x1b48   : > { %12675 = vrcp.f32 %v5057_v25 }
0x1b49   : > { %12677 = vrcp.f32 %v6337_v23 }
0x1b4b   : > { %v5908_v47 = vpop.xlane.xlu0 %5907  ;;  %v15770_v13 = vpop.xlane.xlu1 %7190 }
0x1b4c   : > { %12679 = vrcp.f32 %v5908_v47  ;;  %v17303_v47 = vld [vmem:[#allocation92_spill] sm:$0xff] }
0x1b4d   : > { %12681 = vrcp.f32 %v5489_v62 }
0x1b4f   : > { %v5060_v10 = vpop.xlane.xlu0 %5059  ;;  %v7194_v8 = vpop.xlane.xlu1 %7193 }
0x1b50   : > { %12683 = vrcp.f32 %v5060_v10  ;;  %v17304_v10 = vld [vmem:[#allocation97_spill] sm:$0xff] }
0x1b51   : > { %v15763_v26 = vpop.eup %12671  ;;  %12685 = vrcp.f32 %v6343_v60 }
0x1b52   : > { %v8055_v4 = vpack.c.bf16 %v15763_v26, %v15763_v26  ;;  %v12674_v15 = vpop.eup %12673 }
0x1b53   : > { %v15767_v22 = vpop.xlane.xlu0 %5910  ;;  %v15779_v1 = vmul.f32 %v12674_v15, %v17295_v32  ;;  %v7197_v43 = vpop.xlane.xlu1 %7196 }
0x1b54   : > { %12083 = vmatmul.mubr.msk.bf16.vlgmr.msra.gmra.mxu1 %vm1395_vm1, %v8055_v4 }
0x1b55   : > { %v12676_v52 = vpop.eup %12675  ;;  %8977 = vmatprep.mubr.bf16.mxu1 %v17293_v0  ;;  %5050 = vadd.xlane.f32.xlu0 %v5049_v53  ;;  %v17305_v53 = vld [vmem:[#allocation56_spill] sm:$0xff] }
0x1b56   : > { %v15776_v42 = vmul.f32 %v12676_v52, %v17294_v9  ;;  %v12678_v17 = vpop.eup %12677 }
0x1b57   : > { %v5914_v16 = vpop.xlane.xlu0 %5913  ;;  %v15791_v3 = vmul.f32 %v12678_v17, %v17298_v56  ;;  %v17306_v17 = vld [vmem:[#allocation62_spill] sm:$0xff] }
0x1b58   : > { %12687 = vrcp.f32 %v5914_v16  ;;  %v12306_v54 = vpack.i.bf16 %v15779_v1, %v15776_v42 }
0x1b59   : > { %v12680_v39 = vpop.eup %12679  ;;  %12689 = vrcp.f32 %v15699_v40  ;;  %5904 = vadd.xlane.f32.xlu0 %v5903_v41 }
0x1b5a   : > { %12691 = vrcp.f32 %v15739_v63  ;;  %v15788_v61 = vmul.f32 %v12680_v39, %v17297_v5  ;;  %v12682_v51 = vpop.eup %12681  ;;  %v17299_v63 = vld [vmem:[#allocation93_spill] sm:$0xff] }
0x1b5b   : > { %12693 = vrcp.f32 %v15701_v20  ;;  %v15794_v23 = vpop.xlane.xlu0 %6761  ;;  %v6332_v38 = vsel %vm1395_vm1, %v17299_v63, 0.0  ;;  %v17301_v20 = vld [vmem:[#allocation82_spill] sm:$0xff]  ;;  %v15808_v62 = vmul.f32 %v12682_v51, %v17302_v58  ;;  %v17308_v51 = vld [vmem:[#allocation68_spill] sm:$0xff] }
0x1b5c   : > { %12695 = vrcp.f32 %v15732_v37  ;;  %v12311_v40 = vpack.i.bf16 %v15791_v3, %v15788_v61 }
0x1b5d   : > { %v12684_v6 = vpop.eup %12683  ;;  %12697 = vrcp.f32 %v15744_v2  ;;  %6333 = vadd.xlane.f32.xlu0 %v6332_v38 }
0x1b5e   : > { %12699 = vrcp.f32 %v7194_v8  ;;  %v15805_v36 = vmul.f32 %v12684_v6, %v17301_v20  ;;  %5479 = vadd.xlane.f32.xlu1 %v5478_v30  ;;  %v12686_v46 = vpop.eup %12685  ;;  %v17309_v6 = vld [vmem:[#allocation101_spill] sm:$0xff] }
0x1b5f   : > { %12701 = vrcp.f32 %v15707_v35  ;;  %v6765_v37 = vpop.xlane.xlu0 %6764  ;;  %v15823_v4 = vmul.f32 %v12686_v46, %v17304_v10  ;;  %v17310_v20 = vld [vmem:[#allocation61_spill] sm:$0xff] }
0x1b60   : > { %12703 = vrcp.f32 %v6765_v37  ;;  %v12316_v2 = vpack.i.bf16 %v15808_v62, %v15805_v36  ;;  %v17311_v37 = vld [vmem:[#allocation72_spill] sm:$0xff] }
0x1b61   : > { %12705 = vrcp.f32 %v15749_v31 }
0x1b62   : > { %12707 = vrcp.f32 %v15754_v24 }
0x1b63   : > { %12709 = vrcp.f32 %v15714_v55  ;;  %v15816_v11 = vpop.xlane.xlu0 %7615 }
0x1b64   : > { %12711 = vrcp.f32 %v15723_v29 }
0x1b65   : > { %v12688_v25 = vpop.eup %12687  ;;  %12713 = vrcp.f32 %v7197_v43 }
0x1b66   : > { %v12690_v35 = vpop.eup %12689  ;;  %v15820_v60 = vmul.f32 %v12688_v25, %v17303_v47 }
0x1b67   : > { %v12692_v31 = vpop.eup %12691  ;;  %v6768_v15 = vpop.xlane.xlu0 %6767  ;;  %v3963_v58 = vmul.f32 %v12690_v35, %v17310_v20  ;;  %v17315_v35 = vld [vmem:[#allocation63_spill] sm:$0xff] }
0x1b68   : > { %v12694_v24 = vpop.eup %12693  ;;  %12715 = vrcp.f32 %v6768_v15  ;;  %v12326_v55 = vpack.i.bf16 %v15823_v4, %v15820_v60  ;;  %v3547_v29 = vmul.f32 %v12692_v31, %v17305_v53  ;;  %v17312_v31 = vld [vmem:[#allocation67_spill] sm:$0xff] }
0x1b69   : > { %v12696_v52 = vpop.eup %12695  ;;  %v3964_v16 = vmul.f32 %v12694_v24, %v17306_v17  ;;  %v17313_v24 = vld [vmem:[#allocation58_spill] sm:$0xff] }
0x1b6a   : > { %v12698_v45 = vpop.eup %12697  ;;  %v3546_v41 = vmul.f32 %v12696_v52, %v17307_v44  ;;  %v17317_v44 = vld [vmem:[#allocation107_spill] sm:$0xff] }
0x1b6b   : > { %v12700_v9 = vpop.eup %12699  ;;  %v12276_v56 = vpack.i.bf16 %v3964_v16, %v3547_v29  ;;  %v4400_v8 = vmul.f32 %v12698_v45, %v17308_v51  ;;  %v17314_v45 = vld [vmem:[#allocation73_spill] sm:$0xff]  ;;  %v17316_v16 = vld [vmem:[#allocation103_spill] sm:$0xff] }
0x1b6c   : > { %v12702_v32 = vpop.eup %12701  ;;  %v15835_v38 = vmul.f32 %v12700_v9, %v15446_v18  ;;  %v12271_v47 = vpack.i.bf16 %v3963_v58, %v3546_v41 }
0x1b6d   : > { %v12704_v39 = vpop.eup %12703  ;;  %v4817_v46 = vmul.f32 %v12702_v32, %v17311_v37  ;;  %v17318_v37 = vld [vmem:[#allocation98_spill] sm:$0xff] }
0x1b6e   : > { %v12706_v5 = vpop.eup %12705  ;;  %v15832_v63 = vmul.f32 %v12704_v39, %v17309_v6 }
0x1b6f   : > { %v12708_v19 = vpop.eup %12707  ;;  %12277 = vrot.lane.b32.xlu1 %v12276_v56, %s13234_s15  ;;  %v12281_v10 = vpack.i.bf16 %v4817_v46, %v4400_v8  ;;  %v3548_v52 = vmul.f32 %v12706_v5, %v17313_v24  ;;  %v15858_v56 = vpop.xlane.xlu0 %7618  ;;  %v6757_v46 = vsel %vm1591_vm4, %v17318_v37, 0.0  ;;  %v8040_v24 = vsel %vm1395_vm1, %v15688_v48, 0.0 }
0x1b70   : > { %v12710_v30 = vpop.eup %12709  ;;  %v12336_v43 = vpack.i.bf16 %v15835_v38, %v15832_v63  ;;  %v4401_v15 = vmul.f32 %v12708_v19, %v17312_v31  ;;  %v2055_v8 = vpop.xlane.xlu1 %2054  ;;  %v8046_v31 = vsel %vm1395_vm1, %v15703_v33, 0.0 }
0x1b71   : > { %v12712_v25 = vpop.eup %12711  ;;  %v3965_v29 = vmul.f32 %v12710_v30, %v17315_v35  ;;  %12717 = vrcp.f32 %v2055_v8 }
0x1b72   : > { %v12714_v18 = vpop.eup %12713  ;;  %v4818_v53 = vmul.f32 %v12712_v25, %v17314_v45 }
0x1b73   : > { %12272 = vrot.lane.b32.xlu0 %v12271_v47, %s13235_s3  ;;  %12282 = vrot.lane.b32.xlu1 %v12281_v10, %s13235_s3  ;;  %v12286_v17 = vpack.i.bf16 %v3965_v29, %v3548_v52  ;;  %v15852_v41 = vmul.f32 %v12714_v18, %v17317_v44  ;;  %v15860_v51 = vpop.xlane.xlu0 %7621  ;;  %v7611_v47 = vsel %vm2458_vm8, %v15466_v21, 0.0  ;;  %v8043_v21 = vsel %vm1395_vm1, %v15710_v49, 0.0  ;;  %v17319_v29 = vld [vmem:[#allocation27_spill] sm:$0xff]  ;;  %v17320_v49 = vld [vmem:[#allocation37_spill] sm:$0xff] }
0x1b74   : > { %v12291_v32 = vpack.i.bf16 %v4818_v53, %v4401_v15  ;;  %v2918_v19 = vpop.xlane.xlu1 %2917 }
0x1b75   : > { %v12716_v9 = vpop.eup %12715 }
0x1b76   : > { %v15849_v39 = vmul.f32 %v12716_v9, %v17316_v16 }
0x1b77   : > { %12292 = vrot.lane.b32.xlu0 %v12291_v32, %s13234_s15  ;;  %12287 = vrot.lane.b32.xlu1 %v12286_v17, %s13233_s9  ;;  %v1618_v6 = vpop.xlane.xlu0 %1617 }
0x1b78   : > { %v12341_v5 = vpack.i.bf16 %v15852_v41, %v15849_v39  ;;  %v15862_v20 = vpop.xlane.xlu1 %3771  ;;  %12719 = vrcp.f32 %v1618_v6 }
0x1b79   : > { %12721 = vrcp.f32 %v2918_v19 }
0x1b7b   : > { %v2485_v30 = vpop.xlane.xlu0 %2484 }
0x1b7c   : > { %v15868_v25 = vpop.xlane.xlu1 %4625  ;;  %12723 = vrcp.f32 %v2485_v30 }
0x1b7d   : > { %12725 = vrcp.f32 %v15756_v12 }
0x1b7e   : > { %12727 = vrcp.f32 %v15759_v50  ;;  %v12718_v18 = vpop.eup %12717  ;;  %v8049_v50 = vsel %vm1395_vm1, %v15763_v26, 0.0 }
0x1b7f   : > { %v15864_v58 = vpop.xlane.xlu0 %3342  ;;  %12729 = vrcp.f32 %v15730_v28  ;;  %v2245_v32 = vmul.f32 %v12718_v18, %v17320_v49 }
0x1b80   : > { %12731 = vrcp.f32 %v15737_v14 }
0x1b81   : > { %12733 = vrcp.f32 %v15767_v22 }
0x1b82   : > { %12735 = vrcp.f32 %v15761_v7 }
0x1b83   : > { %v15872_v10 = vpop.xlane.xlu0 %4196  ;;  %12737 = vrcp.f32 %v15794_v23 }
0x1b84   : > { %12739 = vrcp.f32 %v15770_v13 }
0x1b85   : > { %v12720_v33 = vpop.eup %12719  ;;  %12741 = vrcp.f32 %v15862_v20 }
0x1b86   : > { %v1821_v9 = vmul.f32 %v12720_v33, %v17319_v29  ;;  %v12722_v8 = vpop.eup %12721  ;;  %v17322_v33 = vld [vmem:[#allocation47_spill] sm:$0xff]  ;;  %12743 = vrcp.f32 %v15864_v58 }
0x1b87   : > { %12745 = vrcp.f32 %v15868_v25 }
0x1b88   : > { %12747 = vrcp.f32 %v15872_v10 }
0x1b89   : > { %v12724_v7 = vpop.eup %12723  ;;  %12749 = vrcp.f32 %v15816_v11 }
0x1b96   : > { %6758 = vadd.xlane.f32.xlu0 %v6757_v46 }
0x1b99   : > { %v12243_v52 = vpop.permute.xlu0 %12242 }
0x1b9a   : > { %7612 = vadd.xlane.f32.xlu0 %v7611_v47  ;;  %v12245_v53 = vunpack.i.h.bf16 %v12243_v52  ;;  %v12244_v12 = vunpack.i.l.bf16 %v12243_v52 }
0x1b9b   : > { %8047 = vadd.xlane.f32.xlu1 %v8046_v31 }
0x1b9c   : > { %v12248_v15 = vpop.permute.xlu1 %12247  ;;  %v1837_v14 = vsel %vm1395_vm1, %v1821_v9, %v12244_v12  ;;  %v2261_v17 = vsel %vm1395_vm1, %v2245_v32, %v12245_v53  ;;  %v3108_v53 = vmul.f32 %v12722_v8, %v17322_v33  ;;  %v17323_v32 = vld [vmem:[#allocation81_spill] sm:$0xff] }
0x1b9d   : > { %v12250_v48 = vunpack.i.h.bf16 %v12248_v15  ;;  %v12249_v35 = vunpack.i.l.bf16 %v12248_v15  ;;  %v12726_v15 = vpop.eup %12725 }
0x1b9e   : > { %8041 = vadd.xlane.f32.xlu0 %v8040_v24  ;;  %v12728_v52 = vpop.eup %12727 }
0x1b9f   : > { %8044 = vadd.xlane.f32.xlu1 %v8043_v21  ;;  %v2262_v26 = vsel %vm1838_vm10, %v2261_v17, %v12250_v48  ;;  %v1839_v44 = vsel %vm1838_vm10, %v1837_v14, %v12249_v35  ;;  %v17321_v21 = vld [vmem:[#allocation42_spill] sm:$0xff]  ;;  %v12730_v12 = vpop.eup %12729  ;;  %v17324_v14 = vld [vmem:[#allocation69_spill] sm:$0xff] }
0x1ba0   : > { %v12253_v45 = vpop.permute.xlu1 %12252  ;;  %v2687_v18 = vmul.f32 %v12724_v7, %v17321_v21  ;;  %v12732_v35 = vpop.eup %12731  ;;  %v4402_v17 = vmul.f32 %v12726_v15, %v17324_v14  ;;  %v17326_v7 = vld [vmem:[#allocation74_spill] sm:$0xff] }
0x1ba1   : > { %v12255_v47 = vunpack.i.h.bf16 %v12253_v45  ;;  %v12254_v31 = vunpack.i.l.bf16 %v12253_v45 }
0x1ba3   : > { %8050 = vadd.xlane.f32.xlu1 %v8049_v50  ;;  %v3124_v13 = vsel %vm1395_vm1, %v3108_v53, %v12255_v47  ;;  %v2703_v50 = vsel %vm1395_vm1, %v2687_v18, %v12254_v31  ;;  %v17329_v53 = vld [vmem:[#allocation102_spill] sm:$0xff] }
0x1ba4   : > { %v12258_v28 = vpop.permute.xlu1 %12257 }
0x1ba5   : > { %v12260_v22 = vunpack.i.h.bf16 %v12258_v28  ;;  %v12259_v16 = vunpack.i.l.bf16 %v12258_v28  ;;  %v5254_v28 = vmul.f32 %v12728_v52, %v17323_v32  ;;  %v17328_v52 = vld [vmem:[#allocation96_spill] sm:$0xff] }
0x1ba6   : > { %v17331_v32 = vld [vmem:[#allocation104_spill] sm:$0xff] }
0x1ba7   : > { %v1841_v6 = vsel %vm1840_vm11, %v1839_v44, %v12259_v16  ;;  %v2263_v19 = vsel %vm1840_vm11, %v2262_v26, %v12260_v22  ;;  %v12734_v22 = vpop.eup %12733 }
0x1ba8   : > { %v1842_v30 = vpack.c.bf16 %v1841_v6, %v1841_v6  ;;  %v2264_v37 = vpack.c.bf16 %v2263_v19, %v2263_v19  ;;  %v12263_v46 = vpop.permute.xlu0 %12262  ;;  %v17325_v6 = vld [vmem:[#allocation85_spill] sm:$0xff] }
0x1ba9   : > { %v12265_v23 = vunpack.i.h.bf16 %v12263_v46  ;;  %v12264_v24 = vunpack.i.l.bf16 %v12263_v46  ;;  %v5671_v19 = vmul.f32 %v12732_v35, %v17325_v6 }
0x1baa   : > { %1843 = vst [vmem:[#allocation2] sm:$0xf] %v1842_v30  ;;  %2265 = vst [vmem:[#allocation2 + $0x4] sm:$0xf] %v2264_v37  ;;  %v4819_v30 = vmul.f32 %v12730_v12, %v17326_v7  ;;  %v12736_v37 = vpop.eup %12735 }
0x1bab   : > { %v2704_v45 = vsel %vm1838_vm10, %v2703_v50, %v12264_v24  ;;  %v3125_v49 = vsel %vm1838_vm10, %v3124_v13, %v12265_v23  ;;  %v12301_v47 = vpack.i.bf16 %v5671_v19, %v5254_v28  ;;  %v17327_v23 = vld [vmem:[#allocation90_spill] sm:$0xff]  ;;  %v12738_v15 = vpop.eup %12737  ;;  %v6526_v21 = vmul.f32 %v12736_v37, %v17328_v52 }
0x1bac   : > { %v12268_v48 = vpop.permute.xlu1 %12267  ;;  %v12296_v31 = vpack.i.bf16 %v4819_v30, %v4402_v17  ;;  %v6109_v24 = vmul.f32 %v12734_v22, %v17327_v23  ;;  %v12740_v18 = vpop.eup %12739  ;;  %v6962_v12 = vmul.f32 %v12738_v15, %v17329_v53  ;;  %v7186_v28 = vsel %vm2028_vm6, %v17331_v32, 0.0  ;;  %v17332_v15 = vld [vmem:[#allocation55_spill] sm:$0xff] }
0x1bad   : > { %v12270_v29 = vunpack.i.h.bf16 %v12268_v48  ;;  %v12269_v9 = vunpack.i.l.bf16 %v12268_v48  ;;  %v17330_v48 = vld [vmem:[#allocation106_spill] sm:$0xff] }
0x1bae   : > { %v12321_v33 = vpack.i.bf16 %v6526_v21, %v6109_v24  ;;  %v7379_v35 = vmul.f32 %v12740_v18, %v17330_v48  ;;  %v17333_v21 = vld [vmem:[#allocation60_spill] sm:$0xff] }
0x1baf   : > { %v2705_v16 = vsel %vm1840_vm11, %v2704_v45, %v12269_v9  ;;  %v3126_v26 = vsel %vm1840_vm11, %v3125_v49, %v12270_v29 }
0x1bb0   : > { %v2706_v44 = vpack.c.bf16 %v2705_v16, %v2705_v16  ;;  %v3127_v8 = vpack.c.bf16 %v3126_v26, %v3126_v26  ;;  %v12331_v50 = vpack.i.bf16 %v7379_v35, %v6962_v12 }
0x1bb1   : > { %v12400_v46 = vld [vmem:[#allocation2] sm:$0xff]  }
0x1bb2   : > { %2707 = vst [vmem:[#allocation2 + $0x8] sm:$0xf] %v2706_v44  ;;  %3128 = vst [vmem:[#allocation2 + $0xc] sm:$0xf] %v3127_v8  ;;  %12102 = vmatprep.mubr.bf16.mxu0 %v12400_v46  ;;  %v12742_v46 = vpop.eup %12741 }
0x1bb3   : > { %v3962_v18 = vmul.f32 %v12742_v46, %v17333_v21 }
0x1bb4   : > { %12302 = vrot.lane.b32.xlu0 %v12301_v47, %s13235_s3  ;;  %12297 = vrot.lane.b32.xlu1 %v12296_v31, %s13233_s9  ;;  %v12744_v47 = vpop.eup %12743 }
0x1bb5   : > { %v3545_v52 = vmul.f32 %v12744_v47, %v17332_v15  ;;  %v12746_v38 = vpop.eup %12745 }
0x1bb8   : > { %12322 = vrot.lane.b32.xlu0 %v12321_v33, %s13234_s15 }
0x1bb9   : > { %v12402_v13 = vld [vmem:[#allocation2 + $0x8] sm:$0xff]  }
0x1bba   : > { %12103 = vmatmul.mubr.bf16.vlgmr.msra.gmra.mxu0 %v12402_v13 }
0x1bbc   : > { %12332 = vrot.lane.b32.xlu0 %v12331_v50, %s13235_s3 }
0x1bd0   : > { %v15918_v29 = vpop.f32.mrf.mxu0 }
0x1bd2   : > { %v12060_v9 = vpop.f32.mrf.mxu0 }
0x1bd4   : > { %v8096_v45 = vpop.f32.mrf.mxu0 }
0x1bd5   : > { %v17334_v45 = vld [vmem:[#allocation66_spill] sm:$0xff] }
0x1bd6   : > { %v12061_v49 = vpop.f32.mrf.mxu0 }
0x1bd7   : > { %v17335_v49 = vld [vmem:[#allocation71_spill] sm:$0xff] }
0x1bd8   : > { %7187 = vadd.xlane.f32.xlu1 %v7186_v28  ;;  %v4816_v10 = vmul.f32 %v12746_v38, %v17335_v49  ;;  %v17338_v38 = vld [vmem:[#allocation89_spill] sm:$0xff] }
0x1bde   : > { %v15922_v14 = vpop.xlane.xlu0 %5050 }
0x1be0   : > { %v15925_v17 = vpop.f32.mrf.mxu0 }
0x1be2   : > { %v12076_v22 = vpop.f32.mrf.mxu0  ;;  %v15928_v16 = vpop.xlane.xlu0 %5904 }
0x1be4   : > { %v15930_v26 = vpop.f32.mrf.mxu1  ;;  %v8182_v44 = vpop.f32.mrf.mxu0 }
0x1be6   : > { %v12077_v8 = vpop.f32.mrf.mxu0  ;;  %v12068_v6 = vpop.f32.mrf.mxu1 }
0x1be7   : > { %v15932_v19 = vpop.xlane.xlu0 %6333  ;;  %v15934_v7 = vpop.xlane.xlu1 %5479 }
0x1be8   : > { %v8139_v30 = vpop.f32.mrf.mxu1 }
0x1be9   : > { %12307 = vrot.lane.b32.xlu1 %v12306_v54, %s13234_s15 }
0x1bea   : > { %v12069_v20 = vpop.f32.mrf.mxu1 }
0x1beb   : > { %v12273_v58 = vpop.permute.xlu0 %12272  ;;  %v12278_v37 = vpop.permute.xlu1 %12277 }
0x1bec   : > { %v12275_v31 = vunpack.i.h.bf16 %v12273_v58  ;;  %v12274_v23 = vunpack.i.l.bf16 %v12273_v58  ;;  %v12280_v33 = vunpack.i.h.bf16 %v12278_v37  ;;  %v12279_v42 = vunpack.i.l.bf16 %v12278_v37 }
0x1bed   : > { %12312 = vrot.lane.b32.xlu1 %v12311_v40, %s13235_s3 }
0x1bee   : > { %v3561_v1 = vsel %vm1395_vm1, %v3545_v52, %v12274_v23  ;;  %v3978_v54 = vsel %vm1395_vm1, %v3962_v18, %v12275_v31 }
0x1bef   : > { %v12283_v24 = vpop.permute.xlu1 %12282  ;;  %v3979_v53 = vsel %vm1838_vm10, %v3978_v54, %v12280_v33  ;;  %v3562_v12 = vsel %vm1838_vm10, %v3561_v1, %v12279_v42  ;;  %v12293_v9 = vpop.permute.xlu0 %12292 }
0x1bf0   : > { %v12285_v39 = vunpack.i.h.bf16 %v12283_v24  ;;  %v12284_v41 = vunpack.i.l.bf16 %v12283_v24  ;;  %v12295_v28 = vunpack.i.h.bf16 %v12293_v9  ;;  %v12294_v22 = vunpack.i.l.bf16 %v12293_v9 }
0x1bf1   : > { %12317 = vrot.lane.b32.xlu1 %v12316_v2, %s13233_s9 }
0x1bf2   : > { %v4832_v11 = vsel %vm1395_vm1, %v4816_v10, %v12285_v39  ;;  %v17339_v39 = vld [vmem:[#allocation94_spill] sm:$0xff] }
0x1bf3   : > { %v12288_v61 = vpop.permute.xlu1 %12287  ;;  %v4833_v6 = vsel %vm1838_vm10, %v4832_v11, %v12295_v28 }
0x1bf4   : > { %v12290_v3 = vunpack.i.h.bf16 %v12288_v61  ;;  %v12289_v40 = vunpack.i.l.bf16 %v12288_v61 }
0x1bf5   : > { %12327 = vrot.lane.b32.xlu1 %v12326_v55, %s13233_s9 }
0x1bf6   : > { %v3563_v48 = vsel %vm1840_vm11, %v3562_v12, %v12289_v40  ;;  %v3980_v36 = vsel %vm1840_vm11, %v3979_v53, %v12290_v3 }
0x1bf7   : > { %v3564_v62 = vpack.c.bf16 %v3563_v48, %v3563_v48  ;;  %v3981_v2 = vpack.c.bf16 %v3980_v36, %v3980_v36 }
0x1bf9   : > { %3565 = vst [vmem:[#allocation2 + $0x10] sm:$0xf] %v3564_v62  ;;  %3982 = vst [vmem:[#allocation2 + $0x14] sm:$0xf] %v3981_v2  ;;  %12337 = vrot.lane.b32.xlu1 %v12336_v43, %s13234_s15  ;;  %v12748_v43 = vpop.eup %12747 }
0x1bfa   : > { %v4399_v25 = vmul.f32 %v12748_v43, %v17334_v45  ;;  %v12750_v58 = vpop.eup %12749 }
0x1bfb   : > { %v7816_v24 = vmul.f32 %v12750_v58, %v15552_v27 }
0x1bfc   : > { %v4415_v32 = vsel %vm1395_vm1, %v4399_v25, %v12284_v41 }
0x1bfd   : > { %12342 = vrot.lane.b32.xlu1 %v12341_v5, %s13233_s9 }
0x1c00   : > { %v12403_v60 = vld [vmem:[#allocation2 + $0x10] sm:$0xff]  }
0x1c01   : > { %12106 = vmatprep.mubr.bf16.mxu0 %v12403_v60 }
0x1c14   : > { %v8222_v4 = vpop.f32.mrf.mxu1 }
0x1c16   : > { %v12084_v55 = vpop.f32.mrf.mxu1 }
0x1c17   : > { %v17336_v55 = vld [vmem:[#allocation79_spill] sm:$0xff] }
0x1c18   : > { %v8225_v35 = vpop.f32.mrf.mxu1 }
0x1c19   : > { %v17337_v35 = vld [vmem:[#allocation84_spill] sm:$0xff] }
0x1c1a   : > { %v12085_v13 = vpop.f32.mrf.mxu1 }
0x1c1f   : > { %v6759_v27 = vpop.xlane.xlu0 %6758 }
0x1c24   : > { %v8048_v50 = vpop.xlane.xlu1 %8047 }
0x1c25   : > { %12751 = vrcp.f32 %v8048_v50 }
0x1c28   : > { %v8045_v63 = vpop.xlane.xlu1 %8044 }
0x1c29   : > { %12753 = vrcp.f32 %v8045_v63 }
0x1c2a   : > { %12755 = vrcp.f32 %v15858_v56 }
0x1c2b   : > { %12757 = vrcp.f32 %v15860_v51  ;;  %v4416_v51 = vsel %vm1838_vm10, %v4415_v32, %v12294_v22 }
0x1c2c   : > { %v8051_v5 = vpop.xlane.xlu1 %8050 }
0x1c2d   : > { %12759 = vrcp.f32 %v8051_v5 }
0x1c2e   : > { %12761 = vrcp.f32 %v15922_v14 }
0x1c2f   : > { %12763 = vrcp.f32 %v15928_v16 }
0x1c30   : > { %v12298_v44 = vpop.permute.xlu1 %12297  ;;  %12765 = vrcp.f32 %v15934_v7 }
0x1c31   : > { %v12300_v8 = vunpack.i.h.bf16 %v12298_v44  ;;  %v12299_v56 = vunpack.i.l.bf16 %v12298_v44  ;;  %12767 = vrcp.f32 %v15932_v19 }
0x1c32   : > { %v12752_v47 = vpop.eup %12751 }
0x1c33   : > { %v4417_v30 = vsel %vm1840_vm11, %v4416_v51, %v12299_v56  ;;  %v4834_v20 = vsel %vm1840_vm11, %v4833_v6, %v12300_v8  ;;  %v8234_v18 = vmul.f32 %v12752_v47, %v15925_v17  ;;  %v15991_v17 = vpop.xlane.xlu0 %7612 }
0x1c34   : > { %v4418_v37 = vpack.c.bf16 %v4417_v30, %v4417_v30  ;;  %v4835_v46 = vpack.c.bf16 %v4834_v20, %v4834_v20 }
0x1c36   : > { %v12754_v31 = vpop.eup %12753  ;;  %4419 = vst [vmem:[#allocation2 + $0x18] sm:$0xf] %v4418_v37  ;;  %4836 = vst [vmem:[#allocation2 + $0x1c] sm:$0xf] %v4835_v46 }
0x1c37   : > { %v12756_v23 = vpop.eup %12755  ;;  %v8233_v15 = vmul.f32 %v12754_v31, %v15930_v26 }
0x1c38   : > { %v12758_v52 = vpop.eup %12757  ;;  %v7817_v42 = vmul.f32 %v12756_v23, %v15550_v34  ;;  %v15995_v34 = vpop.xlane.xlu0 %8041 }
0x1c39   : > { %v12346_v21 = vpack.i.bf16 %v8233_v15, %v7816_v24  ;;  %v7818_v1 = vmul.f32 %v12758_v52, %v15554_v57 }
0x1c3a   : > { %v12760_v33 = vpop.eup %12759  ;;  %v12351_v61 = vpack.i.bf16 %v8234_v18, %v7817_v42  ;;  %v17340_v42 = vld [vmem:[#allocation105_spill] sm:$0xff] }
0x1c3b   : > { %12347 = vrot.lane.b32.xlu0 %v12346_v21, %s13235_s3  ;;  %v8235_v54 = vmul.f32 %v12760_v33, %v8222_v4  ;;  %v12762_v53 = vpop.eup %12761 }
0x1c3c   : > { %v12303_v12 = vpop.permute.xlu0 %12302  ;;  %v12764_v48 = vpop.eup %12763  ;;  %v5253_v7 = vmul.f32 %v12762_v53, %v17336_v55 }
0x1c3d   : > { %v12356_v3 = vpack.i.bf16 %v8235_v54, %v7818_v1  ;;  %v12404_v40 = vld [vmem:[#allocation2 + $0x18] sm:$0xff]   ;;  %v12766_v36 = vpop.eup %12765  ;;  %v12305_v2 = vunpack.i.h.bf16 %v12303_v12  ;;  %v12304_v16 = vunpack.i.l.bf16 %v12303_v12  ;;  %v6107_v43 = vmul.f32 %v12764_v48, %v17338_v38  ;;  %v12937_v38 = vld [vmem:[%s13490_s21] sm:$0xff] }
0x1c3e   : > { %12107 = vmatmul.mubr.bf16.gmra.mxu0 %v12404_v40  ;;  %v12768_v14 = vpop.eup %12767  ;;  %v5670_v19 = vmul.f32 %v12766_v36, %v17337_v35 }
0x1c3f   : > { %12352 = vrot.lane.b32.xlu0 %v12351_v61, %s13234_s15  ;;  %12357 = vrot.lane.b32.xlu1 %v12356_v3, %s13233_s9  ;;  %v6524_v41 = vmul.f32 %v12768_v14, %v17339_v39  ;;  %v5269_v9 = vsel %vm1395_vm1, %v5253_v7, %v12304_v16  ;;  %v17341_v3 = vld [vmem:[#allocation100_spill] sm:$0xff]  ;;  %v16024_v7 = vld [vmem:[%s17056_s6] ss:$0 sm:$0xff]  ;;  %s16953_s9 = scalar_lea.vmem [#allocation15], %s10425_s30  ;;  %s10677_s30 = sshll.u32 %s13330_s14, 11 }
0x1c40   : > { %v12323_v63 = vpop.permute.xlu0 %12322  ;;  %v5686_v45 = vsel %vm1395_vm1, %v5670_v19, %v12305_v2  ;;  %s10282_s15 = sshll.u32 %s16953_s9, 4  ;;  %s17003_s17 = scalar_lea.hbm %s17063_s13, %s10677_s30  ;;  %s17005_s15 = int_to_ptr.vmem [resolvable:$true] %s10282_s15 }
0x1c41   : > { %v12325_v8 = vunpack.i.h.bf16 %v12323_v63  ;;  %v12324_v56 = vunpack.i.l.bf16 %v12323_v63  ;;  %s13137_s1 = scalar_lea.vmem %s17005_s15, 2048  ;;  %s13236_s14 = smov [#allocation15]  }
0x1c42   : > { %p13138_p12 = scmp.ne.s32.totalorder %s17005_s15, %s13137_s1  ;;  %s13141_s11 = sshll.u32 %s13236_s14, 4  ;;  %s13142_s11 = int_to_ptr.vmem [resolvable:$false] %s13141_s11 }
0x1c43   : > { %s13143_s20 = scalar_lea.vmem %s13142_s11, 4096  ;;  %p13144_p5 = scmp.lt.s32.totalorder %s17005_s15, %s13142_s11 }
0x1c44   : > { %v12333_v46 = vpop.permute.xlu0 %12332  ;;  %p13139_p0 = pnand %p13138_p12, %p17390_p13  ;;  %p13145_p8 = scmp.lt.s32.totalorder %s13143_s20, %s13137_s1 }
0x1c45   : > { %v12334_v33 = vunpack.i.l.bf16 %v12333_v46 }
0x1c46   : > { %p13140_p2 = pneg %p13139_p0  ;;  %p13146_p7 = por %p13145_p8, %p13144_p5 }
0x1c48   : > { %p13147_p6 = pnand %p13146_p7, %p13140_p2 }
0x1c61   : > { %v7188_v57 = vpop.xlane.xlu1 %7187 }
0x1c62   : > { %12769 = vrcp.f32 %v7188_v57 }
0x1c63   : > { %12771 = vrcp.f32 %v6759_v27  ;;  %v12335_v27 = vunpack.i.h.bf16 %v12333_v46 }
0x1c64   : > { %12773 = vrcp.f32 %v15991_v17 }
0x1c65   : > { %v12308_v26 = vpop.permute.xlu1 %12307  ;;  %12775 = vrcp.f32 %v15995_v34 }
0x1c66   : > { %v12310_v60 = vunpack.i.h.bf16 %v12308_v26  ;;  %v12309_v4 = vunpack.i.l.bf16 %v12308_v26 }
0x1c68   : > { %v5687_v10 = vsel %vm1838_vm10, %v5686_v45, %v12310_v60  ;;  %v5270_v11 = vsel %vm1838_vm10, %v5269_v9, %v12309_v4 }
0x1c69   : > { %v12313_v62 = vpop.permute.xlu1 %12312 }
0x1c6a   : > { %v12315_v13 = vunpack.i.h.bf16 %v12313_v62  ;;  %v12314_v50 = vunpack.i.l.bf16 %v12313_v62 }
0x1c6c   : > { %v6540_v32 = vsel %vm1395_vm1, %v6524_v41, %v12315_v13  ;;  %v6123_v28 = vsel %vm1395_vm1, %v6107_v43, %v12314_v50 }
0x1c6d   : > { %v12318_v5 = vpop.permute.xlu1 %12317  ;;  %v6124_v47 = vsel %vm1838_vm10, %v6123_v28, %v12324_v56  ;;  %v6541_v31 = vsel %vm1838_vm10, %v6540_v32, %v12325_v8 }
0x1c6e   : > { %v12320_v25 = vunpack.i.h.bf16 %v12318_v5  ;;  %v12319_v49 = vunpack.i.l.bf16 %v12318_v5  ;;  %v12938_v5 = vld [vmem:[%s13490_s21 + $0x10] sm:$0xff] }
0x1c6f   : > { %v12770_v37 = vpop.eup %12769 }
0x1c70   : > { %v5271_v22 = vsel %vm1840_vm11, %v5270_v11, %v12319_v49  ;;  %v5688_v44 = vsel %vm1840_vm11, %v5687_v10, %v12320_v25  ;;  %v12772_v15 = vpop.eup %12771  ;;  %v7378_v1 = vmul.f32 %v12770_v37, %v17340_v42  ;;  %v12939_v25 = vld [vmem:[%s13490_s21 + $0x8] sm:$0xff]  ;;  %v12940_v11 = vld [vmem:[%s13490_s21 + $0x18] sm:$0xff] }
0x1c71   : > { %v5272_v51 = vpack.c.bf16 %v5271_v22, %v5271_v22  ;;  %v5689_v6 = vpack.c.bf16 %v5688_v44, %v5688_v44  ;;  %v12328_v30 = vpop.permute.xlu1 %12327  ;;  %v6961_v40 = vmul.f32 %v12772_v15, %v17341_v3  ;;  %v12774_v28 = vpop.eup %12773 }
0x1c72   : > { %v12330_v20 = vunpack.i.h.bf16 %v12328_v30  ;;  %v12329_v58 = vunpack.i.l.bf16 %v12328_v30  ;;  %v7394_v53 = vsel %vm1395_vm1, %v7378_v1, %v12335_v27  ;;  %v12776_v44 = vpop.eup %12775  ;;  %v12942_v27 = vld [vmem:[%s13490_s21 + $0x30] sm:$0xff] }
0x1c73   : > { %5273 = vst [vmem:[#allocation2 + $0x20] sm:$0xf] %v5272_v51  ;;  %5690 = vst [vmem:[#allocation2 + $0x24] sm:$0xf] %v5689_v6  ;;  %v6977_v26 = vsel %vm1395_vm1, %v6961_v40, %v12334_v33  ;;  %v7815_v51 = vmul.f32 %v12774_v28, %v15548_v59  ;;  %v8232_v6 = vmul.f32 %v12776_v44, %v15918_v29 }
0x1c74   : > { %v6125_v23 = vsel %vm1840_vm11, %v6124_v47, %v12329_v58  ;;  %v6542_v24 = vsel %vm1840_vm11, %v6541_v31, %v12330_v20 }
0x1c75   : > { %v6126_v52 = vpack.c.bf16 %v6125_v23, %v6125_v23  ;;  %v6543_v21 = vpack.c.bf16 %v6542_v24, %v6542_v24  ;;  %v12338_v18 = vpop.permute.xlu1 %12337 }
0x1c76   : > { %v12340_v54 = vunpack.i.h.bf16 %v12338_v18  ;;  %v12339_v61 = vunpack.i.l.bf16 %v12338_v18 }
0x1c77   : > { %6127 = vst [vmem:[#allocation2 + $0x28] sm:$0xf] %v6126_v52  ;;  %6544 = vst [vmem:[#allocation2 + $0x2c] sm:$0xf] %v6543_v21 }
0x1c78   : > { %v7395_v62 = vsel %vm1838_vm10, %v7394_v53, %v12340_v54  ;;  %v6978_v14 = vsel %vm1838_vm10, %v6977_v26, %v12339_v61  ;;  %v12941_v54 = vld [vmem:[%s13490_s21 + $0x20] sm:$0xff]  ;;  %v12943_v53 = vld [vmem:[%s13490_s21 + $0x28] sm:$0xff] }
0x1c79   : > { %v12343_v57 = vpop.permute.xlu1 %12342 }
0x1c7a   : > { %v12345_v12 = vunpack.i.h.bf16 %v12343_v57  ;;  %v12344_v48 = vunpack.i.l.bf16 %v12343_v57  ;;  %v12405_v36 = vld [vmem:[#allocation2 + $0x20] sm:$0xff]   ;;  %v12104_v2 = vpop.f32.mrf.mxu0 }
0x1c7b   : > { %12110 = vmatprep.mubr.bf16.mxu0 %v12405_v36  ;;  %v8431_v63 = vadd.f32 %v12104_v2, %v16024_v7 }
0x1c7c   : > { %v6979_v16 = vsel %vm1840_vm11, %v6978_v14, %v12344_v48  ;;  %v7396_v60 = vsel %vm1840_vm11, %v7395_v62, %v12345_v12  ;;  %v8422_v35 = vpop.f32.mrf.mxu0  ;;  %v12944_v48 = vld [vmem:[%s13490_s21 + $0x38] sm:$0xff] }
0x1c7d   : > { %v6980_v4 = vpack.c.bf16 %v6979_v16, %v6979_v16  ;;  %v7397_v55 = vpack.c.bf16 %v7396_v60, %v7396_v60  ;;  %v8423_v19 = vadd.f32 %v16024_v7, %v8422_v35  ;;  %v16034_v9 = vadd.f32 %v12938_v5, %v8431_v63 }
0x1c7e   : > { %v12406_v13 = vld [vmem:[#allocation2 + $0x28] sm:$0xff]   ;;  %v12105_v50 = vpop.f32.mrf.mxu0 }
0x1c7f   : > { %6981 = vst [vmem:[#allocation2 + $0x30] sm:$0xf] %v6980_v4  ;;  %7398 = vst [vmem:[#allocation2 + $0x34] sm:$0xf] %v7397_v55  ;;  %v16029_v43 = vadd.f32 %v12937_v38, %v8423_v19  ;;  %12111 = vmatmul.mubr.bf16.gmra.mxu0 %v12406_v13  ;;  %v8434_v45 = vadd.f32 %v12105_v50, %v16024_v7  ;;  %v12945_v4 = vld [vmem:[%s13490_s21 + $0x40] sm:$0xff]  ;;  %v12946_v13 = vld [vmem:[%s13490_s21 + $0x50] sm:$0xff] }
0x1c80   : > { %v8425_v39 = vpop.f32.mrf.mxu0  ;;  %17343 = vst [vmem:[#allocation34_spill] sm:$0xff] %v16034_v9  ;;  %v12947_v38 = vld [vmem:[%s13490_s21 + $0x48] sm:$0xff] }
0x1c81   : > { %17342 = vst [vmem:[#allocation31_spill] sm:$0xff] %v16029_v43  ;;  %v8426_v41 = vadd.f32 %v16024_v7, %v8425_v39  ;;  %8503 = vadd.xlane.f32.xlu0 %v16029_v43  ;;  %v16043_v32 = vadd.f32 %v12940_v11, %v8434_v45 }
0x1c83   : > { %v16038_v49 = vadd.f32 %v12939_v25, %v8426_v41  ;;  %17345 = vst [vmem:[#allocation24_spill] sm:$0xff] %v16043_v32  ;;  %v12948_v41 = vld [vmem:[%s13490_s21 + $0x58] sm:$0xff] }
0x1c85   : > { %17344 = vst [vmem:[#allocation32_spill] sm:$0xff] %v16038_v49  ;;  %8507 = vadd.xlane.f32.xlu0 %v16034_v9  ;;  %8505 = vadd.xlane.f32.xlu1 %v16038_v49 }
0x1c86   : > { %v12407_v10 = vld [vmem:[#allocation2 + $0x30] sm:$0xff]  }
0x1c87   : > { %12114 = vmatprep.mubr.bf16.mxu0 %v12407_v10 }
0x1c89   : > { %8509 = vadd.xlane.f32.xlu0 %v16043_v32 }
0x1cad   : > { %v12348_v22 = vpop.permute.xlu0 %12347 }
0x1cae   : > { %v12350_v8 = vunpack.i.h.bf16 %v12348_v22  ;;  %v12349_v56 = vunpack.i.l.bf16 %v12348_v22 }
0x1cb0   : > { %v8248_v31 = vsel %vm1395_vm1, %v8232_v6, %v12350_v8  ;;  %v7831_v17 = vsel %vm1395_vm1, %v7815_v51, %v12349_v56  ;;  %v12949_v56 = vld [vmem:[%s13490_s21 + $0x60] sm:$0xff] }
0x1cb1   : > { %v12353_v30 = vpop.permute.xlu0 %12352  ;;  %v12358_v20 = vpop.permute.xlu1 %12357 }
0x1cb2   : > { %v12355_v58 = vunpack.i.h.bf16 %v12353_v30  ;;  %v12354_v37 = vunpack.i.l.bf16 %v12353_v30  ;;  %v12360_v46 = vunpack.i.h.bf16 %v12358_v20  ;;  %v12359_v47 = vunpack.i.l.bf16 %v12358_v20 }
0x1cb4   : > { %v7832_v34 = vsel %vm1838_vm10, %v7831_v17, %v12354_v37  ;;  %v8249_v23 = vsel %vm1838_vm10, %v8248_v31, %v12355_v58 }
0x1cb5   : > { %v8250_v24 = vsel %vm1840_vm11, %v8249_v23, %v12360_v46  ;;  %v7833_v59 = vsel %vm1840_vm11, %v7832_v34, %v12359_v47  ;;  %v12950_v47 = vld [vmem:[%s13490_s21 + $0x70] sm:$0xff]  ;;  %v12951_v34 = vld [vmem:[%s13490_s21 + $0x68] sm:$0xff] }
0x1cb6   : > { %v8251_v29 = vpack.c.bf16 %v8250_v24, %v8250_v24  ;;  %v7834_v15 = vpack.c.bf16 %v7833_v59, %v7833_v59 }
0x1cb8   : > { %8252 = vst [vmem:[#allocation2 + $0x3c] sm:$0xf] %v8251_v29  ;;  %7835 = vst [vmem:[#allocation2 + $0x38] sm:$0xf] %v7834_v15 }
0x1cbf   : > { %v12408_v52 = vld [vmem:[#allocation2 + $0x38] sm:$0xff]  }
0x1cc0   : > { %12115 = vmatmul.mubr.bf16.gmra.mxu0 %v12408_v52 }
0x1cc1   : > { %9090 = vmatprep.mubr.bf16.mxu0 %v17293_v0 }
0x1cfe   : > { %v12108_v21 = vpop.f32.mrf.mxu0 }
0x1cff   : > { %v8447_v1 = vadd.f32 %v12108_v21, %v16024_v7  ;;  %v12952_v21 = vld [vmem:[%s13490_s21 + $0x78] sm:$0xff] }
0x1d00   : > { %v8438_v18 = vpop.f32.mrf.mxu0 }
0x1d01   : > { %v8439_v33 = vadd.f32 %v16024_v7, %v8438_v18  ;;  %v16065_v57 = vadd.f32 %v12942_v27, %v8447_v1 }
0x1d02   : > { %v12109_v42 = vpop.f32.mrf.mxu0 }
0x1d03   : > { %v16060_v61 = vadd.f32 %v12941_v54, %v8439_v33  ;;  %17347 = vst [vmem:[#allocation25_spill] sm:$0xff] %v16065_v57  ;;  %v8450_v26 = vadd.f32 %v12109_v42, %v16024_v7 }
0x1d04   : > { %v8441_v3 = vpop.f32.mrf.mxu0 }
0x1d05   : > { %17346 = vst [vmem:[#allocation26_spill] sm:$0xff] %v16060_v61  ;;  %v8442_v40 = vadd.f32 %v16024_v7, %v8441_v3  ;;  %8511 = vadd.xlane.f32.xlu0 %v16060_v61  ;;  %v16074_v36 = vadd.f32 %v12944_v48, %v8450_v26 }
0x1d07   : > { %v16069_v12 = vadd.f32 %v12943_v53, %v8442_v40  ;;  %17349 = vst [vmem:[#allocation41_spill] sm:$0xff] %v16074_v36 }
0x1d09   : > { %17348 = vst [vmem:[#allocation40_spill] sm:$0xff] %v16069_v12  ;;  %8515 = vadd.xlane.f32.xlu0 %v16065_v57  ;;  %8513 = vadd.xlane.f32.xlu1 %v16069_v12 }
0x1d0a   : > { %v8504_v45 = vpop.xlane.xlu0 %8503 }
0x1d0b   : > { %v8535_v28 = vmul.f32 0.0078125, %v8504_v45  ;;  %v12417_v45 = vld [vmem:[#allocation12 + $0xc4] ss:$16 sps:$4 sm:$0xff]  }
0x1d0d   : > { %8517 = vadd.xlane.f32.xlu1 %v16074_v36  ;;  %v16105_v58 = vsub.f32 %v16029_v43, %v8535_v28 }
0x1d0e   : > { %v8508_v22 = vpop.xlane.xlu0 %8507  ;;  %v8506_v6 = vpop.xlane.xlu1 %8505 }
0x1d0f   : > { %v8537_v37 = vmul.f32 0.0078125, %v8508_v22  ;;  %v8536_v46 = vmul.f32 0.0078125, %v8506_v6  ;;  %v8567_v59 = vmul.f32 %v16105_v58, %v16105_v58  ;;  %v12423_v22 = vld [vmem:[#allocation12 + $0xa4] ss:$16 sps:$4 sm:$0xff]  }
0x1d10   : > { %v12429_v6 = vld [vmem:[#allocation12 + $0x84] ss:$16 sps:$4 sm:$0xff]  }
0x1d11   : > { %v16119_v29 = vsub.f32 %v16034_v9, %v8537_v37  ;;  %v16122_v15 = vsub.f32 %v16038_v49, %v8536_v46  ;;  %v12430_v37 = vld [vmem:[#allocation12 + $0x88] ss:$16 sps:$4 sm:$0xff]   ;;  %v12435_v46 = vld [vmem:[#allocation12 + $0x64] ss:$16 sps:$4 sm:$0xff]  }
0x1d12   : > { %v8510_v24 = vpop.xlane.xlu0 %8509 }
0x1d13   : > { %v8538_v52 = vmul.f32 0.0078125, %v8510_v24  ;;  %v8568_v1 = vmul.f32 %v16122_v15, %v16122_v15  ;;  %v8569_v54 = vmul.f32 %v16119_v29, %v16119_v29  ;;  %v12441_v24 = vld [vmem:[#allocation12 + $0x44] ss:$16 sps:$4 sm:$0xff]  }
0x1d15   : > { %v16129_v42 = vsub.f32 %v16043_v32, %v8538_v52  ;;  %v12439_v52 = vld [vmem:[#allocation12 + $0x40] ss:$16 sps:$4 sm:$0xff]  }
0x1d17   : > { %v8570_v48 = vmul.f32 %v16129_v42, %v16129_v42 }
0x1d3f   : > { %v12112_v62 = vpop.f32.mrf.mxu0 }
0x1d40   : > { %v8463_v60 = vadd.f32 %v12112_v62, %v16024_v7 }
0x1d41   : > { %v8454_v14 = vpop.f32.mrf.mxu0 }
0x1d42   : > { %v8455_v2 = vadd.f32 %v16024_v7, %v8454_v14  ;;  %v16085_v50 = vadd.f32 %v12946_v13, %v8463_v60  ;;  %v12414_v60 = vld [vmem:[#allocation12 + $0xec] ss:$16 sps:$4 sm:$0xff]  }
0x1d43   : > { %v12113_v16 = vpop.f32.mrf.mxu0  ;;  %9058 = vmatprep.subr.bf16.mxu0 %v12414_v60 }
0x1d44   : > { %v16080_v55 = vadd.f32 %v12945_v4, %v8455_v2  ;;  %17351 = vst [vmem:[#allocation52_spill] sm:$0xff] %v16085_v50  ;;  %v8466_v63 = vadd.f32 %v12113_v16, %v16024_v7  ;;  %v12411_v16 = vld [vmem:[#allocation12 + $0xe4] ss:$16 sps:$4 sm:$0xff]  }
0x1d45   : > { %v8457_v35 = vpop.f32.mrf.mxu0  ;;  %8945 = vmatprep.subr.bf16.mxu1 %v12411_v16 }
0x1d46   : > { %17350 = vst [vmem:[#allocation53_spill] sm:$0xff] %v16080_v55  ;;  %v8458_v19 = vadd.f32 %v16024_v7, %v8457_v35  ;;  %8519 = vadd.xlane.f32.xlu0 %v16080_v55  ;;  %v16094_v5 = vadd.f32 %v12948_v41, %v8466_v63  ;;  %v12409_v35 = vld [vmem:[#allocation12 + $0xe0] ss:$16 sps:$4 sm:$0xff]  }
0x1d47   : > { %8946 = vmatpush1.bf16.msra.mxu1 %v12409_v35 }
0x1d48   : > { %v16089_v39 = vadd.f32 %v12947_v38, %v8458_v19  ;;  %17353 = vst [vmem:[#allocation65_spill] sm:$0xff] %v16094_v5  ;;  %v12412_v19 = vld [vmem:[#allocation12 + $0xe8] ss:$16 sps:$4 sm:$0xff]   ;;  %8947 = vmatprep.subr.bf16.mxu1 %v12417_v45 }
0x1d49   : > { %9059 = vmatpush1.bf16.msra.mxu0 %v12412_v19 }
0x1d4a   : > { %17352 = vst [vmem:[#allocation54_spill] sm:$0xff] %v16089_v39  ;;  %8523 = vadd.xlane.f32.xlu0 %v16085_v50  ;;  %8521 = vadd.xlane.f32.xlu1 %v16089_v39 }
0x1d4e   : > { %8525 = vadd.xlane.f32.xlu1 %v16094_v5 }
0x1d80   : > { %v12116_v25 = vpop.f32.mrf.mxu0 }
0x1d81   : > { %v8479_v8 = vadd.f32 %v12116_v25, %v16024_v7  ;;  %v12420_v25 = vld [vmem:[#allocation12 + $0xcc] ss:$16 sps:$4 sm:$0xff]  }
0x1d82   : > { %v8470_v10 = vpop.f32.mrf.mxu0  ;;  %9060 = vmatprep.subr.bf16.mxu0 %v12420_v25 }
0x1d83   : > { %v8471_v11 = vadd.f32 %v16024_v7, %v8470_v10  ;;  %v16108_v31 = vadd.f32 %v12950_v47, %v8479_v8  ;;  %v12415_v10 = vld [vmem:[#allocation12 + $0xc0] ss:$16 sps:$4 sm:$0xff]   ;;  %v12438_v47 = vld [vmem:[#allocation12 + $0x6c] ss:$16 sps:$4 sm:$0xff]  }
0x1d84   : > { %v12117_v44 = vpop.f32.mrf.mxu0  ;;  %8948 = vmatpush1.bf16.msra.mxu1 %v12415_v10  ;;  %v12421_v8 = vld [vmem:[#allocation12 + $0xa0] ss:$16 sps:$4 sm:$0xff]  }
0x1d85   : > { %v16100_v51 = vadd.f32 %v12949_v56, %v8471_v11  ;;  %17355 = vst [vmem:[#allocation76_spill] sm:$0xff] %v16108_v31  ;;  %v8482_v17 = vadd.f32 %v12117_v44, %v16024_v7  ;;  %v12418_v11 = vld [vmem:[#allocation12 + $0xc8] ss:$16 sps:$4 sm:$0xff]   ;;  %v12426_v44 = vld [vmem:[#allocation12 + $0xac] ss:$16 sps:$4 sm:$0xff]   ;;  %8949 = vmatprep.subr.bf16.mxu1 %v12423_v22 }
0x1d86   : > { %v8473_v30 = vpop.f32.mrf.mxu0  ;;  %9061 = vmatpush1.bf16.msra.mxu0 %v12418_v11  ;;  %v12424_v56 = vld [vmem:[#allocation12 + $0xa8] ss:$16 sps:$4 sm:$0xff]  }
0x1d87   : > { %17354 = vst [vmem:[#allocation77_spill] sm:$0xff] %v16100_v51  ;;  %v8474_v20 = vadd.f32 %v16024_v7, %v8473_v30  ;;  %8527 = vadd.xlane.f32.xlu0 %v16100_v51  ;;  %v16125_v7 = vadd.f32 %v12952_v21, %v8482_v17  ;;  %9062 = vmatprep.subr.bf16.mxu0 %v12426_v44  ;;  %v12432_v30 = vld [vmem:[#allocation12 + $0x8c] ss:$16 sps:$4 sm:$0xff]   ;;  %v12433_v17 = vld [vmem:[#allocation12 + $0x60] ss:$16 sps:$4 sm:$0xff]  }
0x1d88   : > { %8950 = vmatpush1.bf16.msra.mxu1 %v12421_v8  ;;  %v12442_v21 = vld [vmem:[#allocation12 + $0x48] ss:$16 sps:$4 sm:$0xff]  }
0x1d89   : > { %v16112_v23 = vadd.f32 %v12951_v34, %v8474_v20  ;;  %17357 = vst [vmem:[#allocation33_spill] sm:$0xff] %v16125_v7  ;;  %v12427_v20 = vld [vmem:[#allocation12 + $0x80] ss:$16 sps:$4 sm:$0xff]   ;;  %8951 = vmatprep.subr.bf16.mxu1 %v12429_v6  ;;  %v12436_v34 = vld [vmem:[#allocation12 + $0x68] ss:$16 sps:$4 sm:$0xff]  }
0x1d8a   : > { %9063 = vmatpush1.bf16.msra.mxu0 %v12424_v56 }
0x1d8b   : > { %17356 = vst [vmem:[#allocation78_spill] sm:$0xff] %v16112_v23  ;;  %8529 = vadd.xlane.f32.xlu1 %v16112_v23  ;;  %8531 = vadd.xlane.f32.xlu0 %v16108_v31 }
0x1d8c   : > { %9064 = vmatprep.subr.bf16.mxu0 %v12432_v30  ;;  %8952 = vmatpush1.bf16.msra.mxu1 %v12427_v20 }
0x1d8d   : > { %8953 = vmatprep.subr.bf16.mxu1 %v12435_v46 }
0x1d8e   : > { %v8512_v18 = vpop.xlane.xlu0 %8511  ;;  %9065 = vmatpush1.bf16.msra.mxu0 %v12430_v37 }
0x1d8f   : > { %8533 = vadd.xlane.f32.xlu1 %v16125_v7  ;;  %8583 = vadd.xlane.f32.xlu0 %v8567_v59  ;;  %v8539_v33 = vmul.f32 0.0078125, %v8512_v18  ;;  %v12444_v59 = vld [vmem:[#allocation12 + $0x4c] ss:$16 sps:$4 sm:$0xff]   ;;  %v12447_v18 = vld [vmem:[#allocation12 + $0x24] ss:$16 sps:$4 sm:$0xff]  }
0x1d90   : > { %9066 = vmatprep.subr.bf16.mxu0 %v12438_v47  ;;  %8954 = vmatpush1.bf16.msra.mxu1 %v12433_v17 }
0x1d91   : > { %v16136_v3 = vsub.f32 %v16060_v61, %v8539_v33  ;;  %8955 = vmatprep.subr.bf16.mxu1 %v12441_v24  ;;  %v12450_v33 = vld [vmem:[#allocation12 + $0x2c] ss:$16 sps:$4 sm:$0xff]  }
0x1d92   : > { %v8516_v40 = vpop.xlane.xlu0 %8515  ;;  %v8514_v27 = vpop.xlane.xlu1 %8513  ;;  %9067 = vmatpush1.bf16.msra.mxu0 %v12436_v34 }
0x1d93   : > { %8585 = vadd.xlane.f32.xlu1 %v8568_v1  ;;  %8587 = vadd.xlane.f32.xlu0 %v8569_v54  ;;  %v8541_v26 = vmul.f32 0.0078125, %v8516_v40  ;;  %v8540_v53 = vmul.f32 0.0078125, %v8514_v27  ;;  %v8571_v62 = vmul.f32 %v16136_v3, %v16136_v3  ;;  %v12445_v1 = vld [vmem:[#allocation12 + $0x20] ss:$16 sps:$4 sm:$0xff]   ;;  %v12448_v54 = vld [vmem:[#allocation12 + $0x28] ss:$16 sps:$4 sm:$0xff]  }
0x1d94   : > { %9068 = vmatprep.subr.bf16.mxu0 %v12444_v59  ;;  %8956 = vmatpush1.bf16.msra.mxu1 %v12439_v52  ;;  %v12453_v40 = vld [vmem:[#allocation12 + $0x4] ss:$16 sps:$4 sm:$0xff]   ;;  %v12456_v27 = vld [vmem:[#allocation12 + $0xc] ss:$16 sps:$4 sm:$0xff]  }
0x1d95   : > { %v16143_v14 = vsub.f32 %v16065_v57, %v8541_v26  ;;  %v16146_v2 = vsub.f32 %v16069_v12, %v8540_v53  ;;  %8957 = vmatprep.subr.bf16.mxu1 %v12447_v18  ;;  %v12451_v26 = vld [vmem:[#allocation12] ss:$16 sps:$4 sm:$0xff]   ;;  %v12454_v53 = vld [vmem:[#allocation12 + $0x8] ss:$16 sps:$4 sm:$0xff]  }
0x1d96   : > { %v8518_v4 = vpop.xlane.xlu1 %8517  ;;  %9069 = vmatpush1.bf16.msra.mxu0 %v12442_v21 }
0x1d97   : > { %8589 = vadd.xlane.f32.xlu1 %v8570_v48  ;;  %8591 = vadd.xlane.f32.xlu0 %v8571_v62  ;;  %v8542_v13 = vmul.f32 0.0078125, %v8518_v4  ;;  %v8572_v63 = vmul.f32 %v16146_v2, %v16146_v2  ;;  %v8573_v38 = vmul.f32 %v16143_v14, %v16143_v14 }
0x1d98   : > { %9070 = vmatprep.subr.bf16.mxu0 %v12450_v33  ;;  %8958 = vmatpush1.bf16.msra.mxu1 %v12445_v1 }
0x1d99   : > { %v16153_v41 = vsub.f32 %v16074_v36, %v8542_v13  ;;  %8959 = vmatprep.subr.bf16.mxu1 %v12453_v40 }
0x1d9a   : > { %9071 = vmatpush1.bf16.msra.mxu0 %v12448_v54 }
0x1d9b   : > { %8593 = vadd.xlane.f32.xlu1 %v8572_v63  ;;  %8595 = vadd.xlane.f32.xlu0 %v8573_v38  ;;  %v8574_v28 = vmul.f32 %v16153_v41, %v16153_v41 }
0x1d9c   : > { %9072 = vmatprep.subr.bf16.mxu0 %v12456_v27  ;;  %8960 = vmatpush1.bf16.msra.mxu1 %v12451_v26 }
0x1d9e   : > { %9073 = vmatpush1.bf16.msra.mxu0 %v12454_v53 }
0x1d9f   : > { %8597 = vadd.xlane.f32.xlu1 %v8574_v28 }
0x1dcf   : > { %v8520_v48 = vpop.xlane.xlu0 %8519 }
0x1dd0   : > { %v8543_v62 = vmul.f32 0.0078125, %v8520_v48 }
0x1dd2   : > { %v16158_v16 = vsub.f32 %v16080_v55, %v8543_v62 }
0x1dd3   : > { %v8524_v60 = vpop.xlane.xlu0 %8523  ;;  %v8522_v4 = vpop.xlane.xlu1 %8521 }
0x1dd4   : > { %v8545_v35 = vmul.f32 0.0078125, %v8524_v60  ;;  %v8544_v19 = vmul.f32 0.0078125, %v8522_v4  ;;  %v8575_v13 = vmul.f32 %v16158_v16, %v16158_v16 }
0x1dd6   : > { %v16163_v63 = vsub.f32 %v16085_v50, %v8545_v35  ;;  %v16166_v38 = vsub.f32 %v16089_v39, %v8544_v19  ;;  %8599 = vadd.xlane.f32.xlu0 %v8575_v13 }
0x1dd7   : > { %v8526_v45 = vpop.xlane.xlu1 %8525 }
0x1dd8   : > { %v8546_v25 = vmul.f32 0.0078125, %v8526_v45  ;;  %v8576_v10 = vmul.f32 %v16166_v38, %v16166_v38  ;;  %v8577_v11 = vmul.f32 %v16163_v63, %v16163_v63 }
0x1dda   : > { %v16173_v28 = vsub.f32 %v16094_v5, %v8546_v25  ;;  %8601 = vadd.xlane.f32.xlu1 %v8576_v10  ;;  %8603 = vadd.xlane.f32.xlu0 %v8577_v11 }
0x1ddc   : > { %v8578_v22 = vmul.f32 %v16173_v28, %v16173_v28 }
0x1dde   : > { %8605 = vadd.xlane.f32.xlu1 %v8578_v22 }
0x1e10   : > { %v8528_v44 = vpop.xlane.xlu0 %8527 }
0x1e11   : > { %v8547_v8 = vmul.f32 0.0078125, %v8528_v44 }
0x1e13   : > { %v16178_v56 = vsub.f32 %v16100_v51, %v8547_v8 }
0x1e14   : > { %v8530_v6 = vpop.xlane.xlu1 %8529  ;;  %v8532_v30 = vpop.xlane.xlu0 %8531 }
0x1e15   : > { %v8548_v20 = vmul.f32 0.0078125, %v8530_v6  ;;  %v8549_v37 = vmul.f32 0.0078125, %v8532_v30  ;;  %v8579_v46 = vmul.f32 %v16178_v56, %v16178_v56 }
0x1e17   : > { %v16183_v47 = vsub.f32 %v16112_v23, %v8548_v20  ;;  %v16186_v17 = vsub.f32 %v16108_v31, %v8549_v37  ;;  %8607 = vadd.xlane.f32.xlu0 %v8579_v46  ;;  %v16201_v37 = vld [vmem:[%s17057_s7] ss:$0 sm:$0xff] }
0x1e18   : > { %v8534_v34 = vpop.xlane.xlu1 %8533  ;;  %v8584_v24 = vpop.xlane.xlu0 %8583 }
0x1e19   : > { %v8550_v59 = vmul.f32 0.0078125, %v8534_v34  ;;  %v8615_v52 = vmul.f32 0.0078125, %v8584_v24  ;;  %v8580_v21 = vmul.f32 %v16183_v47, %v16183_v47  ;;  %v8581_v18 = vmul.f32 %v16186_v17, %v16186_v17 }
0x1e1b   : > { %v16193_v33 = vsub.f32 %v16125_v7, %v8550_v59  ;;  %v8631_v1 = vadd.f32 1e-05, %v8615_v52  ;;  %8609 = vadd.xlane.f32.xlu1 %v8580_v21  ;;  %8611 = vadd.xlane.f32.xlu0 %v8581_v18  ;;  %v16208_v18 = vld [vmem:[%s17058_s8] ss:$0 sm:$0xff] }
0x1e1c   : > { %v8586_v54 = vpop.xlane.xlu1 %8585  ;;  %v8588_v40 = vpop.xlane.xlu0 %8587 }
0x1e1d   : > { %12777 = vrsqrt.f32 %v8631_v1  ;;  %v8616_v27 = vmul.f32 0.0078125, %v8586_v54  ;;  %v8617_v26 = vmul.f32 0.0078125, %v8588_v40  ;;  %v8582_v53 = vmul.f32 %v16193_v33, %v16193_v33 }
0x1e1f   : > { %v8632_v48 = vadd.f32 1e-05, %v8616_v27  ;;  %v8633_v62 = vadd.f32 1e-05, %v8617_v26  ;;  %8613 = vadd.xlane.f32.xlu1 %v8582_v53 }
0x1e20   : > { %v8590_v60 = vpop.xlane.xlu1 %8589  ;;  %v8592_v4 = vpop.xlane.xlu0 %8591 }
0x1e21   : > { %12779 = vrsqrt.f32 %v8632_v48  ;;  %v8618_v35 = vmul.f32 0.0078125, %v8590_v60  ;;  %v8619_v13 = vmul.f32 0.0078125, %v8592_v4 }
0x1e22   : > { %12781 = vrsqrt.f32 %v8633_v62 }
0x1e23   : > { %v8634_v19 = vadd.f32 1e-05, %v8618_v35  ;;  %v8635_v10 = vadd.f32 1e-05, %v8619_v13 }
0x1e24   : > { %v8594_v45 = vpop.xlane.xlu1 %8593  ;;  %v8596_v22 = vpop.xlane.xlu0 %8595 }
0x1e25   : > { %12783 = vrsqrt.f32 %v8634_v19  ;;  %v8620_v25 = vmul.f32 0.0078125, %v8594_v45  ;;  %v8621_v30 = vmul.f32 0.0078125, %v8596_v22 }
0x1e27   : > { %v8636_v11 = vadd.f32 1e-05, %v8620_v25  ;;  %v8637_v24 = vadd.f32 1e-05, %v8621_v30 }
0x1e28   : > { %v8598_v44 = vpop.xlane.xlu1 %8597 }
0x1e29   : > { %12785 = vrsqrt.f32 %v8636_v11  ;;  %v8622_v8 = vmul.f32 0.0078125, %v8598_v44 }
0x1e2a   : > { %v12778_v6 = vpop.eup %12777  ;;  %12787 = vrsqrt.f32 %v8635_v10 }
0x1e2b   : > { %v8663_v20 = vmul.f32 %v12778_v6, %v16105_v58  ;;  %v8638_v46 = vadd.f32 1e-05, %v8622_v8 }
0x1e2d   : > { %v8685_v52 = vmul.f32 %v16201_v37, %v8663_v20  ;;  %12789 = vrsqrt.f32 %v8638_v46 }
0x1e2e   : > { %v12780_v34 = vpop.eup %12779  ;;  %12791 = vrsqrt.f32 %v8637_v24 }
0x1e2f   : > { %v8664_v59 = vmul.f32 %v12780_v34, %v16122_v15  ;;  %v12782_v21 = vpop.eup %12781  ;;  %v8707_v54 = vadd.f32 %v16208_v18, %v8685_v52 }
0x1e30   : > { %v8665_v27 = vmul.f32 %v12782_v21, %v16119_v29 }
0x1e31   : > { %v8686_v58 = vmul.f32 %v16201_v37, %v8664_v59 }
0x1e32   : > { %v12784_v1 = vpop.eup %12783  ;;  %v8687_v62 = vmul.f32 %v16201_v37, %v8665_v27 }
0x1e33   : > { %v8708_v40 = vadd.f32 %v16208_v18, %v8686_v58  ;;  %v8666_v15 = vmul.f32 %v12784_v1, %v16129_v42 }
0x1e34   : > { %v8709_v29 = vadd.f32 %v16208_v18, %v8687_v62 }
0x1e35   : > { %v8723_v26 = vpack.c.bf16 %v8708_v40, %v8707_v54  ;;  %v8688_v53 = vmul.f32 %v16201_v37, %v8666_v15 }
0x1e36   : > { %v12786_v48 = vpop.eup %12785 }
0x1e37   : > { %8978 = vmatmul.mubr.bf16.vlgmr.msra.gmra.mxu1 %v8723_v26  ;;  %9091 = vmatmul.mubr.bf16.vlgmr.msra.gmra.mxu0 %v8723_v26  ;;  %v12788_v60 = vpop.eup %12787  ;;  %v8710_v4 = vadd.f32 %v16208_v18, %v8688_v53  ;;  %v8668_v35 = vmul.f32 %v12786_v48, %v16146_v2 }
0x1e38   : > { %8987 = vmatprep.mubr.bf16.mxu1 %v17293_v0  ;;  %9100 = vmatprep.mubr.bf16.mxu0 %v17293_v0  ;;  %v8667_v42 = vmul.f32 %v12788_v60, %v16136_v3 }
0x1e39   : > { %v8724_v19 = vpack.c.bf16 %v8710_v4, %v8709_v29  ;;  %v8690_v13 = vmul.f32 %v16201_v37, %v8668_v35 }
0x1e3a   : > { %v12790_v45 = vpop.eup %12789  ;;  %v8689_v10 = vmul.f32 %v16201_v37, %v8667_v42 }
0x1e3b   : > { %v12792_v25 = vpop.eup %12791  ;;  %v8712_v11 = vadd.f32 %v16208_v18, %v8690_v13  ;;  %v8670_v2 = vmul.f32 %v12790_v45, %v16153_v41 }
0x1e3c   : > { %v8711_v22 = vadd.f32 %v16208_v18, %v8689_v10  ;;  %v8669_v3 = vmul.f32 %v12792_v25, %v16143_v14  ;;  %v12457_v10 = vld [vmem:[#allocation14 + $0x78] sm:$0xff]  }
0x1e3d   : > { %v8692_v8 = vmul.f32 %v16201_v37, %v8670_v2  ;;  %11030 = vmatprep.subr.bf16.mxu1 %v12457_v10  ;;  %v12486_v10 = vld [vmem:[#allocation14 + $0xc0] sm:$0xff]  }
0x1e3e   : > { %v8725_v44 = vpack.c.bf16 %v8712_v11, %v8711_v22  ;;  %v8691_v6 = vmul.f32 %v16201_v37, %v8669_v3  ;;  %v12458_v11 = vld [vmem:[#allocation14 + $0xf8] sm:$0xff]   ;;  %v12461_v3 = vld [vmem:[#allocation14 + $0x70] sm:$0xff]  }
0x1e3f   : > { %8988 = vmatmul.mubr.bf16.gmra.mxu1 %v8724_v19  ;;  %9101 = vmatmul.mubr.bf16.gmra.mxu0 %v8724_v19  ;;  %v8714_v30 = vadd.f32 %v16208_v18, %v8692_v8  ;;  %v12460_v22 = vld [vmem:[#allocation14 + $0xb8] sm:$0xff]   ;;  %v12463_v8 = vld [vmem:[#allocation14 + $0x30] sm:$0xff]  }
0x1e40   : > { %8997 = vmatprep.mubr.bf16.mxu1 %v17293_v0  ;;  %9110 = vmatprep.mubr.bf16.mxu0 %v17293_v0  ;;  %v8713_v20 = vadd.f32 %v16208_v18, %v8691_v6  ;;  %v12464_v6 = vld [vmem:[#allocation14 + $0xb0] sm:$0xff]  }
0x1e41   : > { %11094 = vmatprep.subr.bf16.mxu0 %v12458_v11 }
0x1e42   : > { %v8726_v41 = vpack.c.bf16 %v8714_v30, %v8713_v20  ;;  %11095 = vmatpush3.bf16.msra.mxu0 %v12460_v22  ;;  %v12465_v30 = vld [vmem:[#allocation14 + $0x68] sm:$0xff]  }
0x1e43   : > { %v12466_v20 = vld [vmem:[#allocation14 + $0xe8] sm:$0xff]  }
0x1e47   : > { %8998 = vmatmul.mubr.bf16.gmra.mxu1 %v8725_v44  ;;  %9111 = vmatmul.mubr.bf16.gmra.mxu0 %v8725_v44  ;;  %v12462_v44 = vld [vmem:[#allocation14 + $0xf0] sm:$0xff]  }
0x1e48   : > { %9007 = vmatprep.mubr.bf16.mxu1 %v17293_v0  ;;  %9120 = vmatprep.mubr.bf16.mxu0 %v17293_v0 }
0x1e49   : > { %11096 = vmatprep.subr.bf16.mxu0 %v12462_v44 }
0x1e4a   : > { %11097 = vmatpush3.bf16.msra.mxu0 %v12464_v6 }
0x1e4b   : > { %11098 = vmatprep.subr.bf16.mxu0 %v12466_v20 }
0x1e4f   : > { %9008 = vmatmul.mubr.bf16.gmra.mxu1 %v8726_v41  ;;  %9121 = vmatmul.mubr.bf16.gmra.mxu0 %v8726_v41  ;;  %v12467_v41 = vld [vmem:[#allocation14 + $0x28] sm:$0xff]  }
0x1e50   : > { %9017 = vmatprep.mubr.bf16.mxu1 %v17293_v0  ;;  %9130 = vmatprep.mubr.bf16.mxu0 %v17293_v0 }
0x1e5f   : > { %v8600_v14 = vpop.xlane.xlu0 %8599 }
0x1e60   : > { %v8623_v46 = vmul.f32 0.0078125, %v8600_v14  ;;  %v12468_v14 = vld [vmem:[#allocation14 + $0xa8] sm:$0xff]  }
0x1e61   : > { %11099 = vmatpush3.bf16.msra.mxu0 %v12468_v14 }
0x1e62   : > { %v8639_v34 = vadd.f32 1e-05, %v8623_v46  ;;  %v12469_v46 = vld [vmem:[#allocation14 + $0x60] sm:$0xff]  }
0x1e63   : > { %v8602_v24 = vpop.xlane.xlu1 %8601  ;;  %v8604_v59 = vpop.xlane.xlu0 %8603 }
0x1e64   : > { %12793 = vrsqrt.f32 %v8639_v34  ;;  %v8624_v52 = vmul.f32 0.0078125, %v8602_v24  ;;  %v8625_v21 = vmul.f32 0.0078125, %v8604_v59  ;;  %v12470_v34 = vld [vmem:[#allocation14 + $0xe0] sm:$0xff]  }
0x1e65   : > { %v12471_v24 = vld [vmem:[#allocation14 + $0x20] sm:$0xff]   ;;  %11100 = vmatprep.subr.bf16.mxu0 %v12470_v34 }
0x1e66   : > { %v8640_v58 = vadd.f32 1e-05, %v8624_v52  ;;  %v8641_v1 = vadd.f32 1e-05, %v8625_v21  ;;  %v12472_v59 = vld [vmem:[#allocation14 + $0xa0] sm:$0xff]   ;;  %v12473_v52 = vld [vmem:[#allocation14 + $0x58] sm:$0xff]  }
0x1e67   : > { %v8606_v54 = vpop.xlane.xlu1 %8605  ;;  %11101 = vmatpush3.bf16.msra.mxu0 %v12472_v59  ;;  %v12474_v21 = vld [vmem:[#allocation14 + $0xd8] sm:$0xff]  }
0x1e68   : > { %12795 = vrsqrt.f32 %v8640_v58  ;;  %v8626_v40 = vmul.f32 0.0078125, %v8606_v54  ;;  %v12475_v58 = vld [vmem:[#allocation14 + $0x18] sm:$0xff]   ;;  %11102 = vmatprep.subr.bf16.mxu0 %v12474_v21  ;;  %v12477_v54 = vld [vmem:[#allocation14 + $0x50] sm:$0xff]  }
0x1e69   : > { %12797 = vrsqrt.f32 %v8641_v1  ;;  %v12476_v1 = vld [vmem:[#allocation14 + $0x98] sm:$0xff]  }
0x1e6a   : > { %v8642_v27 = vadd.f32 1e-05, %v8626_v40  ;;  %v12478_v40 = vld [vmem:[#allocation14 + $0xd0] sm:$0xff]  }
0x1e6b   : > { %11103 = vmatpush3.bf16.msra.mxu0 %v12476_v1 }
0x1e6c   : > { %12799 = vrsqrt.f32 %v8642_v27  ;;  %11104 = vmatprep.subr.bf16.mxu0 %v12478_v40 }
0x1e71   : > { %v12794_v15 = vpop.eup %12793 }
0x1e72   : > { %v8671_v26 = vmul.f32 %v12794_v15, %v16158_v16  ;;  %v12479_v15 = vld [vmem:[#allocation14 + $0x10] sm:$0xff]  }
0x1e74   : > { %v8693_v62 = vmul.f32 %v16201_v37, %v8671_v26  ;;  %v12480_v26 = vld [vmem:[#allocation14 + $0x90] sm:$0xff]  }
0x1e75   : > { %v12796_v53 = vpop.eup %12795  ;;  %11105 = vmatpush3.bf16.msra.mxu0 %v12480_v26 }
0x1e76   : > { %v8672_v48 = vmul.f32 %v12796_v53, %v16166_v38  ;;  %v12798_v60 = vpop.eup %12797  ;;  %v8715_v29 = vadd.f32 %v16208_v18, %v8693_v62 }
0x1e77   : > { %v8673_v19 = vmul.f32 %v12798_v60, %v16163_v63  ;;  %v12459_v63 = vld [vmem:[#allocation14 + $0x38] sm:$0xff]  }
0x1e78   : > { %v8694_v4 = vmul.f32 %v16201_v37, %v8672_v48  ;;  %11031 = vmatpush3.bf16.msra.mxu1 %v12459_v63  ;;  %v12488_v63 = vld [vmem:[#allocation14 + $0x80] sm:$0xff]  }
0x1e79   : > { %v12800_v35 = vpop.eup %12799  ;;  %v8695_v38 = vmul.f32 %v16201_v37, %v8673_v19  ;;  %11032 = vmatprep.subr.bf16.mxu1 %v12461_v3  ;;  %v12483_v19 = vld [vmem:[#allocation14 + $0x8] sm:$0xff]  }
0x1e7a   : > { %v8716_v42 = vadd.f32 %v16208_v18, %v8694_v4  ;;  %v8674_v13 = vmul.f32 %v12800_v35, %v16173_v28  ;;  %v12481_v4 = vld [vmem:[#allocation14 + $0x48] sm:$0xff]  }
0x1e7b   : > { %v8717_v2 = vadd.f32 %v16208_v18, %v8695_v38  ;;  %v12482_v35 = vld [vmem:[#allocation14 + $0xc8] sm:$0xff]  }
0x1e7c   : > { %v8727_v45 = vpack.c.bf16 %v8716_v42, %v8715_v29  ;;  %v8696_v16 = vmul.f32 %v16201_v37, %v8674_v13  ;;  %11033 = vmatpush3.bf16.msra.mxu1 %v12463_v8  ;;  %v12484_v13 = vld [vmem:[#allocation14 + $0x88] sm:$0xff]   ;;  %11106 = vmatprep.subr.bf16.mxu0 %v12482_v35 }
0x1e7d   : > { %11034 = vmatprep.subr.bf16.mxu1 %v12465_v30  ;;  %11107 = vmatpush3.bf16.msra.mxu0 %v12484_v13 }
0x1e7e   : > { %9018 = vmatmul.mubr.bf16.gmra.mxu1 %v8727_v45  ;;  %9131 = vmatmul.mubr.bf16.gmra.mxu0 %v8727_v45  ;;  %v8718_v25 = vadd.f32 %v16208_v18, %v8696_v16 }
0x1e7f   : > { %9027 = vmatprep.mubr.bf16.mxu1 %v17293_v0  ;;  %9140 = vmatprep.mubr.bf16.mxu0 %v17293_v0 }
0x1e80   : > { %v8728_v28 = vpack.c.bf16 %v8718_v25, %v8717_v2  ;;  %11035 = vmatpush3.bf16.msra.mxu1 %v12467_v41  ;;  %v12485_v25 = vld [vmem:[#allocation14 + $0x40] sm:$0xff]   ;;  %11108 = vmatprep.subr.bf16.mxu0 %v12486_v10 }
0x1e81   : > { %11036 = vmatprep.subr.bf16.mxu1 %v12469_v46  ;;  %v12487_v2 = vld [vmem:[#allocation14] sm:$0xff]   ;;  %11109 = vmatpush3.bf16.msra.mxu0 %v12488_v63 }
0x1e84   : > { %11037 = vmatpush3.bf16.msra.mxu1 %v12471_v24 }
0x1e85   : > { %11038 = vmatprep.subr.bf16.mxu1 %v12473_v52 }
0x1e86   : > { %9028 = vmatmul.mubr.bf16.gmra.mxu1 %v8728_v28  ;;  %9141 = vmatmul.mubr.bf16.gmra.mxu0 %v8728_v28 }
0x1e87   : > { %9037 = vmatprep.mubr.bf16.mxu1 %v17293_v0  ;;  %9150 = vmatprep.mubr.bf16.mxu0 %v17293_v0 }
0x1e88   : > { %11039 = vmatpush3.bf16.msra.mxu1 %v12475_v58 }
0x1e89   : > { %11040 = vmatprep.subr.bf16.mxu1 %v12477_v54 }
0x1e8c   : > { %11041 = vmatpush3.bf16.msra.mxu1 %v12479_v15 }
0x1e8d   : > { %11042 = vmatprep.subr.bf16.mxu1 %v12481_v4 }
0x1e90   : > { %11043 = vmatpush3.bf16.msra.mxu1 %v12483_v19 }
0x1e91   : > { %11044 = vmatprep.subr.bf16.mxu1 %v12485_v25 }
0x1e94   : > { %11045 = vmatpush3.bf16.msra.mxu1 %v12487_v2 }
0x1ea0   : > { %v8608_v27 = vpop.xlane.xlu0 %8607 }
0x1ea1   : > { %v8627_v53 = vmul.f32 0.0078125, %v8608_v27 }
0x1ea3   : > { %v8643_v48 = vadd.f32 1e-05, %v8627_v53 }
0x1ea4   : > { %v8610_v62 = vpop.xlane.xlu1 %8609  ;;  %v8612_v60 = vpop.xlane.xlu0 %8611 }
0x1ea5   : > { %12801 = vrsqrt.f32 %v8643_v48  ;;  %v8628_v29 = vmul.f32 0.0078125, %v8610_v62  ;;  %v8629_v42 = vmul.f32 0.0078125, %v8612_v60 }
0x1ea7   : > { %v8644_v45 = vadd.f32 1e-05, %v8628_v29  ;;  %v8645_v16 = vadd.f32 1e-05, %v8629_v42 }
0x1ea8   : > { %v8614_v38 = vpop.xlane.xlu1 %8613 }
0x1ea9   : > { %12803 = vrsqrt.f32 %v8644_v45  ;;  %v8630_v11 = vmul.f32 0.0078125, %v8614_v38 }
0x1eaa   : > { %12805 = vrsqrt.f32 %v8645_v16 }
0x1eab   : > { %v8646_v22 = vadd.f32 1e-05, %v8630_v11 }
0x1ead   : > { %12807 = vrsqrt.f32 %v8646_v22 }
0x1eb2   : > { %v12802_v28 = vpop.eup %12801 }
0x1eb3   : > { %v8675_v3 = vmul.f32 %v12802_v28, %v16178_v56 }
0x1eb5   : > { %v8697_v6 = vmul.f32 %v16201_v37, %v8675_v3 }
0x1eb6   : > { %v12804_v44 = vpop.eup %12803 }
0x1eb7   : > { %v8676_v8 = vmul.f32 %v12804_v44, %v16183_v47  ;;  %v12806_v30 = vpop.eup %12805  ;;  %v8719_v14 = vadd.f32 %v16208_v18, %v8697_v6 }
0x1eb8   : > { %v8677_v34 = vmul.f32 %v12806_v30, %v16186_v17  ;;  %v8763_v17 = vld [vmem:[%s17060_s10] sm:$0xf] }
0x1eb9   : > { %v8698_v20 = vmul.f32 %v16201_v37, %v8676_v8 }
0x1eba   : > { %v12808_v41 = vpop.eup %12807  ;;  %v8699_v47 = vmul.f32 %v16201_v37, %v8677_v34 }
0x1ebb   : > { %v8720_v46 = vadd.f32 %v16208_v18, %v8698_v20  ;;  %v8678_v24 = vmul.f32 %v12808_v41, %v16193_v33  ;;  %v17358_v33 = vld [vmem:[#allocation22_spill] sm:$0xff] }
0x1ebc   : > { %v8721_v21 = vadd.f32 %v16208_v18, %v8699_v47  ;;  %v17359_v1 = vsub.s32 0, %v17358_v33  ;;  %v8779_v15 = vsub.s32 3, %v17358_v33  ;;  %v17363_v4 = vsub.s32 1, %v17358_v33 }
0x1ebd   : > { %v8729_v59 = vpack.c.bf16 %v8720_v46, %v8719_v14  ;;  %v8700_v56 = vmul.f32 %v16201_v37, %v8678_v24  ;;  %v17361_v37 = vsub.s32 2, %v17358_v33 }
0x1ebe   : > { %v16274_v54 = vrot.slane %v8763_v17, %v17359_v1  ;;  %v16285_v35 = vrot.slane %v8763_v17, %v17363_v4  ;;  %v16287_v29 = vrot.slane %v8763_v17, %v8779_v15 }
0x1ebf   : > { %9038 = vmatmul.mubr.bf16.gmra.mxu1 %v8729_v59  ;;  %9151 = vmatmul.mubr.bf16.gmra.mxu0 %v8729_v59  ;;  %v8722_v52 = vadd.f32 %v16208_v18, %v8700_v56  ;;  %v16278_v40 = vrot.slane %v8763_v17, %v17361_v37 }
0x1ec0   : > { %9047 = vmatprep.mubr.bf16.mxu1 %v17293_v0  ;;  %9160 = vmatprep.mubr.bf16.mxu0 %v17293_v0  ;;  %17360 = vst [vmem:[#allocation46_spill] sm:$0xff] %v16274_v54  ;;  %17364 = vst [vmem:[#allocation70_spill] sm:$0xff] %v16285_v35 }
0x1ec1   : > { %v8730_v58 = vpack.c.bf16 %v8722_v52, %v8721_v21  ;;  %17362 = vst [vmem:[#allocation59_spill] sm:$0xff] %v16278_v40 }
0x1ec7   : > { %9048 = vmatmul.mubr.bf16.gmra.mxu1 %v8730_v58  ;;  %9161 = vmatmul.mubr.bf16.gmra.mxu0 %v8730_v58 }
0x1ef7   : > { %v8979_v0 = vpop.f32.mrf.mxu1  ;;  %v9092_v27 = vpop.f32.mrf.mxu0 }
0x1ef8   : > { %v8980_v18 = vadd.f32 %v8979_v0, %v16274_v54  ;;  %v9093_v26 = vadd.f32 %v9092_v27, %v16278_v40 }
0x1ef9   : > { %v8981_v53 = vpop.f32.mrf.mxu1  ;;  %v9094_v48 = vpop.f32.mrf.mxu0 }
0x1efa   : > { %v9235_v62 = vmul.f32 0.044715, %v8980_v18  ;;  %v9237_v60 = vmul.f32 0.044715, %v9093_v26  ;;  %v16294_v22 = vadd.f32 %v8981_v53, %v16285_v35  ;;  %v16298_v30 = vadd.f32 %v9094_v48, %v16287_v29 }
0x1efb   : > { %v8983_v42 = vpop.f32.mrf.mxu1  ;;  %v9096_v19 = vpop.f32.mrf.mxu0  ;;  %v16301_v34 = vmul.f32 0.5, %v8980_v18  ;;  %v16303_v59 = vmul.f32 0.5, %v9093_v26 }
0x1efc   : > { %v9299_v13 = vmul.f32 %v9235_v62, %v8980_v18  ;;  %v9301_v45 = vmul.f32 %v9237_v60, %v9093_v26  ;;  %v8984_v16 = vadd.f32 %v8983_v42, %v16274_v54  ;;  %v16291_v38 = vadd.f32 %v9096_v19, %v16278_v40 }
0x1efd   : > { %v8985_v25 = vpop.f32.mrf.mxu1  ;;  %v9098_v10 = vpop.f32.mrf.mxu0  ;;  %v9236_v1 = vmul.f32 0.044715, %v16294_v22  ;;  %v9238_v37 = vmul.f32 0.044715, %v16298_v30  ;;  %v16315_v27 = vmul.f32 0.5, %v16294_v22  ;;  %v16320_v48 = vmul.f32 0.5, %v16298_v30 }
0x1efe   : > { %v9363_v11 = vmul.f32 %v9299_v13, %v8980_v18  ;;  %v9365_v2 = vmul.f32 %v9301_v45, %v9093_v26  ;;  %v9239_v63 = vmul.f32 0.044715, %v8984_v16  ;;  %v9241_v28 = vmul.f32 0.044715, %v16291_v38 }
0x1eff   : > { %v8989_v3 = vpop.f32.mrf.mxu1  ;;  %v9102_v44 = vpop.f32.mrf.mxu0  ;;  %v16322_v62 = vmul.f32 0.5, %v8984_v16  ;;  %v16325_v4 = vadd.f32 %v8985_v25, %v16285_v35  ;;  %v16329_v13 = vadd.f32 %v9098_v10, %v16287_v29 }
0x1f00   : > { %v9427_v8 = vadd.f32 %v9363_v11, %v8980_v18  ;;  %v9429_v6 = vadd.f32 %v9365_v2, %v9093_v26  ;;  %v9303_v20 = vmul.f32 %v9239_v63, %v8984_v16  ;;  %v9305_v41 = vmul.f32 %v9241_v28, %v16291_v38 }
0x1f01   : > { %v8991_v14 = vpop.f32.mrf.mxu1  ;;  %v9104_v46 = vpop.f32.mrf.mxu0  ;;  %v16307_v21 = vadd.f32 %v8989_v3, %v16274_v54  ;;  %v16310_v58 = vadd.f32 %v9102_v44, %v16278_v40  ;;  %v9300_v63 = vmul.f32 %v9236_v1, %v16294_v22 }
0x1f02   : > { %v9491_v24 = vmul.f32 0.7978846, %v9427_v8  ;;  %v9367_v56 = vmul.f32 %v9303_v20, %v8984_v16  ;;  %v9493_v47 = vmul.f32 0.7978846, %v9429_v6  ;;  %v9369_v52 = vmul.f32 %v9305_v41, %v16291_v38 }
0x1f03   : > { %v8993_v17 = vpop.f32.mrf.mxu1  ;;  %v9106_v33 = vpop.f32.mrf.mxu0  ;;  %v9243_v18 = vmul.f32 0.044715, %v16307_v21  ;;  %v9245_v42 = vmul.f32 0.044715, %v16310_v58  ;;  %v16335_v28 = vadd.f32 %v8991_v14, %v16285_v35  ;;  %v16342_v10 = vadd.f32 %v9104_v46, %v16287_v29 }
0x1f04   : > { %v9431_v0 = vadd.f32 %v9367_v56, %v8984_v16  ;;  %12809 = vtanh.f32 %v9491_v24  ;;  %v9433_v15 = vadd.f32 %v9369_v52, %v16291_v38  ;;  %v16338_v25 = vadd.f32 %v8993_v17, %v16274_v54 }
0x1f05   : > { %v8995_v26 = vpop.f32.mrf.mxu1  ;;  %v9108_v53 = vpop.f32.mrf.mxu0  ;;  %12811 = vtanh.f32 %v9493_v47  ;;  %v9307_v45 = vmul.f32 %v9243_v18, %v16307_v21  ;;  %v9309_v16 = vmul.f32 %v9245_v42, %v16310_v58  ;;  %v16345_v44 = vadd.f32 %v9106_v33, %v16278_v40 }
0x1f06   : > { %v9495_v60 = vmul.f32 0.7978846, %v9431_v0  ;;  %v9497_v19 = vmul.f32 0.7978846, %v9433_v15  ;;  %v9302_v8 = vmul.f32 %v9238_v37, %v16298_v30  ;;  %v9247_v20 = vmul.f32 0.044715, %v16338_v25 }
0x1f07   : > { %v8999_v11 = vpop.f32.mrf.mxu1  ;;  %v9112_v2 = vpop.f32.mrf.mxu0  ;;  %v9371_v3 = vmul.f32 %v9307_v45, %v16307_v21  ;;  %v9373_v6 = vmul.f32 %v9309_v16, %v16310_v58  ;;  %v16351_v41 = vadd.f32 %v8995_v26, %v16285_v35  ;;  %v9240_v24 = vmul.f32 0.044715, %v16325_v4 }
0x1f08   : > { %12813 = vtanh.f32 %v9495_v60  ;;  %v9242_v56 = vmul.f32 0.044715, %v16329_v13  ;;  %v9249_v46 = vmul.f32 0.044715, %v16345_v44  ;;  %v9311_v17 = vmul.f32 %v9247_v20, %v16338_v25 }
0x1f09   : > { %v9001_v14 = vpop.f32.mrf.mxu1  ;;  %12815 = vtanh.f32 %v9497_v19  ;;  %v9114_v47 = vpop.f32.mrf.mxu0  ;;  %v9435_v52 = vadd.f32 %v9371_v3, %v16307_v21  ;;  %v16359_v33 = vadd.f32 %v9108_v53, %v16287_v29  ;;  %v16362_v1 = vadd.f32 %v8999_v11, %v16274_v54 }
0x1f0a   : > { %v9437_v37 = vadd.f32 %v9373_v6, %v16310_v58  ;;  %v9244_v0 = vmul.f32 0.044715, %v16335_v28  ;;  %v9246_v15 = vmul.f32 0.044715, %v16342_v10  ;;  %v9313_v18 = vmul.f32 %v9249_v46, %v16345_v44 }
0x1f0b   : > { %v16369_v26 = vmul.f32 0.5, %v16291_v38  ;;  %v9375_v60 = vmul.f32 %v9311_v17, %v16338_v25  ;;  %v9248_v42 = vmul.f32 0.044715, %v16351_v41  ;;  %v9251_v53 = vmul.f32 0.044715, %v16362_v1  ;;  %v9003_v19 = vpop.f32.mrf.mxu1  ;;  %v9116_v6 = vpop.f32.mrf.mxu0 }
0x1f0c   : > { %v16375_v45 = vmul.f32 %v9300_v63, %v16294_v22  ;;  %v9304_v11 = vmul.f32 %v9240_v24, %v16325_v4  ;;  %v9306_v16 = vmul.f32 %v9242_v56, %v16329_v13  ;;  %v16380_v3 = vadd.f32 %v9112_v2, %v16278_v40 }
0x1f0d   : > { %v9499_v38 = vmul.f32 0.7978846, %v9435_v52  ;;  %v9377_v20 = vmul.f32 %v9313_v18, %v16345_v44  ;;  %v9250_v46 = vmul.f32 0.044715, %v16359_v33  ;;  %v9315_v17 = vmul.f32 %v9251_v53, %v16362_v1  ;;  %v9005_v51 = vpop.f32.mrf.mxu1 }
0x1f0e   : > { %v9501_v7 = vmul.f32 0.7978846, %v9437_v37  ;;  %v9308_v31 = vmul.f32 %v9244_v0, %v16335_v28  ;;  %v9310_v63 = vmul.f32 %v9246_v15, %v16342_v10  ;;  %v9253_v24 = vmul.f32 0.044715, %v16380_v3 }
0x1f0f   : > { %v16389_v56 = vmul.f32 %v9302_v8, %v16298_v30  ;;  %v9439_v2 = vadd.f32 %v9375_v60, %v16338_v25  ;;  %v9312_v52 = vmul.f32 %v9248_v42, %v16351_v41  ;;  %v16394_v18 = vadd.f32 %v9001_v14, %v16285_v35  ;;  %v9118_v8 = vpop.f32.mrf.mxu0 }
0x1f10   : > { %v16397_v37 = vmul.f32 %v9304_v11, %v16325_v4  ;;  %v16400_v0 = vmul.f32 %v9306_v16, %v16329_v13  ;;  %v9379_v15 = vmul.f32 %v9315_v17, %v16362_v1  ;;  %v9317_v53 = vmul.f32 %v9253_v24, %v16380_v3 }
0x1f11   : > { %v12810_v23 = vpop.eup %12809  ;;  %12817 = vtanh.f32 %v9499_v38  ;;  %v9441_v60 = vadd.f32 %v9377_v20, %v16345_v44  ;;  %v9314_v42 = vmul.f32 %v9250_v46, %v16359_v33  ;;  %v16407_v14 = vadd.f32 %v9114_v47, %v16287_v29  ;;  %v9009_v47 = vpop.f32.mrf.mxu1 }
0x1f12   : > { %v12812_v5 = vpop.eup %12811  ;;  %v9619_v50 = vadd.f32 1.0, %v12810_v23  ;;  %12819 = vtanh.f32 %v9501_v7  ;;  %v16410_v11 = vmul.f32 %v9308_v31, %v16335_v28  ;;  %v16413_v16 = vmul.f32 %v9310_v63, %v16342_v10  ;;  %v9122_v63 = vpop.f32.mrf.mxu0 }
0x1f13   : > { %v9503_v24 = vmul.f32 0.7978846, %v9439_v2  ;;  %v16416_v39 = vmul.f32 %v9312_v52, %v16351_v41  ;;  %v9252_v38 = vmul.f32 0.044715, %v16394_v18  ;;  %v16420_v20 = vadd.f32 %v9003_v19, %v16274_v54  ;;  %v9011_v12 = vpop.f32.mrf.mxu1 }
0x1f14   : > { %v9621_v46 = vadd.f32 1.0, %v12812_v5  ;;  %v9443_v23 = vadd.f32 %v9379_v15, %v16362_v1  ;;  %v9381_v31 = vmul.f32 %v9317_v53, %v16380_v3  ;;  %v16425_v7 = vadd.f32 %v9116_v6, %v16278_v40 }
0x1f15   : > { %v12814_v17 = vpop.eup %12813  ;;  %v9505_v2 = vmul.f32 0.7978846, %v9441_v60  ;;  %v16428_v52 = vmul.f32 %v9314_v42, %v16359_v33  ;;  %v9254_v36 = vmul.f32 0.044715, %v16407_v14  ;;  %v9255_v19 = vmul.f32 0.044715, %v16420_v20 }
0x1f16   : > { %v12816_v55 = vpop.eup %12815  ;;  %v16433_v57 = vmul.f32 %v9619_v50, %v16301_v34  ;;  %v9623_v5 = vadd.f32 1.0, %v12814_v17  ;;  %v9257_v15 = vmul.f32 0.044715, %v16425_v7  ;;  %v16437_v53 = vadd.f32 %v9005_v51, %v16285_v35  ;;  %v9124_v17 = vpop.f32.mrf.mxu0 }
0x1f17   : > { %12821 = vtanh.f32 %v9503_v24  ;;  %v9316_v6 = vmul.f32 %v9252_v38, %v16394_v18  ;;  %v9319_v60 = vmul.f32 %v9255_v19, %v16420_v20  ;;  %v16442_v42 = vadd.f32 %v9009_v47, %v16274_v54 }
0x1f18   : > { %v9625_v61 = vadd.f32 1.0, %v12816_v55  ;;  %v9507_v32 = vmul.f32 0.7978846, %v9443_v23  ;;  %v9445_v50 = vadd.f32 %v9381_v31, %v16380_v3  ;;  %v9321_v34 = vmul.f32 %v9257_v15, %v16425_v7 }
0x1f19   : > { %17365 = vst [vmem:[#allocation99_spill] sm:$0xff] %v16442_v42  ;;  %v9318_v9 = vmul.f32 %v9254_v36, %v16407_v14  ;;  %v9383_v51 = vmul.f32 %v9319_v60, %v16420_v20  ;;  %v9259_v24 = vmul.f32 0.044715, %v16442_v42  ;;  %v16450_v38 = vadd.f32 %v9122_v63, %v16278_v40  ;;  %v9013_v63 = vpop.f32.mrf.mxu1 }
0x1f1a   : > { %v16453_v47 = vmul.f32 %v9621_v46, %v16303_v59  ;;  %v16456_v55 = vmul.f32 %v9623_v5, %v16322_v62  ;;  %v9256_v23 = vmul.f32 0.044715, %v16437_v53  ;;  %v16460_v31 = vadd.f32 %v9118_v8, %v16287_v29  ;;  %v9126_v46 = vpop.f32.mrf.mxu0 }
0x1f1b   : > { %17366 = vst [vmem:[#allocation23_spill] sm:$0xff] %v16450_v38  ;;  %12823 = vtanh.f32 %v9505_v2  ;;  %v9385_v36 = vmul.f32 %v9321_v34, %v16425_v7  ;;  %v9323_v19 = vmul.f32 %v9259_v24, %v16442_v42  ;;  %v9261_v15 = vmul.f32 0.044715, %v16450_v38  ;;  %v9015_v49 = vpop.f32.mrf.mxu1 }
0x1f1c   : > { %v16466_v60 = vmul.f32 %v9625_v61, %v16369_v26  ;;  %12825 = vtanh.f32 %v9507_v32  ;;  %v9509_v59 = vmul.f32 0.7978846, %v9445_v50  ;;  %v16469_v62 = vmul.f32 %v9316_v6, %v16394_v18 }
0x1f1d   : > { %v16472_v8 = vmul.f32 %v9318_v9, %v16407_v14  ;;  %v9447_v2 = vadd.f32 %v9383_v51, %v16420_v20  ;;  %v9387_v5 = vmul.f32 %v9323_v19, %v16442_v42  ;;  %v9325_v34 = vmul.f32 %v9261_v15, %v16450_v38 }
0x1f1e   : > { %v16477_v24 = vpop.eup %12817  ;;  %v9320_v32 = vmul.f32 %v9256_v23, %v16437_v53  ;;  %v9258_v26 = vmul.f32 0.044715, %v16460_v31  ;;  %v16484_v6 = vadd.f32 %v9013_v63, %v16274_v54  ;;  %v9449_v50 = vadd.f32 %v9385_v36, %v16425_v7  ;;  %v9128_v54 = vpop.f32.mrf.mxu0 }
0x1f1f   : > { %v16486_v9 = vpop.eup %12819  ;;  %v9389_v51 = vmul.f32 %v9325_v34, %v16450_v38  ;;  %v16491_v19 = vadd.f32 %v9011_v12, %v16285_v35  ;;  %v16494_v15 = vadd.f32 %v9126_v46, %v16278_v40  ;;  %12827 = vtanh.f32 %v9509_v59 }
0x1f20   : > { %v16499_v61 = vadd.f32 %v9124_v17, %v16287_v29  ;;  %v9263_v63 = vmul.f32 0.044715, %v16484_v6  ;;  %v9511_v43 = vmul.f32 0.7978846, %v9447_v2  ;;  %v9451_v36 = vadd.f32 %v9387_v5, %v16442_v42 }
0x1f21   : > { %v9453_v34 = vadd.f32 %v9389_v51, %v16450_v38  ;;  %v9265_v12 = vmul.f32 0.044715, %v16494_v15  ;;  %v16506_v46 = vmul.f32 %v9320_v32, %v16437_v53  ;;  %v9322_v23 = vmul.f32 %v9258_v26, %v16460_v31 }
0x1f22   : > { %v9327_v59 = vmul.f32 %v9263_v63, %v16484_v6  ;;  %v9428_v17 = vadd.f32 %v16375_v45, %v16294_v22  ;;  %v9513_v40 = vmul.f32 0.7978846, %v9449_v50  ;;  %v9260_v2 = vmul.f32 0.044715, %v16491_v19 }
0x1f23   : > { %v9329_v5 = vmul.f32 %v9265_v12, %v16494_v15  ;;  %v16515_v51 = vadd.f32 %v9015_v49, %v16285_v35  ;;  %v16519_v32 = vadd.f32 %v9128_v54, %v16287_v29  ;;  %v9432_v26 = vadd.f32 %v16397_v37, %v16325_v4 }
0x1f24   : > { %v12822_v38 = vpop.eup %12821  ;;  %v9391_v42 = vmul.f32 %v9327_v59, %v16484_v6  ;;  %v9492_v63 = vmul.f32 0.7978846, %v9428_v17  ;;  %12829 = vtanh.f32 %v9511_v43  ;;  %v9515_v22 = vmul.f32 0.7978846, %v9451_v36 }
0x1f25   : > { %v9517_v45 = vmul.f32 0.7978846, %v9453_v34  ;;  %v9262_v50 = vmul.f32 0.044715, %v16499_v61  ;;  %v9393_v49 = vmul.f32 %v9329_v5, %v16494_v15  ;;  %v9496_v35 = vmul.f32 0.7978846, %v9432_v26 }
0x1f26   : > { %v9455_v12 = vadd.f32 %v9391_v42, %v16484_v6  ;;  %12831 = vtanh.f32 %v9492_v63  ;;  %v9264_v59 = vmul.f32 0.044715, %v16515_v51  ;;  %v9430_v54 = vadd.f32 %v16389_v56, %v16298_v30 }
0x1f27   : > { %12833 = vtanh.f32 %v9513_v40  ;;  %v9434_v37 = vadd.f32 %v16400_v0, %v16329_v13  ;;  %v9324_v36 = vmul.f32 %v9260_v2, %v16491_v19  ;;  %v9266_v17 = vmul.f32 0.044715, %v16519_v32 }
0x1f28   : > { %v12824_v43 = vpop.eup %12823  ;;  %v9519_v34 = vmul.f32 0.7978846, %v9455_v12  ;;  %12835 = vtanh.f32 %v9496_v35  ;;  %v9494_v5 = vmul.f32 0.7978846, %v9430_v54  ;;  %v9436_v26 = vadd.f32 %v16410_v11, %v16335_v28 }
0x1f29   : > { %v16533_v42 = vpop.eup %12825  ;;  %12837 = vtanh.f32 %v9515_v22  ;;  %v9498_v40 = vmul.f32 0.7978846, %v9434_v37  ;;  %v9326_v30 = vmul.f32 %v9262_v50, %v16499_v61  ;;  %v9457_v56 = vadd.f32 %v9393_v49, %v16494_v15 }
0x1f2a   : > { %12839 = vtanh.f32 %v9517_v45  ;;  %v9440_v0 = vadd.f32 %v16416_v39, %v16351_v41  ;;  %v9328_v2 = vmul.f32 %v9264_v59, %v16515_v51  ;;  %v9500_v35 = vmul.f32 0.7978846, %v9436_v26 }
0x1f2b   : > { %12841 = vtanh.f32 %v9519_v34  ;;  %v9438_v63 = vadd.f32 %v16413_v16, %v16342_v10  ;;  %v9330_v22 = vmul.f32 %v9266_v17, %v16519_v32  ;;  %v9442_v11 = vadd.f32 %v16428_v52, %v16359_v33 }
0x1f2c   : > { %12843 = vtanh.f32 %v9494_v5  ;;  %v9504_v12 = vmul.f32 0.7978846, %v9440_v0  ;;  %v16547_v45 = vpop.eup %12827  ;;  %v9386_v50 = vmul.f32 %v9322_v23, %v16460_v31  ;;  %v16551_v39 = vmul.f32 %v9324_v36, %v16491_v19 }
0x1f2d   : > { %12845 = vtanh.f32 %v9498_v40  ;;  %v9502_v49 = vmul.f32 0.7978846, %v9438_v63  ;;  %v16554_v59 = vmul.f32 %v9326_v30, %v16499_v61  ;;  %v9521_v16 = vmul.f32 0.7978846, %v9457_v56 }
0x1f2e   : > { %12847 = vtanh.f32 %v9500_v35  ;;  %v9506_v54 = vmul.f32 0.7978846, %v9442_v11  ;;  %v9392_v37 = vmul.f32 %v9328_v2, %v16515_v51  ;;  %v9176_v34 = vmul.f32 0.5, %v16325_v4 }
0x1f2f   : > { %v16559_v52 = vmul.f32 0.5, %v16329_v13  ;;  %12849 = vtanh.f32 %v9504_v12  ;;  %v16562_v23 = vmul.f32 %v9330_v22, %v16519_v32  ;;  %v16565_v36 = vmul.f32 0.5, %v16335_v28 }
0x1f30   : > { %12851 = vtanh.f32 %v9502_v49  ;;  %v9631_v17 = vadd.f32 1.0, %v12822_v38  ;;  %v16568_v5 = vmul.f32 0.5, %v16351_v41  ;;  %v16571_v40 = vmul.f32 0.5, %v16342_v10 }
0x1f31   : > { %12853 = vtanh.f32 %v9506_v54  ;;  %v9444_v4 = vadd.f32 %v16469_v62, %v16394_v18  ;;  %v12830_v13 = vpop.eup %12829  ;;  %v9179_v26 = vmul.f32 0.5, %v16307_v21  ;;  %v9183_v30 = vmul.f32 0.5, %v16338_v25 }
0x1f32   : > { %12855 = vtanh.f32 %v9521_v16  ;;  %v9448_v28 = vadd.f32 %v16506_v46, %v16437_v53  ;;  %v9627_v41 = vadd.f32 1.0, %v16477_v24  ;;  %v9446_v10 = vadd.f32 %v16472_v8, %v16407_v14 }
0x1f33   : > { %v12832_v38 = vpop.eup %12831  ;;  %v9508_v56 = vmul.f32 0.7978846, %v9444_v4  ;;  %v9450_v0 = vadd.f32 %v9386_v50, %v16460_v31  ;;  %v16583_v35 = vmul.f32 %v9631_v17, %v9183_v30  ;;  %v9629_v21 = vadd.f32 1.0, %v16486_v9 }
0x1f34   : > { %v12834_v2 = vpop.eup %12833  ;;  %v9620_v62 = vadd.f32 1.0, %v12832_v38  ;;  %v9512_v63 = vmul.f32 0.7978846, %v9448_v28  ;;  %v9633_v22 = vadd.f32 1.0, %v12824_v43  ;;  %v9510_v46 = vmul.f32 0.7978846, %v9446_v10 }
0x1f35   : > { %v12836_v25 = vpop.eup %12835  ;;  %12857 = vtanh.f32 %v9508_v56  ;;  %v9514_v12 = vmul.f32 0.7978846, %v9450_v0  ;;  %v9186_v49 = vmul.f32 0.5, %v16359_v33  ;;  %v9181_v8 = vmul.f32 0.5, %v16310_v58 }
0x1f36   : > { %v16586_v11 = vpop.eup %12837  ;;  %v9624_v24 = vadd.f32 1.0, %v12836_v25  ;;  %12859 = vtanh.f32 %v9512_v63  ;;  %v16592_v16 = vmul.f32 %v9627_v41, %v9179_v26  ;;  %v9185_v9 = vmul.f32 0.5, %v16345_v44 }
0x1f37   : > { %v16590_v50 = vpop.eup %12839  ;;  %v16596_v54 = vmul.f32 0.5, %v16394_v18  ;;  %12861 = vtanh.f32 %v9510_v46  ;;  %v9684_v17 = vmul.f32 %v9620_v62, %v16315_v27  ;;  %v16601_v30 = vmul.f32 %v9629_v21, %v9181_v8 }
0x1f38   : > { %v16598_v43 = vpop.eup %12841  ;;  %v9688_v4 = vmul.f32 %v9624_v24, %v9176_v34  ;;  %12863 = vtanh.f32 %v9514_v12  ;;  %v9751_v33 = vpack.c.bf16 %v16583_v35, %v16592_v16  ;;  %v16605_v26 = vmul.f32 %v9633_v22, %v9185_v9  ;;  %v17369_v16 = vld [vmem:[#allocation46_spill] sm:$0xff] }
0x1f39   : > { %v12844_v58 = vpop.eup %12843  ;;  %v16608_v44 = vmul.f32 0.5, %v16437_v53  ;;  %v16611_v18 = vmul.f32 0.5, %v16407_v14  ;;  %v16614_v27 = vmul.f32 0.5, %v16460_v31  ;;  %v9452_v34 = vadd.f32 %v16551_v39, %v16491_v19 }
0x1f3a   : > { %v12846_v28 = vpop.eup %12845  ;;  %v9748_v38 = vpack.c.bf16 %v9688_v4, %v9684_v17  ;;  %v9622_v41 = vadd.f32 1.0, %v12844_v58  ;;  %v9187_v0 = vmul.f32 0.5, %v16362_v1  ;;  %v9191_v62 = vmul.f32 0.5, %v16420_v20 }
0x1f3b   : > { %v12848_v56 = vpop.eup %12847  ;;  %v9626_v10 = vadd.f32 1.0, %v12846_v28  ;;  %v9456_v53 = vadd.f32 %v9392_v37, %v16515_v51  ;;  %v9635_v31 = vadd.f32 1.0, %v16533_v42  ;;  %v9639_v22 = vadd.f32 1.0, %v12830_v13 }
0x1f3c   : > { %v12850_v63 = vpop.eup %12849  ;;  %10074 = vmatprep.mubr.bf16.mxu1 %v9748_v38  ;;  %v9628_v25 = vadd.f32 1.0, %v12848_v56  ;;  %v9516_v46 = vmul.f32 0.7978846, %v9452_v34  ;;  %v9686_v12 = vmul.f32 %v9622_v41, %v16320_v48  ;;  %v17367_v20 = vpack.c.bf16 %v16456_v55, %v16433_v57 }
0x1f3d   : > { %v12852_v39 = vpop.eup %12851  ;;  %v9690_v1 = vmul.f32 %v9626_v10, %v16559_v52  ;;  %v9632_v37 = vadd.f32 1.0, %v12850_v63  ;;  %v9520_v24 = vmul.f32 0.7978846, %v9456_v53  ;;  %v9641_v4 = vadd.f32 1.0, %v12834_v2 }
0x1f3e   : > { %v16621_v21 = vpop.f32.mrf.mxu1  ;;  %v16623_v14 = vpop.f32.mrf.mxu0  ;;  %10075 = vmatmul.mubr.bf16.vlgmr.msra.gmra.mxu1 %v17367_v20  ;;  %v9692_v9 = vmul.f32 %v9628_v25, %v16565_v36  ;;  %v9630_v17 = vadd.f32 1.0, %v12852_v39  ;;  %12865 = vtanh.f32 %v9516_v46  ;;  %v9193_v57 = vmul.f32 0.5, %v16425_v7 }
0x1f3f   : > { %v12854_v8 = vpop.eup %12853  ;;  %v9750_v58 = vpack.c.bf16 %v9690_v1, %v9686_v12  ;;  %v9696_v48 = vmul.f32 %v9632_v37, %v16568_v5  ;;  %12867 = vtanh.f32 %v9520_v24  ;;  %v9637_v55 = vadd.f32 1.0, %v16547_v45  ;;  %v17370_v37 = vld [vmem:[#allocation59_spill] sm:$0xff] }
0x1f40   : > { %v9021_v42 = vpop.f32.mrf.mxu1  ;;  %v16632_v13 = vpop.eup %12855  ;;  %v9634_v28 = vadd.f32 1.0, %v12854_v8  ;;  %v9454_v36 = vadd.f32 %v16554_v59, %v16499_v61  ;;  %v9458_v2 = vadd.f32 %v16562_v23, %v16519_v32  ;;  %v9694_v41 = vmul.f32 %v9630_v17, %v16571_v40 }
0x1f41   : > { %v16635_v52 = vpop.f32.mrf.mxu0  ;;  %10171 = vmatprep.mubr.bf16.mxu0 %v9750_v58  ;;  %v9752_v38 = vpack.c.bf16 %v9696_v48, %v9692_v9  ;;  %v16644_v5 = vmul.f32 %v9639_v22, %v9191_v62  ;;  %v17368_v10 = vpack.c.bf16 %v16466_v60, %v16453_v47  ;;  %v9753_v7 = vpack.c.bf16 %v16605_v26, %v16601_v30  ;;  %v17371_v9 = vld [vmem:[#allocation70_spill] sm:$0xff] }
0x1f42   : > { %v9698_v34 = vmul.f32 %v9634_v28, %v9186_v49  ;;  %v12858_v56 = vpop.eup %12857  ;;  %v9189_v45 = vmul.f32 0.5, %v16380_v3  ;;  %v9518_v59 = vmul.f32 0.7978846, %v9454_v36  ;;  %v9522_v53 = vmul.f32 0.7978846, %v9458_v2  ;;  %v9023_v23 = vpop.f32.mrf.mxu1  ;;  %v17373_v36 = vld [vmem:[#allocation23_spill] sm:$0xff] }
0x1f43   : > { %10172 = vmatmul.mubr.bf16.vlgmr.msra.gmra.mxu0 %v17368_v10  ;;  %v12860_v63 = vpop.eup %12859  ;;  %10082 = vmatprep.mubr.bf16.mxu1 %v9752_v38  ;;  %v9636_v40 = vadd.f32 1.0, %v12858_v56  ;;  %v9699_v49 = vmul.f32 %v9635_v31, %v9187_v0  ;;  %v16652_v62 = vmul.f32 %v9641_v4, %v9193_v57  ;;  %v9136_v22 = vpop.f32.mrf.mxu0  ;;  %v9196_v47 = vmul.f32 0.5, %v16491_v19  ;;  %v17372_v4 = vld [vmem:[#allocation99_spill] sm:$0xff] }
0x1f44   : > { %v9754_v25 = vpack.c.bf16 %v9698_v34, %v9694_v41  ;;  %v12862_v46 = vpop.eup %12861  ;;  %v9640_v39 = vadd.f32 1.0, %v12860_v63  ;;  %v9200_v60 = vmul.f32 0.5, %v16515_v51  ;;  %12869 = vtanh.f32 %v9518_v59  ;;  %v9025_v1 = vpop.f32.mrf.mxu1 }
0x1f45   : > { %v12864_v30 = vpop.eup %12863  ;;  %v9638_v3 = vadd.f32 1.0, %v12862_v46  ;;  %v9755_v26 = vpack.c.bf16 %v16644_v5, %v9699_v49  ;;  %v16660_v0 = vmul.f32 %v9637_v55, %v9189_v45  ;;  %12871 = vtanh.f32 %v9522_v53 }
0x1f46   : > { %10179 = vmatprep.mubr.bf16.mxu0 %v9754_v25  ;;  %10083 = vmatmul.mubr.bf16.gmra.mxu1 %v9751_v33  ;;  %v9700_v31 = vmul.f32 %v9636_v40, %v16596_v54  ;;  %v9704_v12 = vmul.f32 %v9640_v39, %v16608_v44  ;;  %v9642_v19 = vadd.f32 1.0, %v12864_v30  ;;  %v16665_v51 = vmul.f32 0.5, %v16499_v61  ;;  %v9138_v44 = vpop.f32.mrf.mxu0 }
0x1f47   : > { %v9757_v20 = vpack.c.bf16 %v16652_v62, %v16660_v0  ;;  %v16670_v35 = vmul.f32 0.5, %v16519_v32  ;;  %v16674_v33 = vadd.f32 %v16621_v21, %v17369_v16  ;;  %v16678_v54 = vadd.f32 %v16623_v14, %v17370_v37 }
0x1f48   : > { %v9756_v24 = vpack.c.bf16 %v9704_v12, %v9700_v31  ;;  %v9702_v61 = vmul.f32 %v9638_v3, %v16611_v18  ;;  %v9706_v8 = vmul.f32 %v9642_v19, %v16614_v27  ;;  %v16683_v17 = vadd.f32 %v9021_v42, %v17371_v9  ;;  %v9029_v42 = vpop.f32.mrf.mxu1  ;;  %v9142_v34 = vpop.f32.mrf.mxu0 }
0x1f49   : > { %v9195_v32 = vmul.f32 0.5, %v17372_v4  ;;  %v9267_v58 = vmul.f32 0.044715, %v16674_v33  ;;  %v9269_v21 = vmul.f32 0.044715, %v16678_v54  ;;  %v16689_v48 = vadd.f32 %v9023_v23, %v17369_v16 }
0x1f4a   : > { %10090 = vmatprep.mubr.bf16.mxu1 %v9756_v24  ;;  %v9758_v14 = vpack.c.bf16 %v9706_v8, %v9702_v61  ;;  %v9199_v28 = vmul.f32 0.5, %v16484_v6  ;;  %v9643_v18 = vadd.f32 1.0, %v16586_v11  ;;  %v16694_v27 = vadd.f32 %v9136_v22, %v17370_v37  ;;  %v9031_v25 = vpop.f32.mrf.mxu1  ;;  %v9144_v22 = vpop.f32.mrf.mxu0 }
0x1f4b   : > { %10180 = vmatmul.mubr.bf16.gmra.mxu0 %v9753_v7  ;;  %v12866_v57 = vpop.eup %12865  ;;  %v9647_v55 = vadd.f32 1.0, %v16598_v43  ;;  %v9197_v2 = vmul.f32 0.5, %v17373_v36  ;;  %v9331_v38 = vmul.f32 %v9267_v58, %v16674_v33  ;;  %v9271_v41 = vmul.f32 0.044715, %v16689_v48 }
0x1f4c   : > { %v12868_v5 = vpop.eup %12867  ;;  %10187 = vmatprep.mubr.bf16.mxu0 %v9758_v14  ;;  %v9644_v56 = vadd.f32 1.0, %v12866_v57  ;;  %v9649_v6 = vadd.f32 1.0, %v16632_v13  ;;  %v9268_v11 = vmul.f32 0.044715, %v16683_v17  ;;  %v16704_v10 = vadd.f32 %v16635_v52, %v16287_v29  ;;  %v9033_v24 = vpop.f32.mrf.mxu1 }
0x1f4d   : > { %v9648_v43 = vadd.f32 1.0, %v12868_v5  ;;  %v9645_v7 = vadd.f32 1.0, %v16590_v50  ;;  %v9333_v45 = vmul.f32 %v9269_v21, %v16678_v54  ;;  %v9273_v59 = vmul.f32 0.044715, %v16694_v27  ;;  %v9146_v58 = vpop.f32.mrf.mxu0 }
0x1f4e   : > { %10091 = vmatmul.mubr.bf16.gmra.mxu1 %v9755_v26  ;;  %v9707_v53 = vmul.f32 %v9643_v18, %v9195_v32  ;;  %v9201_v23 = vmul.f32 0.5, %v16494_v15  ;;  %v9395_v63 = vmul.f32 %v9331_v38, %v16674_v33  ;;  %v9335_v13 = vmul.f32 %v9271_v41, %v16689_v48  ;;  %v9035_v38 = vpop.f32.mrf.mxu1 }
0x1f4f   : > { %v9708_v40 = vmul.f32 %v9644_v56, %v9196_v47  ;;  %v9712_v49 = vmul.f32 %v9648_v43, %v9200_v60  ;;  %v9711_v52 = vmul.f32 %v9647_v55, %v9199_v28  ;;  %v16713_v62 = vadd.f32 %v9025_v1, %v17371_v9  ;;  %v9148_v56 = vpop.f32.mrf.mxu0 }
0x1f50   : > { %v9713_v50 = vmul.f32 %v9649_v6, %v9201_v23  ;;  %v9332_v46 = vmul.f32 %v9268_v11, %v16683_v17  ;;  %v9270_v39 = vmul.f32 0.044715, %v16704_v10  ;;  %v16718_v30 = vadd.f32 %v9029_v42, %v17369_v16 }
0x1f51   : > { %v12870_v15 = vpop.eup %12869  ;;  %v9760_v3 = vpack.c.bf16 %v9712_v49, %v9708_v40  ;;  %v9709_v26 = vmul.f32 %v9645_v7, %v9197_v2  ;;  %v9397_v0 = vmul.f32 %v9333_v45, %v16678_v54  ;;  %v9337_v47 = vmul.f32 %v9273_v59, %v16694_v27 }
0x1f52   : > { %v12872_v60 = vpop.eup %12871  ;;  %v9646_v31 = vadd.f32 1.0, %v12870_v15  ;;  %v9459_v12 = vadd.f32 %v9395_v63, %v16674_v33  ;;  %v9399_v19 = vmul.f32 %v9335_v13, %v16689_v48  ;;  %v16725_v1 = vadd.f32 %v9138_v44, %v16287_v29 }
0x1f53   : > { %10188 = vmatmul.mubr.bf16.gmra.mxu0 %v9757_v20  ;;  %10098 = vmatprep.mubr.bf16.mxu1 %v9760_v3  ;;  %v9650_v61 = vadd.f32 1.0, %v12872_v60  ;;  %v9759_v8 = vpack.c.bf16 %v9711_v52, %v9707_v53  ;;  %v9272_v4 = vmul.f32 0.044715, %v16713_v62  ;;  %v9275_v32 = vmul.f32 0.044715, %v16718_v30 }
0x1f54   : > { %v9761_v21 = vpack.c.bf16 %v9713_v50, %v9709_v26  ;;  %v9396_v20 = vmul.f32 %v9332_v46, %v16683_v17  ;;  %v9334_v14 = vmul.f32 %v9270_v39, %v16704_v10  ;;  %v9710_v28 = vmul.f32 %v9646_v31, %v16665_v51 }
0x1f55   : > { %v9714_v18 = vmul.f32 %v9650_v61, %v16670_v35  ;;  %v9461_v44 = vadd.f32 %v9397_v0, %v16678_v54  ;;  %v9401_v42 = vmul.f32 %v9337_v47, %v16694_v27  ;;  %v9523_v57 = vmul.f32 0.7978846, %v9459_v12 }
0x1f56   : > { %10099 = vmatmul.mubr.bf16.gmra.mxu1 %v9759_v8  ;;  %v9463_v55 = vadd.f32 %v9399_v19, %v16689_v48  ;;  %v9274_v36 = vmul.f32 0.044715, %v16725_v1  ;;  %v16738_v2 = vadd.f32 %v9142_v34, %v17370_v37  ;;  %v9336_v5 = vmul.f32 %v9272_v4, %v16713_v62 }
0x1f57   : > { %v9762_v41 = vpack.c.bf16 %v9714_v18, %v9710_v28  ;;  %v9339_v51 = vmul.f32 %v9275_v32, %v16718_v30  ;;  %v16743_v35 = vadd.f32 %v9033_v24, %v17369_v16  ;;  %v16747_v11 = vadd.f32 %v9031_v25, %v17371_v9 }
0x1f58   : > { %v9277_v6 = vmul.f32 0.044715, %v16738_v2  ;;  %v16750_v43 = vadd.f32 %v9144_v22, %v16287_v29  ;;  %v16753_v34 = vadd.f32 %v9146_v58, %v17370_v37  ;;  %v9525_v7 = vmul.f32 0.7978846, %v9461_v44 }
0x1f59   : > { %10195 = vmatprep.mubr.bf16.mxu0 %v9762_v41  ;;  %v9465_v45 = vadd.f32 %v9401_v42, %v16694_v27  ;;  %v9279_v59 = vmul.f32 0.044715, %v16743_v35  ;;  %v16758_v53 = vadd.f32 %v9035_v38, %v17371_v9  ;;  %12873 = vtanh.f32 %v9523_v57 }
0x1f5a   : > { %v9338_v23 = vmul.f32 %v9274_v36, %v16725_v1  ;;  %v9281_v63 = vmul.f32 0.044715, %v16753_v34  ;;  %v16763_v13 = vadd.f32 %v9148_v56, %v16287_v29  ;;  %v9527_v25 = vmul.f32 0.7978846, %v9463_v55 }
0x1f5b   : > { %10196 = vmatmul.mubr.bf16.gmra.mxu0 %v9761_v21  ;;  %v9400_v40 = vmul.f32 %v9336_v5, %v16713_v62  ;;  %v9341_v49 = vmul.f32 %v9277_v6, %v16738_v2  ;;  %v9343_v52 = vmul.f32 %v9279_v59, %v16743_v35  ;;  %v9403_v22 = vmul.f32 %v9339_v51, %v16718_v30 }
0x1f5c   : > { %v9276_v50 = vmul.f32 0.044715, %v16747_v11  ;;  %v9278_v46 = vmul.f32 0.044715, %v16750_v43  ;;  %v9345_v39 = vmul.f32 %v9281_v63, %v16753_v34  ;;  %12875 = vtanh.f32 %v9525_v7 }
0x1f5d   : > { %v9398_v15 = vmul.f32 %v9334_v14, %v16704_v10  ;;  %v9407_v3 = vmul.f32 %v9343_v52, %v16743_v35  ;;  %v9280_v26 = vmul.f32 0.044715, %v16758_v53  ;;  %v9529_v0 = vmul.f32 0.7978846, %v9465_v45 }
0x1f5e   : > { %v9402_v47 = vmul.f32 %v9338_v23, %v16725_v1  ;;  %v9409_v60 = vmul.f32 %v9345_v39, %v16753_v34  ;;  %v9282_v31 = vmul.f32 0.044715, %v16763_v13  ;;  %12877 = vtanh.f32 %v9527_v25 }
0x1f5f   : > { %v9405_v12 = vmul.f32 %v9341_v49, %v16738_v2  ;;  %v9471_v19 = vadd.f32 %v9407_v3, %v16743_v35  ;;  %v9460_v24 = vadd.f32 %v9396_v20, %v16683_v17  ;;  %v9467_v61 = vadd.f32 %v9403_v22, %v16718_v30 }
0x1f60   : > { %v9340_v8 = vmul.f32 %v9276_v50, %v16747_v11  ;;  %v9342_v4 = vmul.f32 %v9278_v46, %v16750_v43  ;;  %v9464_v32 = vadd.f32 %v9400_v40, %v16713_v62  ;;  %v9344_v21 = vmul.f32 %v9280_v26, %v16758_v53 }
0x1f61   : > { %v9535_v58 = vmul.f32 0.7978846, %v9471_v19  ;;  %v9524_v14 = vmul.f32 0.7978846, %v9460_v24  ;;  %v9462_v28 = vadd.f32 %v9398_v15, %v16704_v10  ;;  %v9473_v18 = vadd.f32 %v9409_v60, %v16753_v34 }
0x1f62   : > { %v9346_v44 = vmul.f32 %v9282_v31, %v16763_v13  ;;  %v9528_v42 = vmul.f32 0.7978846, %v9464_v32  ;;  %v9466_v20 = vadd.f32 %v9402_v47, %v16725_v1  ;;  %12879 = vtanh.f32 %v9529_v0 }
0x1f63   : > { %v9469_v57 = vadd.f32 %v9405_v12, %v16738_v2  ;;  %v9526_v55 = vmul.f32 0.7978846, %v9462_v28  ;;  %v9404_v36 = vmul.f32 %v9340_v8, %v16747_v11  ;;  %12881 = vtanh.f32 %v9535_v58 }
0x1f64   : > { %v9530_v38 = vmul.f32 0.7978846, %v9466_v20  ;;  %v9531_v41 = vmul.f32 0.7978846, %v9467_v61  ;;  %v9406_v5 = vmul.f32 %v9342_v4, %v16750_v43  ;;  %v9408_v51 = vmul.f32 %v9344_v21, %v16758_v53 }
0x1f65   : > { %12883 = vtanh.f32 %v9524_v14  ;;  %v9537_v56 = vmul.f32 0.7978846, %v9473_v18  ;;  %v9410_v6 = vmul.f32 %v9346_v44, %v16763_v13  ;;  %v9533_v45 = vmul.f32 0.7978846, %v9469_v57 }
0x1f66   : > { %12885 = vtanh.f32 %v9528_v42  ;;  %v12874_v7 = vpop.eup %12873  ;;  %v9468_v59 = vadd.f32 %v9404_v36, %v16747_v11  ;;  %v9472_v23 = vadd.f32 %v9408_v51, %v16758_v53  ;;  %v9470_v63 = vadd.f32 %v9406_v5, %v16750_v43 }
0x1f67   : > { %12887 = vtanh.f32 %v9526_v55  ;;  %v9474_v49 = vadd.f32 %v9410_v6, %v16763_v13  ;;  %v9204_v0 = vmul.f32 0.5, %v16683_v17  ;;  %v9208_v47 = vmul.f32 0.5, %v16713_v62 }
0x1f68   : > { %12889 = vtanh.f32 %v9530_v38  ;;  %v9532_v40 = vmul.f32 0.7978846, %v9468_v59  ;;  %v9536_v52 = vmul.f32 0.7978846, %v9472_v23  ;;  %v9534_v22 = vmul.f32 0.7978846, %v9470_v63 }
0x1f69   : > { %12891 = vtanh.f32 %v9531_v41  ;;  %v12876_v25 = vpop.eup %12875  ;;  %v9538_v46 = vmul.f32 0.7978846, %v9474_v49  ;;  %v9651_v60 = vadd.f32 1.0, %v12874_v7  ;;  %v9207_v19 = vmul.f32 0.5, %v16689_v48 }
0x1f6a   : > { %12893 = vtanh.f32 %v9537_v56  ;;  %v9653_v24 = vadd.f32 1.0, %v12876_v25  ;;  %v9206_v32 = vmul.f32 0.5, %v16704_v10  ;;  %v9210_v58 = vmul.f32 0.5, %v16725_v1 }
0x1f6b   : > { %12895 = vtanh.f32 %v9533_v45  ;;  %v12878_v50 = vpop.eup %12877  ;;  %v9203_v21 = vmul.f32 0.5, %v16674_v33  ;;  %v9205_v62 = vmul.f32 0.5, %v16678_v54  ;;  %v9209_v18 = vmul.f32 0.5, %v16694_v27 }
0x1f6c   : > { %12897 = vtanh.f32 %v9532_v40  ;;  %v9655_v3 = vadd.f32 1.0, %v12878_v50  ;;  %v9212_v10 = vmul.f32 0.5, %v16747_v11  ;;  %v9216_v1 = vmul.f32 0.5, %v16758_v53 }
0x1f6d   : > { %12899 = vtanh.f32 %v9536_v52  ;;  %v9715_v57 = vmul.f32 %v9651_v60, %v9203_v21  ;;  %v9717_v36 = vmul.f32 %v9653_v24, %v9205_v62  ;;  %v9214_v27 = vmul.f32 0.5, %v16750_v43 }
0x1f6e   : > { %12901 = vtanh.f32 %v9534_v22  ;;  %v9719_v17 = vmul.f32 %v9655_v3, %v9207_v19  ;;  %v9218_v7 = vmul.f32 0.5, %v16763_v13  ;;  %v9215_v45 = vmul.f32 0.5, %v16743_v35 }
0x1f6f   : > { %12903 = vtanh.f32 %v9538_v46  ;;  %v12880_v39 = vpop.eup %12879  ;;  %v9211_v52 = vmul.f32 0.5, %v16718_v30  ;;  %v9217_v22 = vmul.f32 0.5, %v16753_v34  ;;  %v9213_v34 = vmul.f32 0.5, %v16738_v2 }
0x1f70   : > { %v12882_v15 = vpop.eup %12881  ;;  %v9657_v61 = vadd.f32 1.0, %v12880_v39  ;;  %v9763_v6 = vpack.c.bf16 %v9719_v17, %v9715_v57 }
0x1f71   : > { %v9663_v56 = vadd.f32 1.0, %v12882_v15 }
0x1f72   : > { %v12884_v26 = vpop.eup %12883  ;;  %v9721_v38 = vmul.f32 %v9657_v61, %v9209_v18 }
0x1f73   : > { %v12886_v31 = vpop.eup %12885  ;;  %v9652_v12 = vadd.f32 1.0, %v12884_v26  ;;  %v9727_v46 = vmul.f32 %v9663_v56, %v9215_v45 }
0x1f74   : > { %v12888_v8 = vpop.eup %12887  ;;  %v9656_v4 = vadd.f32 1.0, %v12886_v31  ;;  %v9765_v40 = vpack.c.bf16 %v9721_v38, %v9717_v36 }
0x1f75   : > { %v12890_v14 = vpop.eup %12889  ;;  %v9654_v28 = vadd.f32 1.0, %v12888_v8  ;;  %v9716_v42 = vmul.f32 %v9652_v12, %v9204_v0 }
0x1f76   : > { %v12892_v44 = vpop.eup %12891  ;;  %v9720_v48 = vmul.f32 %v9656_v4, %v9208_v47  ;;  %v9658_v20 = vadd.f32 1.0, %v12890_v14 }
0x1f77   : > { %v12894_v55 = vpop.eup %12893  ;;  %v9718_v5 = vmul.f32 %v9654_v28, %v9206_v32  ;;  %v9659_v11 = vadd.f32 1.0, %v12892_v44 }
0x1f78   : > { %v12896_v33 = vpop.eup %12895  ;;  %v9764_v41 = vpack.c.bf16 %v9720_v48, %v9716_v42  ;;  %v9722_v51 = vmul.f32 %v9658_v20, %v9210_v58  ;;  %v9665_v25 = vadd.f32 1.0, %v12894_v55 }
0x1f79   : > { %v12898_v54 = vpop.eup %12897  ;;  %v9661_v35 = vadd.f32 1.0, %v12896_v33  ;;  %v9723_v60 = vmul.f32 %v9659_v11, %v9211_v52 }
0x1f7a   : > { %v12900_v59 = vpop.eup %12899  ;;  %10106 = vmatprep.mubr.bf16.mxu1 %v9764_v41  ;;  %v9766_v23 = vpack.c.bf16 %v9722_v51, %v9718_v5  ;;  %v9660_v63 = vadd.f32 1.0, %v12898_v54  ;;  %v9729_v31 = vmul.f32 %v9665_v25, %v9217_v22 }
0x1f7b   : > { %v12902_v53 = vpop.eup %12901  ;;  %10107 = vmatmul.mubr.bf16.gmra.mxu1 %v9763_v6  ;;  %v9664_v49 = vadd.f32 1.0, %v12900_v59  ;;  %v9767_v32 = vpack.c.bf16 %v9727_v46, %v9723_v60  ;;  %v9725_v58 = vmul.f32 %v9661_v35, %v9213_v34 }
0x1f7c   : > { %v12904_v50 = vpop.eup %12903  ;;  %10203 = vmatprep.mubr.bf16.mxu0 %v9766_v23  ;;  %v9724_v43 = vmul.f32 %v9660_v63, %v9212_v10  ;;  %v9662_v13 = vadd.f32 1.0, %v12902_v53 }
0x1f7d   : > { %10204 = vmatmul.mubr.bf16.gmra.mxu0 %v9765_v40  ;;  %v9728_v3 = vmul.f32 %v9664_v49, %v9216_v1  ;;  %v9666_v26 = vadd.f32 1.0, %v12904_v50  ;;  %v9769_v36 = vpack.c.bf16 %v9729_v31, %v9725_v58 }
0x1f7e   : > { %v9726_v30 = vmul.f32 %v9662_v13, %v9214_v27 }
0x1f7f   : > { %v9039_v39 = vpop.f32.mrf.mxu1  ;;  %v9152_v15 = vpop.f32.mrf.mxu0  ;;  %v9768_v24 = vpack.c.bf16 %v9728_v3, %v9724_v43  ;;  %v9730_v61 = vmul.f32 %v9666_v26, %v9218_v7 }
0x1f80   : > { %v16815_v0 = vadd.f32 %v9039_v39, %v17369_v16  ;;  %v16818_v47 = vadd.f32 %v9152_v15, %v17370_v37 }
0x1f81   : > { %v9041_v12 = vpop.f32.mrf.mxu1  ;;  %v9154_v19 = vpop.f32.mrf.mxu0  ;;  %10114 = vmatprep.mubr.bf16.mxu1 %v9768_v24  ;;  %v9770_v2 = vpack.c.bf16 %v9730_v61, %v9726_v30 }
0x1f82   : > { %v9283_v8 = vmul.f32 0.044715, %v16815_v0  ;;  %v9285_v4 = vmul.f32 0.044715, %v16818_v47  ;;  %v16824_v21 = vadd.f32 %v9041_v12, %v17371_v9  ;;  %v16827_v14 = vadd.f32 %v9154_v19, %v16287_v29 }
0x1f83   : > { %v9043_v28 = vpop.f32.mrf.mxu1  ;;  %v9156_v17 = vpop.f32.mrf.mxu0  ;;  %10211 = vmatprep.mubr.bf16.mxu0 %v9770_v2  ;;  %10115 = vmatmul.mubr.bf16.gmra.mxu1 %v9767_v32 }
0x1f84   : > { %v9347_v62 = vmul.f32 %v9283_v8, %v16815_v0  ;;  %v9349_v18 = vmul.f32 %v9285_v4, %v16818_v47  ;;  %v16832_v44 = vadd.f32 %v9043_v28, %v17369_v16  ;;  %v9284_v42 = vmul.f32 0.044715, %v16824_v21 }
0x1f85   : > { %v9286_v48 = vmul.f32 0.044715, %v16827_v14  ;;  %v16837_v20 = vadd.f32 %v9156_v17, %v17370_v37  ;;  %v9045_v57 = vpop.f32.mrf.mxu1  ;;  %v9158_v55 = vpop.f32.mrf.mxu0  ;;  %10212 = vmatmul.mubr.bf16.gmra.mxu0 %v9769_v36 }
0x1f86   : > { %v9411_v38 = vmul.f32 %v9347_v62, %v16815_v0  ;;  %v9287_v10 = vmul.f32 0.044715, %v16832_v44  ;;  %v16842_v1 = vadd.f32 %v9045_v57, %v17371_v9  ;;  %v9413_v33 = vmul.f32 %v9349_v18, %v16818_v47 }
0x1f87   : > { %v9289_v41 = vmul.f32 0.044715, %v16837_v20  ;;  %v9049_v5 = vpop.f32.mrf.mxu1  ;;  %v9162_v51 = vpop.f32.mrf.mxu0  ;;  %v16849_v6 = vadd.f32 %v9158_v55, %v16287_v29  ;;  %v9348_v27 = vmul.f32 %v9284_v42, %v16824_v21  ;;  %v9350_v7 = vmul.f32 %v9286_v48, %v16827_v14 }
0x1f88   : > { %v9351_v56 = vmul.f32 %v9287_v10, %v16832_v44  ;;  %v9288_v54 = vmul.f32 0.044715, %v16842_v1  ;;  %v9475_v63 = vadd.f32 %v9411_v38, %v16815_v0  ;;  %v9477_v11 = vadd.f32 %v9413_v33, %v16818_v47 }
0x1f89   : > { %v9353_v45 = vmul.f32 %v9289_v41, %v16837_v20  ;;  %v9051_v59 = vpop.f32.mrf.mxu1  ;;  %v9164_v23 = vpop.f32.mrf.mxu0  ;;  %v16857_v25 = vadd.f32 %v9049_v5, %v17369_v16  ;;  %v16860_v53 = vadd.f32 %v9162_v51, %v17370_v37  ;;  %v9290_v22 = vmul.f32 0.044715, %v16849_v6 }
0x1f8a   : > { %v9415_v49 = vmul.f32 %v9351_v56, %v16832_v44  ;;  %v9352_v52 = vmul.f32 %v9288_v54, %v16842_v1  ;;  %v9412_v43 = vmul.f32 %v9348_v27, %v16824_v21  ;;  %v9414_v13 = vmul.f32 %v9350_v7, %v16827_v14 }
0x1f8b   : > { %v9053_v40 = vpop.f32.mrf.mxu1  ;;  %v9166_v50 = vpop.f32.mrf.mxu0  ;;  %v9417_v46 = vmul.f32 %v9353_v45, %v16837_v20  ;;  %v9291_v35 = vmul.f32 0.044715, %v16857_v25  ;;  %v9539_v39 = vmul.f32 0.7978846, %v9475_v63  ;;  %v9293_v15 = vmul.f32 0.044715, %v16860_v53 }
0x1f8c   : > { %v16871_v3 = vadd.f32 %v9051_v59, %v17371_v9  ;;  %v16874_v26 = vadd.f32 %v9164_v23, %v16287_v29  ;;  %v9541_v30 = vmul.f32 0.7978846, %v9477_v11  ;;  %v16878_v34 = vadd.f32 %v9053_v40, %v17369_v16 }
0x1f8d   : > { %v9355_v60 = vmul.f32 %v9291_v35, %v16857_v25  ;;  %v16881_v31 = vadd.f32 %v9166_v50, %v17370_v37  ;;  %v9055_v12 = vpop.f32.mrf.mxu1  ;;  %v9479_v19 = vadd.f32 %v9415_v49, %v16832_v44  ;;  %v9416_v24 = vmul.f32 %v9352_v52, %v16842_v1  ;;  %v9168_v4 = vpop.f32.mrf.mxu0 }
0x1f8e   : > { %v9354_v61 = vmul.f32 %v9290_v22, %v16849_v6  ;;  %v9357_v8 = vmul.f32 %v9293_v15, %v16860_v53  ;;  %v9481_v32 = vadd.f32 %v9417_v46, %v16837_v20  ;;  %v9295_v16 = vmul.f32 0.044715, %v16878_v34 }
0x1f8f   : > { %v9419_v58 = vmul.f32 %v9355_v60, %v16857_v25  ;;  %v9297_v28 = vmul.f32 0.044715, %v16881_v31  ;;  %v9292_v17 = vmul.f32 0.044715, %v16871_v3  ;;  %v9294_v2 = vmul.f32 0.044715, %v16874_v26 }
0x1f90   : > { %v9421_v37 = vmul.f32 %v9357_v8, %v16860_v53  ;;  %v16895_v62 = vadd.f32 %v9055_v12, %v17371_v9  ;;  %v9359_v42 = vmul.f32 %v9295_v16, %v16878_v34  ;;  %v16901_v57 = vadd.f32 %v9168_v4, %v16287_v29 }
0x1f91   : > { %v9483_v18 = vadd.f32 %v9419_v58, %v16857_v25  ;;  %v9361_v48 = vmul.f32 %v9297_v28, %v16881_v31  ;;  %12905 = vtanh.f32 %v9539_v39  ;;  %v9543_v55 = vmul.f32 0.7978846, %v9479_v19 }
0x1f92   : > { %v9485_v36 = vadd.f32 %v9421_v37, %v16860_v53  ;;  %v9296_v38 = vmul.f32 0.044715, %v16895_v62  ;;  %v9545_v10 = vmul.f32 0.7978846, %v9481_v32  ;;  %v9423_v33 = vmul.f32 %v9359_v42, %v16878_v34 }
0x1f93   : > { %v9425_v9 = vmul.f32 %v9361_v48, %v16881_v31  ;;  %v9298_v41 = vmul.f32 0.044715, %v16901_v57  ;;  %v9418_v5 = vmul.f32 %v9354_v61, %v16849_v6  ;;  %v9356_v51 = vmul.f32 %v9292_v17, %v16871_v3 }
0x1f94   : > { %v9476_v29 = vadd.f32 %v9412_v43, %v16824_v21  ;;  %v9480_v56 = vadd.f32 %v9416_v24, %v16842_v1  ;;  %12907 = vtanh.f32 %v9541_v30  ;;  %v9547_v54 = vmul.f32 0.7978846, %v9483_v18 }
0x1f95   : > { %v9358_v27 = vmul.f32 %v9294_v2, %v16874_v26  ;;  %v9360_v7 = vmul.f32 %v9296_v38, %v16895_v62  ;;  %12909 = vtanh.f32 %v9543_v55  ;;  %v9549_v45 = vmul.f32 0.7978846, %v9485_v36 }
0x1f96   : > { %v9487_v59 = vadd.f32 %v9423_v33, %v16878_v34  ;;  %v9540_v23 = vmul.f32 0.7978846, %v9476_v29  ;;  %12911 = vtanh.f32 %v9545_v10  ;;  %v9489_v63 = vadd.f32 %v9425_v9, %v16881_v31 }
0x1f97   : > { %v9362_v11 = vmul.f32 %v9298_v41, %v16901_v57  ;;  %v9544_v40 = vmul.f32 0.7978846, %v9480_v56  ;;  %v9420_v49 = vmul.f32 %v9356_v51, %v16871_v3  ;;  %v9478_v52 = vadd.f32 %v9414_v13, %v16827_v14 }
0x1f98   : > { %12913 = vtanh.f32 %v9540_v23  ;;  %v9482_v22 = vadd.f32 %v9418_v5, %v16849_v6  ;;  %v9422_v50 = vmul.f32 %v9358_v27, %v16874_v26  ;;  %v9424_v43 = vmul.f32 %v9360_v7, %v16895_v62 }
0x1f99   : > { %12915 = vtanh.f32 %v9547_v54  ;;  %v9551_v46 = vmul.f32 0.7978846, %v9487_v59  ;;  %v9542_v35 = vmul.f32 0.7978846, %v9478_v52  ;;  %v9553_v15 = vmul.f32 0.7978846, %v9489_v63 }
0x1f9a   : > { %12917 = vtanh.f32 %v9549_v45  ;;  %v9546_v39 = vmul.f32 0.7978846, %v9482_v22  ;;  %v9426_v30 = vmul.f32 %v9362_v11, %v16901_v57  ;;  %v9484_v60 = vadd.f32 %v9420_v49, %v16871_v3 }
0x1f9b   : > { %12919 = vtanh.f32 %v9544_v40  ;;  %v9488_v13 = vadd.f32 %v9424_v43, %v16895_v62  ;;  %v9486_v19 = vadd.f32 %v9422_v50, %v16874_v26  ;;  %v9219_v55 = vmul.f32 0.5, %v16815_v0 }
0x1f9c   : > { %12921 = vtanh.f32 %v9542_v35  ;;  %v9548_v12 = vmul.f32 0.7978846, %v9484_v60  ;;  %v9490_v8 = vadd.f32 %v9426_v30, %v16901_v57  ;;  %v9223_v36 = vmul.f32 0.5, %v16832_v44 }
0x1f9d   : > { %12923 = vtanh.f32 %v9546_v39  ;;  %v9552_v61 = vmul.f32 0.7978846, %v9488_v13  ;;  %v9550_v4 = vmul.f32 0.7978846, %v9486_v19  ;;  %v9220_v9 = vmul.f32 0.5, %v16824_v21 }
0x1f9e   : > { %12925 = vtanh.f32 %v9551_v46  ;;  %v12906_v24 = vpop.eup %12905  ;;  %v9554_v32 = vmul.f32 0.7978846, %v9490_v8  ;;  %v9224_v41 = vmul.f32 0.5, %v16842_v1  ;;  %v9222_v51 = vmul.f32 0.5, %v16827_v14 }
0x1f9f   : > { %12927 = vtanh.f32 %v9553_v15  ;;  %v9667_v38 = vadd.f32 1.0, %v12906_v24  ;;  %v9225_v27 = vmul.f32 0.5, %v16837_v20  ;;  %v9226_v44 = vmul.f32 0.5, %v16849_v6 }
0x1fa0   : > { %12929 = vtanh.f32 %v9548_v12  ;;  %v9221_v21 = vmul.f32 0.5, %v16818_v47  ;;  %v9228_v40 = vmul.f32 0.5, %v16871_v3  ;;  %v9232_v20 = vmul.f32 0.5, %v16895_v62 }
0x1fa1   : > { %12931 = vtanh.f32 %v9552_v61  ;;  %v12908_v58 = vpop.eup %12907  ;;  %v9731_v11 = vmul.f32 %v9667_v38, %v9219_v55  ;;  %v9230_v47 = vmul.f32 0.5, %v16874_v26  ;;  %v9231_v60 = vmul.f32 0.5, %v16878_v34 }
0x1fa2   : > { %12933 = vtanh.f32 %v9550_v4  ;;  %v12910_v16 = vpop.eup %12909  ;;  %v9669_v7 = vadd.f32 1.0, %v12908_v58  ;;  %v9234_v8 = vmul.f32 0.5, %v16901_v57  ;;  %v9233_v26 = vmul.f32 0.5, %v16881_v31  ;;  %v16946_v31 = vld [vmem:[%s17062_s12] ss:$0 sm:$0xff] }
0x1fa3   : > { %12935 = vtanh.f32 %v9554_v32  ;;  %v12912_v28 = vpop.eup %12911  ;;  %v9671_v2 = vadd.f32 1.0, %v12910_v16  ;;  %v9227_v32 = vmul.f32 0.5, %v16857_v25 }
0x1fa4   : > { %v9673_v10 = vadd.f32 1.0, %v12912_v28  ;;  %v9733_v46 = vmul.f32 %v9669_v7, %v9221_v21 }
0x1fa5   : > { %v12914_v37 = vpop.eup %12913  ;;  %v9735_v54 = vmul.f32 %v9671_v2, %v9223_v36 }
0x1fa6   : > { %v12916_v17 = vpop.eup %12915  ;;  %v9668_v42 = vadd.f32 1.0, %v12914_v37  ;;  %v9737_v1 = vmul.f32 %v9673_v10, %v9225_v27 }
0x1fa7   : > { %v12918_v18 = vpop.eup %12917  ;;  %v9771_v43 = vpack.c.bf16 %v9735_v54, %v9731_v11  ;;  %v9675_v19 = vadd.f32 1.0, %v12916_v17  ;;  %v9229_v17 = vmul.f32 0.5, %v16860_v53 }
0x1fa8   : > { %v12920_v48 = vpop.eup %12919  ;;  %v9732_v0 = vmul.f32 %v9668_v42, %v9220_v9  ;;  %v9773_v13 = vpack.c.bf16 %v9737_v1, %v9733_v46  ;;  %v9677_v16 = vadd.f32 1.0, %v12918_v18 }
0x1fa9   : > { %v12922_v33 = vpop.eup %12921  ;;  %v9672_v5 = vadd.f32 1.0, %v12920_v48  ;;  %v9739_v2 = vmul.f32 %v9675_v19, %v9227_v32 }
0x1faa   : > { %v12924_v29 = vpop.eup %12923  ;;  %v9670_v56 = vadd.f32 1.0, %v12922_v33  ;;  %v9741_v36 = vmul.f32 %v9677_v16, %v9229_v17  ;;  %v17378_v17 = vld [vmem:[#allocation26_spill] sm:$0xff] }
0x1fab   : > { %v12926_v45 = vpop.eup %12925  ;;  %v9736_v59 = vmul.f32 %v9672_v5, %v9224_v41  ;;  %v9674_v23 = vadd.f32 1.0, %v12924_v29 }
0x1fac   : > { %v12928_v63 = vpop.eup %12927  ;;  %v9734_v52 = vmul.f32 %v9670_v56, %v9222_v51  ;;  %v9679_v39 = vadd.f32 1.0, %v12926_v45 }
0x1fad   : > { %v12930_v14 = vpop.eup %12929  ;;  %v9772_v49 = vpack.c.bf16 %v9736_v59, %v9732_v0  ;;  %v9738_v22 = vmul.f32 %v9674_v23, %v9226_v44  ;;  %v9681_v24 = vadd.f32 1.0, %v12928_v63  ;;  %v17374_v59 = vld [vmem:[#allocation31_spill] sm:$0xff] }
0x1fae   : > { %v12932_v50 = vpop.eup %12931  ;;  %v9676_v35 = vadd.f32 1.0, %v12930_v14  ;;  %v9743_v58 = vmul.f32 %v9679_v39, %v9231_v60 }
0x1faf   : > { %v12934_v6 = vpop.eup %12933  ;;  %10122 = vmatprep.mubr.bf16.mxu1 %v9772_v49  ;;  %v9774_v15 = vpack.c.bf16 %v9738_v22, %v9734_v52  ;;  %v9680_v30 = vadd.f32 1.0, %v12932_v50  ;;  %v9745_v42 = vmul.f32 %v9681_v24, %v9233_v26  ;;  %v17375_v52 = vld [vmem:[#allocation32_spill] sm:$0xff] }
0x1fb0   : > { %v12936_v3 = vpop.eup %12935  ;;  %10123 = vmatmul.mubr.bf16.gmra.mxu1 %v9771_v43  ;;  %v9678_v12 = vadd.f32 1.0, %v12934_v6  ;;  %v9740_v62 = vmul.f32 %v9676_v35, %v9228_v40  ;;  %v9775_v55 = vpack.c.bf16 %v9743_v58, %v9739_v2 }
0x1fb1   : > { %10219 = vmatprep.mubr.bf16.mxu0 %v9774_v15  ;;  %v9744_v61 = vmul.f32 %v9680_v30, %v9232_v20  ;;  %v9682_v4 = vadd.f32 1.0, %v12936_v3  ;;  %v9777_v57 = vpack.c.bf16 %v9745_v42, %v9741_v36  ;;  %v17376_v30 = vld [vmem:[#allocation34_spill] sm:$0xff] }
0x1fb2   : > { %10220 = vmatmul.mubr.bf16.gmra.mxu0 %v9773_v13  ;;  %v9742_v28 = vmul.f32 %v9678_v12, %v9230_v47 }
0x1fb3   : > { %v9776_v34 = vpack.c.bf16 %v9744_v61, %v9740_v62  ;;  %v9746_v37 = vmul.f32 %v9682_v4, %v9234_v8  ;;  %v17377_v8 = vld [vmem:[#allocation24_spill] sm:$0xff] }
0x1fb5   : > { %10130 = vmatprep.mubr.bf16.mxu1 %v9776_v34  ;;  %v9778_v48 = vpack.c.bf16 %v9746_v37, %v9742_v28 }
0x1fb7   : > { %10227 = vmatprep.mubr.bf16.mxu0 %v9778_v48 }
0x1fb8   : > { %10131 = vmatmul.mubr.bf16.gmra.mxu1 %v9775_v55 }
0x1fba   : > { %10228 = vmatmul.mubr.bf16.gmra.mxu0 %v9777_v57 }
0x1ffe   : > { %v11046_v25 = vpop.f32.mrf.mxu1 }
0x2000   : > { %v11047_v38 = vpop.f32.mrf.mxu1 }
0x2001   : > { %v11048_v18 = vadd.f32 %v11047_v38, %v11046_v25 }
0x2002   : > { %v11049_v10 = vpop.f32.mrf.mxu1 }
0x2003   : > { %v11110_v33 = vpop.f32.mrf.mxu0  ;;  %v10077_v53 = vadd.f32 %v11048_v18, %v16946_v31 }
0x2004   : > { %v11050_v9 = vpop.f32.mrf.mxu1 }
0x2005   : > { %v11111_v41 = vpop.f32.mrf.mxu0  ;;  %v11051_v5 = vadd.f32 %v11050_v9, %v11049_v10 }
0x2006   : > { %v11112_v51 = vadd.f32 %v11111_v41, %v11110_v33  ;;  %v11052_v29 = vpop.f32.mrf.mxu1  ;;  %v17379_v33 = vld [vmem:[#allocation40_spill] sm:$0xff] }
0x2007   : > { %v11113_v56 = vpop.f32.mrf.mxu0  ;;  %v10080_v27 = vadd.f32 %v11051_v5, %v16946_v31 }
0x2008   : > { %v10174_v54 = vadd.f32 %v11112_v51, %v10077_v53  ;;  %v11053_v7 = vpop.f32.mrf.mxu1 }
0x2009   : > { %v11114_v45 = vpop.f32.mrf.mxu0  ;;  %v11054_v0 = vadd.f32 %v11053_v7, %v11052_v29 }
0x200a   : > { %v10236_v44 = vadd.f32 %v10174_v54, %v17374_v59  ;;  %v11115_v23 = vadd.f32 %v11114_v45, %v11113_v56  ;;  %v11055_v63 = vpop.f32.mrf.mxu1  ;;  %v17380_v56 = vld [vmem:[#allocation25_spill] sm:$0xff] }
0x200b   : > { %v11116_v11 = vpop.f32.mrf.mxu0  ;;  %v10085_v1 = vadd.f32 %v11054_v0, %v16946_v31  ;;  %v17381_v45 = vld [vmem:[#allocation41_spill] sm:$0xff] }
0x200c   : > { %10252 = vst [vmem:[%s16953_s9] sm:$0xff] %v10236_v44  ;;  %v10177_v21 = vadd.f32 %v11115_v23, %v10080_v27  ;;  %v11056_v40 = vpop.f32.mrf.mxu1 }
0x200d   : > { %v11117_v14 = vpop.f32.mrf.mxu0  ;;  %v11057_v49 = vadd.f32 %v11056_v40, %v11055_v63 }
0x200e   : > { %v10237_v22 = vadd.f32 %v10177_v21, %v17375_v52  ;;  %v11118_v20 = vadd.f32 %v11117_v14, %v11116_v11  ;;  %v11058_v50 = vpop.f32.mrf.mxu1 }
0x200f   : > { %v11119_v43 = vpop.f32.mrf.mxu0  ;;  %v10088_v35 = vadd.f32 %v11057_v49, %v16946_v31 }
0x2010   : > { %10253 = vst [vmem:[%s16953_s9 + $0x8] sm:$0xff] %v10237_v22  ;;  %v10182_v46 = vadd.f32 %v11118_v20, %v10085_v1  ;;  %v11059_v39 = vpop.f32.mrf.mxu1 }
0x2011   : > { %v11120_v6 = vpop.f32.mrf.mxu0  ;;  %v11060_v15 = vadd.f32 %v11059_v39, %v11058_v50 }
0x2012   : > { %v10238_v47 = vadd.f32 %v10182_v46, %v17376_v30  ;;  %v11121_v60 = vadd.f32 %v11120_v6, %v11119_v43  ;;  %v11061_v3 = vpop.f32.mrf.mxu1  ;;  %v17382_v43 = vld [vmem:[#allocation53_spill] sm:$0xff] }
0x2013   : > { %v11122_v13 = vpop.f32.mrf.mxu0  ;;  %v10093_v19 = vadd.f32 %v11060_v15, %v16946_v31 }
0x2014   : > { %10254 = vst [vmem:[%s16953_s9 + $0x10] sm:$0xff] %v10238_v47  ;;  %v10185_v12 = vadd.f32 %v11121_v60, %v10088_v35  ;;  %v11062_v24 = vpop.f32.mrf.mxu1 }
0x2015   : > { %v11123_v62 = vpop.f32.mrf.mxu0  ;;  %v11063_v61 = vadd.f32 %v11062_v24, %v11061_v3 }
0x2016   : > { %v10239_v4 = vadd.f32 %v10185_v12, %v17377_v8  ;;  %v11124_v32 = vadd.f32 %v11123_v62, %v11122_v13  ;;  %v11064_v58 = vpop.f32.mrf.mxu1  ;;  %v17383_v13 = vld [vmem:[#allocation54_spill] sm:$0xff] }
0x2017   : > { %v11125_v26 = vpop.f32.mrf.mxu0  ;;  %v10096_v34 = vadd.f32 %v11063_v61, %v16946_v31 }
0x2018   : > { %10255 = vst [vmem:[%s16953_s9 + $0x18] sm:$0xff] %v10239_v4  ;;  %v10190_v16 = vadd.f32 %v11124_v32, %v10093_v19  ;;  %v11065_v28 = vpop.f32.mrf.mxu1 }
0x2019   : > { %v11126_v37 = vpop.f32.mrf.mxu0  ;;  %v11066_v2 = vadd.f32 %v11065_v28, %v11064_v58  ;;  %v17384_v58 = vld [vmem:[#allocation52_spill] sm:$0xff] }
0x201a   : > { %v10240_v42 = vadd.f32 %v10190_v16, %v17378_v17  ;;  %v11127_v48 = vadd.f32 %v11126_v37, %v11125_v26  ;;  %v11067_v55 = vpop.f32.mrf.mxu1  ;;  %v17385_v37 = vld [vmem:[#allocation65_spill] sm:$0xff] }
0x201b   : > { %v11128_v36 = vpop.f32.mrf.mxu0  ;;  %v10101_v25 = vadd.f32 %v11066_v2, %v16946_v31 }
0x201c   : > { %10256 = vst [vmem:[%s16953_s9 + $0x20] sm:$0xff] %v10240_v42  ;;  %v10193_v57 = vadd.f32 %v11127_v48, %v10096_v34  ;;  %v11068_v38 = vpop.f32.mrf.mxu1 }
0x201d   : > { %v11129_v18 = vpop.f32.mrf.mxu0  ;;  %v11069_v10 = vadd.f32 %v11068_v38, %v11067_v55 }
0x201e   : > { %v10241_v53 = vadd.f32 %v10193_v57, %v17379_v33  ;;  %v11130_v9 = vadd.f32 %v11129_v18, %v11128_v36 }
0x201f   : > { %v11131_v41 = vpop.f32.mrf.mxu0  ;;  %v10104_v51 = vadd.f32 %v11069_v10, %v16946_v31 }
0x2020   : > { %10257 = vst [vmem:[%s16953_s9 + $0x28] sm:$0xff] %v10241_v53  ;;  %v10198_v5 = vadd.f32 %v11130_v9, %v10101_v25 }
0x2021   : > { %v11132_v29 = vpop.f32.mrf.mxu0 }
0x2022   : > { %v10242_v54 = vadd.f32 %v10198_v5, %v17380_v56  ;;  %v11133_v27 = vadd.f32 %v11132_v29, %v11131_v41  ;;  %v17386_v5 = vld [vmem:[#allocation77_spill] sm:$0xff] }
0x2024   : > { %10258 = vst [vmem:[%s16953_s9 + $0x30] sm:$0xff] %v10242_v54  ;;  %v10201_v7 = vadd.f32 %v11133_v27, %v10104_v51 }
0x2026   : > { %v10243_v0 = vadd.f32 %v10201_v7, %v17381_v45 }
0x2028   : > { %10259 = vst [vmem:[%s16953_s9 + $0x38] sm:$0xff] %v10243_v0 }
0x203b   : > { %v11070_v59 = vpop.f32.mrf.mxu1 }
0x203d   : > { %v11134_v44 = vpop.f32.mrf.mxu0  ;;  %v11071_v23 = vpop.f32.mrf.mxu1 }
0x203e   : > { %v11072_v63 = vadd.f32 %v11071_v23, %v11070_v59 }
0x203f   : > { %v11135_v11 = vpop.f32.mrf.mxu0  ;;  %v11073_v21 = vpop.f32.mrf.mxu1 }
0x2040   : > { %v10109_v1 = vadd.f32 %v11072_v63, %v16946_v31  ;;  %v11136_v40 = vadd.f32 %v11135_v11, %v11134_v44  ;;  %v17387_v44 = vld [vmem:[#allocation78_spill] sm:$0xff] }
0x2041   : > { %v11137_v14 = vpop.f32.mrf.mxu0  ;;  %v11074_v49 = vpop.f32.mrf.mxu1 }
0x2042   : > { %v10206_v52 = vadd.f32 %v11136_v40, %v10109_v1  ;;  %v11075_v22 = vadd.f32 %v11074_v49, %v11073_v21 }
0x2043   : > { %v11138_v20 = vpop.f32.mrf.mxu0  ;;  %v11076_v50 = vpop.f32.mrf.mxu1 }
0x2044   : > { %v10244_v46 = vadd.f32 %v10206_v52, %v17382_v43  ;;  %v10112_v35 = vadd.f32 %v11075_v22, %v16946_v31  ;;  %v11139_v39 = vadd.f32 %v11138_v20, %v11137_v14  ;;  %v17388_v52 = vld [vmem:[#allocation76_spill] sm:$0xff] }
0x2045   : > { %v11140_v6 = vpop.f32.mrf.mxu0  ;;  %v11077_v15 = vpop.f32.mrf.mxu1 }
0x2046   : > { %10260 = vst [vmem:[%s16953_s9 + $0x40] sm:$0xff] %v10244_v46  ;;  %v10209_v30 = vadd.f32 %v11139_v39, %v10112_v35  ;;  %v11078_v47 = vadd.f32 %v11077_v15, %v11076_v50  ;;  %v17389_v46 = vld [vmem:[#allocation33_spill] sm:$0xff] }
0x2047   : > { %v11141_v60 = vpop.f32.mrf.mxu0  ;;  %v11079_v3 = vpop.f32.mrf.mxu1 }
0x2048   : > { %v10245_v12 = vadd.f32 %v10209_v30, %v17383_v13  ;;  %v10117_v19 = vadd.f32 %v11078_v47, %v16946_v31  ;;  %v11142_v24 = vadd.f32 %v11141_v60, %v11140_v6 }
0x2049   : > { %v11143_v62 = vpop.f32.mrf.mxu0  ;;  %v11080_v61 = vpop.f32.mrf.mxu1 }
0x204a   : > { %10261 = vst [vmem:[%s16953_s9 + $0x48] sm:$0xff] %v10245_v12  ;;  %v10214_v8 = vadd.f32 %v11142_v24, %v10117_v19  ;;  %v11081_v4 = vadd.f32 %v11080_v61, %v11079_v3 }
0x204b   : > { %v11144_v32 = vpop.f32.mrf.mxu0 }
0x204c   : > { %v10246_v26 = vadd.f32 %v10214_v8, %v17384_v58  ;;  %v10120_v16 = vadd.f32 %v11081_v4, %v16946_v31  ;;  %v11145_v34 = vadd.f32 %v11144_v32, %v11143_v62 }
0x204e   : > { %10262 = vst [vmem:[%s16953_s9 + $0x50] sm:$0xff] %v10246_v26  ;;  %v10217_v28 = vadd.f32 %v11145_v34, %v10120_v16 }
0x2050   : > { %v10247_v2 = vadd.f32 %v10217_v28, %v17385_v37 }
0x2052   : > { %10263 = vst [vmem:[%s16953_s9 + $0x58] sm:$0xff] %v10247_v2 }
0x2070   : > { %v11082_v17 = vpop.f32.mrf.mxu1 }
0x2072   : > { %v11146_v42 = vpop.f32.mrf.mxu0  ;;  %v11083_v48 = vpop.f32.mrf.mxu1 }
0x2073   : > { %v11084_v55 = vadd.f32 %v11083_v48, %v11082_v17 }
0x2074   : > { %v11147_v36 = vpop.f32.mrf.mxu0  ;;  %v11085_v57 = vpop.f32.mrf.mxu1 }
0x2075   : > { %v10125_v25 = vadd.f32 %v11084_v55, %v16946_v31  ;;  %v11148_v38 = vadd.f32 %v11147_v36, %v11146_v42 }
0x2076   : > { %v11149_v18 = vpop.f32.mrf.mxu0  ;;  %v11086_v10 = vpop.f32.mrf.mxu1 }
0x2077   : > { %v10222_v33 = vadd.f32 %v11148_v38, %v10125_v25  ;;  %v11087_v53 = vadd.f32 %v11086_v10, %v11085_v57 }
0x2078   : > { %v11150_v9 = vpop.f32.mrf.mxu0  ;;  %v11088_v41 = vpop.f32.mrf.mxu1 }
0x2079   : > { %v10248_v51 = vadd.f32 %v10222_v33, %v17386_v5  ;;  %v10128_v29 = vadd.f32 %v11087_v53, %v16946_v31  ;;  %v11151_v56 = vadd.f32 %v11150_v9, %v11149_v18 }
0x207a   : > { %v11152_v54 = vpop.f32.mrf.mxu0  ;;  %v11089_v27 = vpop.f32.mrf.mxu1 }
0x207b   : > { %10264 = vst [vmem:[%s16953_s9 + $0x60] sm:$0xff] %v10248_v51  ;;  %v10225_v7 = vadd.f32 %v11151_v56, %v10128_v29  ;;  %v11090_v45 = vadd.f32 %v11089_v27, %v11088_v41 }
0x207c   : > { %v11153_v0 = vpop.f32.mrf.mxu0  ;;  %v11091_v59 = vpop.f32.mrf.mxu1 }
0x207d   : > { %v10249_v23 = vadd.f32 %v10225_v7, %v17387_v44  ;;  %v10133_v63 = vadd.f32 %v11090_v45, %v16946_v31  ;;  %v11154_v11 = vadd.f32 %v11153_v0, %v11152_v54 }
0x207e   : > { %v11155_v21 = vpop.f32.mrf.mxu0  ;;  %v11092_v1 = vpop.f32.mrf.mxu1 }
0x207f   : > { %10265 = vst [vmem:[%s16953_s9 + $0x68] sm:$0xff] %v10249_v23  ;;  %v10230_v40 = vadd.f32 %v11154_v11, %v10133_v63  ;;  %v11093_v14 = vadd.f32 %v11092_v1, %v11091_v59 }
0x2080   : > { %v11156_v49 = vpop.f32.mrf.mxu0 }
0x2081   : > { %v10250_v22 = vadd.f32 %v10230_v40, %v17388_v52  ;;  %v10136_v20 = vadd.f32 %v11093_v14, %v16946_v31  ;;  %v11157_v50 = vadd.f32 %v11156_v49, %v11155_v21 }
0x2083   : > { %10266 = vst [vmem:[%s16953_s9 + $0x70] sm:$0xff] %v10250_v22  ;;  %v10233_v43 = vadd.f32 %v11157_v50, %v10136_v20 }
0x2085   : > { %v10251_v35 = vadd.f32 %v10233_v43, %v17389_v46 }
0x2087   : > { %10267 = vst [vmem:[%s16953_s9 + $0x78] sm:$0xff] %v10251_v35 }
0x2088   : > { %13150 = shalt.err (!%p13147_p6)
}
0x2089   : > { %s13151_s23 = scalar_lea.hbm %s17003_s17, 2048  ;;  %s13155_s5 = scalar_lea.hbm %s17063_s13, 4096 }
0x208a   : > { %p13152_p4 = scmp.ne.s32.totalorder %s17003_s17, %s13151_s23  ;;  %p13156_p9 = scmp.lt.s32.totalorder %s17003_s17, %s17063_s13 }
0x208b   : > { %p13157_p11 = scmp.lt.s32.totalorder %s13155_s5, %s13151_s23 }
0x208c   : > { %p13153_p1 = pnand %p13152_p4, %p17390_p13 }
0x208d   : > { %p13158_p10 = por %p13157_p11, %p13156_p9 }
0x208e   : > { %p13154_p3 = pneg %p13153_p1 }
0x2090   : > { %p13159_p12 = pnand %p13158_p10, %p13154_p3 }
0x2092   : > { %13162 = shalt.err (!%p13159_p12)
}
0x2093   : > { %s13237_s3 = smov 128   ;;  %s13238_s29 = smov 8  }
0x2094   : > { %12144 = dma.vmem_to_hbm [thread:$0]  (%p17390_p13), %s17005_s15, 2048, %s17003_s17, %s10269_s16, %s13237_s3, %s13237_s3, %s13238_s29  }
0x2095 PF: > { %s10297_s1 = sand.u32 1, %s13201_s25   ;;  %p17391_p0 = scmp.ne.s32.totalorder %s17151_s22, 0 }
0x2096   : > { %p17392_p2 = scmp.ge.s32.totalorder %s13213_s28, 2  ;;  %s10298_s14 = scalar_lea.sflag [#allocation5], %s10297_s1 }
0x2098   : > { %p12170_p5 = pnand %p17392_p2, %p17391_p0 }
0x209a   : > { %p12171_p8 = pneg %p12170_p5 }
0x209c   : > { %13196 = dma.done.wait (%p12171_p8), %s10298_s14, 2048  }
0x209d   : > { %13198 = vsyncadd (%p12171_p8), %s10298_s14, 4294965248  ;;  %s17393_s11 = sld [smem:[#allocation21_spill]]  ;;  %p29_p7 = scmp.ge.s32.totalorder %s13412_s18, 4  }
0x209e   : > { %s17394_s25 = smov %s13205_s26  ;;  %s17395_s26 = smov %s13209_s27 }
0x209f   : > { %s17397_s28 = smov %s13412_s18  ;;  %31 = sbr.rel (!%p29_p7) target bundleno = 15 (0xf), region = 141 }
0x20a3   : > { %s17396_s27 = smov %s17393_s11 }
0x20a4   :  { %10303 = vsyncpa [#allocation4], 1 }
0x20a5   :  { %10305 = vsyncpa [#allocation4 + $0x1], 1 }
0x20a6   :  { %10306 = vsyncpa [#allocation7], 1 }
0x20a7   :  { %10307 = vsyncpa [#allocation10], 1 }
0x20a8   :  { %10308 = vsyncpa [#allocation13], 1 }
0x20a9   :  { %10309 = vsyncpa [#allocation5], 1 }
0x20aa   :  { %10311 = vsyncpa [#allocation5 + $0x1], 1 }

</bundles_post_ra>
